<compile_context>
chip_gen: v6e
topology: v6e:2x2x1
jax: 0.10.0
libtpu: 0.0.40
codegen_flags: <defaults>
</compile_context>

<pallas_src>
import functools
from collections import namedtuple

import jax
import jax.numpy as jnp
from jax import lax
from jax.experimental import pallas as pl
from jax.experimental.pallas import tpu as pltpu


def _round_up(x, m):
    return (x + m - 1) // m * m


# ---------------------------------------------------------------------------
# Kernel 1: one-shot matmul + bias + ReLU (conv1 im2col path).
#   K is collapsed into a single block -> no accumulator scratch, no pl.when.
# ---------------------------------------------------------------------------
def _mm_bias_relu_kernel(a_ref, w_ref, b_ref, o_ref):
    o_ref[...] = jnp.maximum(
        jnp.dot(a_ref[...], w_ref[...], preferred_element_type=jnp.float32)
        + b_ref[...], 0.0).astype(o_ref.dtype)


def matmul_bias_relu(a, w, b, *, tm=256, tn=128):
    """ReLU(a @ w + b) -> bf16.  a:(M,K), w:(K,N), b:(N,).
    Returns (M, Np) with N zero-padded to a 128 multiple (kept for downstream)."""
    M, K = a.shape
    _, N = w.shape
    gm = pl.cdiv(M, tm)
    Mp = gm * tm
    Kp = _round_up(K, 128)
    Np = _round_up(N, tn)
    a_p = jnp.pad(a.astype(jnp.bfloat16), ((0, Mp - M), (0, Kp - K)))
    w_p = jnp.pad(w.astype(jnp.bfloat16), ((0, Kp - K), (0, Np - N)))
    b_p = jnp.pad(b.astype(jnp.float32), (0, Np - N)).reshape(1, Np)

    out = pl.pallas_call(
        _mm_bias_relu_kernel,
        out_shape=jax.ShapeDtypeStruct((Mp, Np), jnp.bfloat16),
        grid=(gm, Np // tn),
        in_specs=[
            pl.BlockSpec((tm, Kp), lambda i, j: (i, 0)),
            pl.BlockSpec((Kp, tn), lambda i, j: (0, j)),
            pl.BlockSpec((1, tn), lambda i, j: (0, j)),
        ],
        out_specs=pl.BlockSpec((tm, tn), lambda i, j: (i, j)),
        compiler_params=pltpu.CompilerParams(
            dimension_semantics=("parallel", "parallel"),
            vmem_limit_bytes=32 * 1024 * 1024,
        ),
        cost_estimate=pl.CostEstimate(
            flops=2 * Mp * Np * Kp,
            transcendentals=0,
            bytes_accessed=a_p.size * 2 + w_p.size * 2 + b_p.size * 4 + Mp * Np * 2,
        ),
    )(a_p, w_p, b_p)
    return out[:M, :]


# ---------------------------------------------------------------------------
# Conv1 path: im2col (plain-JAX glue, tiny: Cin=3) + Kernel 1.
# ---------------------------------------------------------------------------
def _im2col(x, kh, kw, stride, pad):
    # x: (B,H,W,C) -> (B*OH*OW, kh*kw*C), element ordering (kh, kw, cin).
    B, H, W, C = x.shape
    if pad:
        x = jnp.pad(x, ((0, 0), (pad, pad), (pad, pad), (0, 0)))
    Hp, Wp = H + 2 * pad, W + 2 * pad
    OH = (Hp - kh) // stride + 1
    OW = (Wp - kw) // stride + 1
    cols = []
    for i in range(kh):
        for j in range(kw):
            cols.append(lax.slice(
                x, (0, i, j, 0),
                (B, i + (OH - 1) * stride + 1, j + (OW - 1) * stride + 1, C),
                (1, stride, stride, 1)))
    pat = jnp.stack(cols, axis=3)                        # (B, OH, OW, kh*kw, C)
    return pat.reshape(B * OH * OW, kh * kw * C), (B, OH, OW)


def conv2d_relu_strided(x, w, b, *, stride, pad):
    """Strided conv + ReLU (only conv1 uses this; Cin=3 so im2col is cheap)."""
    # TODO(synk): a phase-decomposed in-kernel strided conv could remove this small
    # JAX-side im2col; not worth the complexity for Cin=3.
    Cout, Cin, KH, KW = w.shape
    patches, (B, OH, OW) = _im2col(x.astype(jnp.bfloat16), KH, KW, stride, pad)
    w2 = jnp.transpose(w, (2, 3, 1, 0)).reshape(KH * KW * Cin, Cout)
    out = matmul_bias_relu(patches, w2, b)               # (B*OH*OW, Cout_p) bf16
    return out.reshape(B, OH, OW, out.shape[1])          # keep padded channels


# ---------------------------------------------------------------------------
# Kernel 2: fused stride-1 conv + bias + ReLU with NO im2col in HBM.
#   grid = (B,); weights are grid-invariant (DMA'd once).  The KH sublane-aligned
#   row strips of the flattened padded image are gathered into one (Ly, KH*Cin_p)
#   operand; KW tap matmuls with K = KH*Cin_p accumulate in f32; bias + ReLU fused.
# ---------------------------------------------------------------------------
def _conv_s1_kernel(x_ref, w_ref, b_ref, o_ref, *, kh, kw, wpp, l_out):
    ly = l_out + kw - 1
    # Gather KH aligned row strips -> (ly, kh*cin_p); each strip start i*wpp is a
    # multiple of 8 (sublane aligned) and Cin_p is a 128 multiple (lane aligned).
    strips = [x_ref[0, i * wpp:i * wpp + ly, :] for i in range(kh)]
    y = strips[0] if kh == 1 else jnp.concatenate(strips, axis=-1)
    acc = jnp.dot(y[0:l_out, :], w_ref[0], preferred_element_type=jnp.float32)
    for j in range(1, kw):
        acc = acc + jnp.dot(y[j:j + l_out, :], w_ref[j],
                            preferred_element_type=jnp.float32)
    o_ref[0] = jnp.maximum(acc + b_ref[...], 0.0).astype(o_ref.dtype)


def conv2d_relu_s1(x, w, b, *, pad):
    """Stride-1 conv + ReLU.  x:(B,H,W,Cin_p) bf16 (Cin_p a 128 multiple, trailing
    channels zero), w:(Cout,Cin,KH,KW) f32, b:(Cout,) f32.
    Returns (B,OH,OW,Cout_p) bf16 with Cout_p a 128 multiple (trailing channels 0)."""
    B, H, W, Cin_p = x.shape
    Cout, Cin, KH, KW = w.shape
    assert Cin <= Cin_p and Cin_p % 128 == 0
    Hp, Wp = H + 2 * pad, W + 2 * pad
    OH, OW = Hp - KH + 1, Wp - KW + 1
    Wpp = _round_up(Wp, 8)            # sublane-aligned flattened row stride
    assert KW - 1 <= Wpp              # single extra zero row keeps tap slices in bounds
    L_in = (Hp + 1) * Wpp
    L_out = OH * Wpp                  # "wide" rows; extra columns cropped below
    Cout_p = _round_up(Cout, 128)
    K = KH * Cin_p

    xp = jnp.pad(x.astype(jnp.bfloat16),
                 ((0, 0), (pad, pad + 1), (pad, Wpp - W - pad), (0, 0)))
    x_flat = xp.reshape(B, L_in, Cin_p)

    # Weights: (Cout,Cin,KH,KW) -> (KW, KH*Cin_p, Cout_p), K ordering (kh, cin).
    w2 = jnp.transpose(w, (3, 2, 1, 0))                                  # (KW,KH,Cin,Cout)
    w2 = jnp.pad(w2, ((0, 0), (0, 0), (0, Cin_p - Cin), (0, Cout_p - Cout)))
    w2 = w2.reshape(KW, K, Cout_p).astype(jnp.bfloat16)
    b2 = jnp.pad(b.astype(jnp.float32), (0, Cout_p - Cout)).reshape(1, Cout_p)

    kernel = functools.partial(_conv_s1_kernel, kh=KH, kw=KW, wpp=Wpp, l_out=L_out)
    out_wide = pl.pallas_call(
        kernel,
        out_shape=jax.ShapeDtypeStruct((B, L_out, Cout_p), jnp.bfloat16),
        grid=(B,),
        in_specs=[
            pl.BlockSpec((1, L_in, Cin_p), lambda bb: (bb, 0, 0)),
            pl.BlockSpec((KW, K, Cout_p), lambda bb: (0, 0, 0)),   # invariant: DMA once
            pl.BlockSpec((1, Cout_p), lambda bb: (0, 0)),
        ],
        out_specs=pl.BlockSpec((1, L_out, Cout_p), lambda bb: (bb, 0, 0)),
        compiler_params=pltpu.CompilerParams(
            dimension_semantics=("parallel",),
            vmem_limit_bytes=32 * 1024 * 1024,
        ),
        cost_estimate=pl.CostEstimate(
            flops=2 * B * OH * OW * KW * K * Cout_p,
            transcendentals=0,
            bytes_accessed=(x_flat.size * 2 + w2.size * 2 + b2.size * 4
                            + B * L_out * Cout_p * 2),
        ),
    )(x_flat, w2, b2)

    return out_wide.reshape(B, OH, Wpp, Cout_p)[:, :, :OW, :]


# ---------------------------------------------------------------------------
# Kernel 3: MaxPool 3x3 / stride 2 (floor mode).
#   Single input tensor (one small pad + one transpose make the 4 even/odd phases
#   contiguous); the kernel does the 9-way max with unit-stride static slices.
# ---------------------------------------------------------------------------
def _maxpool3x3s2_kernel(x_ref, o_ref):
    oh, ow = o_ref.shape[1], o_ref.shape[2]
    e = x_ref[0]          # even rows / even cols : (OH+1, OW+1, C)
    f = x_ref[1]          # even rows / odd  cols
    g = x_ref[2]          # odd  rows / even cols
    h = x_ref[3]          # odd  rows / odd  cols
    m = jnp.maximum(e[:oh, :ow, :], e[:oh, 1:ow + 1, :])
    m = jnp.maximum(m, f[:oh, :ow, :])
    m = jnp.maximum(m, g[:oh, :ow, :])
    m = jnp.maximum(m, g[:oh, 1:ow + 1, :])
    m = jnp.maximum(m, h[:oh, :ow, :])
    m = jnp.maximum(m, e[1:oh + 1, :ow, :])
    m = jnp.maximum(m, e[1:oh + 1, 1:ow + 1, :])
    m = jnp.maximum(m, f[1:oh + 1, :ow, :])
    o_ref[0] = m


def maxpool3x3s2(x):
    """MaxPool 3x3 stride 2 (floor).  x:(B,H,W,C), C a 128 multiple.  Lane-dense out."""
    # TODO(synk): could be fused into the following conv kernel's prologue (image is
    # already VMEM-resident there); kept separate for simplicity/robustness.
    B, H, W, C = x.shape
    OH = (H - 3) // 2 + 1
    OW = (W - 3) // 2 + 1
    H2, W2 = 2 * (OH + 1), 2 * (OW + 1)
    xp = jnp.pad(x, ((0, 0), (0, H2 - H), (0, W2 - W), (0, 0)))   # pads are never read
    xr = xp.reshape(B, OH + 1, 2, OW + 1, 2, C)
    xr = jnp.transpose(xr, (0, 2, 4, 1, 3, 5)).reshape(B * 4, OH + 1, OW + 1, C)
    return pl.pallas_call(
        _maxpool3x3s2_kernel,
        out_shape=jax.ShapeDtypeStruct((B, OH, OW, C), x.dtype),
        grid=(B,),
        in_specs=[pl.BlockSpec((4, OH + 1, OW + 1, C), lambda bb: (bb, 0, 0, 0))],
        out_specs=pl.BlockSpec((1, OH, OW, C), lambda bb: (bb, 0, 0, 0)),
        compiler_params=pltpu.CompilerParams(
            dimension_semantics=("parallel",),
            vmem_limit_bytes=32 * 1024 * 1024,
        ),
        cost_estimate=pl.CostEstimate(
            flops=9 * B * OH * OW * C,
            transcendentals=0,
            bytes_accessed=(xr.size + B * OH * OW * C) * x.dtype.itemsize,
        ),
    )(xr)


# ---------------------------------------------------------------------------
# Parameters (deterministic synthetic init; vanilla AlexNet feature shapes)
# ---------------------------------------------------------------------------
def init_params(key):
    specs = [
        ("conv1", 64, 3, 11),
        ("conv2", 192, 64, 5),
        ("conv3", 384, 192, 3),
        ("conv4", 256, 384, 3),
        ("conv5", 256, 256, 3),
    ]
    params = {}
    for name, cout, cin, k in specs:
        key, k1, k2 = jax.random.split(key, 3)
        fan_in = cin * k * k
        scale = 1.0 / (fan_in ** 0.5)
        params[name] = (
            jax.random.uniform(k1, (cout, cin, k, k), jnp.float32, -scale, scale),
            jax.random.uniform(k2, (cout,), jnp.float32, -scale, scale),
        )
    return params


# ---------------------------------------------------------------------------
# Forward pass: slice1..slice5 of vanilla AlexNet features
# ---------------------------------------------------------------------------
AlexnetOutputs = namedtuple("AlexnetOutputs", ["relu1", "relu2", "relu3", "relu4", "relu5"])


def _to_output(h, cout):
    # Crop padded channels, cast to f32, NHWC -> NCHW (user-facing outputs only).
    return jnp.transpose(h[..., :cout].astype(jnp.float32), (0, 3, 1, 2))


def alexnet_forward(params, x_nchw):
    x = jnp.transpose(x_nchw, (0, 2, 3, 1))  # NCHW -> NHWC

    # slice1: Conv(3->64, k=11, s=4, p=2) + ReLU
    h = conv2d_relu_strided(x, *params["conv1"], stride=4, pad=2)   # (..., 128) bf16
    r1 = _to_output(h, 64)
    # slice2: MaxPool(3,2) + Conv(64->192, k=5, p=2) + ReLU
    h = maxpool3x3s2(h)
    h = conv2d_relu_s1(h, *params["conv2"], pad=2)                  # (..., 256) bf16
    r2 = _to_output(h, 192)
    # slice3: MaxPool(3,2) + Conv(192->384, k=3, p=1) + ReLU
    h = maxpool3x3s2(h)
    h = conv2d_relu_s1(h, *params["conv3"], pad=1)                  # (..., 384) bf16
    r3 = _to_output(h, 384)
    # slice4: Conv(384->256, k=3, p=1) + ReLU
    h = conv2d_relu_s1(h, *params["conv4"], pad=1)                  # (..., 256) bf16
    r4 = _to_output(h, 256)
    # slice5: Conv(256->256, k=3, p=1) + ReLU
    h = conv2d_relu_s1(h, *params["conv5"], pad=1)                  # (..., 256) bf16
    r5 = _to_output(h, 256)

    return AlexnetOutputs(r1, r2, r3, r4, r5)


if __name__ == "__main__":
    key = jax.random.PRNGKey(0)
    kp, kx = jax.random.split(key)
    params = init_params(kp)
    # Small input: B=2, C=3, 64x64 (large enough to survive stride-4 conv + 2 pools).
    x = jax.random.normal(kx, (2, 3, 64, 64), dtype=jnp.float32)

    fwd = jax.jit(alexnet_forward)
    out = fwd(params, x)
    jax.block_until_ready(out)

    # Sanity checks on output shapes (same as PyTorch vanilla AlexNet slices).
    assert out.relu1.shape == (2, 64, 15, 15)
    assert out.relu2.shape == (2, 192, 7, 7)
    assert out.relu3.shape == (2, 384, 3, 3)
    assert out.relu4.shape == (2, 256, 3, 3)
    assert out.relu5.shape == (2, 256, 3, 3)

    print("KERNEL_OK")
</pallas_src>

<mosaic_0001>
module attributes {stable_mosaic.version = 11 : i64} {
  func.func @_mm_bias_relu_kernel(%arg0: i32, %arg1: i32, %arg2: memref<256x384xbf16, #tpu.memory_space<vmem>>, %arg3: memref<384x128xbf16, #tpu.memory_space<vmem>>, %arg4: memref<1x128xf32, #tpu.memory_space<vmem>>, %arg5: memref<256x128xbf16, #tpu.memory_space<vmem>>) attributes {dimension_semantics = [#tpu.dimension_semantics<parallel>, #tpu.dimension_semantics<parallel>], iteration_bounds = array<i64: 2, 1>, scalar_prefetch = 0 : i64, scratch_operands = 0 : i64, tpu.core_type = #tpu.core_type<tc>, window_params = [{transform_indices = @transform_0, window_bounds = array<i64: 256, 384>}, {transform_indices = @transform_1, window_bounds = array<i64: 384, 128>}, {transform_indices = @transform_2, window_bounds = array<i64: 1, 128>}, {transform_indices = @transform_3, window_bounds = array<i64: 256, 128>}]} {
    %c0 = arith.constant 0 : index
    %c0_0 = arith.constant 0 : index
    %0 = vector.load %arg2[%c0, %c0_0] : memref<256x384xbf16, #tpu.memory_space<vmem>>, vector<256x384xbf16>
    %c0_1 = arith.constant 0 : index
    %c0_2 = arith.constant 0 : index
    %1 = vector.load %arg3[%c0_1, %c0_2] : memref<384x128xbf16, #tpu.memory_space<vmem>>, vector<384x128xbf16>
    %cst = arith.constant dense<0.000000e+00> : vector<256x128xf32>
    %2 = tpu.matmul %0, %1, %cst {dimension_numbers = #tpu.dot_dimension_numbers<[1], [0], [0], [1], [0, 0, 1, 1], [], []>} : vector<256x384xbf16>, vector<384x128xbf16>, vector<256x128xf32> -> vector<256x128xf32>
    %c0_3 = arith.constant 0 : index
    %c0_4 = arith.constant 0 : index
    %3 = vector.load %arg4[%c0_3, %c0_4] : memref<1x128xf32, #tpu.memory_space<vmem>>, vector<1x128xf32>
    %4 = vector.broadcast %3 : vector<1x128xf32> to vector<256x128xf32>
    %5 = arith.addf %2, %4 : vector<256x128xf32>
    %cst_5 = arith.constant 0.000000e+00 : f32
    %6 = vector.broadcast %cst_5 : f32 to vector<256x128xf32>
    %7 = arith.maximumf %5, %6 : vector<256x128xf32>
    %8 = arith.truncf %7 : vector<256x128xf32> to vector<256x128xbf16>
    %c0_6 = arith.constant 0 : index
    %c0_7 = arith.constant 0 : index
    %9 = vector.load %arg5[%c0_6, %c0_7] : memref<256x128xbf16, #tpu.memory_space<vmem>>, vector<256x128xbf16>
    tpu.vector_store %arg5[%c0_6, %c0_7], %8 {strides = array<i32>} : memref<256x128xbf16, #tpu.memory_space<vmem>>, vector<256x128xbf16>,
    return
  }
  func.func @transform_0(%arg0: i32, %arg1: i32) -> (i32, i32) {
    %c0_i32 = arith.constant 0 : i32
    %c0_i32_0 = arith.constant 0 : i32
    return %arg0, %c0_i32 : i32, i32
  }
  func.func @transform_1(%arg0: i32, %arg1: i32) -> (i32, i32) {
    %c0_i32 = arith.constant 0 : i32
    %c0_i32_0 = arith.constant 0 : i32
    return %c0_i32, %arg1 : i32, i32
  }
  func.func @transform_2(%arg0: i32, %arg1: i32) -> (i32, i32) {
    %c0_i32 = arith.constant 0 : i32
    %c0_i32_0 = arith.constant 0 : i32
    return %c0_i32, %arg1 : i32, i32
  }
  func.func @transform_3(%arg0: i32, %arg1: i32) -> (i32, i32) {
    %c0_i32 = arith.constant 0 : i32
    return %arg0, %arg1 : i32, i32
  }
}

module attributes {stable_mosaic.version = 11 : i64} {
  func.func @_maxpool3x3s2_kernel(%arg0: i32, %arg1: memref<4x8x8x128xbf16, #tpu.memory_space<vmem>>, %arg2: memref<1x7x7x128xbf16, #tpu.memory_space<vmem>>) attributes {dimension_semantics = [#tpu.dimension_semantics<parallel>], iteration_bounds = array<i64: 2>, scalar_prefetch = 0 : i64, scratch_operands = 0 : i64, tpu.core_type = #tpu.core_type<tc>, window_params = [{transform_indices = @transform_0, window_bounds = array<i64: 4, 8, 8, 128>}, {transform_indices = @transform_1, window_bounds = array<i64: 1, 7, 7, 128>}]} {
    %c0 = arith.constant 0 : index
    %c0_0 = arith.constant 0 : index
    %c0_1 = arith.constant 0 : index
    %c0_2 = arith.constant 0 : index
    %0 = vector.load %arg1[%c0, %c0_0, %c0_1, %c0_2] : memref<4x8x8x128xbf16, #tpu.memory_space<vmem>>, vector<1x8x8x128xbf16>
    %1 = vector.shape_cast %0 : vector<1x8x8x128xbf16> to vector<8x8x128xbf16>
    %c1 = arith.constant 1 : index
    %c0_3 = arith.constant 0 : index
    %c0_4 = arith.constant 0 : index
    %c0_5 = arith.constant 0 : index
    %2 = vector.load %arg1[%c1, %c0_3, %c0_4, %c0_5] : memref<4x8x8x128xbf16, #tpu.memory_space<vmem>>, vector<1x8x8x128xbf16>
    %3 = vector.shape_cast %2 : vector<1x8x8x128xbf16> to vector<8x8x128xbf16>
    %c2 = arith.constant 2 : index
    %c0_6 = arith.constant 0 : index
    %c0_7 = arith.constant 0 : index
    %c0_8 = arith.constant 0 : index
    %4 = vector.load %arg1[%c2, %c0_6, %c0_7, %c0_8] : memref<4x8x8x128xbf16, #tpu.memory_space<vmem>>, vector<1x8x8x128xbf16>
    %5 = vector.shape_cast %4 : vector<1x8x8x128xbf16> to vector<8x8x128xbf16>
    %c3 = arith.constant 3 : index
    %c0_9 = arith.constant 0 : index
    %c0_10 = arith.constant 0 : index
    %c0_11 = arith.constant 0 : index
    %6 = vector.load %arg1[%c3, %c0_9, %c0_10, %c0_11] : memref<4x8x8x128xbf16, #tpu.memory_space<vmem>>, vector<1x8x8x128xbf16>
    %7 = vector.shape_cast %6 : vector<1x8x8x128xbf16> to vector<8x8x128xbf16>
    %8 = vector.extract_strided_slice %1 {offsets = [0, 0, 0], sizes = [7, 7, 128], strides = [1, 1, 1]} : vector<8x8x128xbf16> to vector<7x7x128xbf16>
    %9 = vector.extract_strided_slice %1 {offsets = [0, 1, 0], sizes = [7, 7, 128], strides = [1, 1, 1]} : vector<8x8x128xbf16> to vector<7x7x128xbf16>
    %10 = arith.maximumf %8, %9 : vector<7x7x128xbf16>
    %11 = vector.extract_strided_slice %3 {offsets = [0, 0, 0], sizes = [7, 7, 128], strides = [1, 1, 1]} : vector<8x8x128xbf16> to vector<7x7x128xbf16>
    %12 = arith.maximumf %10, %11 : vector<7x7x128xbf16>
    %13 = vector.extract_strided_slice %5 {offsets = [0, 0, 0], sizes = [7, 7, 128], strides = [1, 1, 1]} : vector<8x8x128xbf16> to vector<7x7x128xbf16>
    %14 = arith.maximumf %12, %13 : vector<7x7x128xbf16>
    %15 = vector.extract_strided_slice %5 {offsets = [0, 1, 0], sizes = [7, 7, 128], strides = [1, 1, 1]} : vector<8x8x128xbf16> to vector<7x7x128xbf16>
    %16 = arith.maximumf %14, %15 : vector<7x7x128xbf16>
    %17 = vector.extract_strided_slice %7 {offsets = [0, 0, 0], sizes = [7, 7, 128], strides = [1, 1, 1]} : vector<8x8x128xbf16> to vector<7x7x128xbf16>
    %18 = arith.maximumf %16, %17 : vector<7x7x128xbf16>
    %19 = vector.extract_strided_slice %1 {offsets = [1, 0, 0], sizes = [7, 7, 128], strides = [1, 1, 1]} : vector<8x8x128xbf16> to vector<7x7x128xbf16>
    %20 = arith.maximumf %18, %19 : vector<7x7x128xbf16>
    %21 = vector.extract_strided_slice %1 {offsets = [1, 1, 0], sizes = [7, 7, 128], strides = [1, 1, 1]} : vector<8x8x128xbf16> to vector<7x7x128xbf16>
    %22 = arith.maximumf %20, %21 : vector<7x7x128xbf16>
    %23 = vector.extract_strided_slice %3 {offsets = [1, 0, 0], sizes = [7, 7, 128], strides = [1, 1, 1]} : vector<8x8x128xbf16> to vector<7x7x128xbf16>
    %24 = arith.maximumf %22, %23 : vector<7x7x128xbf16>
    %c0_12 = arith.constant 0 : index
    %c0_13 = arith.constant 0 : index
    %c0_14 = arith.constant 0 : index
    %c0_15 = arith.constant 0 : index
    %25 = vector.load %arg2[%c0_12, %c0_13, %c0_14, %c0_15] : memref<1x7x7x128xbf16, #tpu.memory_space<vmem>>, vector<1x7x7x128xbf16>
    %26 = vector.shape_cast %25 : vector<1x7x7x128xbf16> to vector<7x7x128xbf16>
    %27 = vector.shape_cast %24 : vector<7x7x128xbf16> to vector<1x7x7x128xbf16>
    tpu.vector_store %arg2[%c0_12, %c0_13, %c0_14, %c0_15], %27 {strides = array<i32>} : memref<1x7x7x128xbf16, #tpu.memory_space<vmem>>, vector<1x7x7x128xbf16>,
    return
  }
  func.func @transform_0(%arg0: i32) -> (i32, i32, i32, i32) {
    %c0_i32 = arith.constant 0 : i32
    %c0_i32_0 = arith.constant 0 : i32
    %c0_i32_1 = arith.constant 0 : i32
    %c0_i32_2 = arith.constant 0 : i32
    return %arg0, %c0_i32, %c0_i32_0, %c0_i32_1 : i32, i32, i32, i32
  }
  func.func @transform_1(%arg0: i32) -> (i32, i32, i32, i32) {
    %c0_i32 = arith.constant 0 : i32
    %c0_i32_0 = arith.constant 0 : i32
    %c0_i32_1 = arith.constant 0 : i32
    %c0_i32_2 = arith.constant 0 : i32
    return %arg0, %c0_i32, %c0_i32_0, %c0_i32_1 : i32, i32, i32, i32
  }
}

module attributes {stable_mosaic.version = 11 : i64} {
  func.func @_conv_s1_kernel(%arg0: i32, %arg1: memref<1x192x128xbf16, #tpu.memory_space<vmem>>, %arg2: memref<5x640x256xbf16, #tpu.memory_space<vmem>>, %arg3: memref<1x256xf32, #tpu.memory_space<vmem>>, %arg4: memref<1x112x256xbf16, #tpu.memory_space<vmem>>) attributes {dimension_semantics = [#tpu.dimension_semantics<parallel>], iteration_bounds = array<i64: 2>, scalar_prefetch = 0 : i64, scratch_operands = 0 : i64, tpu.core_type = #tpu.core_type<tc>, window_params = [{transform_indices = @transform_0, window_bounds = array<i64: 1, 192, 128>}, {pipeline_mode = #tpu.pipeline_mode<synchronous>, transform_indices = @transform_1, window_bounds = array<i64: 5, 640, 256>}, {pipeline_mode = #tpu.pipeline_mode<synchronous>, transform_indices = @transform_2, window_bounds = array<i64: 1, 256>}, {transform_indices = @transform_3, window_bounds = array<i64: 1, 112, 256>}]} {
    %c0 = arith.constant 0 : index
    %c0_0 = arith.constant 0 : index
    %c0_1 = arith.constant 0 : index
    %0 = vector.load %arg1[%c0, %c0_0, %c0_1] : memref<1x192x128xbf16, #tpu.memory_space<vmem>>, vector<1x116x128xbf16>
    %1 = vector.shape_cast %0 : vector<1x116x128xbf16> to vector<116x128xbf16>
    %c0_2 = arith.constant 0 : index
    %c16 = arith.constant 16 : index
    %c0_3 = arith.constant 0 : index
    %2 = vector.load %arg1[%c0_2, %c16, %c0_3] : memref<1x192x128xbf16, #tpu.memory_space<vmem>>, vector<1x116x128xbf16>
    %3 = vector.shape_cast %2 : vector<1x116x128xbf16> to vector<116x128xbf16>
    %c0_4 = arith.constant 0 : index
    %c32 = arith.constant 32 : index
    %c0_5 = arith.constant 0 : index
    %4 = vector.load %arg1[%c0_4, %c32, %c0_5] : memref<1x192x128xbf16, #tpu.memory_space<vmem>>, vector<1x116x128xbf16>
    %5 = vector.shape_cast %4 : vector<1x116x128xbf16> to vector<116x128xbf16>
    %c0_6 = arith.constant 0 : index
    %c48 = arith.constant 48 : index
    %c0_7 = arith.constant 0 : index
    %6 = vector.load %arg1[%c0_6, %c48, %c0_7] : memref<1x192x128xbf16, #tpu.memory_space<vmem>>, vector<1x116x128xbf16>
    %7 = vector.shape_cast %6 : vector<1x116x128xbf16> to vector<116x128xbf16>
    %c0_8 = arith.constant 0 : index
    %c64 = arith.constant 64 : index
    %c0_9 = arith.constant 0 : index
    %8 = vector.load %arg1[%c0_8, %c64, %c0_9] : memref<1x192x128xbf16, #tpu.memory_space<vmem>>, vector<1x116x128xbf16>
    %9 = vector.shape_cast %8 : vector<1x116x128xbf16> to vector<116x128xbf16>
    %10 = tpu.concatenate %1, %3, %5, %7, %9 in 1 : vector<116x128xbf16>, vector<116x128xbf16>, vector<116x128xbf16>, vector<116x128xbf16>, vector<116x128xbf16> -> vector<116x640xbf16>
    %11 = vector.extract_strided_slice %10 {offsets = [0, 0], sizes = [112, 640], strides = [1, 1]} : vector<116x640xbf16> to vector<112x640xbf16>
    %c0_10 = arith.constant 0 : index
    %c0_11 = arith.constant 0 : index
    %c0_12 = arith.constant 0 : index
    %12 = vector.load %arg2[%c0_10, %c0_11, %c0_12] : memref<5x640x256xbf16, #tpu.memory_space<vmem>>, vector<1x640x256xbf16>
    %13 = vector.shape_cast %12 : vector<1x640x256xbf16> to vector<640x256xbf16>
    %cst = arith.constant dense<0.000000e+00> : vector<112x256xf32>
    %14 = tpu.matmul %11, %13, %cst {dimension_numbers = #tpu.dot_dimension_numbers<[1], [0], [0], [1], [0, 0, 1, 1], [], []>} : vector<112x640xbf16>, vector<640x256xbf16>, vector<112x256xf32> -> vector<112x256xf32>
    %15 = vector.extract_strided_slice %10 {offsets = [1, 0], sizes = [112, 640], strides = [1, 1]} : vector<116x640xbf16> to vector<112x640xbf16>
    %c1 = arith.constant 1 : index
    %c0_13 = arith.constant 0 : index
    %c0_14 = arith.constant 0 : index
    %16 = vector.load %arg2[%c1, %c0_13, %c0_14] : memref<5x640x256xbf16, #tpu.memory_space<vmem>>, vector<1x640x256xbf16>
    %17 = vector.shape_cast %16 : vector<1x640x256xbf16> to vector<640x256xbf16>
    %cst_15 = arith.constant dense<0.000000e+00> : vector<112x256xf32>
    %18 = tpu.matmul %15, %17, %cst_15 {dimension_numbers = #tpu.dot_dimension_numbers<[1], [0], [0], [1], [0, 0, 1, 1], [], []>} : vector<112x640xbf16>, vector<640x256xbf16>, vector<112x256xf32> -> vector<112x256xf32>
    %19 = arith.addf %14, %18 : vector<112x256xf32>
    %20 = vector.extract_strided_slice %10 {offsets = [2, 0], sizes = [112, 640], strides = [1, 1]} : vector<116x640xbf16> to vector<112x640xbf16>
    %c2 = arith.constant 2 : index
    %c0_16 = arith.constant 0 : index
    %c0_17 = arith.constant 0 : index
    %21 = vector.load %arg2[%c2, %c0_16, %c0_17] : memref<5x640x256xbf16, #tpu.memory_space<vmem>>, vector<1x640x256xbf16>
    %22 = vector.shape_cast %21 : vector<1x640x256xbf16> to vector<640x256xbf16>
    %cst_18 = arith.constant dense<0.000000e+00> : vector<112x256xf32>
    %23 = tpu.matmul %20, %22, %cst_18 {dimension_numbers = #tpu.dot_dimension_numbers<[1], [0], [0], [1], [0, 0, 1, 1], [], []>} : vector<112x640xbf16>, vector<640x256xbf16>, vector<112x256xf32> -> vector<112x256xf32>
    %24 = arith.addf %19, %23 : vector<112x256xf32>
    %25 = vector.extract_strided_slice %10 {offsets = [3, 0], sizes = [112, 640], strides = [1, 1]} : vector<116x640xbf16> to vector<112x640xbf16>
    %c3 = arith.constant 3 : index
    %c0_19 = arith.constant 0 : index
    %c0_20 = arith.constant 0 : index
    %26 = vector.load %arg2[%c3, %c0_19, %c0_20] : memref<5x640x256xbf16, #tpu.memory_space<vmem>>, vector<1x640x256xbf16>
    %27 = vector.shape_cast %26 : vector<1x640x256xbf16> to vector<640x256xbf16>
    %cst_21 = arith.constant dense<0.000000e+00> : vector<112x256xf32>
    %28 = tpu.matmul %25, %27, %cst_21 {dimension_numbers = #tpu.dot_dimension_numbers<[1], [0], [0], [1], [0, 0, 1, 1], [], []>} : vector<112x640xbf16>, vector<640x256xbf16>, vector<112x256xf32> -> vector<112x256xf32>
    %29 = arith.addf %24, %28 : vector<112x256xf32>
    %30 = vector.extract_strided_slice %10 {offsets = [4, 0], sizes = [112, 640], strides = [1, 1]} : vector<116x640xbf16> to vector<112x640xbf16>
    %c4 = arith.constant 4 : index
    %c0_22 = arith.constant 0 : index
    %c0_23 = arith.constant 0 : index
    %31 = vector.load %arg2[%c4, %c0_22, %c0_23] : memref<5x640x256xbf16, #tpu.memory_space<vmem>>, vector<1x640x256xbf16>
    %32 = vector.shape_cast %31 : vector<1x640x256xbf16> to vector<640x256xbf16>
    %cst_24 = arith.constant dense<0.000000e+00> : vector<112x256xf32>
    %33 = tpu.matmul %30, %32, %cst_24 {dimension_numbers = #tpu.dot_dimension_numbers<[1], [0], [0], [1], [0, 0, 1, 1], [], []>} : vector<112x640xbf16>, vector<640x256xbf16>, vector<112x256xf32> -> vector<112x256xf32>
    %34 = arith.addf %29, %33 : vector<112x256xf32>
    %c0_25 = arith.constant 0 : index
    %c0_26 = arith.constant 0 : index
    %35 = vector.load %arg3[%c0_25, %c0_26] : memref<1x256xf32, #tpu.memory_space<vmem>>, vector<1x256xf32>
    %36 = vector.broadcast %35 : vector<1x256xf32> to vector<112x256xf32>
    %37 = arith.addf %34, %36 : vector<112x256xf32>
    %cst_27 = arith.constant 0.000000e+00 : f32
    %38 = vector.broadcast %cst_27 : f32 to vector<112x256xf32>
    %39 = arith.maximumf %37, %38 : vector<112x256xf32>
    %40 = arith.truncf %39 : vector<112x256xf32> to vector<112x256xbf16>
    %c0_28 = arith.constant 0 : index
    %c0_29 = arith.constant 0 : index
    %c0_30 = arith.constant 0 : index
    %41 = vector.load %arg4[%c0_28, %c0_29, %c0_30] : memref<1x112x256xbf16, #tpu.memory_space<vmem>>, vector<1x112x256xbf16>
    %42 = vector.shape_cast %41 : vector<1x112x256xbf16> to vector<112x256xbf16>
    %43 = vector.shape_cast %40 : vector<112x256xbf16> to vector<1x112x256xbf16>
    tpu.vector_store %arg4[%c0_28, %c0_29, %c0_30], %43 {strides = array<i32>} : memref<1x112x256xbf16, #tpu.memory_space<vmem>>, vector<1x112x256xbf16>,
    return
  }
  func.func @transform_0(%arg0: i32) -> (i32, i32, i32) {
    %c0_i32 = arith.constant 0 : i32
    %c0_i32_0 = arith.constant 0 : i32
    %c0_i32_1 = arith.constant 0 : i32
    return %arg0, %c0_i32, %c0_i32_0 : i32, i32, i32
  }
  func.func @transform_1(%arg0: i32) -> (i32, i32, i32) {
    %c0_i32 = arith.constant 0 : i32
    %c0_i32_0 = arith.constant 0 : i32
    %c0_i32_1 = arith.constant 0 : i32
    %c0_i32_2 = arith.constant 0 : i32
    return %c0_i32, %c0_i32_0, %c0_i32_1 : i32, i32, i32
  }
  func.func @transform_2(%arg0: i32) -> (i32, i32) {
    %c0_i32 = arith.constant 0 : i32
    %c0_i32_0 = arith.constant 0 : i32
    %c0_i32_1 = arith.constant 0 : i32
    return %c0_i32, %c0_i32_0 : i32, i32
  }
  func.func @transform_3(%arg0: i32) -> (i32, i32, i32) {
    %c0_i32 = arith.constant 0 : i32
    %c0_i32_0 = arith.constant 0 : i32
    %c0_i32_1 = arith.constant 0 : i32
    return %arg0, %c0_i32, %c0_i32_0 : i32, i32, i32
  }
}

module attributes {stable_mosaic.version = 11 : i64} {
  func.func @_maxpool3x3s2_kernel(%arg0: i32, %arg1: memref<4x4x4x256xbf16, #tpu.memory_space<vmem>>, %arg2: memref<1x3x3x256xbf16, #tpu.memory_space<vmem>>) attributes {dimension_semantics = [#tpu.dimension_semantics<parallel>], iteration_bounds = array<i64: 2>, scalar_prefetch = 0 : i64, scratch_operands = 0 : i64, tpu.core_type = #tpu.core_type<tc>, window_params = [{transform_indices = @transform_0, window_bounds = array<i64: 4, 4, 4, 256>}, {transform_indices = @transform_1, window_bounds = array<i64: 1, 3, 3, 256>}]} {
    %c0 = arith.constant 0 : index
    %c0_0 = arith.constant 0 : index
    %c0_1 = arith.constant 0 : index
    %c0_2 = arith.constant 0 : index
    %0 = vector.load %arg1[%c0, %c0_0, %c0_1, %c0_2] : memref<4x4x4x256xbf16, #tpu.memory_space<vmem>>, vector<1x4x4x256xbf16>
    %1 = vector.shape_cast %0 : vector<1x4x4x256xbf16> to vector<4x4x256xbf16>
    %c1 = arith.constant 1 : index
    %c0_3 = arith.constant 0 : index
    %c0_4 = arith.constant 0 : index
    %c0_5 = arith.constant 0 : index
    %2 = vector.load %arg1[%c1, %c0_3, %c0_4, %c0_5] : memref<4x4x4x256xbf16, #tpu.memory_space<vmem>>, vector<1x4x4x256xbf16>
    %3 = vector.shape_cast %2 : vector<1x4x4x256xbf16> to vector<4x4x256xbf16>
    %c2 = arith.constant 2 : index
    %c0_6 = arith.constant 0 : index
    %c0_7 = arith.constant 0 : index
    %c0_8 = arith.constant 0 : index
    %4 = vector.load %arg1[%c2, %c0_6, %c0_7, %c0_8] : memref<4x4x4x256xbf16, #tpu.memory_space<vmem>>, vector<1x4x4x256xbf16>
    %5 = vector.shape_cast %4 : vector<1x4x4x256xbf16> to vector<4x4x256xbf16>
    %c3 = arith.constant 3 : index
    %c0_9 = arith.constant 0 : index
    %c0_10 = arith.constant 0 : index
    %c0_11 = arith.constant 0 : index
    %6 = vector.load %arg1[%c3, %c0_9, %c0_10, %c0_11] : memref<4x4x4x256xbf16, #tpu.memory_space<vmem>>, vector<1x4x4x256xbf16>
    %7 = vector.shape_cast %6 : vector<1x4x4x256xbf16> to vector<4x4x256xbf16>
    %8 = vector.extract_strided_slice %1 {offsets = [0, 0, 0], sizes = [3, 3, 256], strides = [1, 1, 1]} : vector<4x4x256xbf16> to vector<3x3x256xbf16>
    %9 = vector.extract_strided_slice %1 {offsets = [0, 1, 0], sizes = [3, 3, 256], strides = [1, 1, 1]} : vector<4x4x256xbf16> to vector<3x3x256xbf16>
    %10 = arith.maximumf %8, %9 : vector<3x3x256xbf16>
    %11 = vector.extract_strided_slice %3 {offsets = [0, 0, 0], sizes = [3, 3, 256], strides = [1, 1, 1]} : vector<4x4x256xbf16> to vector<3x3x256xbf16>
    %12 = arith.maximumf %10, %11 : vector<3x3x256xbf16>
    %13 = vector.extract_strided_slice %5 {offsets = [0, 0, 0], sizes = [3, 3, 256], strides = [1, 1, 1]} : vector<4x4x256xbf16> to vector<3x3x256xbf16>
    %14 = arith.maximumf %12, %13 : vector<3x3x256xbf16>
    %15 = vector.extract_strided_slice %5 {offsets = [0, 1, 0], sizes = [3, 3, 256], strides = [1, 1, 1]} : vector<4x4x256xbf16> to vector<3x3x256xbf16>
    %16 = arith.maximumf %14, %15 : vector<3x3x256xbf16>
    %17 = vector.extract_strided_slice %7 {offsets = [0, 0, 0], sizes = [3, 3, 256], strides = [1, 1, 1]} : vector<4x4x256xbf16> to vector<3x3x256xbf16>
    %18 = arith.maximumf %16, %17 : vector<3x3x256xbf16>
    %19 = vector.extract_strided_slice %1 {offsets = [1, 0, 0], sizes = [3, 3, 256], strides = [1, 1, 1]} : vector<4x4x256xbf16> to vector<3x3x256xbf16>
    %20 = arith.maximumf %18, %19 : vector<3x3x256xbf16>
    %21 = vector.extract_strided_slice %1 {offsets = [1, 1, 0], sizes = [3, 3, 256], strides = [1, 1, 1]} : vector<4x4x256xbf16> to vector<3x3x256xbf16>
    %22 = arith.maximumf %20, %21 : vector<3x3x256xbf16>
    %23 = vector.extract_strided_slice %3 {offsets = [1, 0, 0], sizes = [3, 3, 256], strides = [1, 1, 1]} : vector<4x4x256xbf16> to vector<3x3x256xbf16>
    %24 = arith.maximumf %22, %23 : vector<3x3x256xbf16>
    %c0_12 = arith.constant 0 : index
    %c0_13 = arith.constant 0 : index
    %c0_14 = arith.constant 0 : index
    %c0_15 = arith.constant 0 : index
    %25 = vector.load %arg2[%c0_12, %c0_13, %c0_14, %c0_15] : memref<1x3x3x256xbf16, #tpu.memory_space<vmem>>, vector<1x3x3x256xbf16>
    %26 = vector.shape_cast %25 : vector<1x3x3x256xbf16> to vector<3x3x256xbf16>
    %27 = vector.shape_cast %24 : vector<3x3x256xbf16> to vector<1x3x3x256xbf16>
    tpu.vector_store %arg2[%c0_12, %c0_13, %c0_14, %c0_15], %27 {strides = array<i32>} : memref<1x3x3x256xbf16, #tpu.memory_space<vmem>>, vector<1x3x3x256xbf16>,
    return
  }
  func.func @transform_0(%arg0: i32) -> (i32, i32, i32, i32) {
    %c0_i32 = arith.constant 0 : i32
    %c0_i32_0 = arith.constant 0 : i32
    %c0_i32_1 = arith.constant 0 : i32
    %c0_i32_2 = arith.constant 0 : i32
    return %arg0, %c0_i32, %c0_i32_0, %c0_i32_1 : i32, i32, i32, i32
  }
  func.func @transform_1(%arg0: i32) -> (i32, i32, i32, i32) {
    %c0_i32 = arith.constant 0 : i32
    %c0_i32_0 = arith.constant 0 : i32
    %c0_i32_1 = arith.constant 0 : i32
    %c0_i32_2 = arith.constant 0 : i32
    return %arg0, %c0_i32, %c0_i32_0, %c0_i32_1 : i32, i32, i32, i32
  }
}

module attributes {stable_mosaic.version = 11 : i64} {
  func.func @_conv_s1_kernel(%arg0: i32, %arg1: memref<1x48x256xbf16, #tpu.memory_space<vmem>>, %arg2: memref<3x768x384xbf16, #tpu.memory_space<vmem>>, %arg3: memref<1x384xf32, #tpu.memory_space<vmem>>, %arg4: memref<1x24x384xbf16, #tpu.memory_space<vmem>>) attributes {dimension_semantics = [#tpu.dimension_semantics<parallel>], iteration_bounds = array<i64: 2>, scalar_prefetch = 0 : i64, scratch_operands = 0 : i64, tpu.core_type = #tpu.core_type<tc>, window_params = [{transform_indices = @transform_0, window_bounds = array<i64: 1, 48, 256>}, {pipeline_mode = #tpu.pipeline_mode<synchronous>, transform_indices = @transform_1, window_bounds = array<i64: 3, 768, 384>}, {pipeline_mode = #tpu.pipeline_mode<synchronous>, transform_indices = @transform_2, window_bounds = array<i64: 1, 384>}, {transform_indices = @transform_3, window_bounds = array<i64: 1, 24, 384>}]} {
    %c0 = arith.constant 0 : index
    %c0_0 = arith.constant 0 : index
    %c0_1 = arith.constant 0 : index
    %0 = vector.load %arg1[%c0, %c0_0, %c0_1] : memref<1x48x256xbf16, #tpu.memory_space<vmem>>, vector<1x26x256xbf16>
    %1 = vector.shape_cast %0 : vector<1x26x256xbf16> to vector<26x256xbf16>
    %c0_2 = arith.constant 0 : index
    %c8 = arith.constant 8 : index
    %c0_3 = arith.constant 0 : index
    %2 = vector.load %arg1[%c0_2, %c8, %c0_3] : memref<1x48x256xbf16, #tpu.memory_space<vmem>>, vector<1x26x256xbf16>
    %3 = vector.shape_cast %2 : vector<1x26x256xbf16> to vector<26x256xbf16>
    %c0_4 = arith.constant 0 : index
    %c16 = arith.constant 16 : index
    %c0_5 = arith.constant 0 : index
    %4 = vector.load %arg1[%c0_4, %c16, %c0_5] : memref<1x48x256xbf16, #tpu.memory_space<vmem>>, vector<1x26x256xbf16>
    %5 = vector.shape_cast %4 : vector<1x26x256xbf16> to vector<26x256xbf16>
    %6 = tpu.concatenate %1, %3, %5 in 1 : vector<26x256xbf16>, vector<26x256xbf16>, vector<26x256xbf16> -> vector<26x768xbf16>
    %7 = vector.extract_strided_slice %6 {offsets = [0, 0], sizes = [24, 768], strides = [1, 1]} : vector<26x768xbf16> to vector<24x768xbf16>
    %c0_6 = arith.constant 0 : index
    %c0_7 = arith.constant 0 : index
    %c0_8 = arith.constant 0 : index
    %8 = vector.load %arg2[%c0_6, %c0_7, %c0_8] : memref<3x768x384xbf16, #tpu.memory_space<vmem>>, vector<1x768x384xbf16>
    %9 = vector.shape_cast %8 : vector<1x768x384xbf16> to vector<768x384xbf16>
    %cst = arith.constant dense<0.000000e+00> : vector<24x384xf32>
    %10 = tpu.matmul %7, %9, %cst {dimension_numbers = #tpu.dot_dimension_numbers<[1], [0], [0], [1], [0, 0, 1, 1], [], []>} : vector<24x768xbf16>, vector<768x384xbf16>, vector<24x384xf32> -> vector<24x384xf32>
    %11 = vector.extract_strided_slice %6 {offsets = [1, 0], sizes = [24, 768], strides = [1, 1]} : vector<26x768xbf16> to vector<24x768xbf16>
    %c1 = arith.constant 1 : index
    %c0_9 = arith.constant 0 : index
    %c0_10 = arith.constant 0 : index
    %12 = vector.load %arg2[%c1, %c0_9, %c0_10] : memref<3x768x384xbf16, #tpu.memory_space<vmem>>, vector<1x768x384xbf16>
    %13 = vector.shape_cast %12 : vector<1x768x384xbf16> to vector<768x384xbf16>
    %cst_11 = arith.constant dense<0.000000e+00> : vector<24x384xf32>
    %14 = tpu.matmul %11, %13, %cst_11 {dimension_numbers = #tpu.dot_dimension_numbers<[1], [0], [0], [1], [0, 0, 1, 1], [], []>} : vector<24x768xbf16>, vector<768x384xbf16>, vector<24x384xf32> -> vector<24x384xf32>
    %15 = arith.addf %10, %14 : vector<24x384xf32>
    %16 = vector.extract_strided_slice %6 {offsets = [2, 0], sizes = [24, 768], strides = [1, 1]} : vector<26x768xbf16> to vector<24x768xbf16>
    %c2 = arith.constant 2 : index
    %c0_12 = arith.constant 0 : index
    %c0_13 = arith.constant 0 : index
    %17 = vector.load %arg2[%c2, %c0_12, %c0_13] : memref<3x768x384xbf16, #tpu.memory_space<vmem>>, vector<1x768x384xbf16>
    %18 = vector.shape_cast %17 : vector<1x768x384xbf16> to vector<768x384xbf16>
    %cst_14 = arith.constant dense<0.000000e+00> : vector<24x384xf32>
    %19 = tpu.matmul %16, %18, %cst_14 {dimension_numbers = #tpu.dot_dimension_numbers<[1], [0], [0], [1], [0, 0, 1, 1], [], []>} : vector<24x768xbf16>, vector<768x384xbf16>, vector<24x384xf32> -> vector<24x384xf32>
    %20 = arith.addf %15, %19 : vector<24x384xf32>
    %c0_15 = arith.constant 0 : index
    %c0_16 = arith.constant 0 : index
    %21 = vector.load %arg3[%c0_15, %c0_16] : memref<1x384xf32, #tpu.memory_space<vmem>>, vector<1x384xf32>
    %22 = vector.broadcast %21 : vector<1x384xf32> to vector<24x384xf32>
    %23 = arith.addf %20, %22 : vector<24x384xf32>
    %cst_17 = arith.constant 0.000000e+00 : f32
    %24 = vector.broadcast %cst_17 : f32 to vector<24x384xf32>
    %25 = arith.maximumf %23, %24 : vector<24x384xf32>
    %26 = arith.truncf %25 : vector<24x384xf32> to vector<24x384xbf16>
    %c0_18 = arith.constant 0 : index
    %c0_19 = arith.constant 0 : index
    %c0_20 = arith.constant 0 : index
    %27 = vector.load %arg4[%c0_18, %c0_19, %c0_20] : memref<1x24x384xbf16, #tpu.memory_space<vmem>>, vector<1x24x384xbf16>
    %28 = vector.shape_cast %27 : vector<1x24x384xbf16> to vector<24x384xbf16>
    %29 = vector.shape_cast %26 : vector<24x384xbf16> to vector<1x24x384xbf16>
    tpu.vector_store %arg4[%c0_18, %c0_19, %c0_20], %29 {strides = array<i32>} : memref<1x24x384xbf16, #tpu.memory_space<vmem>>, vector<1x24x384xbf16>,
    return
  }
  func.func @transform_0(%arg0: i32) -> (i32, i32, i32) {
    %c0_i32 = arith.constant 0 : i32
    %c0_i32_0 = arith.constant 0 : i32
    %c0_i32_1 = arith.constant 0 : i32
    return %arg0, %c0_i32, %c0_i32_0 : i32, i32, i32
  }
  func.func @transform_1(%arg0: i32) -> (i32, i32, i32) {
    %c0_i32 = arith.constant 0 : i32
    %c0_i32_0 = arith.constant 0 : i32
    %c0_i32_1 = arith.constant 0 : i32
    %c0_i32_2 = arith.constant 0 : i32
    return %c0_i32, %c0_i32_0, %c0_i32_1 : i32, i32, i32
  }
  func.func @transform_2(%arg0: i32) -> (i32, i32) {
    %c0_i32 = arith.constant 0 : i32
    %c0_i32_0 = arith.constant 0 : i32
    %c0_i32_1 = arith.constant 0 : i32
    return %c0_i32, %c0_i32_0 : i32, i32
  }
  func.func @transform_3(%arg0: i32) -> (i32, i32, i32) {
    %c0_i32 = arith.constant 0 : i32
    %c0_i32_0 = arith.constant 0 : i32
    %c0_i32_1 = arith.constant 0 : i32
    return %arg0, %c0_i32, %c0_i32_0 : i32, i32, i32
  }
}

module attributes {stable_mosaic.version = 11 : i64} {
  func.func @_conv_s1_kernel(%arg0: i32, %arg1: memref<1x48x384xbf16, #tpu.memory_space<vmem>>, %arg2: memref<3x1152x256xbf16, #tpu.memory_space<vmem>>, %arg3: memref<1x256xf32, #tpu.memory_space<vmem>>, %arg4: memref<1x24x256xbf16, #tpu.memory_space<vmem>>) attributes {dimension_semantics = [#tpu.dimension_semantics<parallel>], iteration_bounds = array<i64: 2>, scalar_prefetch = 0 : i64, scratch_operands = 0 : i64, tpu.core_type = #tpu.core_type<tc>, window_params = [{transform_indices = @transform_0, window_bounds = array<i64: 1, 48, 384>}, {pipeline_mode = #tpu.pipeline_mode<synchronous>, transform_indices = @transform_1, window_bounds = array<i64: 3, 1152, 256>}, {pipeline_mode = #tpu.pipeline_mode<synchronous>, transform_indices = @transform_2, window_bounds = array<i64: 1, 256>}, {transform_indices = @transform_3, window_bounds = array<i64: 1, 24, 256>}]} {
    %c0 = arith.constant 0 : index
    %c0_0 = arith.constant 0 : index
    %c0_1 = arith.constant 0 : index
    %0 = vector.load %arg1[%c0, %c0_0, %c0_1] : memref<1x48x384xbf16, #tpu.memory_space<vmem>>, vector<1x26x384xbf16>
    %1 = vector.shape_cast %0 : vector<1x26x384xbf16> to vector<26x384xbf16>
    %c0_2 = arith.constant 0 : index
    %c8 = arith.constant 8 : index
    %c0_3 = arith.constant 0 : index
    %2 = vector.load %arg1[%c0_2, %c8, %c0_3] : memref<1x48x384xbf16, #tpu.memory_space<vmem>>, vector<1x26x384xbf16>
    %3 = vector.shape_cast %2 : vector<1x26x384xbf16> to vector<26x384xbf16>
    %c0_4 = arith.constant 0 : index
    %c16 = arith.constant 16 : index
    %c0_5 = arith.constant 0 : index
    %4 = vector.load %arg1[%c0_4, %c16, %c0_5] : memref<1x48x384xbf16, #tpu.memory_space<vmem>>, vector<1x26x384xbf16>
    %5 = vector.shape_cast %4 : vector<1x26x384xbf16> to vector<26x384xbf16>
    %6 = tpu.concatenate %1, %3, %5 in 1 : vector<26x384xbf16>, vector<26x384xbf16>, vector<26x384xbf16> -> vector<26x1152xbf16>
    %7 = vector.extract_strided_slice %6 {offsets = [0, 0], sizes = [24, 1152], strides = [1, 1]} : vector<26x1152xbf16> to vector<24x1152xbf16>
    %c0_6 = arith.constant 0 : index
    %c0_7 = arith.constant 0 : index
    %c0_8 = arith.constant 0 : index
    %8 = vector.load %arg2[%c0_6, %c0_7, %c0_8] : memref<3x1152x256xbf16, #tpu.memory_space<vmem>>, vector<1x1152x256xbf16>
    %9 = vector.shape_cast %8 : vector<1x1152x256xbf16> to vector<1152x256xbf16>
    %cst = arith.constant dense<0.000000e+00> : vector<24x256xf32>
    %10 = tpu.matmul %7, %9, %cst {dimension_numbers = #tpu.dot_dimension_numbers<[1], [0], [0], [1], [0, 0, 1, 1], [], []>} : vector<24x1152xbf16>, vector<1152x256xbf16>, vector<24x256xf32> -> vector<24x256xf32>
    %11 = vector.extract_strided_slice %6 {offsets = [1, 0], sizes = [24, 1152], strides = [1, 1]} : vector<26x1152xbf16> to vector<24x1152xbf16>
    %c1 = arith.constant 1 : index
    %c0_9 = arith.constant 0 : index
    %c0_10 = arith.constant 0 : index
    %12 = vector.load %arg2[%c1, %c0_9, %c0_10] : memref<3x1152x256xbf16, #tpu.memory_space<vmem>>, vector<1x1152x256xbf16>
    %13 = vector.shape_cast %12 : vector<1x1152x256xbf16> to vector<1152x256xbf16>
    %cst_11 = arith.constant dense<0.000000e+00> : vector<24x256xf32>
    %14 = tpu.matmul %11, %13, %cst_11 {dimension_numbers = #tpu.dot_dimension_numbers<[1], [0], [0], [1], [0, 0, 1, 1], [], []>} : vector<24x1152xbf16>, vector<1152x256xbf16>, vector<24x256xf32> -> vector<24x256xf32>
    %15 = arith.addf %10, %14 : vector<24x256xf32>
    %16 = vector.extract_strided_slice %6 {offsets = [2, 0], sizes = [24, 1152], strides = [1, 1]} : vector<26x1152xbf16> to vector<24x1152xbf16>
    %c2 = arith.constant 2 : index
    %c0_12 = arith.constant 0 : index
    %c0_13 = arith.constant 0 : index
    %17 = vector.load %arg2[%c2, %c0_12, %c0_13] : memref<3x1152x256xbf16, #tpu.memory_space<vmem>>, vector<1x1152x256xbf16>
    %18 = vector.shape_cast %17 : vector<1x1152x256xbf16> to vector<1152x256xbf16>
    %cst_14 = arith.constant dense<0.000000e+00> : vector<24x256xf32>
    %19 = tpu.matmul %16, %18, %cst_14 {dimension_numbers = #tpu.dot_dimension_numbers<[1], [0], [0], [1], [0, 0, 1, 1], [], []>} : vector<24x1152xbf16>, vector<1152x256xbf16>, vector<24x256xf32> -> vector<24x256xf32>
    %20 = arith.addf %15, %19 : vector<24x256xf32>
    %c0_15 = arith.constant 0 : index
    %c0_16 = arith.constant 0 : index
    %21 = vector.load %arg3[%c0_15, %c0_16] : memref<1x256xf32, #tpu.memory_space<vmem>>, vector<1x256xf32>
    %22 = vector.broadcast %21 : vector<1x256xf32> to vector<24x256xf32>
    %23 = arith.addf %20, %22 : vector<24x256xf32>
    %cst_17 = arith.constant 0.000000e+00 : f32
    %24 = vector.broadcast %cst_17 : f32 to vector<24x256xf32>
    %25 = arith.maximumf %23, %24 : vector<24x256xf32>
    %26 = arith.truncf %25 : vector<24x256xf32> to vector<24x256xbf16>
    %c0_18 = arith.constant 0 : index
    %c0_19 = arith.constant 0 : index
    %c0_20 = arith.constant 0 : index
    %27 = vector.load %arg4[%c0_18, %c0_19, %c0_20] : memref<1x24x256xbf16, #tpu.memory_space<vmem>>, vector<1x24x256xbf16>
    %28 = vector.shape_cast %27 : vector<1x24x256xbf16> to vector<24x256xbf16>
    %29 = vector.shape_cast %26 : vector<24x256xbf16> to vector<1x24x256xbf16>
    tpu.vector_store %arg4[%c0_18, %c0_19, %c0_20], %29 {strides = array<i32>} : memref<1x24x256xbf16, #tpu.memory_space<vmem>>, vector<1x24x256xbf16>,
    return
  }
  func.func @transform_0(%arg0: i32) -> (i32, i32, i32) {
    %c0_i32 = arith.constant 0 : i32
    %c0_i32_0 = arith.constant 0 : i32
    %c0_i32_1 = arith.constant 0 : i32
    return %arg0, %c0_i32, %c0_i32_0 : i32, i32, i32
  }
  func.func @transform_1(%arg0: i32) -> (i32, i32, i32) {
    %c0_i32 = arith.constant 0 : i32
    %c0_i32_0 = arith.constant 0 : i32
    %c0_i32_1 = arith.constant 0 : i32
    %c0_i32_2 = arith.constant 0 : i32
    return %c0_i32, %c0_i32_0, %c0_i32_1 : i32, i32, i32
  }
  func.func @transform_2(%arg0: i32) -> (i32, i32) {
    %c0_i32 = arith.constant 0 : i32
    %c0_i32_0 = arith.constant 0 : i32
    %c0_i32_1 = arith.constant 0 : i32
    return %c0_i32, %c0_i32_0 : i32, i32
  }
  func.func @transform_3(%arg0: i32) -> (i32, i32, i32) {
    %c0_i32 = arith.constant 0 : i32
    %c0_i32_0 = arith.constant 0 : i32
    %c0_i32_1 = arith.constant 0 : i32
    return %arg0, %c0_i32, %c0_i32_0 : i32, i32, i32
  }
}

module attributes {stable_mosaic.version = 11 : i64} {
  func.func @_conv_s1_kernel(%arg0: i32, %arg1: memref<1x48x256xbf16, #tpu.memory_space<vmem>>, %arg2: memref<3x768x256xbf16, #tpu.memory_space<vmem>>, %arg3: memref<1x256xf32, #tpu.memory_space<vmem>>, %arg4: memref<1x24x256xbf16, #tpu.memory_space<vmem>>) attributes {dimension_semantics = [#tpu.dimension_semantics<parallel>], iteration_bounds = array<i64: 2>, scalar_prefetch = 0 : i64, scratch_operands = 0 : i64, tpu.core_type = #tpu.core_type<tc>, window_params = [{transform_indices = @transform_0, window_bounds = array<i64: 1, 48, 256>}, {pipeline_mode = #tpu.pipeline_mode<synchronous>, transform_indices = @transform_1, window_bounds = array<i64: 3, 768, 256>}, {pipeline_mode = #tpu.pipeline_mode<synchronous>, transform_indices = @transform_2, window_bounds = array<i64: 1, 256>}, {transform_indices = @transform_3, window_bounds = array<i64: 1, 24, 256>}]} {
    %c0 = arith.constant 0 : index
    %c0_0 = arith.constant 0 : index
    %c0_1 = arith.constant 0 : index
    %0 = vector.load %arg1[%c0, %c0_0, %c0_1] : memref<1x48x256xbf16, #tpu.memory_space<vmem>>, vector<1x26x256xbf16>
    %1 = vector.shape_cast %0 : vector<1x26x256xbf16> to vector<26x256xbf16>
    %c0_2 = arith.constant 0 : index
    %c8 = arith.constant 8 : index
    %c0_3 = arith.constant 0 : index
    %2 = vector.load %arg1[%c0_2, %c8, %c0_3] : memref<1x48x256xbf16, #tpu.memory_space<vmem>>, vector<1x26x256xbf16>
    %3 = vector.shape_cast %2 : vector<1x26x256xbf16> to vector<26x256xbf16>
    %c0_4 = arith.constant 0 : index
    %c16 = arith.constant 16 : index
    %c0_5 = arith.constant 0 : index
    %4 = vector.load %arg1[%c0_4, %c16, %c0_5] : memref<1x48x256xbf16, #tpu.memory_space<vmem>>, vector<1x26x256xbf16>
    %5 = vector.shape_cast %4 : vector<1x26x256xbf16> to vector<26x256xbf16>
    %6 = tpu.concatenate %1, %3, %5 in 1 : vector<26x256xbf16>, vector<26x256xbf16>, vector<26x256xbf16> -> vector<26x768xbf16>
    %7 = vector.extract_strided_slice %6 {offsets = [0, 0], sizes = [24, 768], strides = [1, 1]} : vector<26x768xbf16> to vector<24x768xbf16>
    %c0_6 = arith.constant 0 : index
    %c0_7 = arith.constant 0 : index
    %c0_8 = arith.constant 0 : index
    %8 = vector.load %arg2[%c0_6, %c0_7, %c0_8] : memref<3x768x256xbf16, #tpu.memory_space<vmem>>, vector<1x768x256xbf16>
    %9 = vector.shape_cast %8 : vector<1x768x256xbf16> to vector<768x256xbf16>
    %cst = arith.constant dense<0.000000e+00> : vector<24x256xf32>
    %10 = tpu.matmul %7, %9, %cst {dimension_numbers = #tpu.dot_dimension_numbers<[1], [0], [0], [1], [0, 0, 1, 1], [], []>} : vector<24x768xbf16>, vector<768x256xbf16>, vector<24x256xf32> -> vector<24x256xf32>
    %11 = vector.extract_strided_slice %6 {offsets = [1, 0], sizes = [24, 768], strides = [1, 1]} : vector<26x768xbf16> to vector<24x768xbf16>
    %c1 = arith.constant 1 : index
    %c0_9 = arith.constant 0 : index
    %c0_10 = arith.constant 0 : index
    %12 = vector.load %arg2[%c1, %c0_9, %c0_10] : memref<3x768x256xbf16, #tpu.memory_space<vmem>>, vector<1x768x256xbf16>
    %13 = vector.shape_cast %12 : vector<1x768x256xbf16> to vector<768x256xbf16>
    %cst_11 = arith.constant dense<0.000000e+00> : vector<24x256xf32>
    %14 = tpu.matmul %11, %13, %cst_11 {dimension_numbers = #tpu.dot_dimension_numbers<[1], [0], [0], [1], [0, 0, 1, 1], [], []>} : vector<24x768xbf16>, vector<768x256xbf16>, vector<24x256xf32> -> vector<24x256xf32>
    %15 = arith.addf %10, %14 : vector<24x256xf32>
    %16 = vector.extract_strided_slice %6 {offsets = [2, 0], sizes = [24, 768], strides = [1, 1]} : vector<26x768xbf16> to vector<24x768xbf16>
    %c2 = arith.constant 2 : index
    %c0_12 = arith.constant 0 : index
    %c0_13 = arith.constant 0 : index
    %17 = vector.load %arg2[%c2, %c0_12, %c0_13] : memref<3x768x256xbf16, #tpu.memory_space<vmem>>, vector<1x768x256xbf16>
    %18 = vector.shape_cast %17 : vector<1x768x256xbf16> to vector<768x256xbf16>
    %cst_14 = arith.constant dense<0.000000e+00> : vector<24x256xf32>
    %19 = tpu.matmul %16, %18, %cst_14 {dimension_numbers = #tpu.dot_dimension_numbers<[1], [0], [0], [1], [0, 0, 1, 1], [], []>} : vector<24x768xbf16>, vector<768x256xbf16>, vector<24x256xf32> -> vector<24x256xf32>
    %20 = arith.addf %15, %19 : vector<24x256xf32>
    %c0_15 = arith.constant 0 : index
    %c0_16 = arith.constant 0 : index
    %21 = vector.load %arg3[%c0_15, %c0_16] : memref<1x256xf32, #tpu.memory_space<vmem>>, vector<1x256xf32>
    %22 = vector.broadcast %21 : vector<1x256xf32> to vector<24x256xf32>
    %23 = arith.addf %20, %22 : vector<24x256xf32>
    %cst_17 = arith.constant 0.000000e+00 : f32
    %24 = vector.broadcast %cst_17 : f32 to vector<24x256xf32>
    %25 = arith.maximumf %23, %24 : vector<24x256xf32>
    %26 = arith.truncf %25 : vector<24x256xf32> to vector<24x256xbf16>
    %c0_18 = arith.constant 0 : index
    %c0_19 = arith.constant 0 : index
    %c0_20 = arith.constant 0 : index
    %27 = vector.load %arg4[%c0_18, %c0_19, %c0_20] : memref<1x24x256xbf16, #tpu.memory_space<vmem>>, vector<1x24x256xbf16>
    %28 = vector.shape_cast %27 : vector<1x24x256xbf16> to vector<24x256xbf16>
    %29 = vector.shape_cast %26 : vector<24x256xbf16> to vector<1x24x256xbf16>
    tpu.vector_store %arg4[%c0_18, %c0_19, %c0_20], %29 {strides = array<i32>} : memref<1x24x256xbf16, #tpu.memory_space<vmem>>, vector<1x24x256xbf16>,
    return
  }
  func.func @transform_0(%arg0: i32) -> (i32, i32, i32) {
    %c0_i32 = arith.constant 0 : i32
    %c0_i32_0 = arith.constant 0 : i32
    %c0_i32_1 = arith.constant 0 : i32
    return %arg0, %c0_i32, %c0_i32_0 : i32, i32, i32
  }
  func.func @transform_1(%arg0: i32) -> (i32, i32, i32) {
    %c0_i32 = arith.constant 0 : i32
    %c0_i32_0 = arith.constant 0 : i32
    %c0_i32_1 = arith.constant 0 : i32
    %c0_i32_2 = arith.constant 0 : i32
    return %c0_i32, %c0_i32_0, %c0_i32_1 : i32, i32, i32
  }
  func.func @transform_2(%arg0: i32) -> (i32, i32) {
    %c0_i32 = arith.constant 0 : i32
    %c0_i32_0 = arith.constant 0 : i32
    %c0_i32_1 = arith.constant 0 : i32
    return %c0_i32, %c0_i32_0 : i32, i32
  }
  func.func @transform_3(%arg0: i32) -> (i32, i32, i32) {
    %c0_i32 = arith.constant 0 : i32
    %c0_i32_0 = arith.constant 0 : i32
    %c0_i32_1 = arith.constant 0 : i32
    return %arg0, %c0_i32, %c0_i32_0 : i32, i32, i32
  }
}

</mosaic_0001>

<bundles_post_ra>
// kernel: alexnet_forward.7
= control target key start
LH: loop header
LB: loop body
LE: loop exit
PB: predicated region body
PF: predicated region fallthrough
CT: control target
= control target key end

     0   :  { %s1966_s12 = smov 0   ;;  %s1968_s13 = smov 0   ;;  %s2216_s0 = inlined_call_operand.vmem [shape: bf16[512,384], index: 0, kind: input, shape index: {}]   ;;  %s2217_s1 = inlined_call_operand.vmem [shape: bf16[384,128], index: 1, kind: input, shape index: {}]   ;;  %s2218_s2 = inlined_call_operand.vmem [shape: f32[1,128], index: 2, kind: input, shape index: {}]   ;;  %s2219_s3 = inlined_call_operand.vmem [shape: bf16[512,128], index: 3, kind: output, shape index: {}]  }
   0x1   :  { %s1970_s14 = smov 0  }
   0x2 LB: > { %s25_s15 = sadd.s32 1, %s1940_s13  ;;  %p1370_p0 = scmp.ge.s32.totalorder %s1944_s14, 1  ;;  %s1944_s14 = sphi %s1970_s14, %s13_s14   ;;  %s1940_s13 = sphi %s1968_s13, %s2221_s13   ;;  %s1936_s12 = sphi %s1966_s12, %s2220_s12  }
   0x3   : > { %p27_p1 = scmp.ge.s32.totalorder %s25_s15, 2  ;;  %p170_p2 = scmp.lt.s32.totalorder %s1944_s14, 3 }
   0x5   : > { %s2223_s15 = smov (%p27_p1, %s25_s15), 0  ;;  %p171_p3 = pnand %p1370_p0, %p170_p2 }
   0x6   : > { %s1371_s18 = sshll.u32 (!%p171_p3), %s1936_s12, 5 }
   0x7   : > { %174 = sbr.rel (%p171_p3) target bundleno = 343 (0x157), region = 32  ;;  %p206_p4 = scmp.lt.s32.totalorder (!%p171_p3), %s1371_s18, 63 }
   0xc   : > { %v1834_v0 = vld [vmem:[%s2217_s1 + $0x78] sm:$0xff]   ;;  %v1836_v2 = vld [vmem:[%s2217_s1 + $0x70] sm:$0xff]   ;;  %v1838_v4 = vld [vmem:[%s2217_s1 + $0x68] sm:$0xff]   ;;  %s2225_s18 = smov (!%p206_p4, %s1371_s18), 63 }
   0xd   : > { %v1835_v1 = vld [vmem:[%s2217_s1 + $0x38] sm:$0xff]   ;;  %1609 = vmatprep.subr.bf16.mxu0 %v1834_v0  ;;  %1793 = vmatprep.subr.bf16.mxu1 %v1834_v0  ;;  %v1837_v3 = vld [vmem:[%s2217_s1 + $0x30] sm:$0xff]   ;;  %v1839_v5 = vld [vmem:[%s2217_s1 + $0x28] sm:$0xff]   ;;  %s1809_s4 = smul.u32 12, %s2225_s18  ;;  %s1374_s25 = sshll.u32 %s2225_s18, 2 }
   0xe   : > { %1610 = vmatpush3.bf16.msra.mxu0 %v1835_v1  ;;  %1801 = vmatpush3.bf16.msra.mxu1 %v1835_v1  ;;  %v1840_v6 = vld [vmem:[%s2217_s1 + $0x60] sm:$0xff]   ;;  %v1842_v8 = vld [vmem:[%s2217_s1 + $0x58] sm:$0xff]   ;;  %v1844_v10 = vld [vmem:[%s2217_s1 + $0x50] sm:$0xff]   ;;  %s2145_s28 = scalar_lea.vmem %s2219_s3, %s1374_s25 }
   0xf   : > { %1611 = vmatprep.subr.bf16.mxu0 %v1836_v2  ;;  %1794 = vmatprep.subr.bf16.mxu1 %v1836_v2  ;;  %v1841_v7 = vld [vmem:[%s2217_s1 + $0x20] sm:$0xff]   ;;  %s2017_s11 = scalar_lea.vmem %s2216_s0, %s1809_s4  ;;  %v1843_v9 = vld [vmem:[%s2217_s1 + $0x18] sm:$0xff]   ;;  %v1845_v13 = vld [vmem:[%s2217_s1 + $0x10] sm:$0xff]  }
  0x10   : > { %v1852_v11 = vld [vmem:[%s2017_s11 + $0x4] ss:$12 sps:$4 sm:$0xff]   ;;  %v1846_v14 = vld [vmem:[%s2217_s1 + $0x48] sm:$0xff]   ;;  %v1856_v18 = vld [vmem:[%s2217_s1 + $0xb8] sm:$0xff]  }
  0x11   : > { %v1855_v12 = vld [vmem:[%s2017_s11 + $0x124] ss:$12 sps:$4 sm:$0xff]   ;;  %780 = vmatprep.mubr.bf16.mxu0 %v1852_v11  ;;  %v1847_v15 = vld [vmem:[%s2217_s1 + $0x8] sm:$0xff]   ;;  %v1866_v28 = vld [vmem:[%s2017_s11 + $0x34] ss:$12 sps:$4 sm:$0xff]  }
  0x12   : > { %1612 = vmatpush3.bf16.msra.mxu0 %v1837_v3  ;;  %1802 = vmatpush3.bf16.msra.mxu1 %v1837_v3  ;;  %v1848_v16 = vld [vmem:[%s2217_s1 + $0x40] sm:$0xff]   ;;  %v1858_v21 = vld [vmem:[%s2017_s11 + $0x1c] ss:$12 sps:$4 sm:$0xff]   ;;  %v1857_v22 = vld [vmem:[%s2217_s1 + $0xb0] sm:$0xff]  }
  0x13   : > { %1613 = vmatprep.subr.bf16.mxu0 %v1838_v4  ;;  %1795 = vmatprep.subr.bf16.mxu1 %v1838_v4  ;;  %v1849_v17 = vld [vmem:[%s2217_s1] sm:$0xff]   ;;  %v1860_v23 = vld [vmem:[%s2017_s11 + $0x13c] ss:$12 sps:$4 sm:$0xff]   ;;  %v1873_v33 = vld [vmem:[%s2217_s1 + $0x90] sm:$0xff]  }
  0x14   : > { %876 = vmatprep.mubr.bf16.mxu1 %v1855_v12  ;;  %v1850_v19 = vld [vmem:[%s2017_s11] ss:$12 sps:$4 sm:$0xff]   ;;  %v1862_v24 = vld [vmem:[%s2017_s11 + $0x18] ss:$12 sps:$4 sm:$0xff]   ;;  %v1870_v31 = vld [vmem:[%s2017_s11 + $0x30] ss:$12 sps:$4 sm:$0xff]  }
  0x15   : > { %v1853_v20 = vld [vmem:[%s2017_s11 + $0x120] ss:$12 sps:$4 sm:$0xff]   ;;  %v1863_v26 = vld [vmem:[%s2017_s11 + $0x138] ss:$12 sps:$4 sm:$0xff]   ;;  %v1871_v32 = vld [vmem:[%s2017_s11 + $0x150] ss:$12 sps:$4 sm:$0xff]  }
  0x16   : > { %1614 = vmatpush3.bf16.msra.mxu0 %v1839_v5  ;;  %1803 = vmatpush3.bf16.msra.mxu1 %v1839_v5  ;;  %v1864_v25 = vld [vmem:[%s2217_s1 + $0xa8] sm:$0xff]   ;;  %v1865_v27 = vld [vmem:[%s2217_s1 + $0xa0] sm:$0xff]   ;;  %v1872_v30 = vld [vmem:[%s2217_s1 + $0x98] sm:$0xff]  }
  0x17   : > { %1615 = vmatprep.subr.bf16.mxu0 %v1840_v6  ;;  %1796 = vmatprep.subr.bf16.mxu1 %v1840_v6  ;;  %v1868_v29 = vld [vmem:[%s2017_s11 + $0x154] ss:$12 sps:$4 sm:$0xff]   ;;  %v1874_v34 = vld [vmem:[%s2017_s11 + $0x4c] ss:$12 sps:$4 sm:$0xff]   ;;  %v1882_v39 = vld [vmem:[%s2017_s11 + $0x64] ss:$12 sps:$4 sm:$0xff]  }
  0x18   : > { %v1876_v35 = vld [vmem:[%s2017_s11 + $0x16c] ss:$12 sps:$4 sm:$0xff]   ;;  %v1878_v37 = vld [vmem:[%s2017_s11 + $0x48] ss:$12 sps:$4 sm:$0xff]   ;;  %v1881_v40 = vld [vmem:[%s2217_s1 + $0x80] sm:$0xff]  }
  0x19   : > { %v1880_v36 = vld [vmem:[%s2217_s1 + $0x88] sm:$0xff]   ;;  %v1889_v45 = vld [vmem:[%s2017_s11 + $0x38] ss:$12 sps:$4 sm:$0xff]   ;;  %v1891_v47 = vld [vmem:[%s2017_s11 + $0x50] ss:$12 sps:$4 sm:$0xff]  }
  0x1a   : > { %1616 = vmatpush3.bf16.msra.mxu0 %v1841_v7  ;;  %1804 = vmatpush3.bf16.msra.mxu1 %v1841_v7  ;;  %v1879_v38 = vld [vmem:[%s2017_s11 + $0x168] ss:$12 sps:$4 sm:$0xff]   ;;  %v1885_v42 = vld [vmem:[%s2017_s11 + $0x60] ss:$12 sps:$4 sm:$0xff]   ;;  %v1890_v46 = vld [vmem:[%s2017_s11 + $0x78] ss:$12 sps:$4 sm:$0xff]  }
  0x1b   : > { %1617 = vmatprep.subr.bf16.mxu0 %v1842_v8  ;;  %1797 = vmatprep.subr.bf16.mxu1 %v1842_v8  ;;  %v1884_v41 = vld [vmem:[%s2017_s11 + $0x8] ss:$12 sps:$4 sm:$0xff]   ;;  %v1886_v43 = vld [vmem:[%s2017_s11 + $0x20] ss:$12 sps:$4 sm:$0xff]   ;;  %v1895_v50 = vld [vmem:[%s2017_s11 + $0x90] ss:$12 sps:$4 sm:$0xff]  }
  0x1c   : > { %v1887_v44 = vld [vmem:[%s2017_s11 + $0x7c] ss:$12 sps:$4 sm:$0xff]   ;;  %v1892_v48 = vld [vmem:[%s2017_s11 + $0x94] ss:$12 sps:$4 sm:$0xff]   ;;  %v1897_v52 = vld [vmem:[%s2017_s11 + $0xac] ss:$12 sps:$4 sm:$0xff]  }
  0x1d   : > { %v1894_v49 = vld [vmem:[%s2017_s11 + $0x68] ss:$12 sps:$4 sm:$0xff]   ;;  %v1896_v51 = vld [vmem:[%s2017_s11 + $0x80] ss:$12 sps:$4 sm:$0xff]   ;;  %v1899_v53 = vld [vmem:[%s2017_s11 + $0x98] ss:$12 sps:$4 sm:$0xff]  }
  0x1e   : > { %1618 = vmatpush3.bf16.msra.mxu0 %v1843_v9  ;;  %1805 = vmatpush3.bf16.msra.mxu1 %v1843_v9  ;;  %v1900_v54 = vld [vmem:[%s2017_s11 + $0xa8] ss:$12 sps:$4 sm:$0xff]   ;;  %v1901_v55 = vld [vmem:[%s2017_s11 + $0xb0] ss:$12 sps:$4 sm:$0xff]   ;;  %v1905_v58 = vld [vmem:[%s2017_s11 + $0xc0] ss:$12 sps:$4 sm:$0xff]  }
  0x1f   : > { %1619 = vmatprep.subr.bf16.mxu0 %v1844_v10  ;;  %1798 = vmatprep.subr.bf16.mxu1 %v1844_v10  ;;  %v1902_v56 = vld [vmem:[%s2017_s11 + $0xc4] ss:$12 sps:$4 sm:$0xff]   ;;  %v1904_v57 = vld [vmem:[%s2017_s11 + $0xc8] ss:$12 sps:$4 sm:$0xff]   ;;  %v1906_v59 = vld [vmem:[%s2017_s11 + $0xe0] ss:$12 sps:$4 sm:$0xff]  }
  0x20   : > { %v1907_v60 = vld [vmem:[%s2017_s11 + $0xdc] ss:$12 sps:$4 sm:$0xff]   ;;  %v1909_v61 = vld [vmem:[%s2017_s11 + $0xf8] ss:$12 sps:$4 sm:$0xff]   ;;  %v1912_v0 = vld [vmem:[%s2017_s11 + $0xf4] ss:$12 sps:$4 sm:$0xff]  }
  0x21   : > { %v1910_v62 = vld [vmem:[%s2017_s11 + $0xd8] ss:$12 sps:$4 sm:$0xff]   ;;  %v1911_v63 = vld [vmem:[%s2017_s11 + $0x110] ss:$12 sps:$4 sm:$0xff]   ;;  %v1914_v1 = vld [vmem:[%s2017_s11 + $0x128] ss:$12 sps:$4 sm:$0xff]  }
  0x22   : > { %1620 = vmatpush3.bf16.msra.mxu0 %v1845_v13  ;;  %1806 = vmatpush3.bf16.msra.mxu1 %v1845_v13  ;;  %v1915_v2 = vld [vmem:[%s2017_s11 + $0xf0] ss:$12 sps:$4 sm:$0xff]   ;;  %v1916_v3 = vld [vmem:[%s2017_s11 + $0x140] ss:$12 sps:$4 sm:$0xff]   ;;  %v1919_v5 = vld [vmem:[%s2017_s11 + $0x158] ss:$12 sps:$4 sm:$0xff]  }
  0x23   : > { %1621 = vmatprep.subr.bf16.mxu0 %v1846_v14  ;;  %1799 = vmatprep.subr.bf16.mxu1 %v1846_v14  ;;  %v1917_v4 = vld [vmem:[%s2017_s11 + $0x10c] ss:$12 sps:$4 sm:$0xff]   ;;  %v1920_v6 = vld [vmem:[%s2017_s11 + $0x108] ss:$12 sps:$4 sm:$0xff]   ;;  %v1921_v7 = vld [vmem:[%s2017_s11 + $0x170] ss:$12 sps:$4 sm:$0xff]  }
  0x26   : > { %1622 = vmatpush3.bf16.msra.mxu0 %v1847_v15  ;;  %1807 = vmatpush3.bf16.msra.mxu1 %v1847_v15 }
  0x27   : > { %1623 = vmatprep.subr.bf16.mxu0 %v1848_v16  ;;  %1800 = vmatprep.subr.bf16.mxu1 %v1848_v16 }
  0x2a   : > { %1624 = vmatpush3.bf16.msra.mxu0 %v1849_v17  ;;  %1808 = vmatpush3.bf16.msra.mxu1 %v1849_v17 }
  0x2b   : > { %1745 = vmatprep.subr.bf16.mxu1 %v1856_v18 }
  0x2d   : > { %781 = vmatmul.mubr.bf16.vlgmr.msra.gmra.mxu0 %v1850_v19  ;;  %877 = vmatmul.mubr.bf16.vlgmr.msra.gmra.mxu1 %v1853_v20 }
  0x2e   : > { %1746 = vmatpush3.bf16.msra.mxu1 %v1856_v18  ;;  %788 = vmatprep.mubr.bf16.mxu0 %v1858_v21 }
  0x2f   : > { %1747 = vmatprep.subr.bf16.mxu1 %v1857_v22  ;;  %884 = vmatprep.mubr.bf16.mxu1 %v1860_v23 }
  0x32   : > { %1748 = vmatpush3.bf16.msra.mxu1 %v1857_v22 }
  0x33   : > { %1749 = vmatprep.subr.bf16.mxu1 %v1864_v25 }
  0x35   : > { %789 = vmatmul.mubr.bf16.gmra.mxu0 %v1862_v24  ;;  %885 = vmatmul.mubr.bf16.gmra.mxu1 %v1863_v26 }
  0x36   : > { %1750 = vmatpush3.bf16.msra.mxu1 %v1864_v25  ;;  %796 = vmatprep.mubr.bf16.mxu0 %v1866_v28 }
  0x37   : > { %1751 = vmatprep.subr.bf16.mxu1 %v1865_v27  ;;  %892 = vmatprep.mubr.bf16.mxu1 %v1868_v29 }
  0x3a   : > { %1752 = vmatpush3.bf16.msra.mxu1 %v1865_v27 }
  0x3b   : > { %1753 = vmatprep.subr.bf16.mxu1 %v1872_v30 }
  0x3d   : > { %797 = vmatmul.mubr.bf16.gmra.mxu0 %v1870_v31  ;;  %893 = vmatmul.mubr.bf16.gmra.mxu1 %v1871_v32 }
  0x3e   : > { %1754 = vmatpush3.bf16.msra.mxu1 %v1872_v30  ;;  %804 = vmatprep.mubr.bf16.mxu0 %v1874_v34 }
  0x3f   : > { %1755 = vmatprep.subr.bf16.mxu1 %v1873_v33  ;;  %900 = vmatprep.mubr.bf16.mxu1 %v1876_v35 }
  0x42   : > { %1756 = vmatpush3.bf16.msra.mxu1 %v1873_v33 }
  0x43   : > { %1757 = vmatprep.subr.bf16.mxu1 %v1880_v36 }
  0x45   : > { %805 = vmatmul.mubr.bf16.gmra.mxu0 %v1878_v37  ;;  %901 = vmatmul.mubr.bf16.gmra.mxu1 %v1879_v38 }
  0x46   : > { %1758 = vmatpush3.bf16.msra.mxu1 %v1880_v36  ;;  %812 = vmatprep.mubr.bf16.mxu0 %v1882_v39 }
  0x47   : > { %1759 = vmatprep.subr.bf16.mxu1 %v1881_v40  ;;  %1761 = vmatprep.mubr.bf16.mxu1 %v1884_v41 }
  0x4a   : > { %1760 = vmatpush3.bf16.msra.mxu1 %v1881_v40 }
  0x4d   : > { %813 = vmatmul.mubr.bf16.gmra.mxu0 %v1885_v42  ;;  %1762 = vmatmul.mubr.bf16.vlgmr.msra.gmra.mxu1 %v1886_v43 }
  0x4e   : > { %820 = vmatprep.mubr.bf16.mxu0 %v1887_v44  ;;  %1765 = vmatprep.mubr.bf16.mxu1 %v1889_v45 }
  0x55   : > { %821 = vmatmul.mubr.bf16.gmra.mxu0 %v1890_v46  ;;  %1766 = vmatmul.mubr.bf16.gmra.mxu1 %v1891_v47 }
  0x56   : > { %828 = vmatprep.mubr.bf16.mxu0 %v1892_v48  ;;  %1769 = vmatprep.mubr.bf16.mxu1 %v1894_v49 }
  0x5d   : > { %829 = vmatmul.mubr.bf16.gmra.mxu0 %v1895_v50  ;;  %1770 = vmatmul.mubr.bf16.gmra.mxu1 %v1896_v51  ;;  %v2135_v50 = vld [vmem:[%s2218_s2] ss:$0 sm:$0xff] }
  0x5e   : > { %836 = vmatprep.mubr.bf16.mxu0 %v1897_v52  ;;  %1773 = vmatprep.mubr.bf16.mxu1 %v1899_v53 }
  0x65   : > { %837 = vmatmul.mubr.bf16.gmra.mxu0 %v1900_v54  ;;  %1774 = vmatmul.mubr.bf16.gmra.mxu1 %v1901_v55 }
  0x66   : > { %844 = vmatprep.mubr.bf16.mxu0 %v1902_v56  ;;  %1777 = vmatprep.mubr.bf16.mxu1 %v1904_v57 }
  0x6d   : > { %845 = vmatmul.mubr.bf16.gmra.mxu0 %v1905_v58  ;;  %1778 = vmatmul.mubr.bf16.gmra.mxu1 %v1906_v59 }
  0x6e   : > { %852 = vmatprep.mubr.bf16.mxu0 %v1907_v60  ;;  %1781 = vmatprep.mubr.bf16.mxu1 %v1909_v61 }
  0x75   : > { %853 = vmatmul.mubr.bf16.gmra.mxu0 %v1910_v62  ;;  %1782 = vmatmul.mubr.bf16.gmra.mxu1 %v1911_v63 }
  0x76   : > { %860 = vmatprep.mubr.bf16.mxu0 %v1912_v0  ;;  %1785 = vmatprep.mubr.bf16.mxu1 %v1914_v1 }
  0x7d   : > { %861 = vmatmul.mubr.bf16.gmra.mxu0 %v1915_v2  ;;  %1786 = vmatmul.mubr.bf16.gmra.mxu1 %v1916_v3 }
  0x7e   : > { %868 = vmatprep.mubr.bf16.mxu0 %v1917_v4  ;;  %1789 = vmatprep.mubr.bf16.mxu1 %v1919_v5 }
  0x85   : > { %869 = vmatmul.mubr.bf16.gmra.mxu0 %v1920_v6  ;;  %1790 = vmatmul.mubr.bf16.gmra.mxu1 %v1921_v7 }
  0xed   : > { %v1625_v8 = vpop.f32.mrf.mxu0  ;;  %v1697_v9 = vpop.f32.mrf.mxu1 }
  0xef   : > { %v1626_v10 = vpop.f32.mrf.mxu0  ;;  %v1698_v11 = vpop.f32.mrf.mxu1 }
  0xf0   : > { %v2112_v12 = vadd.f32 %v1698_v11, %v1697_v9  ;;  %v1627_v47 = vadd.f32 %v1626_v10, %v1625_v8 }
  0xf1   : > { %v1628_v13 = vpop.f32.mrf.mxu0  ;;  %v1700_v14 = vpop.f32.mrf.mxu1 }
  0xf2   : > { %v783_v57 = vadd.f32 %v1627_v47, %v2135_v50 }
  0xf3   : > { %v1629_v15 = vpop.f32.mrf.mxu0  ;;  %v1701_v16 = vpop.f32.mrf.mxu1 }
  0xf4   : > { %v2114_v17 = vadd.f32 %v1701_v16, %v1700_v14  ;;  %v1630_v52 = vadd.f32 %v1629_v15, %v1628_v13 }
  0xf5   : > { %v1631_v18 = vpop.f32.mrf.mxu0  ;;  %v1703_v19 = vpop.f32.mrf.mxu1 }
  0xf6   : > { %v786_v0 = vadd.f32 %v1630_v52, %v2135_v50 }
  0xf7   : > { %v1632_v20 = vpop.f32.mrf.mxu0  ;;  %v1704_v21 = vpop.f32.mrf.mxu1 }
  0xf8   : > { %v2116_v22 = vadd.f32 %v1704_v21, %v1703_v19  ;;  %v1633_v44 = vadd.f32 %v1632_v20, %v1631_v18 }
  0xf9   : > { %v1634_v23 = vpop.f32.mrf.mxu0  ;;  %v1706_v24 = vpop.f32.mrf.mxu1 }
  0xfa   : > { %v791_v53 = vadd.f32 %v1633_v44, %v2135_v50 }
  0xfb   : > { %v1635_v25 = vpop.f32.mrf.mxu0  ;;  %v1707_v26 = vpop.f32.mrf.mxu1 }
  0xfc   : > { %v2118_v27 = vadd.f32 %v1707_v26, %v1706_v24  ;;  %v1636_v48 = vadd.f32 %v1635_v25, %v1634_v23 }
  0xfd   : > { %v1637_v28 = vpop.f32.mrf.mxu0  ;;  %v1709_v29 = vpop.f32.mrf.mxu1 }
  0xfe   : > { %v794_v58 = vadd.f32 %v1636_v48, %v2135_v50 }
  0xff   : > { %v1638_v30 = vpop.f32.mrf.mxu0  ;;  %v1710_v31 = vpop.f32.mrf.mxu1 }
 0x100   : > { %v2120_v32 = vadd.f32 %v1710_v31, %v1709_v29  ;;  %v1639_v1 = vadd.f32 %v1638_v30, %v1637_v28 }
 0x101   : > { %v1640_v33 = vpop.f32.mrf.mxu0  ;;  %v1712_v34 = vpop.f32.mrf.mxu1 }
 0x102   : > { %v799_v21 = vadd.f32 %v1639_v1, %v2135_v50 }
 0x103   : > { %v1641_v35 = vpop.f32.mrf.mxu0  ;;  %v1713_v36 = vpop.f32.mrf.mxu1 }
 0x104   : > { %v2122_v37 = vadd.f32 %v1713_v36, %v1712_v34  ;;  %v1642_v8 = vadd.f32 %v1641_v35, %v1640_v33 }
 0x105   : > { %v1643_v38 = vpop.f32.mrf.mxu0  ;;  %v2124_v39 = vpop.f32.mrf.mxu1 }
 0x106   : > { %v802_v30 = vadd.f32 %v1642_v8, %v2135_v50 }
 0x107   : > { %v1644_v40 = vpop.f32.mrf.mxu0  ;;  %v2126_v41 = vpop.f32.mrf.mxu1 }
 0x108   : > { %v1645_v61 = vadd.f32 %v1644_v40, %v1643_v38 }
 0x109   : > { %v1646_v42 = vpop.f32.mrf.mxu0  ;;  %v2128_v43 = vpop.f32.mrf.mxu1 }
 0x10a   : > { %v807_v15 = vadd.f32 %v1645_v61, %v2135_v50 }
 0x10b   : > { %v1647_v45 = vpop.f32.mrf.mxu0  ;;  %v2130_v46 = vpop.f32.mrf.mxu1 }
 0x10c   : > { %v1648_v4 = vadd.f32 %v1647_v45, %v1646_v42 }
 0x10d   : > { %v1649_v49 = vpop.f32.mrf.mxu0  ;;  %v1763_v51 = vpop.f32.mrf.mxu1 }
 0x10e   : > { %v952_v56 = vadd.f32 %v1763_v51, %v791_v53  ;;  %v810_v23 = vadd.f32 %v1648_v4, %v2135_v50 }
 0x10f   : > { %v1650_v54 = vpop.f32.mrf.mxu0  ;;  %v943_v55 = vpop.f32.mrf.mxu1 }
 0x110   : > { %v944_v62 = vadd.f32 %v943_v55, %v783_v57  ;;  %v1072_v5 = vmax.f32 %v952_v56, 0.0  ;;  %v1651_v31 = vadd.f32 %v1650_v54, %v1649_v49 }
 0x111   : > { %v1652_v59 = vpop.f32.mrf.mxu0  ;;  %v1764_v60 = vpop.f32.mrf.mxu1 }
 0x112   : > { %v955_v63 = vadd.f32 %v1764_v60, %v794_v58  ;;  %v1070_v11 = vmax.f32 %v944_v62, 0.0  ;;  %v815_v56 = vadd.f32 %v1651_v31, %v2135_v50 }
 0x113   : > { %v1653_v2 = vpop.f32.mrf.mxu0  ;;  %v946_v3 = vpop.f32.mrf.mxu1 }
 0x114   : > { %v1073_v6 = vmax.f32 %v955_v63, 0.0  ;;  %v947_v7 = vadd.f32 %v946_v3, %v786_v0  ;;  %v1654_v42 = vadd.f32 %v1653_v2, %v1652_v59 }
 0x115   : > { %v1655_v9 = vpop.f32.mrf.mxu0  ;;  %v1767_v10 = vpop.f32.mrf.mxu1 }
 0x116   : > { %v1522_v13 = vpack.c.bf16 %v1073_v6, %v1072_v5  ;;  %v1071_v14 = vmax.f32 %v947_v7, 0.0  ;;  %v968_v20 = vadd.f32 %v1767_v10, %v807_v15  ;;  %v818_v62 = vadd.f32 %v1654_v42, %v2135_v50 }
 0x117   : > { %v1656_v16 = vpop.f32.mrf.mxu0  ;;  %v959_v18 = vpop.f32.mrf.mxu1 }
 0x118   : > { %1594 = vst [vmem:[%s2145_s28 + $0x8] sm:$0xff] %v1522_v13   ;;  %v1517_v19 = vpack.c.bf16 %v1071_v14, %v1070_v11  ;;  %v1657_v26 = vadd.f32 %v1656_v16, %v1655_v9  ;;  %v960_v28 = vadd.f32 %v959_v18, %v799_v21  ;;  %v1076_v35 = vmax.f32 %v968_v20, 0.0 }
 0x119   : > { %v1658_v24 = vpop.f32.mrf.mxu0  ;;  %v1768_v25 = vpop.f32.mrf.mxu1 }
 0x11a   : > { %1518 = vst [vmem:[%s2145_s28] sm:$0xff] %v1517_v19   ;;  %v971_v29 = vadd.f32 %v1768_v25, %v810_v23  ;;  %v1074_v47 = vmax.f32 %v960_v28, 0.0  ;;  %v823_v52 = vadd.f32 %v1657_v26, %v2135_v50 }
 0x11b   : > { %v1659_v33 = vpop.f32.mrf.mxu0  ;;  %v962_v34 = vpop.f32.mrf.mxu1 }
 0x11c   : > { %v1077_v36 = vmax.f32 %v971_v29, 0.0  ;;  %v1660_v38 = vadd.f32 %v1659_v33, %v1658_v24  ;;  %v963_v40 = vadd.f32 %v962_v34, %v802_v30 }
 0x11d   : > { %v1661_v44 = vpop.f32.mrf.mxu0  ;;  %v1771_v45 = vpop.f32.mrf.mxu1 }
 0x11e   : > { %v1532_v48 = vpack.c.bf16 %v1077_v36, %v1076_v35  ;;  %v1075_v51 = vmax.f32 %v963_v40, 0.0  ;;  %v984_v54 = vadd.f32 %v1771_v45, %v823_v52  ;;  %v826_v57 = vadd.f32 %v1660_v38, %v2135_v50 }
 0x11f   : > { %v1662_v53 = vpop.f32.mrf.mxu0  ;;  %v975_v55 = vpop.f32.mrf.mxu1 }
 0x120   : > { %1596 = vst [vmem:[%s2145_s28 + $0x18] sm:$0xff] %v1532_v48   ;;  %v1527_v49 = vpack.c.bf16 %v1075_v51, %v1074_v47  ;;  %v976_v59 = vadd.f32 %v975_v55, %v815_v56  ;;  %v1080_v1 = vmax.f32 %v984_v54, 0.0  ;;  %v1663_v2 = vadd.f32 %v1662_v53, %v1661_v44 }
 0x121   : > { %v1664_v58 = vpop.f32.mrf.mxu0  ;;  %v1772_v60 = vpop.f32.mrf.mxu1 }
 0x122   : > { %1595 = vst [vmem:[%s2145_s28 + $0x10] sm:$0xff] %v1527_v49   ;;  %v987_v61 = vadd.f32 %v1772_v60, %v826_v57  ;;  %v1078_v7 = vmax.f32 %v976_v59, 0.0  ;;  %v831_v16 = vadd.f32 %v1663_v2, %v2135_v50 }
 0x123   : > { %v1665_v63 = vpop.f32.mrf.mxu0  ;;  %v978_v0 = vpop.f32.mrf.mxu1 }
 0x124   : > { %v1081_v3 = vmax.f32 %v987_v61, 0.0  ;;  %v979_v4 = vadd.f32 %v978_v0, %v818_v62  ;;  %v1666_v9 = vadd.f32 %v1665_v63, %v1664_v58 }
 0x125   : > { %v1667_v5 = vpop.f32.mrf.mxu0  ;;  %v1775_v6 = vpop.f32.mrf.mxu1 }
 0x126   : > { %v1542_v8 = vpack.c.bf16 %v1081_v3, %v1080_v1  ;;  %v1079_v10 = vmax.f32 %v979_v4, 0.0  ;;  %v834_v23 = vadd.f32 %v1666_v9, %v2135_v50 }
 0x127   : > { %v1668_v11 = vpop.f32.mrf.mxu0  ;;  %v991_v13 = vpop.f32.mrf.mxu1 }
 0x128   : > { %1598 = vst [vmem:[%s2145_s28 + $0x28] sm:$0xff] %v1542_v8   ;;  %v1537_v14 = vpack.c.bf16 %v1079_v10, %v1078_v7  ;;  %v1669_v15 = vadd.f32 %v1668_v11, %v1667_v5  ;;  %v992_v21 = vadd.f32 %v991_v13, %v831_v16 }
 0x129   : > { %v1670_v18 = vpop.f32.mrf.mxu0  ;;  %v1776_v19 = vpop.f32.mrf.mxu1 }
 0x12a   : > { %1597 = vst [vmem:[%s2145_s28 + $0x20] sm:$0xff] %v1537_v14   ;;  %v839_v20 = vadd.f32 %v1669_v15, %v2135_v50  ;;  %v1082_v33 = vmax.f32 %v992_v21, 0.0  ;;  %v887_v14 = vadd.f32 %v2116_v22, %v2135_v50  ;;  %v890_v21 = vadd.f32 %v2118_v27, %v2135_v50 }
 0x12b   : > { %v1671_v24 = vpop.f32.mrf.mxu0  ;;  %v994_v25 = vpop.f32.mrf.mxu1  ;;  %v882_v27 = vadd.f32 %v2114_v17, %v2135_v50 }
 0x12c   : > { %v1672_v26 = vadd.f32 %v1671_v24, %v1670_v18  ;;  %v995_v28 = vadd.f32 %v994_v25, %v834_v23  ;;  %v1000_v31 = vadd.f32 %v1775_v6, %v839_v20  ;;  %v1717_v23 = vadd.f32 %v2126_v41, %v2124_v39 }
 0x12d   : > { %v1673_v29 = vpop.f32.mrf.mxu0  ;;  %v1779_v30 = vpop.f32.mrf.mxu1  ;;  %v879_v24 = vadd.f32 %v2112_v12, %v2135_v50 }
 0x12e   : > { %v842_v34 = vadd.f32 %v1672_v26, %v2135_v50  ;;  %v1083_v35 = vmax.f32 %v995_v28, 0.0  ;;  %v1084_v48 = vmax.f32 %v1000_v31, 0.0  ;;  %v1720_v31 = vadd.f32 %v2130_v46, %v2128_v43 }
 0x12f   : > { %v1674_v36 = vpop.f32.mrf.mxu0  ;;  %v1007_v38 = vpop.f32.mrf.mxu1  ;;  %v903_v43 = vadd.f32 %v1717_v23, %v2135_v50 }
 0x130   : > { %v1003_v40 = vadd.f32 %v1776_v19, %v842_v34  ;;  %v1547_v42 = vpack.c.bf16 %v1083_v35, %v1082_v33  ;;  %v1675_v44 = vadd.f32 %v1674_v36, %v1673_v29 }
 0x131   : > { %v1676_v45 = vpop.f32.mrf.mxu0  ;;  %v1780_v47 = vpop.f32.mrf.mxu1 }
 0x132   : > { %v1085_v51 = vmax.f32 %v1003_v40, 0.0  ;;  %1599 = vst [vmem:[%s2145_s28 + $0x30] sm:$0xff] %v1547_v42   ;;  %v847_v52 = vadd.f32 %v1675_v44, %v2135_v50 }
 0x133   : > { %v1677_v53 = vpop.f32.mrf.mxu0  ;;  %v1010_v55 = vpop.f32.mrf.mxu1 }
 0x134   : > { %v1552_v49 = vpack.c.bf16 %v1085_v51, %v1084_v48  ;;  %v1678_v54 = vadd.f32 %v1677_v53, %v1676_v45  ;;  %v1008_v58 = vadd.f32 %v1007_v38, %v847_v52 }
 0x135   : > { %v1679_v56 = vpop.f32.mrf.mxu0  ;;  %v2167_v57 = vpop.f32.mrf.mxu1 }
 0x136   : > { %1600 = vst [vmem:[%s2145_s28 + $0x38] sm:$0xff] %v1552_v49   ;;  %v850_v60 = vadd.f32 %v1678_v54, %v2135_v50  ;;  %v1086_v2 = vmax.f32 %v1008_v58, 0.0  ;;  %v906_v49 = vadd.f32 %v1720_v31, %v2135_v50 }
 0x137   : > { %v1680_v59 = vpop.f32.mrf.mxu0  ;;  %v1023_v61 = vpop.f32.mrf.mxu1 }
 0x138   : > { %v1011_v62 = vadd.f32 %v1010_v55, %v850_v60  ;;  %v1681_v63 = vadd.f32 %v1680_v59, %v1679_v56  ;;  %v895_v56 = vadd.f32 %v2120_v32, %v2135_v50 }
 0x139   : > { %v1682_v0 = vpop.f32.mrf.mxu0  ;;  %v2171_v1 = vpop.f32.mrf.mxu1 }
 0x13a   : > { %v1087_v3 = vmax.f32 %v1011_v62, 0.0  ;;  %v855_v4 = vadd.f32 %v1681_v63, %v2135_v50 }
 0x13b   : > { %v1683_v5 = vpop.f32.mrf.mxu0  ;;  %v1026_v6 = vpop.f32.mrf.mxu1 }
 0x13c   : > { %v1557_v7 = vpack.c.bf16 %v1087_v3, %v1086_v2  ;;  %v1684_v8 = vadd.f32 %v1683_v5, %v1682_v0  ;;  %v1016_v11 = vadd.f32 %v1779_v30, %v855_v4  ;;  %v898_v3 = vadd.f32 %v2122_v37, %v2135_v50 }
 0x13d   : > { %v1685_v9 = vpop.f32.mrf.mxu0  ;;  %v1787_v10 = vpop.f32.mrf.mxu1 }
 0x13e   : > { %1601 = vst [vmem:[%s2145_s28 + $0x40] sm:$0xff] %v1557_v7   ;;  %v858_v13 = vadd.f32 %v1684_v8, %v2135_v50  ;;  %v1048_v19 = vadd.f32 %v1787_v10, %v887_v14  ;;  %v1088_v28 = vmax.f32 %v1016_v11, 0.0 }
 0x13f   : > { %v1686_v15 = vpop.f32.mrf.mxu0  ;;  %v1039_v16 = vpop.f32.mrf.mxu1 }
 0x140   : > { %v1019_v18 = vadd.f32 %v1780_v47, %v858_v13  ;;  %v1687_v20 = vadd.f32 %v1686_v15, %v1685_v9  ;;  %v1040_v33 = vadd.f32 %v1039_v16, %v879_v24  ;;  %v1096_v12 = vmax.f32 %v1048_v19, 0.0 }
 0x141   : > { %v1688_v25 = vpop.f32.mrf.mxu0  ;;  %v1788_v26 = vpop.f32.mrf.mxu1 }
 0x142   : > { %v1089_v29 = vmax.f32 %v1019_v18, 0.0  ;;  %v863_v22 = vadd.f32 %v1687_v20, %v2135_v50  ;;  %v1051_v30 = vadd.f32 %v1788_v26, %v890_v21  ;;  %v1094_v46 = vmax.f32 %v1040_v33, 0.0 }
 0x143   : > { %v1689_v34 = vpop.f32.mrf.mxu0  ;;  %v1042_v39 = vpop.f32.mrf.mxu1 }
 0x144   : > { %v1562_v41 = vpack.c.bf16 %v1089_v29, %v1088_v28  ;;  %v1097_v35 = vmax.f32 %v1051_v30, 0.0  ;;  %v1690_v36 = vadd.f32 %v1689_v34, %v1688_v25  ;;  %v1043_v38 = vadd.f32 %v1042_v39, %v882_v27 }
 0x145   : > { %v1691_v40 = vpop.f32.mrf.mxu0  ;;  %v1791_v42 = vpop.f32.mrf.mxu1  ;;  %v1024_v44 = vadd.f32 %v1023_v61, %v863_v22 }
 0x146   : > { %1602 = vst [vmem:[%s2145_s28 + $0x48] sm:$0xff] %v1562_v41   ;;  %v1582_v45 = vpack.c.bf16 %v1097_v35, %v1096_v12  ;;  %v866_v47 = vadd.f32 %v1690_v36, %v2135_v50  ;;  %v1095_v48 = vmax.f32 %v1043_v38, 0.0  ;;  %v1064_v53 = vadd.f32 %v1791_v42, %v903_v43 }
 0x147   : > { %v1692_v17 = vpop.f32.mrf.mxu0  ;;  %v1055_v51 = vpop.f32.mrf.mxu1  ;;  %v1090_v59 = vmax.f32 %v1024_v44, 0.0 }
 0x148   : > { %1606 = vst [vmem:[%s2145_s28 + $0x68] sm:$0xff] %v1582_v45   ;;  %v1027_v52 = vadd.f32 %v1026_v6, %v866_v47  ;;  %v1693_v55 = vadd.f32 %v1692_v17, %v1691_v40  ;;  %v1577_v54 = vpack.c.bf16 %v1095_v48, %v1094_v46  ;;  %v1056_v0 = vadd.f32 %v1055_v51, %v895_v56 }
 0x149   : > { %v1694_v58 = vpop.f32.mrf.mxu0  ;;  %v1792_v60 = vpop.f32.mrf.mxu1  ;;  %v1100_v6 = vmax.f32 %v1064_v53, 0.0 }
 0x14a   : > { %v1091_v61 = vmax.f32 %v1027_v52, 0.0  ;;  %v871_v62 = vadd.f32 %v1693_v55, %v2135_v50  ;;  %v1067_v63 = vadd.f32 %v1792_v60, %v906_v49  ;;  %1605 = vst [vmem:[%s2145_s28 + $0x60] sm:$0xff] %v1577_v54   ;;  %v1098_v13 = vmax.f32 %v1056_v0, 0.0 }
 0x14b   : > { %v1695_v2 = vpop.f32.mrf.mxu0  ;;  %v1058_v4 = vpop.f32.mrf.mxu1 }
 0x14c   : > { %v1567_v5 = vpack.c.bf16 %v1091_v61, %v1090_v59  ;;  %v1101_v32 = vmax.f32 %v1067_v63, 0.0  ;;  %v1696_v7 = vadd.f32 %v1695_v2, %v1694_v58  ;;  %v1059_v8 = vadd.f32 %v1058_v4, %v898_v3 }
 0x14d   : > { %v1032_v9 = vadd.f32 %v2167_v57, %v871_v62 }
 0x14e   : > { %1603 = vst [vmem:[%s2145_s28 + $0x50] sm:$0xff] %v1567_v5   ;;  %v1592_v10 = vpack.c.bf16 %v1101_v32, %v1100_v6  ;;  %v874_v11 = vadd.f32 %v1696_v7, %v2135_v50  ;;  %v1099_v14 = vmax.f32 %v1059_v8, 0.0 }
 0x14f   : > { %v1092_v16 = vmax.f32 %v1032_v9, 0.0 }
 0x150   : > { %1608 = vst [vmem:[%s2145_s28 + $0x78] sm:$0xff] %v1592_v10   ;;  %v1035_v15 = vadd.f32 %v2171_v1, %v874_v11  ;;  %v1587_v37 = vpack.c.bf16 %v1099_v14, %v1098_v13 }
 0x152   : > { %v1093_v18 = vmax.f32 %v1035_v15, 0.0  ;;  %1607 = vst [vmem:[%s2145_s28 + $0x70] sm:$0xff] %v1587_v37  }
 0x154   : > { %v1572_v19 = vpack.c.bf16 %v1093_v18, %v1092_v16 }
 0x156   : > { %1604 = vst [vmem:[%s2145_s28 + $0x58] sm:$0xff] %v1572_v19  }
 0x157 PF: > { %s13_s14 = sadd.s32 1, %s1944_s14   ;;  %s2220_s12 = smov %s1940_s13 }
 0x158   : > { %p10_p5 = scmp.ge.s32.totalorder %s13_s14, 4   ;;  %s2221_s13 = smov %s2223_s15 }
 0x15a   :  { %12 = sbr.rel (!%p10_p5) target bundleno = 2 (0x2), region = 68 }

// kernel: alexnet_forward.8
= control target key start
LH: loop header
LB: loop body
LE: loop exit
PB: predicated region body
PF: predicated region fallthrough
CT: control target
= control target key end

     0   :  { %s501_s6 = smov 0   ;;  %s673_s0 = inlined_call_operand.vmem [shape: bf16[8,8,8,128], index: 0, kind: input, shape index: {}]   ;;  %s674_s1 = inlined_call_operand.vmem [shape: bf16[2,7,7,128], index: 1, kind: output, shape index: {}]  }
   0x1 LB: > { %s507_s7 = sadd.s32 4294967295, %s489_s6   ;;  %p444_p0 = scmp.ge.s32.totalorder %s489_s6, 1  ;;  %s489_s6 = sphi %s501_s6, %s11_s6  }
   0x2   : > { %p89_p1 = scmp.lt.s32.totalorder %s489_s6, 3 }
   0x4   : > { %p90_p2 = pnand %p444_p0, %p89_p1 }
   0x5   : > { %s445_s8 = sshll.u32 (!%p90_p2), %s507_s7, 2  ;;  %p117_p4 = scmp.lt.s32.totalorder (!%p90_p2), %s507_s7, 1 }
   0x6   : > { %93 = sbr.rel (%p90_p2) target bundleno = 67 (0x43), region = 24  ;;  %p111_p3 = scmp.lt.s32.totalorder (!%p90_p2), %s445_s8, 7 }
   0xb   : > { %s678_s8 = smov (!%p111_p3, %s445_s8), 7  ;;  %s680_s7 = smov (!%p117_p4, %s507_s7), 1  ;;  %vm361_vm0 = vcmask 1043456   ;;  %vm362_vm1 = vsmask.f32 3328 }
   0xc   : > { %s473_s9 = sshll.u32 %s678_s8, 5  ;;  %s474_s13 = smul.u32 28, %s680_s7  ;;  %vm610_vm2 = vmand %vm361_vm0, %vm362_vm1 }
   0xd   : > { %s515_s12 = scalar_lea.vmem %s673_s0, %s473_s9 }
   0xe   : > { %v122_v0 = vld [vmem:[%s515_s12] sm:$0xf]  ;;  %v519_v1 = vld [vmem:[%s515_s12 + $0x4] sm:$0xf]  ;;  %v534_v16 = vld [vmem:[%s515_s12 + $0x8] sm:$0xf]  ;;  %s597_s16 = scalar_lea.vmem %s674_s1, %s474_s13 }
   0xf   : > { %v522_v2 = vld [vmem:[%s515_s12 + $0x40] sm:$0xf]  ;;  %v525_v3 = vld [vmem:[%s515_s12 + $0x44] sm:$0xf]  ;;  %v156_v4 = vshrl.u32 %v122_v0, 16  ;;  %v159_v5 = vshll.u32 %v122_v0, 16 }
  0x10   : > { %v165_v6 = vshrl.u32 %v519_v1, 16  ;;  %v168_v7 = vshll.u32 %v519_v1, 16  ;;  %v247_v8 = vshrl.u32 %v522_v2, 16  ;;  %v250_v9 = vshll.u32 %v522_v2, 16  ;;  %v538_v23 = vld [vmem:[%s515_s12 + $0x48] sm:$0xf] }
  0x11   : > { %v256_v10 = vshrl.u32 %v525_v3, 16  ;;  %v259_v11 = vshll.u32 %v525_v3, 16  ;;  %v158_v12 = vrot.slane %v156_v4, 4  ;;  %v161_v13 = vrot.slane %v159_v5, 5  ;;  %v449_v26 = vld [vmem:[%s515_s12 + $0x20] sm:$0xf] }
  0x12   : > { %v167_v14 = vrot.slane %v165_v6, 4  ;;  %v170_v15 = vrot.slane %v168_v7, 5  ;;  %v249_v17 = vrot.slane %v247_v8, 4  ;;  %v252_v18 = vrot.slane %v250_v9, 5  ;;  %v546_v31 = vld [vmem:[%s515_s12 + $0xc] sm:$0xf] }
  0x13   : > { %v258_v19 = vrot.slane %v256_v10, 4  ;;  %v261_v20 = vrot.slane %v259_v11, 5  ;;  %v162_v21 = vor.u32 %v161_v13, %v158_v12  ;;  %v174_v24 = vshrl.u32 %v534_v16, 16  ;;  %v549_v32 = vld [vmem:[%s515_s12 + $0x24] sm:$0xf] }
  0x14   : > { %v171_v22 = vor.u32 %v170_v15, %v167_v14  ;;  %v177_v25 = vshll.u32 %v534_v16, 16  ;;  %v253_v27 = vor.u32 %v252_v18, %v249_v17  ;;  %v265_v29 = vshrl.u32 %v538_v23, 16  ;;  %v554_v41 = vld [vmem:[%s515_s12 + $0x4c] sm:$0xf]  ;;  %v563_v50 = vld [vmem:[%s515_s12 + $0x10] sm:$0xf] }
  0x15   : > { %v262_v28 = vor.u32 %v261_v20, %v258_v19  ;;  %v268_v30 = vshll.u32 %v538_v23, 16  ;;  %v163_v33 = vrot.slane %v162_v21, 4  ;;  %v176_v35 = vrot.slane %v174_v24, 4  ;;  %v572_v55 = vld [vmem:[%s515_s12 + $0x50] sm:$0xf] }
  0x16   : > { %v551_v34 = vrot.slane %v171_v22, 4  ;;  %v179_v36 = vrot.slane %v177_v25, 5  ;;  %v254_v37 = vrot.slane %v253_v27, 4  ;;  %v267_v39 = vrot.slane %v265_v29, 4  ;;  %v451_v56 = vld [vmem:[%s515_s12 + $0x28] sm:$0xf] }
  0x17   : > { %v263_v38 = vrot.slane %v262_v28, 4  ;;  %v270_v40 = vrot.slane %v268_v30, 5  ;;  %v225_v42 = vmax.bf16 %v163_v33, %v122_v0  ;;  %v183_v45 = vshrl.u32 %v546_v31, 16  ;;  %v464_v4 = vld [vmem:[%s515_s12 + $0x60] sm:$0xf] }
  0x18   : > { %v226_v43 = vmax.bf16 %v551_v34, %v519_v1  ;;  %v180_v44 = vor.u32 %v179_v36, %v176_v35  ;;  %v186_v47 = vshll.u32 %v546_v31, 16  ;;  %v274_v48 = vshrl.u32 %v554_v41, 16  ;;  %v465_v5 = vld [vmem:[%s515_s12 + $0x64] sm:$0xf]  ;;  %v452_v21 = vld [vmem:[%s515_s12 + $0x2c] sm:$0xf] }
  0x19   : > { %v271_v46 = vor.u32 %v270_v40, %v267_v39  ;;  %v277_v49 = vshll.u32 %v554_v41, 16  ;;  %v232_v51 = vmax.bf16 %v449_v26, %v225_v42  ;;  %v185_v54 = vrot.slane %v183_v45, 4  ;;  %v466_v24 = vld [vmem:[%s515_s12 + $0x68] sm:$0xf]  ;;  %v602_v35 = vld [vmem:[%s515_s12 + $0x54] sm:$0xf] }
  0x1a   : > { %v233_v52 = vmax.bf16 %v549_v32, %v226_v43  ;;  %v181_v53 = vrot.slane %v180_v44, 4  ;;  %v188_v58 = vrot.slane %v186_v47, 5  ;;  %v276_v59 = vrot.slane %v274_v48, 4  ;;  %v453_v44 = vld [vmem:[%s515_s12 + $0x30] sm:$0xf] }
  0x1b   : > { %v272_v57 = vrot.slane %v271_v46, 4  ;;  %v279_v60 = vrot.slane %v277_v49, 5  ;;  %v239_v61 = vmax.bf16 %v522_v2, %v232_v51  ;;  %v192_v0 = vshrl.u32 %v563_v50, 16  ;;  %v364_v45 = vld [vmem:[%s597_s16] sm:$0xf] }
  0x1c   : > { %v240_v62 = vmax.bf16 %v525_v3, %v233_v52  ;;  %v227_v63 = vmax.bf16 %v181_v53, %v534_v16  ;;  %v189_v6 = vor.u32 %v188_v58, %v185_v54  ;;  %v195_v8 = vshll.u32 %v563_v50, 16  ;;  %v585_v3 = vld [vmem:[%s515_s12 + $0x14] sm:$0xf]  ;;  %v367_v46 = vld [vmem:[%s597_s16 + $0x4] sm:$0xf] }
  0x1d   : > { %v280_v7 = vor.u32 %v279_v60, %v276_v59  ;;  %v283_v9 = vshrl.u32 %v572_v55, 16  ;;  %v316_v10 = vmax.bf16 %v254_v37, %v239_v61  ;;  %v194_v12 = vrot.slane %v192_v0, 4  ;;  %v467_v54 = vld [vmem:[%s515_s12 + $0x6c] sm:$0xf]  ;;  %v128_v58 = vld [vmem:[%s515_s12 + $0x18] sm:$0xf] }
  0x1e   : > { %v317_v11 = vmax.bf16 %v263_v38, %v240_v62  ;;  %v234_v2 = vmax.bf16 %v451_v56, %v227_v63  ;;  %v190_v13 = vrot.slane %v189_v6, 4  ;;  %v197_v15 = vrot.slane %v195_v8, 5  ;;  %v625_v62 = vld [vmem:[%s515_s12 + $0x58] sm:$0xf]  ;;  %v454_v0 = vld [vmem:[%s515_s12 + $0x34] sm:$0xf] }
  0x1f   : > { %v281_v14 = vrot.slane %v280_v7, 4  ;;  %v285_v17 = vrot.slane %v283_v9, 4  ;;  %v323_v18 = vmax.bf16 %v464_v4, %v316_v10  ;;  %v286_v22 = vshll.u32 %v572_v55, 16  ;;  %v370_v4 = vld [vmem:[%s597_s16 + $0x8] sm:$0xf] }
  0x20   : > { %v241_v19 = vmax.bf16 %v538_v23, %v234_v2  ;;  %v324_v20 = vmax.bf16 %v465_v5, %v317_v11  ;;  %v228_v25 = vmax.bf16 %v190_v13, %v546_v31  ;;  %v198_v26 = vor.u32 %v197_v15, %v194_v12  ;;  %v468_v10 = vld [vmem:[%s515_s12 + $0x70] sm:$0xf] }
  0x21   : > { %v201_v27 = vshrl.u32 %v585_v3, 16  ;;  %v204_v28 = vshll.u32 %v585_v3, 16  ;;  %v330_v23 = vmax.bf16 %v323_v18, %v519_v1  ;;  %v288_v33 = vrot.slane %v286_v22, 5  ;;  %v129_v18 = vld [vmem:[%s515_s12 + $0x1c] sm:$0xf] }
  0x22   : > { %v318_v29 = vmax.bf16 %v272_v57, %v241_v19  ;;  %v331_v30 = vmax.bf16 %v324_v20, %v534_v16  ;;  %v235_v36 = vmax.bf16 %v452_v21, %v228_v25  ;;  %v604_v37 = vrot.slane %v198_v26, 4 }
  0x23   : > { %v203_v38 = vrot.slane %v201_v27, 4  ;;  %v206_v39 = vrot.slane %v204_v28, 5  ;;  %v347_v40 = vmax.bf16 %v330_v23, %v551_v34  ;;  %v289_v1 = vor.u32 %v288_v33, %v285_v17 }
  0x24   : > { %v348_v42 = vmax.bf16 %v331_v30, %v181_v53  ;;  %v325_v43 = vmax.bf16 %v466_v24, %v318_v29  ;;  %v242_v47 = vmax.bf16 %v554_v41, %v235_v36  ;;  %v229_v48 = vmax.bf16 %v604_v37, %v563_v50  ;;  %v469_v36 = vld [vmem:[%s515_s12 + $0x74] sm:$0xf] }
  0x25   : > { %v207_v34 = vor.u32 %v206_v39, %v203_v38  ;;  %v292_v49 = vshrl.u32 %v602_v35, 16  ;;  %v354_v51 = vmax.bf16 %v549_v32, %v347_v40  ;;  %v290_v57 = vrot.slane %v289_v1, 4  ;;  %v376_v1 = vld [vmem:[%s597_s16 + $0x10] sm:$0xf] }
  0x26   : > { %v355_v52 = vmax.bf16 %v451_v56, %v348_v42  ;;  %v332_v53 = vmax.bf16 %v325_v43, %v546_v31  ;;  %v319_v59 = vmax.bf16 %v281_v14, %v242_v47  ;;  %v236_v41 = vmax.bf16 %v453_v44, %v229_v48  ;;  %v455_v42 = vld [vmem:[%s515_s12 + $0x38] sm:$0xf] }
  0x27   : > { %v208_v60 = vrot.slane %v207_v34, 4  ;;  %v294_v61 = vrot.slane %v292_v49, 4  ;;  %v365_v63 = vsel %vm610_vm2, %v354_v51, %v364_v45  ;;  %v295_v31 = vshll.u32 %v602_v35, 16 }
  0x28   : > { %v368_v32 = vsel %vm610_vm2, %v355_v52, %v367_v46  ;;  %v349_v56 = vmax.bf16 %v332_v53, %v190_v13  ;;  %366 = vst [vmem:[%s597_s16] sm:$0xf] %v365_v63  ;;  %v243_v5 = vmax.bf16 %v572_v55, %v236_v41  ;;  %v326_v6 = vmax.bf16 %v467_v54, %v319_v59  ;;  %v470_v59 = vld [vmem:[%s515_s12 + $0x78] sm:$0xf] }
  0x29   : > { %369 = vst [vmem:[%s597_s16 + $0x4] sm:$0xf] %v368_v32  ;;  %v230_v7 = vmax.bf16 %v208_v60, %v585_v3  ;;  %v210_v8 = vshrl.u32 %v128_v58, 16  ;;  %v297_v11 = vrot.slane %v295_v31, 5  ;;  %v213_v2 = vshll.u32 %v128_v58, 16 }
  0x2a   : > { %v356_v9 = vmax.bf16 %v452_v21, %v349_v56  ;;  %v301_v12 = vshrl.u32 %v625_v62, 16  ;;  %v320_v13 = vmax.bf16 %v290_v57, %v243_v5  ;;  %v333_v14 = vmax.bf16 %v326_v6, %v563_v50  ;;  %v373_v50 = vld [vmem:[%s597_s16 + $0xc] sm:$0xf]  ;;  %v379_v57 = vld [vmem:[%s597_s16 + $0x14] sm:$0xf] }
  0x2b   : > { %v237_v15 = vmax.bf16 %v454_v0, %v230_v7  ;;  %v212_v17 = vrot.slane %v210_v8, 4  ;;  %v298_v19 = vor.u32 %v297_v11, %v294_v61  ;;  %v215_v20 = vrot.slane %v213_v2, 5  ;;  %v456_v56 = vld [vmem:[%s515_s12 + $0x3c] sm:$0xf]  ;;  %v382_v31 = vld [vmem:[%s597_s16 + $0x18] sm:$0xf] }
  0x2c   : > { %v371_v55 = vsel %vm610_vm2, %v356_v9, %v370_v4  ;;  %v303_v22 = vrot.slane %v301_v12, 4  ;;  %v350_v21 = vmax.bf16 %v333_v14, %v604_v37  ;;  %v327_v25 = vmax.bf16 %v468_v10, %v320_v13 }
  0x2d   : > { %372 = vst [vmem:[%s597_s16 + $0x8] sm:$0xf] %v371_v55  ;;  %v244_v24 = vmax.bf16 %v602_v35, %v237_v15  ;;  %v304_v26 = vshll.u32 %v625_v62, 16  ;;  %v299_v27 = vrot.slane %v298_v19, 4  ;;  %v216_v28 = vor.u32 %v215_v20, %v212_v17 }
  0x2e   : > { %v338_v23 = vshrl.u32 %v129_v18, 16  ;;  %v341_v29 = vshll.u32 %v129_v18, 16  ;;  %v357_v30 = vmax.bf16 %v453_v44, %v350_v21  ;;  %v334_v33 = vmax.bf16 %v327_v25, %v585_v3 }
  0x2f   : > { %v306_v38 = vrot.slane %v304_v26, 5  ;;  %v321_v39 = vmax.bf16 %v299_v27, %v244_v24  ;;  %v217_v37 = vrot.slane %v216_v28, 4 }
  0x30   : > { %v374_v35 = vsel %vm610_vm2, %v357_v30, %v373_v50  ;;  %v351_v40 = vmax.bf16 %v334_v33, %v208_v60  ;;  %v340_v44 = vrot.slane %v338_v23, 4  ;;  %v343_v47 = vrot.slane %v341_v29, 5 }
  0x31   : > { %v307_v43 = vor.u32 %v306_v38, %v303_v22  ;;  %375 = vst [vmem:[%s597_s16 + $0xc] sm:$0xf] %v374_v35  ;;  %v231_v45 = vmax.bf16 %v217_v37, %v128_v58  ;;  %v328_v46 = vmax.bf16 %v469_v36, %v321_v39 }
  0x32   : > { %v358_v3 = vmax.bf16 %v454_v0, %v351_v40  ;;  %v344_v54 = vor.u32 %v343_v47, %v340_v44 }
  0x33   : > { %v238_v48 = vmax.bf16 %v455_v42, %v231_v45  ;;  %v308_v34 = vrot.slane %v307_v43, 4  ;;  %v335_v49 = vmax.bf16 %v328_v46, %v128_v58 }
  0x34   : > { %v377_v51 = vsel %vm610_vm2, %v358_v3, %v376_v1  ;;  %v345_v32 = vrot.slane %v344_v54, 4 }
  0x35   : > { %378 = vst [vmem:[%s597_s16 + $0x10] sm:$0xf] %v377_v51  ;;  %v245_v52 = vmax.bf16 %v625_v62, %v238_v48  ;;  %v352_v53 = vmax.bf16 %v335_v49, %v217_v37 }
  0x37   : > { %v322_v41 = vmax.bf16 %v308_v34, %v245_v52  ;;  %v359_v60 = vmax.bf16 %v455_v42, %v352_v53 }
  0x39   : > { %v380_v61 = vsel %vm610_vm2, %v359_v60, %v379_v57  ;;  %v329_v63 = vmax.bf16 %v470_v59, %v322_v41 }
  0x3a   : > { %381 = vst [vmem:[%s597_s16 + $0x14] sm:$0xf] %v380_v61 }
  0x3b   : > { %v336_v58 = vmax.bf16 %v329_v63, %v129_v18 }
  0x3d   : > { %v353_v0 = vmax.bf16 %v345_v32, %v336_v58 }
  0x3f   : > { %v360_v4 = vmax.bf16 %v456_v56, %v353_v0 }
  0x41   : > { %v383_v62 = vsel %vm610_vm2, %v360_v4, %v382_v31 }
  0x42   : > { %384 = vst [vmem:[%s597_s16 + $0x18] sm:$0xf] %v383_v62 }
  0x43 PF: > { %s11_s6 = sadd.s32 1, %s489_s6  }
  0x44   : > { %p8_p5 = scmp.ge.s32.totalorder %s11_s6, 4  }
  0x46   :  { %10 = sbr.rel (!%p8_p5) target bundleno = 1 (0x1), region = 57 }

// kernel: alexnet_forward.10
= control target key start
LH: loop header
LB: loop body
LE: loop exit
PB: predicated region body
PF: predicated region fallthrough
CT: control target
= control target key end

     0   :  { %s353_s6 = smov 0   ;;  %s409_s0 = inlined_call_operand.vmem [shape: bf16[8,4,4,256], index: 0, kind: input, shape index: {}]   ;;  %s410_s1 = inlined_call_operand.vmem [shape: bf16[2,3,3,256], index: 1, kind: output, shape index: {}]  }
   0x1 LB: > { %s359_s7 = sadd.s32 4294967295, %s341_s6   ;;  %p308_p0 = scmp.ge.s32.totalorder %s341_s6, 1  ;;  %s341_s6 = sphi %s353_s6, %s11_s6  }
   0x2   : > { %p89_p1 = scmp.lt.s32.totalorder %s341_s6, 3 }
   0x4   : > { %p90_p2 = pnand %p308_p0, %p89_p1 }
   0x5   : > { %s309_s8 = sshll.u32 (!%p90_p2), %s359_s7, 2  ;;  %p117_p4 = scmp.lt.s32.totalorder (!%p90_p2), %s359_s7, 1 }
   0x6   : > { %93 = sbr.rel (%p90_p2) target bundleno = 46 (0x2e), region = 24  ;;  %p111_p3 = scmp.lt.s32.totalorder (!%p90_p2), %s309_s8, 7 }
   0xb   : > { %s412_s8 = smov (!%p111_p3, %s309_s8), 7  ;;  %s414_s7 = smov (!%p117_p4, %s359_s7), 1  ;;  %vm233_vm0 = vcmask 1041408   ;;  %vm234_vm1 = vsmask.f32 1280  ;;  %vm236_vm2 = vcmask 1043458  }
   0xc   : > { %s325_s9 = sshll.u32 %s412_s8, 4  ;;  %s326_s13 = smul.u32 12, %s414_s7  ;;  %vm237_vm3 = vsmask.f32 3328  ;;  %vm235_vm4 = vmand %vm233_vm0, %vm234_vm1 }
   0xd   : > { %s367_s12 = scalar_lea.vmem %s409_s0, %s325_s9  ;;  %vm238_vm5 = vmand %vm236_vm2, %vm237_vm3 }
   0xe   : > { %v122_v0 = vld [vmem:[%s367_s12] sm:$0xf]  ;;  %v371_v1 = vld [vmem:[%s367_s12 + $0x4] sm:$0xf]  ;;  %v378_v16 = vld [vmem:[%s367_s12 + $0x8] sm:$0xf]  ;;  %s121_s16 = scalar_lea.vmem %s410_s1, %s326_s13 }
   0xf   : > { %v317_v2 = vld [vmem:[%s367_s12 + $0x20] sm:$0xf]  ;;  %v318_v3 = vld [vmem:[%s367_s12 + $0x24] sm:$0xf]  ;;  %v140_v4 = vshrl.u32 %v122_v0, 16  ;;  %v143_v5 = vshll.u32 %v122_v0, 16  ;;  %vm239_vm6 = vmor %vm238_vm5, %vm235_vm4 }
  0x10   : > { %v149_v6 = vshrl.u32 %v371_v1, 16  ;;  %v152_v7 = vshll.u32 %v371_v1, 16  ;;  %v179_v8 = vshrl.u32 %v317_v2, 16  ;;  %v182_v9 = vshll.u32 %v317_v2, 16  ;;  %v319_v23 = vld [vmem:[%s367_s12 + $0x28] sm:$0xf] }
  0x11   : > { %v188_v10 = vshrl.u32 %v318_v3, 16  ;;  %v191_v11 = vshll.u32 %v318_v3, 16  ;;  %v142_v12 = vrot.slane %v140_v4, 6  ;;  %v145_v13 = vrot.slane %v143_v5, 7  ;;  %v125_v30 = vld [vmem:[%s367_s12 + $0xc] sm:$0xf] }
  0x12   : > { %v151_v14 = vrot.slane %v149_v6, 6  ;;  %v154_v15 = vrot.slane %v152_v7, 7  ;;  %v181_v17 = vrot.slane %v179_v8, 6  ;;  %v184_v18 = vrot.slane %v182_v9, 7  ;;  %v313_v35 = vld [vmem:[%s367_s12 + $0x10] sm:$0xf] }
  0x13   : > { %v190_v19 = vrot.slane %v188_v10, 6  ;;  %v193_v20 = vrot.slane %v191_v11, 7  ;;  %v146_v21 = vor.u32 %v145_v13, %v142_v12  ;;  %v158_v24 = vshrl.u32 %v378_v16, 16  ;;  %v314_v36 = vld [vmem:[%s367_s12 + $0x14] sm:$0xf] }
  0x14   : > { %v155_v22 = vor.u32 %v154_v15, %v151_v14  ;;  %v161_v25 = vshll.u32 %v378_v16, 16  ;;  %v185_v26 = vor.u32 %v184_v18, %v181_v17  ;;  %v197_v28 = vshrl.u32 %v319_v23, 16  ;;  %v315_v50 = vld [vmem:[%s367_s12 + $0x18] sm:$0xf]  ;;  %v320_v56 = vld [vmem:[%s367_s12 + $0x30] sm:$0xf] }
  0x15   : > { %v194_v27 = vor.u32 %v193_v20, %v190_v19  ;;  %v200_v29 = vshll.u32 %v319_v23, 16  ;;  %v147_v31 = vrot.slane %v146_v21, 2  ;;  %v160_v33 = vrot.slane %v158_v24, 6  ;;  %v321_v57 = vld [vmem:[%s367_s12 + $0x34] sm:$0xf] }
  0x16   : > { %v156_v32 = vrot.slane %v155_v22, 2  ;;  %v163_v34 = vrot.slane %v161_v25, 7  ;;  %v199_v37 = vrot.slane %v197_v28, 6  ;;  %v218_v42 = vshrl.u32 %v125_v30, 16  ;;  %v240_v11 = vld [vmem:[%s121_s16] sm:$0xf] }
  0x17   : > { %v202_v38 = vrot.slane %v200_v29, 7  ;;  %v169_v39 = vmax.bf16 %v147_v31, %v122_v0  ;;  %v186_v43 = vrot.slane %v185_v26, 2  ;;  %v195_v44 = vrot.slane %v194_v27, 2  ;;  %v243_v12 = vld [vmem:[%s121_s16 + $0x4] sm:$0xf] }
  0x18   : > { %v170_v40 = vmax.bf16 %v156_v32, %v371_v1  ;;  %v164_v41 = vor.u32 %v163_v34, %v160_v33  ;;  %v221_v45 = vshll.u32 %v125_v30, 16  ;;  %v220_v51 = vrot.slane %v218_v42, 6  ;;  %v316_v17 = vld [vmem:[%s367_s12 + $0x1c] sm:$0xf] }
  0x19   : > { %v172_v46 = vmax.bf16 %v313_v35, %v169_v39  ;;  %v203_v49 = vor.u32 %v202_v38, %v199_v37 }
  0x1a   : > { %v173_v47 = vmax.bf16 %v314_v36, %v170_v40  ;;  %v165_v48 = vrot.slane %v164_v41, 2  ;;  %v223_v55 = vrot.slane %v221_v45, 7 }
  0x1b   : > { %v175_v52 = vmax.bf16 %v317_v2, %v172_v46  ;;  %v204_v61 = vrot.slane %v203_v49, 2  ;;  %v322_v2 = vld [vmem:[%s367_s12 + $0x38] sm:$0xf] }
  0x1c   : > { %v176_v53 = vmax.bf16 %v318_v3, %v173_v47  ;;  %v171_v54 = vmax.bf16 %v165_v48, %v378_v16  ;;  %v224_v4 = vor.u32 %v223_v55, %v220_v51 }
  0x1d   : > { %v208_v58 = vmax.bf16 %v186_v43, %v175_v52 }
  0x1e   : > { %v209_v59 = vmax.bf16 %v195_v44, %v176_v53  ;;  %v174_v60 = vmax.bf16 %v315_v50, %v171_v54  ;;  %v225_v10 = vrot.slane %v224_v4, 2 }
  0x1f   : > { %v211_v62 = vmax.bf16 %v320_v56, %v208_v58 }
  0x20   : > { %v177_v63 = vmax.bf16 %v319_v23, %v174_v60  ;;  %v212_v0 = vmax.bf16 %v321_v57, %v209_v59 }
  0x21   : > { %v214_v3 = vmax.bf16 %v211_v62, %v371_v1  ;;  %v246_v1 = vld [vmem:[%s121_s16 + $0x8] sm:$0xf] }
  0x22   : > { %v210_v5 = vmax.bf16 %v204_v61, %v177_v63  ;;  %v215_v6 = vmax.bf16 %v212_v0, %v378_v16 }
  0x23   : > { %v227_v7 = vmax.bf16 %v214_v3, %v156_v32 }
  0x24   : > { %v228_v8 = vmax.bf16 %v215_v6, %v165_v48  ;;  %v213_v9 = vmax.bf16 %v322_v2, %v210_v5 }
  0x25   : > { %v230_v13 = vmax.bf16 %v314_v36, %v227_v7 }
  0x26   : > { %v231_v14 = vmax.bf16 %v315_v50, %v228_v8  ;;  %v216_v15 = vmax.bf16 %v213_v9, %v125_v30 }
  0x27   : > { %v241_v18 = vsel %vm239_vm6, %v230_v13, %v240_v11 }
  0x28   : > { %v244_v19 = vsel %vm239_vm6, %v231_v14, %v243_v12  ;;  %v229_v20 = vmax.bf16 %v225_v10, %v216_v15  ;;  %242 = vst [vmem:[%s121_s16] sm:$0xf] %v241_v18 }
  0x29   : > { %245 = vst [vmem:[%s121_s16 + $0x4] sm:$0xf] %v244_v19 }
  0x2a   : > { %v232_v21 = vmax.bf16 %v316_v17, %v229_v20 }
  0x2c   : > { %v247_v22 = vsel %vm239_vm6, %v232_v21, %v246_v1 }
  0x2d   : > { %248 = vst [vmem:[%s121_s16 + $0x8] sm:$0xf] %v247_v22 }
  0x2e PF: > { %s11_s6 = sadd.s32 1, %s341_s6  }
  0x2f   : > { %p8_p5 = scmp.ge.s32.totalorder %s11_s6, 4  }
  0x31   :  { %10 = sbr.rel (!%p8_p5) target bundleno = 1 (0x1), region = 57 }

// kernel: alexnet_forward.9
= control target key start
LH: loop header
LB: loop body
LE: loop exit
PB: predicated region body
PF: predicated region fallthrough
CT: control target
= control target key end

     0   :  { %s6322_s12 = smov 0   ;;  %s8901_s0 = inlined_call_operand.vmem [shape: bf16[2,192,128], index: 0, kind: input, shape index: {}]   ;;  %s8902_s1 = inlined_call_operand.vmem [shape: bf16[5,640,256], index: 1, kind: input, shape index: {}]   ;;  %s8903_s2 = inlined_call_operand.vmem [shape: f32[1,256], index: 2, kind: input, shape index: {}]   ;;  %s8904_s3 = inlined_call_operand.vmem [shape: bf16[2,112,256], index: 3, kind: output, shape index: {}]  }
   0x1 LB: > { %s4845_s13 = sadd.s32 4294967295, %s6299_s12   ;;  %p4849_p0 = scmp.ge.s32.totalorder %s6299_s12, 1  ;;  %s6299_s12 = sphi %s6322_s12, %s13_s12  }
   0x2   : > { %p137_p1 = scmp.lt.s32.totalorder %s6299_s12, 3 }
   0x4   : > { %p138_p2 = pnand %p4849_p0, %p137_p1 }
   0x6   : > { %141 = sbr.rel (%p138_p2) target bundleno = 734 (0x2de), region = 32 }
   0xb   : > { %v5645_v0 = vld [vmem:[%s8902_s1 + $0x2f4] ss:$8 sps:$4 sm:$0xff]   ;;  %v5649_v2 = vld [vmem:[%s8902_s1 + $0x2f0] ss:$8 sps:$4 sm:$0xff]   ;;  %v5651_v4 = vld [vmem:[%s8902_s1 + $0x2e4] ss:$8 sps:$4 sm:$0xff]  }
   0xc   : > { %v5647_v1 = vld [vmem:[%s8902_s1 + $0x3f4] ss:$8 sps:$4 sm:$0xff]   ;;  %969 = vmatprep.subr.bf16.mxu0 %v5645_v0  ;;  %v5650_v3 = vld [vmem:[%s8902_s1 + $0x3f0] ss:$8 sps:$4 sm:$0xff]   ;;  %v5653_v5 = vld [vmem:[%s8902_s1 + $0x3e4] ss:$8 sps:$4 sm:$0xff]  }
   0xd   : > { %1072 = vmatprep.subr.bf16.mxu1 %v5647_v1  ;;  %970 = vmatpush1.bf16.msra.mxu0 %v5649_v2  ;;  %v5655_v6 = vld [vmem:[%s8902_s1 + $0x2e0] ss:$8 sps:$4 sm:$0xff]   ;;  %v5657_v8 = vld [vmem:[%s8902_s1 + $0x2d4] ss:$8 sps:$4 sm:$0xff]   ;;  %v5661_v10 = vld [vmem:[%s8902_s1 + $0x2d0] ss:$8 sps:$4 sm:$0xff]  }
   0xe   : > { %1073 = vmatpush1.bf16.msra.mxu1 %v5650_v3  ;;  %971 = vmatprep.subr.bf16.mxu0 %v5651_v4  ;;  %v5656_v7 = vld [vmem:[%s8902_s1 + $0x3e0] ss:$8 sps:$4 sm:$0xff]   ;;  %v5659_v9 = vld [vmem:[%s8902_s1 + $0x3d4] ss:$8 sps:$4 sm:$0xff]   ;;  %v5662_v11 = vld [vmem:[%s8902_s1 + $0x3d0] ss:$8 sps:$4 sm:$0xff]  }
   0xf   : > { %1074 = vmatprep.subr.bf16.mxu1 %v5653_v5  ;;  %v5663_v12 = vld [vmem:[%s8902_s1 + $0x2c4] ss:$8 sps:$4 sm:$0xff]   ;;  %v5667_v14 = vld [vmem:[%s8902_s1 + $0x2c0] ss:$8 sps:$4 sm:$0xff]   ;;  %v5669_v16 = vld [vmem:[%s8902_s1 + $0x2b4] ss:$8 sps:$4 sm:$0xff]  }
  0x10   : > { %v5665_v13 = vld [vmem:[%s8902_s1 + $0x3c4] ss:$8 sps:$4 sm:$0xff]   ;;  %v5668_v15 = vld [vmem:[%s8902_s1 + $0x3c0] ss:$8 sps:$4 sm:$0xff]   ;;  %v5671_v17 = vld [vmem:[%s8902_s1 + $0x3b4] ss:$8 sps:$4 sm:$0xff]  }
  0x11   : > { %972 = vmatpush1.bf16.msra.mxu0 %v5655_v6  ;;  %v5673_v18 = vld [vmem:[%s8902_s1 + $0x2b0] ss:$8 sps:$4 sm:$0xff]   ;;  %v5675_v20 = vld [vmem:[%s8902_s1 + $0x2a4] ss:$8 sps:$4 sm:$0xff]   ;;  %v5679_v22 = vld [vmem:[%s8902_s1 + $0x2a0] ss:$8 sps:$4 sm:$0xff]  }
  0x12   : > { %1075 = vmatpush1.bf16.msra.mxu1 %v5656_v7  ;;  %973 = vmatprep.subr.bf16.mxu0 %v5657_v8  ;;  %v5674_v19 = vld [vmem:[%s8902_s1 + $0x3b0] ss:$8 sps:$4 sm:$0xff]   ;;  %v5677_v21 = vld [vmem:[%s8902_s1 + $0x3a4] ss:$8 sps:$4 sm:$0xff]   ;;  %v5680_v23 = vld [vmem:[%s8902_s1 + $0x3a0] ss:$8 sps:$4 sm:$0xff]  }
  0x13   : > { %1076 = vmatprep.subr.bf16.mxu1 %v5659_v9  ;;  %v5681_v24 = vld [vmem:[%s8902_s1 + $0x294] ss:$8 sps:$4 sm:$0xff]   ;;  %v5685_v26 = vld [vmem:[%s8902_s1 + $0x290] ss:$8 sps:$4 sm:$0xff]   ;;  %v5687_v28 = vld [vmem:[%s8902_s1 + $0x284] ss:$8 sps:$4 sm:$0xff]  }
  0x14   : > { %v5683_v25 = vld [vmem:[%s8902_s1 + $0x394] ss:$8 sps:$4 sm:$0xff]   ;;  %v5686_v27 = vld [vmem:[%s8902_s1 + $0x390] ss:$8 sps:$4 sm:$0xff]   ;;  %v5689_v29 = vld [vmem:[%s8902_s1 + $0x384] ss:$8 sps:$4 sm:$0xff]  }
  0x15   : > { %974 = vmatpush1.bf16.msra.mxu0 %v5661_v10  ;;  %v5691_v30 = vld [vmem:[%s8902_s1 + $0x280] ss:$8 sps:$4 sm:$0xff]   ;;  %v5693_v32 = vld [vmem:[%s8902_s1 + $0x374] ss:$8 sps:$4 sm:$0xff]   ;;  %p161_p3 = scmp.lt.s32.totalorder %s4845_s13, 1  ;;  %vm2068_vm1 = vcmask 1046528  }
  0x16   : > { %1077 = vmatpush1.bf16.msra.mxu1 %v5662_v11  ;;  %975 = vmatprep.subr.bf16.mxu0 %v5663_v12  ;;  %v5692_v31 = vld [vmem:[%s8902_s1 + $0x380] ss:$8 sps:$4 sm:$0xff]   ;;  %v5695_v33 = vld [vmem:[%s8902_s1 + $0x474] ss:$8 sps:$4 sm:$0xff]   ;;  %v5697_v34 = vld [vmem:[%s8902_s1 + $0x370] ss:$8 sps:$4 sm:$0xff]  }
  0x17   : > { %1078 = vmatprep.subr.bf16.mxu1 %v5665_v13  ;;  %v5698_v35 = vld [vmem:[%s8902_s1 + $0x470] ss:$8 sps:$4 sm:$0xff]   ;;  %v5699_v36 = vld [vmem:[%s8902_s1 + $0x364] ss:$8 sps:$4 sm:$0xff]   ;;  %s9058_s13 = smov (!%p161_p3, %s4845_s13), 1  ;;  %vm3840_vm3 = vcmask 1045504  }
  0x18   : > { %v5701_v37 = vld [vmem:[%s8902_s1 + $0x464] ss:$8 sps:$4 sm:$0xff]   ;;  %v5703_v38 = vld [vmem:[%s8902_s1 + $0x360] ss:$8 sps:$4 sm:$0xff]   ;;  %v5705_v40 = vld [vmem:[%s8902_s1 + $0x354] ss:$8 sps:$4 sm:$0xff]  }
  0x19   : > { %976 = vmatpush1.bf16.msra.mxu0 %v5667_v14  ;;  %v5704_v39 = vld [vmem:[%s8902_s1 + $0x460] ss:$8 sps:$4 sm:$0xff]   ;;  %v5707_v41 = vld [vmem:[%s8902_s1 + $0x454] ss:$8 sps:$4 sm:$0xff]   ;;  %s5634_s23 = smul.u32 96, %s9058_s13 }
  0x1a   : > { %1079 = vmatpush1.bf16.msra.mxu1 %v5668_v15  ;;  %977 = vmatprep.subr.bf16.mxu0 %v5669_v16  ;;  %v5709_v42 = vld [vmem:[%s8902_s1 + $0x350] ss:$8 sps:$4 sm:$0xff]   ;;  %v5711_v44 = vld [vmem:[%s8902_s1 + $0x344] ss:$8 sps:$4 sm:$0xff]   ;;  %v5715_v46 = vld [vmem:[%s8902_s1 + $0x340] ss:$8 sps:$4 sm:$0xff]  }
  0x1b   : > { %1080 = vmatprep.subr.bf16.mxu1 %v5671_v17  ;;  %v5710_v43 = vld [vmem:[%s8902_s1 + $0x450] ss:$8 sps:$4 sm:$0xff]   ;;  %v5713_v45 = vld [vmem:[%s8902_s1 + $0x444] ss:$8 sps:$4 sm:$0xff]   ;;  %s6478_s7 = scalar_lea.vmem %s8901_s0, %s5634_s23  ;;  %v5716_v47 = vld [vmem:[%s8902_s1 + $0x440] ss:$8 sps:$4 sm:$0xff]  }
  0x1c   : > { %v5717_v48 = vld [vmem:[%s8902_s1 + $0x334] ss:$8 sps:$4 sm:$0xff]   ;;  %v6493_v50 = vld [vmem:[%s6478_s7 + $0x8] sm:$0xff]   ;;  %vm441_vm0 = vsmask.f32 7424  ;;  %v6511_v58 = vld [vmem:[%s6478_s7 + $0x20] sm:$0xff]  }
  0x1d   : > { %978 = vmatpush1.bf16.msra.mxu0 %v5673_v18  ;;  %v5719_v49 = vld [vmem:[%s8902_s1 + $0x434] ss:$8 sps:$4 sm:$0xff]   ;;  %v5721_v52 = vld [vmem:[%s8902_s1 + $0x330] ss:$8 sps:$4 sm:$0xff]   ;;  %v450_v54 = vshll.u32 %v6493_v50, 16  ;;  %v454_v55 = vshrl.u32 %v6493_v50, 16 }
  0x1e   : > { %1081 = vmatpush1.bf16.msra.mxu1 %v5674_v19  ;;  %979 = vmatprep.subr.bf16.mxu0 %v5675_v20  ;;  %v6496_v51 = vld [vmem:[%s6478_s7 + $0x10] sm:$0xff]   ;;  %v6508_v57 = vld [vmem:[%s6478_s7 + $0x18] sm:$0xff]   ;;  %v6514_v59 = vld [vmem:[%s6478_s7] sm:$0xff]   ;;  %v8922_v2 = vshll.u32 %v6511_v58, 16  ;;  %vm2933_vm2 = vsmask.f32 6400 }
  0x1f   : > { %1082 = vmatprep.subr.bf16.mxu1 %v5677_v21  ;;  %v5722_v53 = vld [vmem:[%s8902_s1 + $0x430] ss:$8 sps:$4 sm:$0xff]   ;;  %v458_v56 = vshll.u32 %v6496_v51, 16  ;;  %v5723_v60 = vld [vmem:[%s8902_s1 + $0x324] ss:$8 sps:$4 sm:$0xff]   ;;  %v452_v61 = vrot.slane %v450_v54, 1 }
  0x20   : > { %v8924_v63 = vshll.u32 %v6508_v57, 16  ;;  %v470_v0 = vshrl.u32 %v6508_v57, 16  ;;  %v5725_v1 = vld [vmem:[%s8902_s1 + $0x424] ss:$8 sps:$4 sm:$0xff]   ;;  %v443_v3 = vshrl.u32 %v6514_v59, 16  ;;  %v445_v4 = vshll.u32 %v6514_v59, 16 }
  0x21   : > { %980 = vmatpush1.bf16.msra.mxu0 %v5679_v22  ;;  %v460_v62 = vrot.slane %v458_v56, 1  ;;  %v5727_v5 = vld [vmem:[%s8902_s1 + $0x320] ss:$8 sps:$4 sm:$0xff]   ;;  %v456_v6 = vor.u32 %v454_v55, %v452_v61  ;;  %v476_v9 = vrot.slane %v8922_v2, 1  ;;  %v5729_v12 = vld [vmem:[%s8902_s1 + $0x314] ss:$8 sps:$4 sm:$0xff]  }
  0x22   : > { %1083 = vmatpush1.bf16.msra.mxu1 %v5680_v23  ;;  %981 = vmatprep.subr.bf16.mxu0 %v5681_v24  ;;  %v468_v7 = vrot.slane %v8924_v63, 1  ;;  %v5728_v8 = vld [vmem:[%s8902_s1 + $0x420] ss:$8 sps:$4 sm:$0xff]   ;;  %v6543_v10 = vrot.slane %v443_v3, 1  ;;  %v6545_v11 = vrot.slane %v445_v4, 2  ;;  %v447_v22 = vrot.slane %v445_v4, 1 }
  0x23   : > { %1084 = vmatprep.subr.bf16.mxu1 %v5683_v25  ;;  %v6551_v13 = vsel %vm441_vm0, %v456_v6, %v460_v62  ;;  %v5731_v15 = vld [vmem:[%s8902_s1 + $0x414] ss:$8 sps:$4 sm:$0xff]   ;;  %v5733_v17 = vld [vmem:[%s8902_s1 + $0x310] ss:$8 sps:$4 sm:$0xff]   ;;  %v6572_v20 = vld [vmem:[%s6478_s7 + $0x28] sm:$0xff]   ;;  %v462_v23 = vshrl.u32 %v6496_v51, 16 }
  0x24   : > { %v472_v14 = vor.u32 %v470_v0, %v468_v7  ;;  %1001 = vmatprep.mubr.bf16.mxu0 %v6551_v13  ;;  %v5734_v19 = vld [vmem:[%s8902_s1 + $0x410] ss:$8 sps:$4 sm:$0xff]   ;;  %v5735_v21 = vld [vmem:[%s8902_s1 + $0x304] ss:$8 sps:$4 sm:$0xff]   ;;  %v5739_v25 = vld [vmem:[%s8902_s1 + $0x300] ss:$8 sps:$4 sm:$0xff]  }
  0x25   : > { %982 = vmatpush1.bf16.msra.mxu0 %v5685_v26  ;;  %v5737_v24 = vld [vmem:[%s8902_s1 + $0x404] ss:$8 sps:$4 sm:$0xff]   ;;  %v8923_v26 = vshrl.u32 %v6511_v58, 16  ;;  %v5762_v6 = vld [vmem:[%s8902_s1 + $0x40] ss:$8 sps:$4 sm:$0xff]   ;;  %s5635_s23 = smul.u32 112, %s9058_s13 }
  0x26   : > { %1085 = vmatpush1.bf16.msra.mxu1 %v5686_v27  ;;  %983 = vmatprep.subr.bf16.mxu0 %v5687_v28  ;;  %v6565_v18 = vsel %vm441_vm0, %v472_v14, %v476_v9  ;;  %v8920_v27 = vshll.u32 %v6572_v20, 16  ;;  %v5740_v28 = vld [vmem:[%s8902_s1 + $0x400] ss:$8 sps:$4 sm:$0xff]   ;;  %v5769_v14 = vld [vmem:[%s8902_s1 + $0x30] ss:$8 sps:$4 sm:$0xff]  }
  0x27   : > { %1086 = vmatprep.subr.bf16.mxu1 %v5689_v29  ;;  %1104 = vmatprep.mubr.bf16.mxu1 %v6565_v18  ;;  %v448_v29 = vor.u32 %v447_v22, %v443_v3  ;;  %v5777_v3 = vld [vmem:[%s8902_s1 + $0x4c4] ss:$8 sps:$4 sm:$0xff]   ;;  %v6045_v2 = vld [vmem:[%s8902_s1 + $0x850] ss:$8 sps:$4 sm:$0xff]   ;;  %s8818_s25 = scalar_lea.vmem %s8904_s3, %s5635_s23 }
  0x29   : > { %984 = vmatpush1.bf16.msra.mxu0 %v5691_v30  ;;  %v464_v30 = vor.u32 %v462_v23, %v460_v62  ;;  %v5765_v62 = vld [vmem:[%s8902_s1 + $0x4d0] ss:$8 sps:$4 sm:$0xff]  }
  0x2a   : > { %1087 = vmatpush1.bf16.msra.mxu1 %v5692_v31  ;;  %985 = vmatprep.subr.bf16.mxu0 %v5693_v32  ;;  %v5748_v31 = vld [vmem:[%s8902_s1 + $0x4f4] ss:$8 sps:$4 sm:$0xff]  }
  0x2b   : > { %1088 = vmatprep.subr.bf16.mxu1 %v5695_v33  ;;  %v5751_v32 = vld [vmem:[%s8902_s1 + $0x74] ss:$8 sps:$4 sm:$0xff]  }
  0x2c   : > { %v6598_v33 = vld [vmem:[%s6478_s7 + $0x30] sm:$0xff]  }
  0x2d   : > { %986 = vmatpush2.bf16.msra.mxu0 %v5697_v34  ;;  %v480_v34 = vor.u32 %v8923_v26, %v476_v9  ;;  %v8919_v4 = vshrl.u32 %v6598_v33, 16 }
  0x2e   : > { %1089 = vmatpush2.bf16.msra.mxu1 %v5698_v35  ;;  %987 = vmatprep.subr.bf16.mxu0 %v5699_v36  ;;  %v484_v35 = vrot.slane %v8920_v27, 1  ;;  %v453_v36 = vsel %vm441_vm0, %v448_v29, %v452_v61  ;;  %v5764_v61 = vld [vmem:[%s8902_s1 + $0x44] ss:$8 sps:$4 sm:$0xff]   ;;  %v5781_v29 = vld [vmem:[%s8902_s1 + $0x14] ss:$8 sps:$4 sm:$0xff]  }
  0x2f   : > { %1090 = vmatprep.subr.bf16.mxu1 %v5701_v37  ;;  %v469_v37 = vsel %vm441_vm0, %v464_v30, %v468_v7  ;;  %v5771_v7 = vld [vmem:[%s8902_s1 + $0x34] ss:$8 sps:$4 sm:$0xff]  }
  0x31   : > { %988 = vmatpush2.bf16.msra.mxu0 %v5703_v38  ;;  %v5746_v38 = vld [vmem:[%s8902_s1 + $0x4f0] ss:$8 sps:$4 sm:$0xff]  }
  0x32   : > { %1091 = vmatpush2.bf16.msra.mxu1 %v5704_v39  ;;  %989 = vmatprep.subr.bf16.mxu0 %v5705_v40  ;;  %v5749_v39 = vld [vmem:[%s8902_s1 + $0x70] ss:$8 sps:$4 sm:$0xff]   ;;  %v5754_v40 = vld [vmem:[%s8902_s1 + $0x64] ss:$8 sps:$4 sm:$0xff]  }
  0x33   : > { %1092 = vmatprep.subr.bf16.mxu1 %v5707_v41  ;;  %v5758_v41 = vld [vmem:[%s8902_s1 + $0x4e4] ss:$8 sps:$4 sm:$0xff]  }
  0x35   : > { %990 = vmatpush2.bf16.msra.mxu0 %v5709_v42  ;;  %v8921_v42 = vshrl.u32 %v6572_v20, 16 }
  0x36   : > { %1093 = vmatpush2.bf16.msra.mxu1 %v5710_v43  ;;  %991 = vmatprep.subr.bf16.mxu0 %v5711_v44  ;;  %v8918_v43 = vshll.u32 %v6598_v33, 16  ;;  %v5752_v44 = vld [vmem:[%s8902_s1 + $0x60] ss:$8 sps:$4 sm:$0xff]  }
  0x37   : > { %1094 = vmatprep.subr.bf16.mxu1 %v5713_v45  ;;  %v6624_v45 = vsel %vm441_vm0, %v480_v34, %v484_v35  ;;  %v5779_v34 = vld [vmem:[%s8902_s1 + $0x10] ss:$8 sps:$4 sm:$0xff]  }
  0x39   : > { %992 = vmatpush2.bf16.msra.mxu0 %v5715_v46  ;;  %v5756_v46 = vld [vmem:[%s8902_s1 + $0x4e0] ss:$8 sps:$4 sm:$0xff]  }
  0x3a   : > { %1095 = vmatpush2.bf16.msra.mxu1 %v5716_v47  ;;  %993 = vmatprep.subr.bf16.mxu0 %v5717_v48  ;;  %v5761_v47 = vld [vmem:[%s8902_s1 + $0x54] ss:$8 sps:$4 sm:$0xff]  }
  0x3b   : > { %1096 = vmatprep.subr.bf16.mxu1 %v5719_v49  ;;  %v5767_v48 = vld [vmem:[%s8902_s1 + $0x4d4] ss:$8 sps:$4 sm:$0xff]   ;;  %v488_v49 = vor.u32 %v8921_v42, %v484_v35  ;;  %v5787_v35 = vld [vmem:[%s8902_s1 + $0x4] ss:$8 sps:$4 sm:$0xff]  }
  0x3d   : > { %994 = vmatpush2.bf16.msra.mxu0 %v5721_v52  ;;  %v492_v52 = vrot.slane %v8918_v43, 1 }
  0x3e   : > { %1097 = vmatpush2.bf16.msra.mxu1 %v5722_v53  ;;  %995 = vmatprep.subr.bf16.mxu0 %v5723_v60  ;;  %v6641_v53 = vld [vmem:[%s6478_s7 + $0x38] sm:$0xff]  }
  0x3f   : > { %1098 = vmatprep.subr.bf16.mxu1 %v5725_v1  ;;  %v5759_v60 = vld [vmem:[%s8902_s1 + $0x50] ss:$8 sps:$4 sm:$0xff]   ;;  %v6653_v1 = vsel %vm441_vm0, %v488_v49, %v492_v52  ;;  %v6675_v9 = vor.u32 %v8919_v4, %v492_v52 }
  0x40   : > { %v6760_v49 = vld [vmem:[%s6478_s7 + $0x50] ss:$0 sps:$4 sm:$0x33]  }
  0x41   : > { %996 = vmatpush2.bf16.msra.mxu0 %v5727_v5  ;;  %v8916_v5 = vshll.u32 %v6641_v53, 16  ;;  %8931 = vst [vmem:[#allocation2_spill] sm:$0xff] %v6760_v49  ;;  %v5789_v52 = vld [vmem:[%s8902_s1 + $0xf0] ss:$8 sps:$4 sm:$0xff]  }
  0x42   : > { %1099 = vmatpush2.bf16.msra.mxu1 %v5728_v8  ;;  %997 = vmatprep.subr.bf16.mxu0 %v5729_v12  ;;  %v5775_v8 = vld [vmem:[%s8902_s1 + $0x4c0] ss:$8 sps:$4 sm:$0xff]  }
  0x43   : > { %1100 = vmatprep.subr.bf16.mxu1 %v5731_v15  ;;  %v500_v12 = vrot.slane %v8916_v5, 1  ;;  %v5774_v15 = vld [vmem:[%s8902_s1 + $0x24] ss:$8 sps:$4 sm:$0xff]  }
  0x45   : > { %998 = vmatpush2.bf16.msra.mxu0 %v5733_v17  ;;  %v6690_v17 = vsel %vm441_vm0, %v6675_v9, %v500_v12 }
  0x46   : > { %1101 = vmatpush2.bf16.msra.mxu1 %v5734_v19  ;;  %999 = vmatprep.subr.bf16.mxu0 %v5735_v21  ;;  %v5784_v19 = vld [vmem:[%s8902_s1 + $0x4b4] ss:$8 sps:$4 sm:$0xff]   ;;  %v8917_v21 = vshrl.u32 %v6641_v53, 16 }
  0x47   : > { %1102 = vmatprep.subr.bf16.mxu1 %v5737_v24  ;;  %v5772_v24 = vld [vmem:[%s8902_s1 + $0x20] ss:$8 sps:$4 sm:$0xff]  }
  0x48   : > { %v6714_v30 = vor.u32 %v8917_v21, %v500_v12  ;;  %v5817_v12 = vld [vmem:[%s8902_s1 + $0x484] ss:$8 sps:$4 sm:$0xff]   ;;  %v7495_v21 = vld [vmem:[%s6478_s7 + $0x50] ss:$0 sps:$4 sm:$0x33]  }
  0x49   : > { %1000 = vmatpush2.bf16.msra.mxu0 %v5739_v25  ;;  %v5782_v25 = vld [vmem:[%s8902_s1 + $0x4b0] ss:$8 sps:$4 sm:$0xff]   ;;  %v2096_v43 = vrot.slane %v7495_v21, 1 }
  0x4a   : > { %1103 = vmatpush2.bf16.msra.mxu1 %v5740_v28  ;;  %1175 = vmatprep.subr.bf16.mxu0 %v5748_v31  ;;  %v5794_v28 = vld [vmem:[%s8902_s1 + $0x4a4] ss:$8 sps:$4 sm:$0xff]  }
  0x4b   : > { %1678 = vmatprep.subr.bf16.mxu1 %v5751_v32  ;;  %v6719_v32 = vld [vmem:[%s6478_s7 + $0x48] sm:$0xff]  }
  0x4c   : > { %1002 = vmatmul.mubr.bf16.vlgmr.msra.gmra.mxu0 %v453_v36 }
  0x4d   : > { %1105 = vmatmul.mubr.bf16.vlgmr.msra.gmra.mxu1 %v469_v37  ;;  %1176 = vmatpush1.bf16.msra.mxu0 %v5746_v38 }
  0x4e   : > { %1679 = vmatpush1.bf16.msra.mxu1 %v5749_v39  ;;  %1011 = vmatprep.mubr.bf16.mxu0 %v469_v37  ;;  %v8910_v39 = vshll.u32 %v6719_v32, 16 }
  0x4f   : > { %1680 = vmatprep.subr.bf16.mxu1 %v5754_v40  ;;  %1114 = vmatprep.mubr.bf16.mxu1 %v6624_v45  ;;  %v5804_v40 = vld [vmem:[%s8902_s1 + $0x494] ss:$8 sps:$4 sm:$0xff]  }
  0x50   : > { %1177 = vmatprep.subr.bf16.mxu0 %v5758_v41  ;;  %v5785_v41 = vld [vmem:[%s8902_s1] ss:$8 sps:$4 sm:$0xff]  }
  0x51   : > { %1178 = vmatpush1.bf16.msra.mxu0 %v5756_v46  ;;  %v6753_v46 = vld [vmem:[%s6478_s7 + $0x40] ss:$0 sps:$4 sm:$0x33]  }
  0x52   : > { %1681 = vmatpush1.bf16.msra.mxu1 %v5752_v44  ;;  %1179 = vmatprep.subr.bf16.mxu0 %v5767_v48  ;;  %v5791_v44 = vld [vmem:[%s8902_s1 + $0xf4] ss:$8 sps:$4 sm:$0xff]   ;;  %v516_v48 = vrot.slane %v8910_v39, 1 }
  0x53   : > { %1682 = vmatprep.subr.bf16.mxu1 %v5761_v47 }
  0x54   : > { %1012 = vmatmul.mubr.bf16.gmra.mxu0 %v6551_v13  ;;  %v6680_v13 = vld [vmem:[%s6478_s7 + $0x40] sm:$0xff]  }
  0x55   : > { %1115 = vmatmul.mubr.bf16.gmra.mxu1 %v6565_v18  ;;  %1021 = vmatprep.mubr.bf16.mxu0 %v6565_v18  ;;  %v8912_v22 = vshll.u32 %v6680_v13, 16  ;;  %v8913_v38 = vshrl.u32 %v6680_v13, 16 }
  0x56   : > { %1683 = vmatpush1.bf16.msra.mxu1 %v5759_v60  ;;  %1124 = vmatprep.mubr.bf16.mxu1 %v6653_v1  ;;  %v5797_v60 = vld [vmem:[%s8902_s1 + $0xe4] ss:$8 sps:$4 sm:$0xff]  }
  0x57   : > { %1684 = vmatprep.subr.bf16.mxu1 %v5764_v61  ;;  %1180 = vmatpush1.bf16.msra.mxu0 %v5765_v62  ;;  %v508_v31 = vrot.slane %v8912_v22, 1  ;;  %v8915_v61 = vshll.u32 %v6753_v46, 16  ;;  %v5795_v62 = vld [vmem:[%s8902_s1 + $0xe0] ss:$8 sps:$4 sm:$0xff]  }
  0x58   : > { %1181 = vmatprep.subr.bf16.mxu0 %v5777_v3 }
  0x59   : > { %v6729_v36 = vsel %vm441_vm0, %v6714_v30, %v508_v31  ;;  %v512_v47 = vor.u32 %v8913_v38, %v508_v31  ;;  %v5799_v31 = vld [vmem:[%s8902_s1 + $0xd0] ss:$8 sps:$4 sm:$0xff]  }
  0x5a   : > { %1685 = vmatpush1.bf16.msra.mxu1 %v5762_v6  ;;  %v8911_v6 = vshrl.u32 %v6719_v32, 16 }
  0x5b   : > { %1686 = vmatprep.subr.bf16.mxu1 %v5771_v7  ;;  %1182 = vmatpush1.bf16.msra.mxu0 %v5775_v8  ;;  %v6773_v3 = vsel %vm441_vm0, %v512_v47, %v516_v48  ;;  %v8907_v7 = vshll.u32 %v6760_v49, 16  ;;  %v6778_v8 = vld [vmem:[%s6478_s7 + $0x38] ss:$0 sps:$4 sm:$0x33]  }
  0x5c   : > { %1022 = vmatmul.mubr.bf16.gmra.mxu0 %v469_v37  ;;  %1183 = vmatprep.subr.bf16.mxu0 %v5784_v19  ;;  %v5792_v37 = vld [vmem:[%s8902_s1 + $0x4a0] ss:$8 sps:$4 sm:$0xff]   ;;  %v5823_v19 = vld [vmem:[%s8902_s1 + $0x174] ss:$8 sps:$4 sm:$0xff]  }
  0x5d   : > { %1125 = vmatmul.mubr.bf16.gmra.mxu1 %v6624_v45  ;;  %1031 = vmatprep.mubr.bf16.mxu0 %v6624_v45 }
  0x5e   : > { %1687 = vmatpush1.bf16.msra.mxu1 %v5769_v14  ;;  %1134 = vmatprep.mubr.bf16.mxu1 %v6690_v17  ;;  %v5815_v14 = vld [vmem:[%s8902_s1 + $0x480] ss:$8 sps:$4 sm:$0xff]  }
  0x5f   : > { %1688 = vmatprep.subr.bf16.mxu1 %v5774_v15  ;;  %1184 = vmatpush1.bf16.msra.mxu0 %v5782_v25  ;;  %v6790_v15 = vld [vmem:[%s6478_s7 + $0x48] ss:$0 sps:$4 sm:$0x33]   ;;  %v534_v25 = vrot.slane %v8915_v61, 1 }
  0x60   : > { %1185 = vmatprep.subr.bf16.mxu0 %v5794_v28  ;;  %8932 = vst [vmem:[#allocation3_spill] sm:$0xff] %v6790_v15  ;;  %v6803_v28 = vor.u32 %v8911_v6, %v516_v48 }
  0x62   : > { %1689 = vmatpush1.bf16.msra.mxu1 %v5772_v24  ;;  %v5801_v24 = vld [vmem:[%s8902_s1 + $0xd4] ss:$8 sps:$4 sm:$0xff]  }
  0x63   : > { %1690 = vmatprep.subr.bf16.mxu1 %v5781_v29  ;;  %1186 = vmatpush1.bf16.msra.mxu0 %v5792_v37  ;;  %v544_v29 = vrot.slane %v8907_v7, 1  ;;  %v5807_v37 = vld [vmem:[%s8902_s1 + $0xc4] ss:$8 sps:$4 sm:$0xff]   ;;  %v6003_v7 = vld [vmem:[%s8902_s1 + $0x7e0] ss:$8 sps:$4 sm:$0xff]  }
  0x64   : > { %1032 = vmatmul.mubr.bf16.gmra.mxu0 %v6565_v18  ;;  %v5802_v18 = vld [vmem:[%s8902_s1 + $0x490] ss:$8 sps:$4 sm:$0xff]   ;;  %1187 = vmatprep.subr.bf16.mxu0 %v5804_v40  ;;  %v535_v40 = vsel %vm441_vm0, %v6714_v30, %v534_v25  ;;  %v5814_v30 = vld [vmem:[%s8902_s1 + $0xb4] ss:$8 sps:$4 sm:$0xff]   ;;  %v5829_v25 = vld [vmem:[%s8902_s1 + $0x164] ss:$8 sps:$4 sm:$0xff]  }
  0x65   : > { %1135 = vmatmul.mubr.bf16.gmra.mxu1 %v6653_v1  ;;  %1041 = vmatprep.mubr.bf16.mxu0 %v6653_v1 }
  0x66   : > { %1691 = vmatpush1.bf16.msra.mxu1 %v5779_v34  ;;  %1144 = vmatprep.mubr.bf16.mxu1 %v6729_v36  ;;  %v8914_v34 = vshll.u32 %v6778_v8, 16 }
  0x67   : > { %1692 = vmatprep.subr.bf16.mxu1 %v5787_v35  ;;  %1188 = vmatpush1.bf16.msra.mxu0 %v5802_v18  ;;  %v8906_v35 = vshll.u32 %v6790_v15, 16  ;;  %v6069_v15 = vld [vmem:[%s8902_s1 + $0x8e0] ss:$8 sps:$4 sm:$0xff]  }
  0x68   : > { %1189 = vmatprep.subr.bf16.mxu0 %v5817_v12  ;;  %v529_v18 = vrot.slane %v8914_v34, 1  ;;  %v5820_v12 = vld [vmem:[%s8902_s1 + $0xa4] ss:$8 sps:$4 sm:$0xff]   ;;  %v6036_v34 = vld [vmem:[%s8902_s1 + $0x870] ss:$8 sps:$4 sm:$0xff]  }
  0x69   : > { %v539_v48 = vrot.slane %v8906_v35, 1  ;;  %v5997_v35 = vld [vmem:[%s8902_s1 + $0x770] ss:$8 sps:$4 sm:$0xff]  }
  0x6a   : > { %1693 = vmatpush1.bf16.msra.mxu1 %v5785_v41  ;;  %v545_v41 = vsel %vm441_vm0, %v6803_v28, %v544_v29  ;;  %v5832_v29 = vld [vmem:[%s8902_s1 + $0x84] ss:$8 sps:$4 sm:$0xff]  }
  0x6b   : > { %1694 = vmatprep.subr.bf16.mxu1 %v5791_v44  ;;  %1190 = vmatpush1.bf16.msra.mxu0 %v5815_v14  ;;  %v5805_v44 = vld [vmem:[%s8902_s1 + $0xc0] ss:$8 sps:$4 sm:$0xff]  }
  0x6c   : > { %1042 = vmatmul.mubr.bf16.gmra.mxu0 %v6624_v45  ;;  %1781 = vmatprep.subr.bf16.mxu0 %v5823_v19  ;;  %v5818_v14 = vld [vmem:[%s8902_s1 + $0xa0] ss:$8 sps:$4 sm:$0xff]   ;;  %v8925_v19 = vmov 0  }
  0x6d   : > { %1145 = vmatmul.mubr.bf16.gmra.mxu1 %v6690_v17  ;;  %1051 = vmatprep.mubr.bf16.mxu0 %v6690_v17 }
  0x6e   : > { %1695 = vmatpush2.bf16.msra.mxu1 %v5789_v52  ;;  %1154 = vmatprep.mubr.bf16.mxu1 %v6773_v3  ;;  %v530_v52 = vsel %vm441_vm0, %v6675_v9, %v529_v18  ;;  %v5826_v9 = vld [vmem:[%s8902_s1 + $0x94] ss:$8 sps:$4 sm:$0xff]   ;;  %v5842_v18 = vld [vmem:[%s8902_s1 + $0x270] ss:$8 sps:$4 sm:$0xff]  }
  0x6f   : > { %1696 = vmatprep.subr.bf16.mxu1 %v5797_v60  ;;  %v540_v60 = vsel %vm441_vm0, %v512_v47, %v539_v48  ;;  %v5821_v47 = vld [vmem:[%s8902_s1 + $0x170] ss:$8 sps:$4 sm:$0xff]   ;;  %v5853_v48 = vld [vmem:[%s8902_s1 + $0x264] ss:$8 sps:$4 sm:$0xff]  }
  0x72   : > { %1697 = vmatpush2.bf16.msra.mxu1 %v5795_v62  ;;  %v5812_v62 = vld [vmem:[%s8902_s1 + $0xb0] ss:$8 sps:$4 sm:$0xff]  }
  0x73   : > { %1698 = vmatprep.subr.bf16.mxu1 %v5801_v24  ;;  %v5824_v24 = vld [vmem:[%s8902_s1 + $0x90] ss:$8 sps:$4 sm:$0xff]  }
  0x74   : > { %1052 = vmatmul.mubr.bf16.gmra.mxu0 %v6653_v1 }
  0x75   : > { %1155 = vmatmul.mubr.bf16.gmra.mxu1 %v6729_v36  ;;  %1061 = vmatprep.mubr.bf16.mxu0 %v535_v40  ;;  %v5835_v40 = vld [vmem:[%s8902_s1 + $0x154] ss:$8 sps:$4 sm:$0xff]  }
  0x76   : > { %1699 = vmatpush2.bf16.msra.mxu1 %v5799_v31  ;;  %1164 = vmatprep.mubr.bf16.mxu1 %v545_v41  ;;  %v5827_v31 = vld [vmem:[%s8902_s1 + $0x160] ss:$8 sps:$4 sm:$0xff]   ;;  %v5833_v41 = vld [vmem:[%s8902_s1 + $0x150] ss:$8 sps:$4 sm:$0xff]  }
  0x77   : > { %1700 = vmatprep.subr.bf16.mxu1 %v5807_v37  ;;  %v5830_v37 = vld [vmem:[%s8902_s1 + $0x80] ss:$8 sps:$4 sm:$0xff]  }
  0x7a   : > { %1701 = vmatpush2.bf16.msra.mxu1 %v5805_v44  ;;  %v5838_v44 = vld [vmem:[%s8902_s1 + $0x144] ss:$8 sps:$4 sm:$0xff]  }
  0x7b   : > { %1702 = vmatprep.subr.bf16.mxu1 %v5814_v30  ;;  %v5836_v30 = vld [vmem:[%s8902_s1 + $0x140] ss:$8 sps:$4 sm:$0xff]  }
  0x7c   : > { %1062 = vmatmul.mubr.bf16.gmra.mxu0 %v530_v52  ;;  %v5839_v52 = vld [vmem:[%s8902_s1 + $0x130] ss:$8 sps:$4 sm:$0xff]  }
  0x7d   : > { %1165 = vmatmul.mubr.bf16.gmra.mxu1 %v540_v60  ;;  %1207 = vmatprep.mubr.bf16.mxu0 %v8925_v19  ;;  %v5847_v60 = vld [vmem:[%s8902_s1 + $0x124] ss:$8 sps:$4 sm:$0xff]  }
  0x7e   : > { %1703 = vmatpush2.bf16.msra.mxu1 %v5812_v62  ;;  %1710 = vmatprep.mubr.bf16.mxu1 %v6493_v50  ;;  %v5859_v62 = vld [vmem:[%s8902_s1 + $0x254] ss:$8 sps:$4 sm:$0xff]  }
  0x7f   : > { %1704 = vmatprep.subr.bf16.mxu1 %v5820_v12  ;;  %v5857_v12 = vld [vmem:[%s8902_s1 + $0x250] ss:$8 sps:$4 sm:$0xff]  }
  0x82   : > { %1705 = vmatpush2.bf16.msra.mxu1 %v5818_v14  ;;  %v5845_v14 = vld [vmem:[%s8902_s1 + $0x120] ss:$8 sps:$4 sm:$0xff]  }
  0x83   : > { %1706 = vmatprep.subr.bf16.mxu1 %v5826_v9  ;;  %v5868_v9 = vld [vmem:[%s8902_s1 + $0x244] ss:$8 sps:$4 sm:$0xff]  }
  0x84   : > { %1208 = vmatmul.mubr.bf16.vlgmr.msra.gmra.mxu0 %v6624_v45  ;;  %v5844_v45 = vld [vmem:[%s8902_s1 + $0x274] ss:$8 sps:$4 sm:$0xff]  }
  0x85   : > { %1782 = vmatpush1.bf16.msra.mxu0 %v5821_v47  ;;  %1217 = vmatprep.mubr.bf16.mxu0 %v8925_v19  ;;  %v5848_v47 = vld [vmem:[%s8902_s1 + $0x110] ss:$8 sps:$4 sm:$0xff]  }
  0x86   : > { %1707 = vmatpush2.bf16.msra.mxu1 %v5824_v24  ;;  %1783 = vmatprep.subr.bf16.mxu0 %v5829_v25  ;;  %v5856_v24 = vld [vmem:[%s8902_s1 + $0x104] ss:$8 sps:$4 sm:$0xff]   ;;  %v5866_v25 = vld [vmem:[%s8902_s1 + $0x240] ss:$8 sps:$4 sm:$0xff]  }
  0x87   : > { %1708 = vmatprep.subr.bf16.mxu1 %v5832_v29  ;;  %v6936_v29 = vld [vmem:[%s6478_s7 + $0x50] sm:$0xff]  }
  0x89   : > { %1784 = vmatpush1.bf16.msra.mxu0 %v5827_v31  ;;  %v5878_v31 = vld [vmem:[%s8902_s1 + $0x234] ss:$8 sps:$4 sm:$0xff]  }
  0x8a   : > { %1709 = vmatpush2.bf16.msra.mxu1 %v5830_v37  ;;  %1785 = vmatprep.subr.bf16.mxu0 %v5835_v40  ;;  %v5854_v37 = vld [vmem:[%s8902_s1 + $0x100] ss:$8 sps:$4 sm:$0xff]   ;;  %v5876_v40 = vld [vmem:[%s8902_s1 + $0x230] ss:$8 sps:$4 sm:$0xff]  }
  0x8b   : > { %1884 = vmatprep.subr.bf16.mxu1 %v5844_v45  ;;  %v8908_v45 = vshll.u32 %v6936_v29, 16 }
  0x8c   : > { %1218 = vmatmul.mubr.bf16.gmra.mxu0 %v6653_v1  ;;  %v5841_v1 = vld [vmem:[%s8902_s1 + $0x134] ss:$8 sps:$4 sm:$0xff]  }
  0x8d   : > { %1711 = vmatmul.mubr.bf16.vlgmr.msra.gmra.mxu1 %v6514_v59  ;;  %1786 = vmatpush1.bf16.msra.mxu0 %v5833_v41  ;;  %v5851_v59 = vld [vmem:[%s8902_s1 + $0x260] ss:$8 sps:$4 sm:$0xff]   ;;  %v5860_v41 = vld [vmem:[%s8902_s1 + $0x1f0] ss:$8 sps:$4 sm:$0xff]  }
  0x8e   : > { %1227 = vmatprep.mubr.bf16.mxu0 %v8925_v19  ;;  %1787 = vmatprep.subr.bf16.mxu0 %v5838_v44  ;;  %v5865_v44 = vld [vmem:[%s8902_s1 + $0x1e4] ss:$8 sps:$4 sm:$0xff]  }
  0x8f   : > { %1720 = vmatprep.mubr.bf16.mxu1 %v6496_v51  ;;  %1885 = vmatpush1.bf16.msra.mxu1 %v5842_v18  ;;  %v5888_v18 = vld [vmem:[%s8902_s1 + $0x224] ss:$8 sps:$4 sm:$0xff]  }
  0x90   : > { %1886 = vmatprep.subr.bf16.mxu1 %v5853_v48  ;;  %v5863_v48 = vld [vmem:[%s8902_s1 + $0x1e0] ss:$8 sps:$4 sm:$0xff]  }
  0x91   : > { %1788 = vmatpush1.bf16.msra.mxu0 %v5836_v30  ;;  %v524_v30 = vrot.slane %v8908_v45, 1 }
  0x92   : > { %1789 = vmatprep.subr.bf16.mxu0 %v5841_v1  ;;  %v5886_v1 = vld [vmem:[%s8902_s1 + $0x220] ss:$8 sps:$4 sm:$0xff]  }
  0x93   : > { %1887 = vmatpush1.bf16.msra.mxu1 %v5851_v59  ;;  %v6974_v59 = vld [vmem:[%s6478_s7 + $0x58] ss:$0 sps:$4 sm:$0x33]  }
  0x94   : > { %1228 = vmatmul.mubr.bf16.gmra.mxu0 %v6690_v17  ;;  %v5850_v17 = vld [vmem:[%s8902_s1 + $0x114] ss:$8 sps:$4 sm:$0xff]   ;;  %1888 = vmatprep.subr.bf16.mxu1 %v5859_v62  ;;  %8933 = vst [vmem:[#allocation4_spill] sm:$0xff] %v6974_v59  ;;  %v525_v62 = vsel %vm441_vm0, %v6803_v28, %v524_v30  ;;  %v5900_v28 = vld [vmem:[%s8902_s1 + $0x204] ss:$8 sps:$4 sm:$0xff]  }
  0x95   : > { %1721 = vmatmul.mubr.bf16.gmra.mxu1 %v6493_v50  ;;  %1790 = vmatpush1.bf16.msra.mxu0 %v5839_v52  ;;  %v5871_v52 = vld [vmem:[%s8902_s1 + $0x1d4] ss:$8 sps:$4 sm:$0xff]   ;;  %v6051_v50 = vld [vmem:[%s8902_s1 + $0x840] ss:$8 sps:$4 sm:$0xff]  }
  0x96   : > { %1237 = vmatprep.mubr.bf16.mxu0 %v8925_v19  ;;  %1791 = vmatprep.subr.bf16.mxu0 %v5847_v60  ;;  %v5869_v60 = vld [vmem:[%s8902_s1 + $0x1d0] ss:$8 sps:$4 sm:$0xff]  }
  0x97   : > { %1730 = vmatprep.mubr.bf16.mxu1 %v6508_v57  ;;  %1889 = vmatpush1.bf16.msra.mxu1 %v5857_v12  ;;  %v8909_v12 = vshrl.u32 %v6936_v29, 16 }
  0x98   : > { %1890 = vmatprep.subr.bf16.mxu1 %v5868_v9  ;;  %v5875_v9 = vld [vmem:[%s8902_s1 + $0x1c4] ss:$8 sps:$4 sm:$0xff]  }
  0x99   : > { %1792 = vmatpush1.bf16.msra.mxu0 %v5845_v14  ;;  %v8905_v14 = vshll.u32 %v6974_v59, 16 }
  0x9a   : > { %1793 = vmatprep.subr.bf16.mxu0 %v5850_v17  ;;  %v5892_v17 = vld [vmem:[%s8902_s1 + $0x210] ss:$8 sps:$4 sm:$0xff]  }
  0x9b   : > { %1891 = vmatpush1.bf16.msra.mxu1 %v5866_v25  ;;  %v552_v25 = vrot.slane %v8905_v14, 1  ;;  %v5984_v14 = vld [vmem:[%s8902_s1 + $0x6a4] ss:$8 sps:$4 sm:$0xff]  }
  0x9c   : > { %1238 = vmatmul.mubr.bf16.gmra.mxu0 %v6729_v36  ;;  %v5862_v36 = vld [vmem:[%s8902_s1 + $0x1f4] ss:$8 sps:$4 sm:$0xff]   ;;  %1892 = vmatprep.subr.bf16.mxu1 %v5878_v31 }
  0x9d   : > { %1731 = vmatmul.mubr.bf16.gmra.mxu1 %v6496_v51  ;;  %1794 = vmatpush1.bf16.msra.mxu0 %v5848_v47  ;;  %v5873_v47 = vld [vmem:[%s8902_s1 + $0x1c0] ss:$8 sps:$4 sm:$0xff]   ;;  %v5881_v31 = vld [vmem:[%s8902_s1 + $0x1b4] ss:$8 sps:$4 sm:$0xff]  }
  0x9e   : > { %1247 = vmatprep.mubr.bf16.mxu0 %v8925_v19  ;;  %1795 = vmatprep.subr.bf16.mxu0 %v5856_v24  ;;  %v548_v24 = vor.u32 %v8909_v12, %v524_v30  ;;  %v7034_v30 = vld [vmem:[%s6478_s7 + $0x18] sm:$0xff]   ;;  %v7534_v51 = vld [vmem:[%s6478_s7 + $0x48] ss:$0 sps:$4 sm:$0x33]  }
  0x9f   : > { %1740 = vmatprep.mubr.bf16.mxu1 %v6511_v58  ;;  %1893 = vmatpush1.bf16.msra.mxu1 %v5876_v40  ;;  %8934 = vst [vmem:[#allocation5_spill] sm:$0xff] %v7534_v51 }
  0xa0   : > { %1894 = vmatprep.subr.bf16.mxu1 %v5888_v18  ;;  %v553_v40 = vsel %vm441_vm0, %v548_v24, %v552_v25  ;;  %v5883_v18 = vld [vmem:[%s8902_s1 + $0x1a0] ss:$8 sps:$4 sm:$0xff]  }
  0xa1   : > { %1796 = vmatpush1.bf16.msra.mxu0 %v5854_v37  ;;  %v5898_v37 = vld [vmem:[%s8902_s1 + $0x200] ss:$8 sps:$4 sm:$0xff]  }
  0xa2   : > { %1797 = vmatprep.subr.bf16.mxu0 %v5862_v36  ;;  %v5879_v36 = vld [vmem:[%s8902_s1 + $0x1b0] ss:$8 sps:$4 sm:$0xff]   ;;  %v7068_v24 = vld [vmem:[%s6478_s7 + $0x20] sm:$0xff]  }
  0xa3   : > { %1895 = vmatpush1.bf16.msra.mxu1 %v5886_v1  ;;  %v5889_v1 = vld [vmem:[%s8902_s1 + $0x190] ss:$8 sps:$4 sm:$0xff]   ;;  %v5907_v25 = vld [vmem:[%s8902_s1 + $0x560] ss:$8 sps:$4 sm:$0xff]  }
  0xa4   : > { %1248 = vmatmul.mubr.bf16.gmra.mxu0 %v6773_v3  ;;  %v5894_v3 = vld [vmem:[%s8902_s1 + $0x214] ss:$8 sps:$4 sm:$0xff]  }
  0xa5   : > { %1741 = vmatmul.mubr.bf16.gmra.mxu1 %v6508_v57  ;;  %1798 = vmatpush2.bf16.msra.mxu0 %v5860_v41  ;;  %v5885_v41 = vld [vmem:[%s8902_s1 + $0x1a4] ss:$8 sps:$4 sm:$0xff]  }
  0xa6   : > { %1257 = vmatprep.mubr.bf16.mxu0 %v8925_v19  ;;  %1799 = vmatprep.subr.bf16.mxu0 %v5865_v44  ;;  %v5906_v44 = vld [vmem:[%s8902_s1 + $0x674] ss:$8 sps:$4 sm:$0xff]  }
  0xa7   : > { %1750 = vmatprep.mubr.bf16.mxu1 %v6572_v20  ;;  %1896 = vmatprep.subr.bf16.mxu1 %v5894_v3  ;;  %v5897_v3 = vld [vmem:[%s8902_s1 + $0x184] ss:$8 sps:$4 sm:$0xff]  }
  0xa8   : > { %1897 = vmatpush1.bf16.msra.mxu1 %v5892_v17  ;;  %v5909_v17 = vld [vmem:[%s8902_s1 + $0x564] ss:$8 sps:$4 sm:$0xff]  }
  0xa9   : > { %1800 = vmatpush2.bf16.msra.mxu0 %v5863_v48  ;;  %1898 = vmatprep.subr.bf16.mxu1 %v5900_v28  ;;  %v5891_v48 = vld [vmem:[%s8902_s1 + $0x194] ss:$8 sps:$4 sm:$0xff]   ;;  %v5912_v28 = vld [vmem:[%s8902_s1 + $0x664] ss:$8 sps:$4 sm:$0xff]  }
  0xaa   : > { %1801 = vmatprep.subr.bf16.mxu0 %v5871_v52  ;;  %v5895_v52 = vld [vmem:[%s8902_s1 + $0x180] ss:$8 sps:$4 sm:$0xff]  }
  0xac   : > { %1258 = vmatmul.mubr.bf16.gmra.mxu0 %v525_v62  ;;  %1899 = vmatpush1.bf16.msra.mxu1 %v5898_v37  ;;  %v5901_v62 = vld [vmem:[%s8902_s1 + $0x570] ss:$8 sps:$4 sm:$0xff]   ;;  %v5915_v37 = vld [vmem:[%s8902_s1 + $0x554] ss:$8 sps:$4 sm:$0xff]  }
  0xad   : > { %1751 = vmatmul.mubr.bf16.gmra.mxu1 %v6511_v58  ;;  %1802 = vmatpush2.bf16.msra.mxu0 %v5869_v60  ;;  %v5903_v60 = vld [vmem:[%s8902_s1 + $0x574] ss:$8 sps:$4 sm:$0xff]  }
  0xae   : > { %1267 = vmatprep.mubr.bf16.mxu0 %v8925_v19  ;;  %1803 = vmatprep.subr.bf16.mxu0 %v5875_v9  ;;  %v5904_v9 = vld [vmem:[%s8902_s1 + $0x670] ss:$8 sps:$4 sm:$0xff]  }
  0xaf   : > { %1760 = vmatprep.mubr.bf16.mxu1 %v6598_v33  ;;  %2618 = vmatprep.subr.bf16.mxu1 %v5906_v44  ;;  %v5921_v44 = vld [vmem:[%s8902_s1 + $0x544] ss:$8 sps:$4 sm:$0xff]  }
  0xb1   : > { %1804 = vmatpush2.bf16.msra.mxu0 %v5873_v47  ;;  %v7064_v47 = vld [vmem:[%s6478_s7 + $0x10] sm:$0xff]  }
  0xb2   : > { %1805 = vmatprep.subr.bf16.mxu0 %v5881_v31  ;;  %v5910_v31 = vld [vmem:[%s8902_s1 + $0x660] ss:$8 sps:$4 sm:$0xff]  }
  0xb4   : > { %1268 = vmatmul.mubr.bf16.gmra.mxu0 %v553_v40  ;;  %v5913_v40 = vld [vmem:[%s8902_s1 + $0x550] ss:$8 sps:$4 sm:$0xff]  }
  0xb5   : > { %1761 = vmatmul.mubr.bf16.gmra.mxu1 %v6572_v20  ;;  %1806 = vmatpush2.bf16.msra.mxu0 %v5879_v36  ;;  %v5918_v36 = vld [vmem:[%s8902_s1 + $0x654] ss:$8 sps:$4 sm:$0xff]  }
  0xb6   : > { %1770 = vmatprep.mubr.bf16.mxu1 %v6641_v53  ;;  %1807 = vmatprep.subr.bf16.mxu0 %v5885_v41  ;;  %v5916_v41 = vld [vmem:[%s8902_s1 + $0x650] ss:$8 sps:$4 sm:$0xff]  }
  0xb7   : > { %1813 = vmatprep.mubr.bf16.mxu0 %v7034_v30 }
  0xb9   : > { %1808 = vmatpush2.bf16.msra.mxu0 %v5883_v18  ;;  %v5924_v18 = vld [vmem:[%s8902_s1 + $0x644] ss:$8 sps:$4 sm:$0xff]  }
  0xba   : > { %1809 = vmatprep.subr.bf16.mxu0 %v5891_v48  ;;  %v7099_v48 = vld [vmem:[%s6478_s7 + $0x28] sm:$0xff]  }
  0xbd   : > { %1771 = vmatmul.mubr.bf16.gmra.mxu1 %v6598_v33  ;;  %1810 = vmatpush2.bf16.msra.mxu0 %v5889_v1  ;;  %v5919_v1 = vld [vmem:[%s8902_s1 + $0x540] ss:$8 sps:$4 sm:$0xff]  }
  0xbe   : > { %1916 = vmatprep.mubr.bf16.mxu1 %v8925_v19  ;;  %1811 = vmatprep.subr.bf16.mxu0 %v5897_v3  ;;  %v5922_v3 = vld [vmem:[%s8902_s1 + $0x640] ss:$8 sps:$4 sm:$0xff]  }
  0xc1   : > { %1812 = vmatpush2.bf16.msra.mxu0 %v5895_v52  ;;  %v5927_v52 = vld [vmem:[%s8902_s1 + $0x534] ss:$8 sps:$4 sm:$0xff]  }
  0xc2   : > { %2515 = vmatprep.subr.bf16.mxu0 %v5903_v60  ;;  %v5930_v60 = vld [vmem:[%s8902_s1 + $0x634] ss:$8 sps:$4 sm:$0xff]  }
  0xc4   : > { %1814 = vmatmul.mubr.bf16.vlgmr.msra.gmra.mxu0 %v7064_v47 }
  0xc5   : > { %1917 = vmatmul.mubr.bf16.vlgmr.msra.gmra.mxu1 %v7068_v24  ;;  %2516 = vmatpush1.bf16.msra.mxu0 %v5901_v62  ;;  %v5925_v62 = vld [vmem:[%s8902_s1 + $0x530] ss:$8 sps:$4 sm:$0xff]  }
  0xc6   : > { %2619 = vmatpush1.bf16.msra.mxu1 %v5904_v9  ;;  %2517 = vmatprep.subr.bf16.mxu0 %v5909_v17  ;;  %v5928_v9 = vld [vmem:[%s8902_s1 + $0x630] ss:$8 sps:$4 sm:$0xff]   ;;  %v5933_v17 = vld [vmem:[%s8902_s1 + $0x524] ss:$8 sps:$4 sm:$0xff]  }
  0xc7   : > { %2620 = vmatprep.subr.bf16.mxu1 %v5912_v28  ;;  %1823 = vmatprep.mubr.bf16.mxu0 %v7068_v24  ;;  %v5936_v28 = vld [vmem:[%s8902_s1 + $0x624] ss:$8 sps:$4 sm:$0xff]  }
  0xc8   : > { %1926 = vmatprep.mubr.bf16.mxu1 %v8925_v19 }
  0xc9   : > { %2518 = vmatpush1.bf16.msra.mxu0 %v5907_v25  ;;  %v7130_v25 = vld [vmem:[%s6478_s7 + $0x30] sm:$0xff]  }
  0xca   : > { %2621 = vmatpush1.bf16.msra.mxu1 %v5910_v31  ;;  %2519 = vmatprep.subr.bf16.mxu0 %v5915_v37  ;;  %v5931_v31 = vld [vmem:[%s8902_s1 + $0x520] ss:$8 sps:$4 sm:$0xff]  }
  0xcb   : > { %2622 = vmatprep.subr.bf16.mxu1 %v5918_v36  ;;  %v5934_v37 = vld [vmem:[%s8902_s1 + $0x620] ss:$8 sps:$4 sm:$0xff]   ;;  %v5939_v36 = vld [vmem:[%s8902_s1 + $0x514] ss:$8 sps:$4 sm:$0xff]  }
  0xcc   : > { %1824 = vmatmul.mubr.bf16.gmra.mxu0 %v7034_v30 }
  0xcd   : > { %1927 = vmatmul.mubr.bf16.gmra.mxu1 %v7099_v48  ;;  %2520 = vmatpush1.bf16.msra.mxu0 %v5913_v40  ;;  %v5942_v40 = vld [vmem:[%s8902_s1 + $0x614] ss:$8 sps:$4 sm:$0xff]  }
  0xce   : > { %2623 = vmatpush1.bf16.msra.mxu1 %v5916_v41  ;;  %2521 = vmatprep.subr.bf16.mxu0 %v5921_v44  ;;  %v5937_v41 = vld [vmem:[%s8902_s1 + $0x510] ss:$8 sps:$4 sm:$0xff]  }
  0xcf   : > { %2624 = vmatprep.subr.bf16.mxu1 %v5924_v18  ;;  %1833 = vmatprep.mubr.bf16.mxu0 %v7099_v48  ;;  %v5940_v44 = vld [vmem:[%s8902_s1 + $0x610] ss:$8 sps:$4 sm:$0xff]   ;;  %v5945_v18 = vld [vmem:[%s8902_s1 + $0x504] ss:$8 sps:$4 sm:$0xff]  }
  0xd0   : > { %1936 = vmatprep.mubr.bf16.mxu1 %v8925_v19 }
  0xd1   : > { %2522 = vmatpush1.bf16.msra.mxu0 %v5919_v1  ;;  %v5948_v1 = vld [vmem:[%s8902_s1 + $0x604] ss:$8 sps:$4 sm:$0xff]  }
  0xd2   : > { %2625 = vmatpush1.bf16.msra.mxu1 %v5922_v3  ;;  %2523 = vmatprep.subr.bf16.mxu0 %v5927_v52  ;;  %v7161_v3 = vld [vmem:[%s6478_s7 + $0x38] sm:$0xff]   ;;  %v5943_v52 = vld [vmem:[%s8902_s1 + $0x500] ss:$8 sps:$4 sm:$0xff]  }
  0xd3   : > { %2626 = vmatprep.subr.bf16.mxu1 %v5930_v60  ;;  %v5946_v60 = vld [vmem:[%s8902_s1 + $0x600] ss:$8 sps:$4 sm:$0xff]  }
  0xd4   : > { %1834 = vmatmul.mubr.bf16.gmra.mxu0 %v7068_v24 }
  0xd5   : > { %1937 = vmatmul.mubr.bf16.gmra.mxu1 %v7130_v25  ;;  %2524 = vmatpush1.bf16.msra.mxu0 %v5925_v62  ;;  %v5951_v62 = vld [vmem:[%s8902_s1 + $0x5f4] ss:$8 sps:$4 sm:$0xff]  }
  0xd6   : > { %2627 = vmatpush1.bf16.msra.mxu1 %v5928_v9  ;;  %2525 = vmatprep.subr.bf16.mxu0 %v5933_v17  ;;  %v5954_v9 = vld [vmem:[%s8902_s1 + $0x6f4] ss:$8 sps:$4 sm:$0xff]   ;;  %v5949_v17 = vld [vmem:[%s8902_s1 + $0x5f0] ss:$8 sps:$4 sm:$0xff]  }
  0xd7   : > { %2628 = vmatprep.subr.bf16.mxu1 %v5936_v28  ;;  %1843 = vmatprep.mubr.bf16.mxu0 %v7130_v25  ;;  %v5952_v28 = vld [vmem:[%s8902_s1 + $0x6f0] ss:$8 sps:$4 sm:$0xff]  }
  0xd8   : > { %1946 = vmatprep.mubr.bf16.mxu1 %v8925_v19 }
  0xd9   : > { %2526 = vmatpush1.bf16.msra.mxu0 %v5931_v31  ;;  %v5957_v31 = vld [vmem:[%s8902_s1 + $0x5e4] ss:$8 sps:$4 sm:$0xff]  }
  0xda   : > { %2629 = vmatpush1.bf16.msra.mxu1 %v5934_v37  ;;  %2527 = vmatprep.subr.bf16.mxu0 %v5939_v36  ;;  %v5960_v37 = vld [vmem:[%s8902_s1 + $0x6e4] ss:$8 sps:$4 sm:$0xff]   ;;  %v5955_v36 = vld [vmem:[%s8902_s1 + $0x5e0] ss:$8 sps:$4 sm:$0xff]  }
  0xdb   : > { %2630 = vmatprep.subr.bf16.mxu1 %v5942_v40  ;;  %v5958_v40 = vld [vmem:[%s8902_s1 + $0x6e0] ss:$8 sps:$4 sm:$0xff]  }
  0xdc   : > { %1844 = vmatmul.mubr.bf16.gmra.mxu0 %v7099_v48 }
  0xdd   : > { %1947 = vmatmul.mubr.bf16.gmra.mxu1 %v7161_v3  ;;  %2528 = vmatpush1.bf16.msra.mxu0 %v5937_v41  ;;  %v7198_v41 = vld [vmem:[%s6478_s7 + $0x40] sm:$0xff]  }
  0xde   : > { %2631 = vmatpush1.bf16.msra.mxu1 %v5940_v44  ;;  %2529 = vmatprep.subr.bf16.mxu0 %v5945_v18  ;;  %v5963_v44 = vld [vmem:[%s8902_s1 + $0x5d4] ss:$8 sps:$4 sm:$0xff]  }
  0xdf   : > { %2632 = vmatprep.subr.bf16.mxu1 %v5948_v1  ;;  %1853 = vmatprep.mubr.bf16.mxu0 %v7161_v3  ;;  %v5966_v18 = vld [vmem:[%s8902_s1 + $0x6d4] ss:$8 sps:$4 sm:$0xff]   ;;  %v5961_v1 = vld [vmem:[%s8902_s1 + $0x5d0] ss:$8 sps:$4 sm:$0xff]  }
  0xe0   : > { %1956 = vmatprep.mubr.bf16.mxu1 %v8925_v19 }
  0xe1   : > { %2530 = vmatpush1.bf16.msra.mxu0 %v5943_v52  ;;  %v5964_v52 = vld [vmem:[%s8902_s1 + $0x6d0] ss:$8 sps:$4 sm:$0xff]  }
  0xe2   : > { %2633 = vmatpush1.bf16.msra.mxu1 %v5946_v60  ;;  %2531 = vmatprep.subr.bf16.mxu0 %v5951_v62  ;;  %v5969_v60 = vld [vmem:[%s8902_s1 + $0x5c4] ss:$8 sps:$4 sm:$0xff]  }
  0xe3   : > { %2634 = vmatprep.subr.bf16.mxu1 %v5954_v9  ;;  %v5972_v62 = vld [vmem:[%s8902_s1 + $0x6c4] ss:$8 sps:$4 sm:$0xff]   ;;  %v5967_v9 = vld [vmem:[%s8902_s1 + $0x5c0] ss:$8 sps:$4 sm:$0xff]  }
  0xe4   : > { %1854 = vmatmul.mubr.bf16.gmra.mxu0 %v7130_v25 }
  0xe5   : > { %1957 = vmatmul.mubr.bf16.gmra.mxu1 %v7198_v41  ;;  %2532 = vmatpush2.bf16.msra.mxu0 %v5949_v17  ;;  %v5970_v17 = vld [vmem:[%s8902_s1 + $0x6c0] ss:$8 sps:$4 sm:$0xff]  }
  0xe6   : > { %2635 = vmatpush2.bf16.msra.mxu1 %v5952_v28  ;;  %2533 = vmatprep.subr.bf16.mxu0 %v5957_v31  ;;  %v7229_v28 = vld [vmem:[%s6478_s7 + $0x48] sm:$0xff]   ;;  %v5975_v31 = vld [vmem:[%s8902_s1 + $0x5b4] ss:$8 sps:$4 sm:$0xff]  }
  0xe7   : > { %2636 = vmatprep.subr.bf16.mxu1 %v5960_v37  ;;  %1863 = vmatprep.mubr.bf16.mxu0 %v7198_v41  ;;  %v5978_v37 = vld [vmem:[%s8902_s1 + $0x6b4] ss:$8 sps:$4 sm:$0xff]  }
  0xe8   : > { %1966 = vmatprep.mubr.bf16.mxu1 %v8925_v19 }
  0xe9   : > { %2534 = vmatpush2.bf16.msra.mxu0 %v5955_v36  ;;  %v5973_v36 = vld [vmem:[%s8902_s1 + $0x5b0] ss:$8 sps:$4 sm:$0xff]  }
  0xea   : > { %2637 = vmatpush2.bf16.msra.mxu1 %v5958_v40  ;;  %2535 = vmatprep.subr.bf16.mxu0 %v5963_v44  ;;  %v5976_v40 = vld [vmem:[%s8902_s1 + $0x6b0] ss:$8 sps:$4 sm:$0xff]   ;;  %v6269_v44 = vld [vmem:[%s6478_s7 + $0x8] sm:$0xff]  }
  0xeb   : > { %2638 = vmatprep.subr.bf16.mxu1 %v5966_v18  ;;  %v2070_v18 = vrot.slane %v6269_v44, 1  ;;  %v5991_v44 = vld [vmem:[%s8902_s1 + $0x580] ss:$8 sps:$4 sm:$0xff]  }
  0xec   : > { %1864 = vmatmul.mubr.bf16.gmra.mxu0 %v7161_v3 }
  0xed   : > { %1967 = vmatmul.mubr.bf16.gmra.mxu1 %v7229_v28  ;;  %2536 = vmatpush2.bf16.msra.mxu0 %v5961_v1  ;;  %v2072_v1 = vrot.slane %v7064_v47, 1  ;;  %v5979_v47 = vld [vmem:[%s8902_s1 + $0x5a0] ss:$8 sps:$4 sm:$0xff]  }
  0xee   : > { %2639 = vmatpush2.bf16.msra.mxu1 %v5964_v52  ;;  %2537 = vmatprep.subr.bf16.mxu0 %v5969_v60  ;;  %v2074_v52 = vrot.slane %v7034_v30, 1  ;;  %v2076_v60 = vrot.slane %v7068_v24, 1  ;;  %v5982_v30 = vld [vmem:[%s8902_s1 + $0x6a0] ss:$8 sps:$4 sm:$0xff]  }
  0xef   : > { %2640 = vmatprep.subr.bf16.mxu1 %v5972_v62  ;;  %1873 = vmatprep.mubr.bf16.mxu0 %v7229_v28  ;;  %v5981_v62 = vld [vmem:[%s8902_s1 + $0x5a4] ss:$8 sps:$4 sm:$0xff]   ;;  %v7265_v24 = vsel %vm2068_vm1, %v2070_v18, %v2072_v1 }
  0xf0   : > { %1976 = vmatprep.mubr.bf16.mxu1 %v8925_v19 }
  0xf1   : > { %2538 = vmatpush2.bf16.msra.mxu0 %v5967_v9  ;;  %v7268_v9 = vsel %vm2068_vm1, %v2074_v52, %v2076_v60 }
  0xf2   : > { %2641 = vmatpush2.bf16.msra.mxu1 %v5970_v17  ;;  %2539 = vmatprep.subr.bf16.mxu0 %v5975_v31  ;;  %v5987_v17 = vld [vmem:[%s8902_s1 + $0x594] ss:$8 sps:$4 sm:$0xff]  }
  0xf3   : > { %2642 = vmatprep.subr.bf16.mxu1 %v5978_v37  ;;  %v5990_v31 = vld [vmem:[%s8902_s1 + $0x694] ss:$8 sps:$4 sm:$0xff]   ;;  %v5985_v37 = vld [vmem:[%s8902_s1 + $0x590] ss:$8 sps:$4 sm:$0xff]  }
  0xf4   : > { %1874 = vmatmul.mubr.bf16.gmra.mxu0 %v7198_v41 }
  0xf5   : > { %1977 = vmatmul.mubr.bf16.gmra.mxu1 %v6936_v29  ;;  %2540 = vmatpush2.bf16.msra.mxu0 %v5973_v36  ;;  %v5988_v36 = vld [vmem:[%s8902_s1 + $0x690] ss:$8 sps:$4 sm:$0xff]  }
  0xf6   : > { %2643 = vmatpush2.bf16.msra.mxu1 %v5976_v40  ;;  %2541 = vmatprep.subr.bf16.mxu0 %v5981_v62  ;;  %v5996_v40 = vld [vmem:[%s8902_s1 + $0x684] ss:$8 sps:$4 sm:$0xff]   ;;  %v5994_v62 = vld [vmem:[%s8902_s1 + $0x680] ss:$8 sps:$4 sm:$0xff]  }
  0xf7   : > { %2644 = vmatprep.subr.bf16.mxu1 %v5984_v14  ;;  %2547 = vmatprep.mubr.bf16.mxu0 %v7265_v24  ;;  %v5993_v14 = vld [vmem:[%s8902_s1 + $0x584] ss:$8 sps:$4 sm:$0xff]  }
  0xf8   : > { %2650 = vmatprep.mubr.bf16.mxu1 %v7268_v9 }
  0xf9   : > { %2542 = vmatpush2.bf16.msra.mxu0 %v5979_v47  ;;  %v6270_v47 = vld [vmem:[%s6478_s7] sm:$0xff]  }
  0xfa   : > { %2645 = vmatpush2.bf16.msra.mxu1 %v5982_v30  ;;  %2543 = vmatprep.subr.bf16.mxu0 %v5987_v17  ;;  %v2069_v30 = vrot.slane %v6270_v47, 1  ;;  %v5999_v17 = vld [vmem:[%s8902_s1 + $0x774] ss:$8 sps:$4 sm:$0xff]   ;;  %v6005_v47 = vld [vmem:[%s8902_s1 + $0x7e4] ss:$8 sps:$4 sm:$0xff]  }
  0xfb   : > { %2646 = vmatprep.subr.bf16.mxu1 %v5990_v31  ;;  %v6002_v31 = vld [vmem:[%s8902_s1 + $0x7f4] ss:$8 sps:$4 sm:$0xff]  }
  0xfd   : > { %2544 = vmatpush2.bf16.msra.mxu0 %v5985_v37  ;;  %v6000_v37 = vld [vmem:[%s8902_s1 + $0x7f0] ss:$8 sps:$4 sm:$0xff]  }
  0xfe   : > { %2647 = vmatpush2.bf16.msra.mxu1 %v5988_v36  ;;  %2545 = vmatprep.subr.bf16.mxu0 %v5993_v14  ;;  %v2078_v36 = vrot.slane %v7099_v48, 1  ;;  %v2071_v14 = vsel %vm2068_vm1, %v2069_v30, %v2070_v18  ;;  %v6006_v48 = vld [vmem:[%s8902_s1 + $0x760] ss:$8 sps:$4 sm:$0xff]   ;;  %v6008_v18 = vld [vmem:[%s8902_s1 + $0x764] ss:$8 sps:$4 sm:$0xff]  }
  0xff   : > { %2648 = vmatprep.subr.bf16.mxu1 %v5996_v40  ;;  %v2075_v40 = vsel %vm2068_vm1, %v2072_v1, %v2074_v52  ;;  %v6011_v52 = vld [vmem:[%s8902_s1 + $0x7d4] ss:$8 sps:$4 sm:$0xff]   ;;  %v6012_v30 = vld [vmem:[%s8902_s1 + $0x7c0] ss:$8 sps:$4 sm:$0xff]  }
 0x100   : > { %v7325_v1 = vsel %vm2068_vm1, %v2076_v60, %v2078_v36  ;;  %v6009_v60 = vld [vmem:[%s8902_s1 + $0x7d0] ss:$8 sps:$4 sm:$0xff]  }
 0x101   : > { %2546 = vmatpush2.bf16.msra.mxu0 %v5991_v44  ;;  %v6017_v44 = vld [vmem:[%s8902_s1 + $0x754] ss:$8 sps:$4 sm:$0xff]  }
 0x102   : > { %2649 = vmatpush2.bf16.msra.mxu1 %v5994_v62  ;;  %2721 = vmatprep.subr.bf16.mxu0 %v5999_v17  ;;  %v6014_v62 = vld [vmem:[%s8902_s1 + $0x7c4] ss:$8 sps:$4 sm:$0xff]   ;;  %v6015_v17 = vld [vmem:[%s8902_s1 + $0x750] ss:$8 sps:$4 sm:$0xff]  }
 0x103   : > { %3422 = vmatprep.subr.bf16.mxu1 %v6002_v31 }
 0x104   : > { %2548 = vmatmul.mubr.bf16.vlgmr.msra.gmra.mxu0 %v2071_v14 }
 0x105   : > { %2651 = vmatmul.mubr.bf16.vlgmr.msra.gmra.mxu1 %v2075_v40  ;;  %2722 = vmatpush1.bf16.msra.mxu0 %v5997_v35  ;;  %v7338_v35 = vrot.slane %v7130_v25, 1 }
 0x106   : > { %3423 = vmatpush1.bf16.msra.mxu1 %v6000_v37  ;;  %2557 = vmatprep.mubr.bf16.mxu0 %v2075_v40 }
 0x107   : > { %3424 = vmatprep.subr.bf16.mxu1 %v6005_v47  ;;  %2660 = vmatprep.mubr.bf16.mxu1 %v7325_v1  ;;  %v7351_v25 = vsel %vm2068_vm1, %v2078_v36, %v7338_v35  ;;  %v6020_v36 = vld [vmem:[%s8902_s1 + $0x7b4] ss:$8 sps:$4 sm:$0xff]  }
 0x108   : > { %2723 = vmatprep.subr.bf16.mxu0 %v6008_v18 }
 0x109   : > { %2724 = vmatpush1.bf16.msra.mxu0 %v6006_v48 }
 0x10a   : > { %3425 = vmatpush1.bf16.msra.mxu1 %v6003_v7  ;;  %2725 = vmatprep.subr.bf16.mxu0 %v6017_v44  ;;  %v6026_v7 = vld [vmem:[%s8902_s1 + $0x744] ss:$8 sps:$4 sm:$0xff]   ;;  %v7374_v44 = vrot.slane %v7161_v3, 1 }
 0x10b   : > { %3426 = vmatprep.subr.bf16.mxu1 %v6011_v52  ;;  %v6024_v52 = vld [vmem:[%s8902_s1 + $0x740] ss:$8 sps:$4 sm:$0xff]  }
 0x10c   : > { %2558 = vmatmul.mubr.bf16.gmra.mxu0 %v7265_v24  ;;  %v1003_v31 = vpop.f32.mrf.mxu0  ;;  %v6018_v24 = vld [vmem:[%s8902_s1 + $0x7b0] ss:$8 sps:$4 sm:$0xff]   ;;  %v7386_v3 = vsel %vm2068_vm1, %v7338_v35, %v7374_v44 }
 0x10d   : > { %2661 = vmatmul.mubr.bf16.gmra.mxu1 %v7268_v9  ;;  %v1106_v37 = vpop.f32.mrf.mxu1  ;;  %2567 = vmatprep.mubr.bf16.mxu0 %v7268_v9 }
 0x10e   : > { %v7358_v14 = vadd.f32 %v1106_v37, %v1003_v31  ;;  %3427 = vmatpush1.bf16.msra.mxu1 %v6009_v60  ;;  %v1005_v47 = vpop.f32.mrf.mxu0  ;;  %2670 = vmatprep.mubr.bf16.mxu1 %v7351_v25 }
 0x10f   : > { %v1108_v48 = vpop.f32.mrf.mxu1  ;;  %3428 = vmatprep.subr.bf16.mxu1 %v6014_v62  ;;  %2726 = vmatpush1.bf16.msra.mxu0 %v6015_v17  ;;  %v6023_v17 = vld [vmem:[%s8902_s1 + $0x7a4] ss:$8 sps:$4 sm:$0xff]  }
 0x110   : > { %v7365_v18 = vadd.f32 %v1108_v48, %v1005_v47  ;;  %v1007_v60 = vpop.f32.mrf.mxu0  ;;  %2727 = vmatprep.subr.bf16.mxu0 %v6026_v7  ;;  %v6032_v7 = vld [vmem:[%s8902_s1 + $0x734] ss:$8 sps:$4 sm:$0xff]  }
 0x111   : > { %v1110_v62 = vpop.f32.mrf.mxu1 }
 0x112   : > { %v7376_v31 = vadd.f32 %v1110_v62, %v1007_v60  ;;  %3429 = vmatpush1.bf16.msra.mxu1 %v6012_v30  ;;  %v1009_v37 = vpop.f32.mrf.mxu0  ;;  %v6030_v60 = vld [vmem:[%s8902_s1 + $0x730] ss:$8 sps:$4 sm:$0xff]  }
 0x113   : > { %v1112_v47 = vpop.f32.mrf.mxu1  ;;  %3430 = vmatprep.subr.bf16.mxu1 %v6020_v36  ;;  %2728 = vmatpush1.bf16.msra.mxu0 %v6024_v52  ;;  %v6021_v52 = vld [vmem:[%s8902_s1 + $0x7a0] ss:$8 sps:$4 sm:$0xff]  }
 0x114   : > { %v7381_v48 = vadd.f32 %v1112_v47, %v1009_v37  ;;  %2568 = vmatmul.mubr.bf16.gmra.mxu0 %v2075_v40  ;;  %v1013_v30 = vpop.f32.mrf.mxu0  ;;  %v6041_v40 = vld [vmem:[%s8902_s1 + $0x724] ss:$8 sps:$4 sm:$0xff]   ;;  %2729 = vmatprep.subr.bf16.mxu0 %v6032_v7 }
 0x115   : > { %2671 = vmatmul.mubr.bf16.gmra.mxu1 %v7325_v1  ;;  %v1116_v36 = vpop.f32.mrf.mxu1  ;;  %2577 = vmatprep.mubr.bf16.mxu0 %v7325_v1  ;;  %v6035_v7 = vld [vmem:[%s8902_s1 + $0x784] ss:$8 sps:$4 sm:$0xff]  }
 0x116   : > { %v7395_v62 = vadd.f32 %v1116_v36, %v1013_v30  ;;  %3431 = vmatpush1.bf16.msra.mxu1 %v6018_v24  ;;  %v1015_v37 = vpop.f32.mrf.mxu0  ;;  %2680 = vmatprep.mubr.bf16.mxu1 %v7386_v3  ;;  %v6029_v30 = vld [vmem:[%s8902_s1 + $0x794] ss:$8 sps:$4 sm:$0xff]   ;;  %v7411_v36 = vrot.slane %v7198_v41, 1 }
 0x117   : > { %v1118_v47 = vpop.f32.mrf.mxu1  ;;  %3432 = vmatprep.subr.bf16.mxu1 %v6023_v17  ;;  %2730 = vmatpush1.bf16.msra.mxu0 %v6030_v60  ;;  %v6027_v17 = vld [vmem:[%s8902_s1 + $0x790] ss:$8 sps:$4 sm:$0xff]  }
 0x118   : > { %v7408_v24 = vadd.f32 %v1118_v47, %v1015_v37  ;;  %v1017_v45 = vpop.f32.mrf.mxu0  ;;  %2731 = vmatprep.subr.bf16.mxu0 %v6041_v40  ;;  %v6033_v40 = vld [vmem:[%s8902_s1 + $0x780] ss:$8 sps:$4 sm:$0xff]  }
 0x119   : > { %v1120_v12 = vpop.f32.mrf.mxu1 }
 0x11a   : > { %v7413_v39 = vadd.f32 %v1120_v12, %v1017_v45  ;;  %3433 = vmatpush1.bf16.msra.mxu1 %v6021_v52  ;;  %v1019_v6 = vpop.f32.mrf.mxu0  ;;  %v7426_v45 = vsel %vm2068_vm1, %v7374_v44, %v7411_v36  ;;  %v6039_v12 = vld [vmem:[%s8902_s1 + $0x720] ss:$8 sps:$4 sm:$0xff]  }
 0x11b   : > { %v1122_v22 = vpop.f32.mrf.mxu1  ;;  %3434 = vmatprep.subr.bf16.mxu1 %v6029_v30  ;;  %2732 = vmatpush1.bf16.msra.mxu0 %v6039_v12 }
 0x11c   : > { %v7421_v41 = vadd.f32 %v1122_v22, %v1019_v6  ;;  %2578 = vmatmul.mubr.bf16.gmra.mxu0 %v7268_v9  ;;  %v1023_v60 = vpop.f32.mrf.mxu0  ;;  %v6050_v22 = vld [vmem:[%s8902_s1 + $0x714] ss:$8 sps:$4 sm:$0xff]  }
 0x11d   : > { %2681 = vmatmul.mubr.bf16.gmra.mxu1 %v7351_v25  ;;  %v1126_v52 = vpop.f32.mrf.mxu1  ;;  %2587 = vmatprep.mubr.bf16.mxu0 %v7351_v25  ;;  %v6038_v9 = vld [vmem:[%s8902_s1 + $0x874] ss:$8 sps:$4 sm:$0xff]  }
 0x11e   : > { %v7436_v6 = vadd.f32 %v1126_v52, %v1023_v60  ;;  %3435 = vmatpush1.bf16.msra.mxu1 %v6027_v17  ;;  %v1025_v37 = vpop.f32.mrf.mxu0  ;;  %2690 = vmatprep.mubr.bf16.mxu1 %v7426_v45  ;;  %v7449_v17 = vrot.slane %v7229_v28, 1  ;;  %v6048_v60 = vld [vmem:[%s8902_s1 + $0x710] ss:$8 sps:$4 sm:$0xff]   ;;  %v6044_v28 = vld [vmem:[%s8902_s1 + $0x864] ss:$8 sps:$4 sm:$0xff]  }
 0x11f   : > { %v1128_v47 = vpop.f32.mrf.mxu1  ;;  %3436 = vmatprep.subr.bf16.mxu1 %v6035_v7  ;;  %2733 = vmatprep.subr.bf16.mxu0 %v6050_v22 }
 0x120   : > { %v7446_v30 = vadd.f32 %v1128_v47, %v1025_v37  ;;  %v1027_v52 = vpop.f32.mrf.mxu0  ;;  %v7467_v22 = vsel %vm2068_vm1, %v7411_v36, %v7449_v17  ;;  %2734 = vmatpush1.bf16.msra.mxu0 %v6048_v60  ;;  %v6042_v60 = vld [vmem:[%s8902_s1 + $0x860] ss:$8 sps:$4 sm:$0xff]  }
 0x121   : > { %v1130_v38 = vpop.f32.mrf.mxu1 }
 0x122   : > { %v7454_v7 = vadd.f32 %v1130_v38, %v1027_v52  ;;  %3437 = vmatpush1.bf16.msra.mxu1 %v6033_v40  ;;  %v1029_v37 = vpop.f32.mrf.mxu0  ;;  %v6059_v38 = vld [vmem:[%s8902_s1 + $0x704] ss:$8 sps:$4 sm:$0xff]   ;;  %v6057_v52 = vld [vmem:[%s8902_s1 + $0x700] ss:$8 sps:$4 sm:$0xff]  }
 0x123   : > { %v1132_v47 = vpop.f32.mrf.mxu1  ;;  %3438 = vmatprep.subr.bf16.mxu1 %v6038_v9  ;;  %2735 = vmatprep.subr.bf16.mxu0 %v6059_v38 }
 0x124   : > { %v7462_v12 = vadd.f32 %v1132_v47, %v1029_v37  ;;  %2588 = vmatmul.mubr.bf16.gmra.mxu0 %v7325_v1  ;;  %v1033_v40 = vpop.f32.mrf.mxu0  ;;  %v6065_v47 = vld [vmem:[%s8902_s1 + $0x8f4] ss:$8 sps:$4 sm:$0xff]  }
 0x125   : > { %2691 = vmatmul.mubr.bf16.gmra.mxu1 %v7386_v3  ;;  %v1136_v9 = vpop.f32.mrf.mxu1  ;;  %2597 = vmatprep.mubr.bf16.mxu0 %v7386_v3 }
 0x126   : > { %v7477_v37 = vadd.f32 %v1136_v9, %v1033_v40  ;;  %3439 = vmatpush2.bf16.msra.mxu1 %v6036_v34  ;;  %v1035_v61 = vpop.f32.mrf.mxu0  ;;  %2700 = vmatprep.mubr.bf16.mxu1 %v7467_v22  ;;  %v6047_v40 = vld [vmem:[%s8902_s1 + $0x854] ss:$8 sps:$4 sm:$0xff]   ;;  %v7491_v34 = vld [vmem:[%s6478_s7 + $0x40] ss:$0 sps:$4 sm:$0x33]  }
 0x127   : > { %v1138_v5 = vpop.f32.mrf.mxu1  ;;  %3440 = vmatprep.subr.bf16.mxu1 %v6044_v28  ;;  %v2092_v9 = vrot.slane %v7491_v34, 1  ;;  %2736 = vmatpush1.bf16.msra.mxu0 %v6057_v52  ;;  %v2938_v52 = vrot.slane %v450_v54, 2  ;;  %v7530_v54 = vld [vmem:[%s6478_s7 + $0x38] ss:$0 sps:$4 sm:$0x33]  }
 0x128   : > { %v7498_v4 = vadd.f32 %v1138_v5, %v1035_v61  ;;  %v1037_v27 = vpop.f32.mrf.mxu0  ;;  %3525 = vmatprep.subr.bf16.mxu0 %v6065_v47  ;;  %v6053_v5 = vld [vmem:[%s8902_s1 + $0x844] ss:$8 sps:$4 sm:$0xff]   ;;  %v2942_v47 = vrot.slane %v458_v56, 2  ;;  %v2094_v56 = vrot.slane %v7534_v51, 1 }
 0x129   : > { %v1140_v42 = vpop.f32.mrf.mxu1  ;;  %v2093_v61 = vsel %vm2068_vm1, %v7374_v44, %v2092_v9 }
 0x12a   : > { %v7500_v28 = vadd.f32 %v1140_v42, %v1037_v27  ;;  %3441 = vmatpush2.bf16.msra.mxu1 %v6042_v60  ;;  %v1039_v26 = vpop.f32.mrf.mxu0  ;;  %v2097_v27 = vsel %vm2068_vm1, %v7449_v17, %v2096_v43  ;;  %v2937_v42 = vrot.slane %v454_v55, 1  ;;  %v2941_v60 = vrot.slane %v462_v23, 1 }
 0x12b   : > { %v1142_v16 = vpop.f32.mrf.mxu1  ;;  %3442 = vmatprep.subr.bf16.mxu1 %v6047_v40  ;;  %v2090_v55 = vrot.slane %v7530_v54, 1 }
 0x12c   : > { %v7514_v38 = vadd.f32 %v1142_v16, %v1039_v26  ;;  %2598 = vmatmul.mubr.bf16.gmra.mxu0 %v7351_v25  ;;  %v1043_v43 = vpop.f32.mrf.mxu0  ;;  %v7542_v9 = vor.u32 %v2938_v52, %v2937_v42 }
 0x12d   : > { %2701 = vmatmul.mubr.bf16.gmra.mxu1 %v7426_v45  ;;  %v1146_v44 = vpop.f32.mrf.mxu1  ;;  %2607 = vmatprep.mubr.bf16.mxu0 %v2093_v61  ;;  %v7544_v61 = vor.u32 %v2942_v47, %v2941_v60  ;;  %v6062_v60 = vld [vmem:[%s8902_s1 + $0x824] ss:$8 sps:$4 sm:$0xff]  }
 0x12e   : > { %v7524_v40 = vadd.f32 %v1146_v44, %v1043_v43  ;;  %3443 = vmatpush2.bf16.msra.mxu1 %v6045_v2  ;;  %v1045_v16 = vpop.f32.mrf.mxu0  ;;  %2710 = vmatprep.mubr.bf16.mxu1 %v2097_v27  ;;  %v6056_v2 = vld [vmem:[%s8902_s1 + $0x834] ss:$8 sps:$4 sm:$0xff]   ;;  %v2095_v27 = vsel %vm2068_vm1, %v7411_v36, %v2094_v56  ;;  %v6060_v56 = vld [vmem:[%s8902_s1 + $0x820] ss:$8 sps:$4 sm:$0xff]  }
 0x12f   : > { %v1148_v23 = vpop.f32.mrf.mxu1  ;;  %3444 = vmatprep.subr.bf16.mxu1 %v6053_v5  ;;  %v2091_v5 = vsel %vm2068_vm1, %v7338_v35, %v2090_v55  ;;  %v7563_v35 = vsel %vm2933_vm2, %v7542_v9, %v7544_v61 }
 0x130   : > { %v7540_v26 = vadd.f32 %v1148_v23, %v1045_v16  ;;  %v1047_v43 = vpop.f32.mrf.mxu0  ;;  %v6054_v16 = vld [vmem:[%s8902_s1 + $0x830] ss:$8 sps:$4 sm:$0xff]  }
 0x131   : > { %v1150_v44 = vpop.f32.mrf.mxu1 }
 0x132   : > { %v7546_v63 = vadd.f32 %v1150_v44, %v1047_v43  ;;  %3445 = vmatpush2.bf16.msra.mxu1 %v6051_v50  ;;  %v1049_v42 = vpop.f32.mrf.mxu0  ;;  %v6068_v43 = vld [vmem:[%s8902_s1 + $0x814] ss:$8 sps:$4 sm:$0xff]  }
 0x133   : > { %v1152_v52 = vpop.f32.mrf.mxu1  ;;  %3446 = vmatprep.subr.bf16.mxu1 %v6056_v2 }
 0x134   : > { %v7558_v47 = vadd.f32 %v1152_v52, %v1049_v42  ;;  %2608 = vmatmul.mubr.bf16.gmra.mxu0 %v2091_v5  ;;  %v1053_v36 = vpop.f32.mrf.mxu0  ;;  %v6063_v42 = vld [vmem:[%s8902_s1 + $0x8f0] ss:$8 sps:$4 sm:$0xff]  }
 0x135   : > { %2711 = vmatmul.mubr.bf16.gmra.mxu1 %v2095_v27  ;;  %v1156_v50 = vpop.f32.mrf.mxu1  ;;  %2753 = vmatprep.mubr.bf16.mxu0 %v8925_v19  ;;  %v6066_v52 = vld [vmem:[%s8902_s1 + $0x810] ss:$8 sps:$4 sm:$0xff]  }
 0x136   : > { %v7565_v55 = vadd.f32 %v1156_v50, %v1053_v36  ;;  %3447 = vmatpush2.bf16.msra.mxu1 %v6054_v16  ;;  %v1055_v23 = vpop.f32.mrf.mxu0  ;;  %3454 = vmatprep.mubr.bf16.mxu1 %v7563_v35  ;;  %v6071_v50 = vld [vmem:[%s8902_s1 + $0x8e4] ss:$8 sps:$4 sm:$0xff]  }
 0x137   : > { %v1158_v2 = vpop.f32.mrf.mxu1  ;;  %3448 = vmatprep.subr.bf16.mxu1 %v6062_v60 }
 0x138   : > { %v7575_v44 = vadd.f32 %v1158_v2, %v1055_v23  ;;  %v1057_v5 = vpop.f32.mrf.mxu0  ;;  %v6074_v23 = vld [vmem:[%s8902_s1 + $0x804] ss:$8 sps:$4 sm:$0xff]   ;;  %v2945_v2 = vrot.slane %v470_v0, 1 }
 0x139   : > { %v1160_v27 = vpop.f32.mrf.mxu1 }
 0x13a   : > { %v7577_v16 = vadd.f32 %v1160_v27, %v1057_v5  ;;  %3449 = vmatpush2.bf16.msra.mxu1 %v6060_v56  ;;  %v1059_v60 = vpop.f32.mrf.mxu0  ;;  %v8935_v5 = vshll.u32 %v6508_v57, 16  ;;  %v6077_v57 = vld [vmem:[%s8902_s1 + $0x8d4] ss:$8 sps:$4 sm:$0xff]  }
 0x13b   : > { %v1162_v36 = vpop.f32.mrf.mxu1  ;;  %3450 = vmatprep.subr.bf16.mxu1 %v6068_v43 }
 0x13c   : > { %v7591_v56 = vadd.f32 %v1162_v36, %v1059_v60  ;;  %v2946_v27 = vrot.slane %v8935_v5, 2  ;;  %2754 = vmatmul.mubr.bf16.vlgmr.msra.gmra.mxu0 %v7325_v1  ;;  %v1063_v19 = vpop.f32.mrf.mxu0  ;;  %v6072_v60 = vld [vmem:[%s8902_s1 + $0x800] ss:$8 sps:$4 sm:$0xff]  }
 0x13d   : > { %v1166_v43 = vpop.f32.mrf.mxu1  ;;  %3526 = vmatpush1.bf16.msra.mxu0 %v6063_v42  ;;  %v8936_v42 = vmov 0  }
 0x13e   : > { %v7598_v59 = vadd.f32 %v1166_v43, %v1063_v19  ;;  %3451 = vmatpush2.bf16.msra.mxu1 %v6066_v52  ;;  %v1065_v0 = vpop.f32.mrf.mxu0  ;;  %3527 = vmatprep.subr.bf16.mxu0 %v6071_v50  ;;  %v6086_v19 = vld [vmem:[%s8902_s1 + $0x9f4] ss:$8 sps:$4 sm:$0xff]   ;;  %v2947_v52 = vor.u32 %v2946_v27, %v2945_v2  ;;  %v6075_v50 = vld [vmem:[%s8902_s1 + $0x8d0] ss:$8 sps:$4 sm:$0xff]  }
 0x13f   : > { %v1168_v36 = vpop.f32.mrf.mxu1  ;;  %3452 = vmatprep.subr.bf16.mxu1 %v6074_v23  ;;  %2763 = vmatprep.mubr.bf16.mxu0 %v8936_v42  ;;  %v8937_v23 = vor.u32 %v6545_v11, %v6543_v10  ;;  %v6084_v10 = vld [vmem:[%s8902_s1 + $0x9f0] ss:$8 sps:$4 sm:$0xff]   ;;  %v8938_v11 = vshrl.u32 %v6511_v58, 16 }
 0x140   : > { %v7612_v1 = vadd.f32 %v1168_v36, %v1065_v0  ;;  %v1067_v5 = vpop.f32.mrf.mxu0  ;;  %v7632_v27 = vsel %vm2933_vm2, %v7544_v61, %v2947_v52 }
 0x141   : > { %v1170_v43 = vpop.f32.mrf.mxu1  ;;  %3528 = vmatpush1.bf16.msra.mxu0 %v6069_v15  ;;  %v2940_v0 = vsel %vm2933_vm2, %v8937_v23, %v7542_v9  ;;  %v6080_v15 = vld [vmem:[%s8902_s1 + $0x8c4] ss:$8 sps:$4 sm:$0xff]   ;;  %v2949_v9 = vrot.slane %v8938_v11, 1 }
 0x142   : > { %v7615_v49 = vadd.f32 %v1170_v43, %v1067_v5  ;;  %3453 = vmatpush2.bf16.msra.mxu1 %v6072_v60  ;;  %v1069_v36 = vpop.f32.mrf.mxu0  ;;  %3529 = vmatprep.subr.bf16.mxu0 %v6077_v57  ;;  %v8939_v60 = vshll.u32 %v6511_v58, 16  ;;  %v6078_v5 = vld [vmem:[%s8902_s1 + $0x8c0] ss:$8 sps:$4 sm:$0xff]   ;;  %v6083_v58 = vld [vmem:[%s8902_s1 + $0x8b4] ss:$8 sps:$4 sm:$0xff]  }
 0x143   : > { %v1172_v51 = vpop.f32.mrf.mxu1  ;;  %3628 = vmatprep.subr.bf16.mxu1 %v6086_v19 }
 0x144   : > { %v7628_v2 = vadd.f32 %v1172_v51, %v1069_v36  ;;  %v2950_v57 = vrot.slane %v8939_v60, 2  ;;  %2764 = vmatmul.mubr.bf16.gmra.mxu0 %v7351_v25  ;;  %v1209_v19 = vpop.f32.mrf.mxu0  ;;  %v6095_v51 = vld [vmem:[%s8902_s1 + $0x9e4] ss:$8 sps:$4 sm:$0xff]   ;;  %v6081_v36 = vld [vmem:[%s8902_s1 + $0x8b0] ss:$8 sps:$4 sm:$0xff]  }
 0x145   : > { %3455 = vmatmul.mubr.bf16.vlgmr.msra.gmra.mxu1 %v2940_v0  ;;  %3530 = vmatpush1.bf16.msra.mxu0 %v6075_v50  ;;  %v1210_v61 = vadd.f32 %v1209_v19, %v7358_v14  ;;  %v6093_v14 = vld [vmem:[%s8902_s1 + $0x9e0] ss:$8 sps:$4 sm:$0xff]  }
 0x146   : > { %2773 = vmatprep.mubr.bf16.mxu0 %v8936_v42  ;;  %v1211_v43 = vpop.f32.mrf.mxu0  ;;  %3531 = vmatprep.subr.bf16.mxu0 %v6080_v15  ;;  %v2951_v50 = vor.u32 %v2950_v57, %v2949_v9  ;;  %v8940_v9 = vshrl.u32 %v6572_v20, 16  ;;  %v8941_v57 = vshll.u32 %v6572_v20, 16  ;;  %v6087_v20 = vld [vmem:[%s8902_s1 + $0x8a0] ss:$8 sps:$4 sm:$0xff]  }
 0x147   : > { %3464 = vmatprep.mubr.bf16.mxu1 %v7632_v27  ;;  %v1212_v25 = vadd.f32 %v1211_v43, %v7365_v18  ;;  %3629 = vmatpush1.bf16.msra.mxu1 %v6084_v10  ;;  %v6089_v18 = vld [vmem:[%s8902_s1 + $0x8a4] ss:$8 sps:$4 sm:$0xff]  }
 0x148   : > { %v1213_v23 = vpop.f32.mrf.mxu0  ;;  %3630 = vmatprep.subr.bf16.mxu1 %v6095_v51  ;;  %v7667_v11 = vsel %vm2933_vm2, %v2947_v52, %v2951_v50  ;;  %v2953_v60 = vrot.slane %v8940_v9, 1  ;;  %v2954_v19 = vrot.slane %v8941_v57, 2  ;;  %v6099_v52 = vld [vmem:[%s8902_s1 + $0x9d0] ss:$8 sps:$4 sm:$0xff]  }
 0x149   : > { %3532 = vmatpush1.bf16.msra.mxu0 %v6078_v5  ;;  %v1214_v0 = vadd.f32 %v1213_v23, %v7376_v31  ;;  %v6101_v31 = vld [vmem:[%s8902_s1 + $0x9d4] ss:$8 sps:$4 sm:$0xff]  }
 0x14a   : > { %v1215_v15 = vpop.f32.mrf.mxu0  ;;  %3533 = vmatprep.subr.bf16.mxu0 %v6083_v58  ;;  %v2955_v23 = vor.u32 %v2954_v19, %v2953_v60  ;;  %v8943_v60 = vshll.u32 %v6598_v33, 16 }
 0x14b   : > { %v1216_v10 = vadd.f32 %v1215_v15, %v7381_v48  ;;  %3631 = vmatpush1.bf16.msra.mxu1 %v6093_v14 }
 0x14c   : > { %2774 = vmatmul.mubr.bf16.gmra.mxu0 %v7386_v3  ;;  %v1219_v51 = vpop.f32.mrf.mxu0  ;;  %v6110_v3 = vld [vmem:[%s8902_s1 + $0x9c4] ss:$8 sps:$4 sm:$0xff]   ;;  %3632 = vmatprep.subr.bf16.mxu1 %v6101_v31 }
 0x14d   : > { %3465 = vmatmul.mubr.bf16.gmra.mxu1 %v7563_v35  ;;  %v1712_v48 = vpop.f32.mrf.mxu1  ;;  %3534 = vmatpush1.bf16.msra.mxu0 %v6081_v36  ;;  %v1220_v5 = vadd.f32 %v1219_v51, %v7395_v62  ;;  %v6092_v62 = vld [vmem:[%s8902_s1 + $0x894] ss:$8 sps:$4 sm:$0xff]   ;;  %v8942_v51 = vshrl.u32 %v6598_v33, 16  ;;  %v6098_v31 = vld [vmem:[%s8902_s1 + $0x884] ss:$8 sps:$4 sm:$0xff]  }
 0x14e   : > { %v7682_v43 = vadd.f32 %v1712_v48, %v1210_v61  ;;  %2783 = vmatprep.mubr.bf16.mxu0 %v8936_v42  ;;  %v1221_v35 = vpop.f32.mrf.mxu0  ;;  %3535 = vmatprep.subr.bf16.mxu0 %v6089_v18  ;;  %v6090_v18 = vld [vmem:[%s8902_s1 + $0x890] ss:$8 sps:$4 sm:$0xff]   ;;  %v6119_v33 = vld [vmem:[%s8902_s1 + $0x9b4] ss:$8 sps:$4 sm:$0xff]  }
 0x14f   : > { %v1714_v58 = vpop.f32.mrf.mxu1  ;;  %3474 = vmatprep.mubr.bf16.mxu1 %v7667_v11  ;;  %v1222_v61 = vadd.f32 %v1221_v35, %v7408_v24  ;;  %3633 = vmatpush1.bf16.msra.mxu1 %v6099_v52  ;;  %v2957_v24 = vrot.slane %v8942_v51, 1  ;;  %v7715_v52 = vsel %vm2933_vm2, %v2951_v50, %v2955_v23  ;;  %v6096_v50 = vld [vmem:[%s8902_s1 + $0x880] ss:$8 sps:$4 sm:$0xff]  }
 0x150   : > { %v7696_v14 = vadd.f32 %v1714_v58, %v1212_v25  ;;  %v1223_v36 = vpop.f32.mrf.mxu0  ;;  %3634 = vmatprep.subr.bf16.mxu1 %v6110_v3 }
 0x151   : > { %v1716_v15 = vpop.f32.mrf.mxu1  ;;  %3536 = vmatpush1.bf16.msra.mxu0 %v6087_v20  ;;  %v1224_v9 = vadd.f32 %v1223_v36, %v7413_v39  ;;  %v2958_v39 = vrot.slane %v8943_v60, 2  ;;  %v6108_v20 = vld [vmem:[%s8902_s1 + $0x9c0] ss:$8 sps:$4 sm:$0xff]  }
 0x152   : > { %v7699_v57 = vadd.f32 %v1716_v15, %v1214_v0  ;;  %v1225_v25 = vpop.f32.mrf.mxu0  ;;  %3537 = vmatprep.subr.bf16.mxu0 %v6092_v62  ;;  %v6104_v62 = vld [vmem:[%s8902_s1 + $0x974] ss:$8 sps:$4 sm:$0xff]   ;;  %v6117_v15 = vld [vmem:[%s8902_s1 + $0x9b0] ss:$8 sps:$4 sm:$0xff]  }
 0x153   : > { %v1718_v48 = vpop.f32.mrf.mxu1  ;;  %v1226_v0 = vadd.f32 %v1225_v25, %v7421_v41  ;;  %v7736_v36 = vor.u32 %v2958_v39, %v2957_v24  ;;  %3635 = vmatpush1.bf16.msra.mxu1 %v6108_v20  ;;  %v6102_v24 = vld [vmem:[%s8902_s1 + $0x970] ss:$8 sps:$4 sm:$0xff]  }
 0x154   : > { %v7712_v19 = vadd.f32 %v1718_v48, %v1216_v10  ;;  %2784 = vmatmul.mubr.bf16.gmra.mxu0 %v7426_v45  ;;  %v1229_v3 = vpop.f32.mrf.mxu0  ;;  %3636 = vmatprep.subr.bf16.mxu1 %v6119_v33  ;;  %v6128_v33 = vld [vmem:[%s8902_s1 + $0x9a4] ss:$8 sps:$4 sm:$0xff]  }
 0x155   : > { %3475 = vmatmul.mubr.bf16.gmra.mxu1 %v7632_v27  ;;  %v1722_v35 = vpop.f32.mrf.mxu1  ;;  %3538 = vmatpush1.bf16.msra.mxu0 %v6090_v18  ;;  %v1230_v41 = vadd.f32 %v1229_v3, %v7436_v6  ;;  %v7755_v60 = vsel %vm2933_vm2, %v2955_v23, %v7736_v36  ;;  %v8945_v3 = vshll.u32 %v6641_v53, 16 }
 0x156   : > { %v7726_v10 = vadd.f32 %v1722_v35, %v1220_v5  ;;  %2793 = vmatprep.mubr.bf16.mxu0 %v8936_v42  ;;  %v1231_v45 = vpop.f32.mrf.mxu0  ;;  %3539 = vmatprep.subr.bf16.mxu0 %v6098_v31  ;;  %v6107_v31 = vld [vmem:[%s8902_s1 + $0x964] ss:$8 sps:$4 sm:$0xff]  }
 0x157   : > { %v1724_v58 = vpop.f32.mrf.mxu1  ;;  %3484 = vmatprep.mubr.bf16.mxu1 %v7715_v52  ;;  %v1232_v6 = vadd.f32 %v1231_v45, %v7446_v30  ;;  %3637 = vmatpush1.bf16.msra.mxu1 %v6117_v15  ;;  %v2962_v35 = vrot.slane %v8945_v3, 2 }
 0x158   : > { %v7739_v5 = vadd.f32 %v1724_v58, %v1222_v61  ;;  %v1233_v18 = vpop.f32.mrf.mxu0  ;;  %3638 = vmatprep.subr.bf16.mxu1 %v6128_v33 }
 0x159   : > { %v1726_v51 = vpop.f32.mrf.mxu1  ;;  %3540 = vmatpush1.bf16.msra.mxu0 %v6096_v50  ;;  %v1234_v25 = vadd.f32 %v1233_v18, %v7454_v7 }
 0x15a   : > { %v7745_v48 = vadd.f32 %v1726_v51, %v1224_v9  ;;  %v1235_v30 = vpop.f32.mrf.mxu0  ;;  %3541 = vmatprep.subr.bf16.mxu0 %v6104_v62  ;;  %v8944_v9 = vshrl.u32 %v6641_v53, 16  ;;  %v6105_v53 = vld [vmem:[%s8902_s1 + $0x960] ss:$8 sps:$4 sm:$0xff]   ;;  %v6134_v62 = vld [vmem:[%s8902_s1 + $0x994] ss:$8 sps:$4 sm:$0xff]  }
 0x15b   : > { %v1728_v61 = vpop.f32.mrf.mxu1  ;;  %v1236_v39 = vadd.f32 %v1235_v30, %v7462_v12 }
 0x15c   : > { %v7758_v7 = vadd.f32 %v1728_v61, %v1226_v0  ;;  %v2961_v20 = vrot.slane %v8944_v9, 1  ;;  %2794 = vmatmul.mubr.bf16.gmra.mxu0 %v7467_v22  ;;  %v1239_v23 = vpop.f32.mrf.mxu0  ;;  %v6126_v0 = vld [vmem:[%s8902_s1 + $0x9a0] ss:$8 sps:$4 sm:$0xff]   ;;  %v6275_v22 = vld [vmem:[%s6478_s7 + $0x50] sm:$0xff]  }
 0x15d   : > { %3485 = vmatmul.mubr.bf16.gmra.mxu1 %v7667_v11  ;;  %v1732_v12 = vpop.f32.mrf.mxu1  ;;  %3542 = vmatpush2.bf16.msra.mxu0 %v6102_v24  ;;  %v1240_v50 = vadd.f32 %v1239_v23, %v7477_v37  ;;  %v2088_v58 = vrot.slane %v6275_v22, 1  ;;  %v6113_v37 = vld [vmem:[%s8902_s1 + $0x954] ss:$8 sps:$4 sm:$0xff]   ;;  %v6111_v23 = vld [vmem:[%s8902_s1 + $0x950] ss:$8 sps:$4 sm:$0xff]  }
 0x15e   : > { %v7773_v45 = vadd.f32 %v1732_v12, %v1230_v41  ;;  %2803 = vmatprep.mubr.bf16.mxu0 %v8936_v42  ;;  %v1241_v15 = vpop.f32.mrf.mxu0  ;;  %3543 = vmatprep.subr.bf16.mxu0 %v6107_v31  ;;  %v2983_v41 = vshrl.u32 %v7491_v34, 16  ;;  %v7791_v30 = vor.u32 %v2962_v35, %v2961_v20  ;;  %v6116_v20 = vld [vmem:[%s8902_s1 + $0x944] ss:$8 sps:$4 sm:$0xff]  }
 0x15f   : > { %v1734_v18 = vpop.f32.mrf.mxu1  ;;  %3494 = vmatprep.mubr.bf16.mxu1 %v7755_v60  ;;  %v1242_v51 = vadd.f32 %v1241_v15, %v7498_v4  ;;  %3639 = vmatpush1.bf16.msra.mxu1 %v6126_v0  ;;  %v2089_v4 = vsel %vm2068_vm1, %v7449_v17, %v2088_v58  ;;  %v6132_v0 = vld [vmem:[%s8902_s1 + $0x990] ss:$8 sps:$4 sm:$0xff]  }
 0x160   : > { %v7789_v24 = vadd.f32 %v1734_v18, %v1232_v6  ;;  %v1243_v61 = vpop.f32.mrf.mxu0  ;;  %3640 = vmatprep.subr.bf16.mxu1 %v6134_v62  ;;  %v2985_v35 = vrot.slane %v2983_v41, 1  ;;  %v7812_v17 = vsel %vm2933_vm2, %v7736_v36, %v7791_v30  ;;  %v6114_v18 = vld [vmem:[%s8902_s1 + $0x940] ss:$8 sps:$4 sm:$0xff]  }
 0x161   : > { %v1736_v9 = vpop.f32.mrf.mxu1  ;;  %3544 = vmatpush2.bf16.msra.mxu0 %v6105_v53  ;;  %v1244_v31 = vadd.f32 %v1243_v61, %v7500_v28  ;;  %v8946_v28 = vshll.u32 %v6753_v46, 16  ;;  %v7819_v46 = vld [vmem:[%s6478_s7 + $0x58] ss:$0 sps:$4 sm:$0x33]  }
 0x162   : > { %v7794_v3 = vadd.f32 %v1736_v9, %v1234_v25  ;;  %v1245_v34 = vpop.f32.mrf.mxu0  ;;  %3545 = vmatprep.subr.bf16.mxu0 %v6113_v37  ;;  %v2977_v37 = vshrl.u32 %v7530_v54, 16  ;;  %v6122_v9 = vld [vmem:[%s8902_s1 + $0x934] ss:$8 sps:$4 sm:$0xff]  }
 0x163   : > { %v1738_v6 = vpop.f32.mrf.mxu1  ;;  %v2986_v25 = vrot.slane %v8946_v28, 2  ;;  %v1246_v33 = vadd.f32 %v1245_v34, %v7514_v38  ;;  %v2098_v38 = vrot.slane %v7819_v46, 1  ;;  %3641 = vmatpush1.bf16.msra.mxu1 %v6132_v0 }
 0x164   : > { %v7807_v12 = vadd.f32 %v1738_v6, %v1236_v39  ;;  %2804 = vmatmul.mubr.bf16.gmra.mxu0 %v2089_v4  ;;  %v1249_v53 = vpop.f32.mrf.mxu0  ;;  %v6140_v39 = vld [vmem:[%s8902_s1 + $0x984] ss:$8 sps:$4 sm:$0xff]   ;;  %v6138_v4 = vld [vmem:[%s8902_s1 + $0x980] ss:$8 sps:$4 sm:$0xff]  }
 0x165   : > { %3495 = vmatmul.mubr.bf16.gmra.mxu1 %v7715_v52  ;;  %v1742_v22 = vpop.f32.mrf.mxu1  ;;  %3546 = vmatpush2.bf16.msra.mxu0 %v6111_v23  ;;  %v1250_v62 = vadd.f32 %v1249_v53, %v7524_v40  ;;  %v2987_v40 = vor.u32 %v2986_v25, %v2985_v35  ;;  %v2099_v6 = vsel %vm2068_vm1, %v2088_v58, %v2098_v38  ;;  %v8947_v35 = vshll.u32 %v6778_v8, 16  ;;  %v6125_v58 = vld [vmem:[%s8902_s1 + $0x924] ss:$8 sps:$4 sm:$0xff]   ;;  %v6146_v8 = vld [vmem:[%s8902_s1 + $0xb74] ss:$8 sps:$4 sm:$0xff]  }
 0x166   : > { %v7826_v15 = vadd.f32 %v1742_v22, %v1240_v50  ;;  %2813 = vmatprep.mubr.bf16.mxu0 %v8936_v42  ;;  %v1251_v41 = vpop.f32.mrf.mxu0  ;;  %3547 = vmatprep.subr.bf16.mxu0 %v6116_v20 }
 0x167   : > { %v1744_v61 = vpop.f32.mrf.mxu1  ;;  %3504 = vmatprep.mubr.bf16.mxu1 %v7812_v17  ;;  %v1252_v50 = vadd.f32 %v1251_v41, %v7540_v26  ;;  %3642 = vmatprep.subr.bf16.mxu1 %v6140_v39  ;;  %v6120_v26 = vld [vmem:[%s8902_s1 + $0x930] ss:$8 sps:$4 sm:$0xff]   ;;  %v2980_v25 = vrot.slane %v8947_v35, 2 }
 0x168   : > { %v7838_v23 = vadd.f32 %v1744_v61, %v1242_v51  ;;  %v1253_v54 = vpop.f32.mrf.mxu0  ;;  %v2979_v51 = vrot.slane %v2977_v37, 1  ;;  %3643 = vmatpush1.bf16.msra.mxu1 %v6138_v4 }
 0x169   : > { %v1746_v34 = vpop.f32.mrf.mxu1  ;;  %3548 = vmatpush2.bf16.msra.mxu0 %v6114_v18  ;;  %v1254_v20 = vadd.f32 %v1253_v54, %v7546_v63  ;;  %v2988_v63 = vsel %vm2933_vm2, %v7791_v30, %v2987_v40  ;;  %4390 = vmatprep.subr.bf16.mxu1 %v6146_v8 }
 0x16a   : > { %v7845_v28 = vadd.f32 %v1746_v34, %v1244_v31  ;;  %v1255_v0 = vpop.f32.mrf.mxu0  ;;  %3549 = vmatprep.subr.bf16.mxu0 %v6122_v9  ;;  %v6131_v9 = vld [vmem:[%s8902_s1 + $0x914] ss:$8 sps:$4 sm:$0xff]  }
 0x16b   : > { %v1748_v53 = vpop.f32.mrf.mxu1  ;;  %v1256_v31 = vadd.f32 %v1255_v0, %v7558_v47  ;;  %v6123_v47 = vld [vmem:[%s8902_s1 + $0x920] ss:$8 sps:$4 sm:$0xff]  }
 0x16c   : > { %v7858_v22 = vadd.f32 %v1748_v53, %v1246_v33  ;;  %2814 = vmatmul.mubr.bf16.gmra.mxu0 %v2099_v6  ;;  %v1259_v38 = vpop.f32.mrf.mxu0  ;;  %v2981_v33 = vor.u32 %v2980_v25, %v2979_v51  ;;  %v6129_v6 = vld [vmem:[%s8902_s1 + $0x910] ss:$8 sps:$4 sm:$0xff]  }
 0x16d   : > { %3505 = vmatmul.mubr.bf16.gmra.mxu1 %v7755_v60  ;;  %v1752_v39 = vpop.f32.mrf.mxu1  ;;  %3550 = vmatpush2.bf16.msra.mxu0 %v6120_v26  ;;  %v1260_v18 = vadd.f32 %v1259_v38, %v7565_v55 }
 0x16e   : > { %v7865_v37 = vadd.f32 %v1752_v39, %v1250_v62  ;;  %3514 = vmatprep.mubr.bf16.mxu1 %v2988_v63  ;;  %v1261_v41 = vpop.f32.mrf.mxu0  ;;  %3551 = vmatprep.subr.bf16.mxu0 %v6125_v58  ;;  %v2982_v26 = vsel %vm2933_vm2, %v7736_v36, %v2981_v33  ;;  %v6135_v36 = vld [vmem:[%s8902_s1 + $0x900] ss:$8 sps:$4 sm:$0xff]   ;;  %v6144_v33 = vld [vmem:[%s8902_s1 + $0xb70] ss:$8 sps:$4 sm:$0xff]  }
 0x16f   : > { %v1754_v61 = vpop.f32.mrf.mxu1  ;;  %3557 = vmatprep.mubr.bf16.mxu0 %v7667_v11  ;;  %v1262_v40 = vadd.f32 %v1261_v41, %v7575_v44  ;;  %v6137_v44 = vld [vmem:[%s8902_s1 + $0x904] ss:$8 sps:$4 sm:$0xff]  }
 0x170   : > { %v7875_v55 = vadd.f32 %v1754_v61, %v1252_v50  ;;  %v1263_v62 = vpop.f32.mrf.mxu0 }
 0x171   : > { %v1756_v4 = vpop.f32.mrf.mxu1  ;;  %3552 = vmatpush2.bf16.msra.mxu0 %v6123_v47  ;;  %v1264_v54 = vadd.f32 %v1263_v62, %v7577_v16  ;;  %v6141_v47 = vld [vmem:[%s8902_s1 + $0xa70] ss:$8 sps:$4 sm:$0xff]  }
 0x172   : > { %v7878_v34 = vadd.f32 %v1756_v4, %v1254_v20  ;;  %v1265_v51 = vpop.f32.mrf.mxu0  ;;  %3553 = vmatprep.subr.bf16.mxu0 %v6131_v9 }
 0x173   : > { %v1758_v35 = vpop.f32.mrf.mxu1  ;;  %v1266_v50 = vadd.f32 %v1265_v51, %v7591_v56  ;;  %v6143_v56 = vld [vmem:[%s8902_s1 + $0xa74] ss:$8 sps:$4 sm:$0xff]  }
 0x174   : > { %v7889_v25 = vadd.f32 %v1758_v35, %v1256_v31  ;;  %v1269_v16 = vpop.f32.mrf.mxu0 }
 0x175   : > { %3515 = vmatmul.mubr.bf16.gmra.mxu1 %v2982_v26  ;;  %v1762_v20 = vpop.f32.mrf.mxu1  ;;  %3554 = vmatpush2.bf16.msra.mxu0 %v6129_v6  ;;  %v1270_v0 = vadd.f32 %v1269_v16, %v7598_v59  ;;  %v6150_v6 = vld [vmem:[%s8902_s1 + $0xb60] ss:$8 sps:$4 sm:$0xff]   ;;  %v6158_v26 = vld [vmem:[%s8902_s1 + $0xb54] ss:$8 sps:$4 sm:$0xff]   ;;  %v6156_v16 = vld [vmem:[%s8902_s1 + $0xb50] ss:$8 sps:$4 sm:$0xff]  }
 0x176   : > { %v7892_v53 = vadd.f32 %v1762_v20, %v1260_v18  ;;  %3660 = vmatprep.mubr.bf16.mxu1 %v8936_v42  ;;  %v1271_v58 = vpop.f32.mrf.mxu0  ;;  %3555 = vmatprep.subr.bf16.mxu0 %v6137_v44 }
 0x177   : > { %v1764_v63 = vpop.f32.mrf.mxu1  ;;  %v1272_v31 = vadd.f32 %v1271_v58, %v7612_v1  ;;  %v6149_v1 = vld [vmem:[%s8902_s1 + $0xa64] ss:$8 sps:$4 sm:$0xff]  }
 0x178   : > { %v7902_v8 = vadd.f32 %v1764_v63, %v1262_v40  ;;  %v1273_v59 = vpop.f32.mrf.mxu0 }
 0x179   : > { %v1766_v38 = vpop.f32.mrf.mxu1  ;;  %3556 = vmatpush2.bf16.msra.mxu0 %v6135_v36  ;;  %v1274_v39 = vadd.f32 %v1273_v59, %v7615_v49  ;;  %v6152_v49 = vld [vmem:[%s8902_s1 + $0xb64] ss:$8 sps:$4 sm:$0xff]   ;;  %v6159_v59 = vld [vmem:[%s8902_s1 + $0xa40] ss:$8 sps:$4 sm:$0xff]  }
 0x17a   : > { %v7905_v18 = vadd.f32 %v1766_v38, %v1264_v54  ;;  %v1275_v41 = vpop.f32.mrf.mxu0  ;;  %4287 = vmatprep.subr.bf16.mxu0 %v6143_v56  ;;  %v6147_v54 = vld [vmem:[%s8902_s1 + $0xa60] ss:$8 sps:$4 sm:$0xff]   ;;  %v6164_v36 = vld [vmem:[%s8902_s1 + $0xb44] ss:$8 sps:$4 sm:$0xff]  }
 0x17b   : > { %v1768_v61 = vpop.f32.mrf.mxu1  ;;  %v1276_v9 = vadd.f32 %v1275_v41, %v7628_v2  ;;  %v6162_v38 = vld [vmem:[%s8902_s1 + $0xb40] ss:$8 sps:$4 sm:$0xff]  }
 0x17c   : > { %v7920_v40 = vadd.f32 %v1768_v61, %v1266_v50  ;;  %3558 = vmatmul.mubr.bf16.vlgmr.msra.gmra.mxu0 %v7632_v27  ;;  %v6155_v27 = vld [vmem:[%s8902_s1 + $0xa54] ss:$8 sps:$4 sm:$0xff]   ;;  %v6153_v50 = vld [vmem:[%s8902_s1 + $0xa50] ss:$8 sps:$4 sm:$0xff]  }
 0x17d   : > { %3661 = vmatmul.mubr.bf16.vlgmr.msra.gmra.mxu1 %v7715_v52  ;;  %v1772_v62 = vpop.f32.mrf.mxu1  ;;  %4288 = vmatpush1.bf16.msra.mxu0 %v6141_v47  ;;  %v6167_v47 = vld [vmem:[%s8902_s1 + $0xa34] ss:$8 sps:$4 sm:$0xff]  }
 0x17e   : > { %4391 = vmatpush1.bf16.msra.mxu1 %v6144_v33  ;;  %v7924_v4 = vadd.f32 %v1772_v62, %v1270_v0  ;;  %4289 = vmatprep.subr.bf16.mxu0 %v6149_v1  ;;  %v6161_v0 = vld [vmem:[%s8902_s1 + $0xa44] ss:$8 sps:$4 sm:$0xff]   ;;  %v8949_v62 = vshll.u32 %v6680_v13, 16 }
 0x17f   : > { %v1774_v2 = vpop.f32.mrf.mxu1  ;;  %4392 = vmatprep.subr.bf16.mxu1 %v6152_v49  ;;  %3567 = vmatprep.mubr.bf16.mxu0 %v7715_v52  ;;  %v8948_v49 = vshrl.u32 %v6680_v13, 16  ;;  %v6173_v13 = vld [vmem:[%s8902_s1 + $0xa24] ss:$8 sps:$4 sm:$0xff]  }
 0x180   : > { %v7938_v51 = vadd.f32 %v1774_v2, %v1272_v31  ;;  %3670 = vmatprep.mubr.bf16.mxu1 %v8936_v42 }
 0x181   : > { %v1776_v35 = vpop.f32.mrf.mxu1  ;;  %4290 = vmatpush1.bf16.msra.mxu0 %v6147_v54  ;;  %v2966_v54 = vrot.slane %v8949_v62, 2 }
 0x182   : > { %4393 = vmatpush1.bf16.msra.mxu1 %v6150_v6  ;;  %v7942_v44 = vadd.f32 %v1776_v35, %v1274_v39  ;;  %4291 = vmatprep.subr.bf16.mxu0 %v6155_v27  ;;  %v6168_v27 = vld [vmem:[%s8902_s1 + $0xb30] ss:$8 sps:$4 sm:$0xff]  }
 0x183   : > { %v1778_v20 = vpop.f32.mrf.mxu1  ;;  %4394 = vmatprep.subr.bf16.mxu1 %v6158_v26 }
 0x184   : > { %v7956_v58 = vadd.f32 %v1778_v20, %v1276_v9  ;;  %3568 = vmatmul.mubr.bf16.gmra.mxu0 %v7667_v11  ;;  %v1815_v63 = vpop.f32.mrf.mxu0  ;;  %v2965_v9 = vrot.slane %v8948_v49, 1  ;;  %v6180_v49 = vld [vmem:[%s8902_s1 + $0xb10] ss:$8 sps:$4 sm:$0xff]  }
 0x185   : > { %3671 = vmatmul.mubr.bf16.gmra.mxu1 %v7755_v60  ;;  %v1918_v56 = vpop.f32.mrf.mxu1  ;;  %v1816_v31 = vadd.f32 %v1815_v63, %v7682_v43  ;;  %4292 = vmatpush1.bf16.msra.mxu0 %v6153_v50  ;;  %v6170_v43 = vld [vmem:[%s8902_s1 + $0xb34] ss:$8 sps:$4 sm:$0xff]  }
 0x186   : > { %4395 = vmatpush1.bf16.msra.mxu1 %v6156_v16  ;;  %v1817_v39 = vpop.f32.mrf.mxu0  ;;  %4293 = vmatprep.subr.bf16.mxu0 %v6161_v0 }
 0x187   : > { %4396 = vmatprep.subr.bf16.mxu1 %v6164_v36  ;;  %v1920_v11 = vpop.f32.mrf.mxu1  ;;  %v1818_v33 = vadd.f32 %v1817_v39, %v7696_v14  ;;  %v7974_v41 = vadd.f32 %v1918_v56, %v1816_v31  ;;  %3577 = vmatprep.mubr.bf16.mxu0 %v7755_v60  ;;  %v6165_v14 = vld [vmem:[%s8902_s1 + $0xa30] ss:$8 sps:$4 sm:$0xff]   ;;  %v8002_v36 = vor.u32 %v2966_v54, %v2965_v9  ;;  %v8950_v9 = vshrl.u32 %v6719_v32, 16 }
 0x188   : > { %3680 = vmatprep.mubr.bf16.mxu1 %v8936_v42  ;;  %v1819_v61 = vpop.f32.mrf.mxu0 }
 0x189   : > { %v1922_v1 = vpop.f32.mrf.mxu1  ;;  %v1820_v6 = vadd.f32 %v1819_v61, %v7699_v57  ;;  %v7983_v2 = vadd.f32 %v1920_v11, %v1818_v33  ;;  %4294 = vmatpush1.bf16.msra.mxu0 %v6159_v59  ;;  %v6176_v57 = vld [vmem:[%s8902_s1 + $0xb24] ss:$8 sps:$4 sm:$0xff]   ;;  %v8027_v33 = vsel %vm2933_vm2, %v7791_v30, %v8002_v36  ;;  %v2969_v62 = vrot.slane %v8950_v9, 1  ;;  %v6192_v9 = vld [vmem:[%s8902_s1 + $0xbf0] ss:$8 sps:$4 sm:$0xff]  }
 0x18a   : > { %4397 = vmatpush1.bf16.msra.mxu1 %v6162_v38  ;;  %v1821_v26 = vpop.f32.mrf.mxu0  ;;  %4295 = vmatprep.subr.bf16.mxu0 %v6167_v47  ;;  %v6182_v38 = vld [vmem:[%s8902_s1 + $0xb14] ss:$8 sps:$4 sm:$0xff]   ;;  %v8951_v30 = vshll.u32 %v6719_v32, 16 }
 0x18b   : > { %4398 = vmatprep.subr.bf16.mxu1 %v6170_v43  ;;  %v1924_v35 = vpop.f32.mrf.mxu1  ;;  %v1822_v50 = vadd.f32 %v1821_v26, %v7712_v19  ;;  %v7998_v16 = vadd.f32 %v1922_v1, %v1820_v6  ;;  %v6171_v19 = vld [vmem:[%s8902_s1 + $0xa20] ss:$8 sps:$4 sm:$0xff]  }
 0x18c   : > { %3578 = vmatmul.mubr.bf16.gmra.mxu0 %v7715_v52  ;;  %v1825_v20 = vpop.f32.mrf.mxu0  ;;  %v6174_v52 = vld [vmem:[%s8902_s1 + $0xb20] ss:$8 sps:$4 sm:$0xff]   ;;  %v2970_v54 = vrot.slane %v8951_v30, 2  ;;  %v6200_v30 = vld [vmem:[%s8902_s1 + $0xbe4] ss:$8 sps:$4 sm:$0xff]  }
 0x18d   : > { %3681 = vmatmul.mubr.bf16.gmra.mxu1 %v7812_v17  ;;  %v1928_v0 = vpop.f32.mrf.mxu1  ;;  %v1826_v63 = vadd.f32 %v1825_v20, %v7726_v10  ;;  %v8005_v56 = vadd.f32 %v1924_v35, %v1822_v50  ;;  %4296 = vmatpush1.bf16.msra.mxu0 %v6165_v14  ;;  %v6179_v10 = vld [vmem:[%s8902_s1 + $0xa14] ss:$8 sps:$4 sm:$0xff]   ;;  %v6185_v14 = vld [vmem:[%s8902_s1 + $0xa04] ss:$8 sps:$4 sm:$0xff]   ;;  %v6183_v20 = vld [vmem:[%s8902_s1 + $0xa00] ss:$8 sps:$4 sm:$0xff]  }
 0x18e   : > { %4399 = vmatpush1.bf16.msra.mxu1 %v6168_v27  ;;  %v1827_v31 = vpop.f32.mrf.mxu0  ;;  %4297 = vmatprep.subr.bf16.mxu0 %v6173_v13  ;;  %v6188_v27 = vld [vmem:[%s8902_s1 + $0xb04] ss:$8 sps:$4 sm:$0xff]  }
 0x18f   : > { %4400 = vmatprep.subr.bf16.mxu1 %v6176_v57  ;;  %v1930_v59 = vpop.f32.mrf.mxu1  ;;  %v1828_v39 = vadd.f32 %v1827_v31, %v7739_v5  ;;  %v8020_v11 = vadd.f32 %v1928_v0, %v1826_v63  ;;  %3587 = vmatprep.mubr.bf16.mxu0 %v7812_v17  ;;  %v6177_v5 = vld [vmem:[%s8902_s1 + $0xa10] ss:$8 sps:$4 sm:$0xff]   ;;  %v8062_v0 = vor.u32 %v2970_v54, %v2969_v62 }
 0x190   : > { %3690 = vmatprep.mubr.bf16.mxu1 %v8936_v42  ;;  %v1829_v47 = vpop.f32.mrf.mxu0 }
 0x191   : > { %v1932_v43 = vpop.f32.mrf.mxu1  ;;  %v1830_v61 = vadd.f32 %v1829_v47, %v7745_v48  ;;  %v8030_v1 = vadd.f32 %v1930_v59, %v1828_v39  ;;  %4298 = vmatpush1.bf16.msra.mxu0 %v6171_v19  ;;  %v6194_v19 = vld [vmem:[%s8902_s1 + $0xbf4] ss:$8 sps:$4 sm:$0xff]   ;;  %v8953_v47 = vshll.u32 %v6936_v29, 16 }
 0x192   : > { %4401 = vmatpush1.bf16.msra.mxu1 %v6174_v52  ;;  %v1831_v6 = vpop.f32.mrf.mxu0  ;;  %4299 = vmatprep.subr.bf16.mxu0 %v6179_v10 }
 0x193   : > { %4402 = vmatprep.subr.bf16.mxu1 %v6182_v38  ;;  %v1934_v48 = vpop.f32.mrf.mxu1  ;;  %v1832_v26 = vadd.f32 %v1831_v6, %v7758_v7  ;;  %v8049_v35 = vadd.f32 %v1932_v43, %v1830_v61  ;;  %v6186_v7 = vld [vmem:[%s8902_s1 + $0xb00] ss:$8 sps:$4 sm:$0xff]   ;;  %v8952_v38 = vshrl.u32 %v6936_v29, 16  ;;  %v2974_v43 = vrot.slane %v8953_v47, 2 }
 0x194   : > { %3588 = vmatmul.mubr.bf16.gmra.mxu0 %v7755_v60  ;;  %v1835_v32 = vpop.f32.mrf.mxu0  ;;  %v2995_v61 = vshrl.u32 %v7495_v21, 16  ;;  %v2972_v29 = vsel %vm2933_vm2, %v8002_v36, %v8062_v0 }
 0x195   : > { %3691 = vmatmul.mubr.bf16.gmra.mxu1 %v8027_v33  ;;  %v1938_v13 = vpop.f32.mrf.mxu1  ;;  %v1836_v57 = vadd.f32 %v1835_v32, %v7773_v45  ;;  %v8054_v50 = vadd.f32 %v1934_v48, %v1832_v26  ;;  %4300 = vmatpush1.bf16.msra.mxu0 %v6177_v5  ;;  %v6191_v45 = vld [vmem:[%s8902_s1 + $0xaf4] ss:$8 sps:$4 sm:$0xff]   ;;  %v2973_v39 = vrot.slane %v8952_v38, 1 }
 0x196   : > { %4403 = vmatpush1.bf16.msra.mxu1 %v6180_v49  ;;  %v1837_v60 = vpop.f32.mrf.mxu0  ;;  %4301 = vmatprep.subr.bf16.mxu0 %v6185_v14  ;;  %v8954_v48 = vld [vmem:[#allocation5_spill] sm:$0xff] }
 0x197   : > { %4404 = vmatprep.subr.bf16.mxu1 %v6188_v27  ;;  %v1940_v63 = vpop.f32.mrf.mxu1  ;;  %v1838_v52 = vadd.f32 %v1837_v60, %v7789_v24  ;;  %v8071_v31 = vadd.f32 %v1938_v13, %v1836_v57  ;;  %3597 = vmatprep.mubr.bf16.mxu0 %v8027_v33  ;;  %v6189_v24 = vld [vmem:[%s8902_s1 + $0xaf0] ss:$8 sps:$4 sm:$0xff]   ;;  %v2989_v14 = vshrl.u32 %v8954_v48, 16  ;;  %v8103_v32 = vor.u32 %v2974_v43, %v2973_v39  ;;  %v8955_v57 = vld [vmem:[#allocation2_spill] sm:$0xff]  ;;  %v8957_v39 = vld [vmem:[#allocation3_spill] sm:$0xff] }
 0x198   : > { %3700 = vmatprep.mubr.bf16.mxu1 %v8936_v42  ;;  %v1839_v59 = vpop.f32.mrf.mxu0  ;;  %v2997_v13 = vrot.slane %v2995_v61, 1  ;;  %v8958_v47 = vshll.u32 %v8957_v39, 16 }
 0x199   : > { %v1942_v10 = vpop.f32.mrf.mxu1  ;;  %v1840_v5 = vadd.f32 %v1839_v59, %v7794_v3  ;;  %v8081_v49 = vadd.f32 %v1940_v63, %v1838_v52  ;;  %4302 = vmatpush1.bf16.msra.mxu0 %v6183_v20  ;;  %v6197_v3 = vld [vmem:[%s8902_s1 + $0xae4] ss:$8 sps:$4 sm:$0xff]   ;;  %v8956_v20 = vshll.u32 %v8955_v57, 16  ;;  %v6206_v59 = vld [vmem:[%s8902_s1 + $0xbd4] ss:$8 sps:$4 sm:$0xff]  }
 0x19a   : > { %4405 = vmatpush1.bf16.msra.mxu1 %v6186_v7  ;;  %v1841_v62 = vpop.f32.mrf.mxu0  ;;  %4303 = vmatprep.subr.bf16.mxu0 %v6191_v45  ;;  %v3001_v45 = vshrl.u32 %v7819_v46, 16  ;;  %v2991_v46 = vrot.slane %v2989_v14, 1  ;;  %v2992_v43 = vrot.slane %v8958_v47, 2 }
 0x19b   : > { %4406 = vmatprep.subr.bf16.mxu1 %v6194_v19  ;;  %v1944_v21 = vpop.f32.mrf.mxu1  ;;  %v1842_v54 = vadd.f32 %v1841_v62, %v7807_v12  ;;  %v8099_v6 = vadd.f32 %v1942_v10, %v1840_v5  ;;  %v2998_v7 = vrot.slane %v8956_v20, 2  ;;  %v6195_v12 = vld [vmem:[%s8902_s1 + $0xae0] ss:$8 sps:$4 sm:$0xff]  }
 0x19c   : > { %3598 = vmatmul.mubr.bf16.gmra.mxu0 %v7812_v17  ;;  %v1845_v27 = vpop.f32.mrf.mxu0  ;;  %v6198_v17 = vld [vmem:[%s8902_s1 + $0xbe0] ss:$8 sps:$4 sm:$0xff]   ;;  %v2993_v20 = vor.u32 %v2992_v43, %v2991_v46 }
 0x19d   : > { %3701 = vmatmul.mubr.bf16.gmra.mxu1 %v2972_v29  ;;  %v1948_v26 = vpop.f32.mrf.mxu1  ;;  %v1846_v60 = vadd.f32 %v1845_v27, %v7826_v15  ;;  %v8108_v63 = vadd.f32 %v1944_v21, %v1842_v54  ;;  %4304 = vmatpush2.bf16.msra.mxu0 %v6189_v24  ;;  %v6203_v15 = vld [vmem:[%s8902_s1 + $0xad4] ss:$8 sps:$4 sm:$0xff]   ;;  %v2976_v24 = vsel %vm2933_vm2, %v8062_v0, %v8103_v32  ;;  %v6209_v27 = vld [vmem:[%s8902_s1 + $0xac4] ss:$8 sps:$4 sm:$0xff]  }
 0x19e   : > { %4407 = vmatpush2.bf16.msra.mxu1 %v6192_v9  ;;  %v1847_v19 = vpop.f32.mrf.mxu0  ;;  %4305 = vmatprep.subr.bf16.mxu0 %v6197_v3  ;;  %v2999_v9 = vor.u32 %v2998_v7, %v2997_v13  ;;  %v3003_v3 = vrot.slane %v3001_v45, 1  ;;  %v2994_v46 = vsel %vm2933_vm2, %v8002_v36, %v2993_v20  ;;  %v8177_v43 = vld [vmem:[%s6478_s7 + $0x8] sm:$0xff]  }
 0x19f   : > { %4408 = vmatprep.subr.bf16.mxu1 %v6200_v30  ;;  %v1950_v52 = vpop.f32.mrf.mxu1  ;;  %v1848_v10 = vadd.f32 %v1847_v19, %v7838_v23  ;;  %v8124_v38 = vadd.f32 %v1948_v26, %v1846_v60  ;;  %3607 = vmatprep.mubr.bf16.mxu0 %v2972_v29  ;;  %v6201_v23 = vld [vmem:[%s8902_s1 + $0xad0] ss:$8 sps:$4 sm:$0xff]   ;;  %v6212_v26 = vld [vmem:[%s8902_s1 + $0xbc4] ss:$8 sps:$4 sm:$0xff]  }
 0x1a0   : > { %3710 = vmatprep.mubr.bf16.mxu1 %v8936_v42  ;;  %v1849_v61 = vpop.f32.mrf.mxu0  ;;  %v6204_v29 = vld [vmem:[%s8902_s1 + $0xbd0] ss:$8 sps:$4 sm:$0xff]  }
 0x1a1   : > { %v1952_v5 = vpop.f32.mrf.mxu1  ;;  %v1850_v62 = vadd.f32 %v1849_v61, %v7845_v28  ;;  %v8133_v21 = vadd.f32 %v1950_v52, %v1848_v10  ;;  %4306 = vmatpush2.bf16.msra.mxu0 %v6195_v12  ;;  %v8959_v30 = vld [vmem:[#allocation4_spill] sm:$0xff]  ;;  %v3000_v12 = vsel %vm2933_vm2, %v8062_v0, %v2999_v9  ;;  %v3842_v61 = vrot.slane %v8177_v43, 2  ;;  %v8185_v9 = vld [vmem:[%s6478_s7 + $0x18] sm:$0xff]  }
 0x1a2   : > { %4409 = vmatpush2.bf16.msra.mxu1 %v6198_v17  ;;  %v8960_v54 = vshll.u32 %v8959_v30, 16  ;;  %v1851_v14 = vpop.f32.mrf.mxu0  ;;  %4307 = vmatprep.subr.bf16.mxu0 %v6203_v15  ;;  %v6215_v0 = vld [vmem:[%s8902_s1 + $0xab4] ss:$8 sps:$4 sm:$0xff]   ;;  %v6216_v30 = vld [vmem:[%s8902_s1 + $0xbb0] ss:$8 sps:$4 sm:$0xff]  }
 0x1a3   : > { %4410 = vmatprep.subr.bf16.mxu1 %v6206_v59  ;;  %v1954_v28 = vpop.f32.mrf.mxu1  ;;  %v1852_v13 = vadd.f32 %v1851_v14, %v7858_v22  ;;  %v8150_v57 = vadd.f32 %v1952_v5, %v1850_v62  ;;  %v6207_v22 = vld [vmem:[%s8902_s1 + $0xac0] ss:$8 sps:$4 sm:$0xff]   ;;  %v6218_v15 = vld [vmem:[%s8902_s1 + $0xbb4] ss:$8 sps:$4 sm:$0xff]   ;;  %v6221_v14 = vld [vmem:[%s8902_s1 + $0xaa4] ss:$8 sps:$4 sm:$0xff]  }
 0x1a4   : > { %v3004_v48 = vrot.slane %v8960_v54, 2  ;;  %3608 = vmatmul.mubr.bf16.gmra.mxu0 %v8027_v33  ;;  %v1855_v7 = vpop.f32.mrf.mxu0  ;;  %v6210_v33 = vld [vmem:[%s8902_s1 + $0xbc0] ss:$8 sps:$4 sm:$0xff]   ;;  %v8181_v5 = vld [vmem:[%s6478_s7 + $0x10] sm:$0xff]  }
 0x1a5   : > { %3711 = vmatmul.mubr.bf16.gmra.mxu1 %v2976_v24  ;;  %v1958_v60 = vpop.f32.mrf.mxu1  ;;  %v1856_v17 = vadd.f32 %v1855_v7, %v7865_v37  ;;  %v8156_v45 = vadd.f32 %v1954_v28, %v1852_v13  ;;  %4308 = vmatpush2.bf16.msra.mxu0 %v6201_v23  ;;  %v3844_v24 = vrot.slane %v8181_v5, 2  ;;  %v8189_v62 = vld [vmem:[%s6478_s7 + $0x20] sm:$0xff]  }
 0x1a6   : > { %4411 = vmatpush2.bf16.msra.mxu1 %v6204_v29  ;;  %v3005_v19 = vor.u32 %v3004_v48, %v3003_v3  ;;  %v1857_v52 = vpop.f32.mrf.mxu0  ;;  %4309 = vmatprep.subr.bf16.mxu0 %v6209_v27  ;;  %v3848_v36 = vrot.slane %v8189_v62, 2  ;;  %v6213_v3 = vld [vmem:[%s8902_s1 + $0xab0] ss:$8 sps:$4 sm:$0xff]   ;;  %v6224_v28 = vld [vmem:[%s8902_s1 + $0xba4] ss:$8 sps:$4 sm:$0xff]  }
 0x1a7   : > { %4412 = vmatprep.subr.bf16.mxu1 %v6212_v26  ;;  %v1960_v37 = vpop.f32.mrf.mxu1  ;;  %v1858_v59 = vadd.f32 %v1857_v52, %v7875_v55  ;;  %v8171_v10 = vadd.f32 %v1958_v60, %v1856_v17  ;;  %3617 = vmatprep.mubr.bf16.mxu0 %v3000_v12  ;;  %v3846_v55 = vrot.slane %v8185_v9, 2  ;;  %v8217_v20 = vsel %vm3840_vm3, %v3842_v61, %v3844_v24  ;;  %v6219_v12 = vld [vmem:[%s8902_s1 + $0xaa0] ss:$8 sps:$4 sm:$0xff]   ;;  %v6283_v62 = vld [vmem:[%s6478_s7 + $0x30] sm:$0xff]  }
 0x1a8   : > { %3720 = vmatprep.mubr.bf16.mxu1 %v8936_v42  ;;  %v1859_v39 = vpop.f32.mrf.mxu0  ;;  %v3006_v54 = vsel %vm2933_vm2, %v8103_v32, %v3005_v19  ;;  %v6222_v17 = vld [vmem:[%s8902_s1 + $0xba0] ss:$8 sps:$4 sm:$0xff]   ;;  %v6230_v19 = vld [vmem:[%s8902_s1 + $0xb94] ss:$8 sps:$4 sm:$0xff]  }
 0x1a9   : > { %v1962_v47 = vpop.f32.mrf.mxu1  ;;  %v1860_v23 = vadd.f32 %v1859_v39, %v7878_v34  ;;  %v8193_v29 = vadd.f32 %v1960_v37, %v1858_v59  ;;  %4310 = vmatpush2.bf16.msra.mxu0 %v6207_v22  ;;  %v8224_v7 = vsel %vm3840_vm3, %v3846_v55, %v3848_v36  ;;  %v6225_v39 = vld [vmem:[%s8902_s1 + $0xa90] ss:$8 sps:$4 sm:$0xff]  }
 0x1aa   : > { %4413 = vmatpush2.bf16.msra.mxu1 %v6210_v33  ;;  %v1861_v48 = vpop.f32.mrf.mxu0  ;;  %4311 = vmatprep.subr.bf16.mxu0 %v6215_v0 }
 0x1ab   : > { %4414 = vmatprep.subr.bf16.mxu1 %v6218_v15  ;;  %v1964_v34 = vpop.f32.mrf.mxu1  ;;  %v1862_v27 = vadd.f32 %v1861_v48, %v7889_v25  ;;  %v8210_v26 = vadd.f32 %v1962_v47, %v1860_v23 }
 0x1ac   : > { %3618 = vmatmul.mubr.bf16.gmra.mxu0 %v2994_v46  ;;  %v1865_v13 = vpop.f32.mrf.mxu0 }
 0x1ad   : > { %3721 = vmatmul.mubr.bf16.gmra.mxu1 %v3006_v54  ;;  %v1968_v32 = vpop.f32.mrf.mxu1  ;;  %v1866_v25 = vadd.f32 %v1865_v13, %v7892_v53  ;;  %v8227_v60 = vadd.f32 %v1964_v34, %v1862_v27  ;;  %4312 = vmatpush2.bf16.msra.mxu0 %v6213_v3  ;;  %v6227_v53 = vld [vmem:[%s8902_s1 + $0xa94] ss:$8 sps:$4 sm:$0xff]   ;;  %v6236_v3 = vld [vmem:[%s8902_s1 + $0xb84] ss:$8 sps:$4 sm:$0xff]  }
 0x1ae   : > { %4415 = vmatpush2.bf16.msra.mxu1 %v6216_v30  ;;  %v1867_v22 = vpop.f32.mrf.mxu0  ;;  %4313 = vmatprep.subr.bf16.mxu0 %v6221_v14  ;;  %v6281_v14 = vld [vmem:[%s6478_s7] sm:$0xff]  }
 0x1af   : > { %4416 = vmatprep.subr.bf16.mxu1 %v6224_v28  ;;  %v1970_v33 = vpop.f32.mrf.mxu1  ;;  %v1868_v52 = vadd.f32 %v1867_v22, %v7902_v8  ;;  %v8242_v37 = vadd.f32 %v1968_v32, %v1866_v25  ;;  %4319 = vmatprep.mubr.bf16.mxu0 %v8217_v20  ;;  %v6228_v8 = vld [vmem:[%s8902_s1 + $0xb90] ss:$8 sps:$4 sm:$0xff]   ;;  %v3841_v28 = vrot.slane %v6281_v14, 2  ;;  %v6231_v32 = vld [vmem:[%s8902_s1 + $0xa80] ss:$8 sps:$4 sm:$0xff]  }
 0x1b0   : > { %4422 = vmatprep.mubr.bf16.mxu1 %v8224_v7  ;;  %v1869_v0 = vpop.f32.mrf.mxu0 }
 0x1b1   : > { %v1972_v15 = vpop.f32.mrf.mxu1  ;;  %v1870_v59 = vadd.f32 %v1869_v0, %v7905_v18  ;;  %v8247_v46 = vadd.f32 %v1970_v33, %v1868_v52  ;;  %4314 = vmatpush2.bf16.msra.mxu0 %v6219_v12  ;;  %v6233_v18 = vld [vmem:[%s8902_s1 + $0xa84] ss:$8 sps:$4 sm:$0xff]   ;;  %v3843_v0 = vsel %vm3840_vm3, %v3841_v28, %v3842_v61  ;;  %v6246_v28 = vld [vmem:[%s8902_s1 + $0xc40] ss:$8 sps:$4 sm:$0xff]  }
 0x1b2   : > { %4417 = vmatpush2.bf16.msra.mxu1 %v6222_v17  ;;  %v1871_v47 = vpop.f32.mrf.mxu0  ;;  %4315 = vmatprep.subr.bf16.mxu0 %v6227_v53  ;;  %v6282_v33 = vld [vmem:[%s6478_s7 + $0x28] sm:$0xff]  }
 0x1b3   : > { %4418 = vmatprep.subr.bf16.mxu1 %v6230_v19  ;;  %v1974_v23 = vpop.f32.mrf.mxu1  ;;  %v1872_v30 = vadd.f32 %v1871_v47, %v7920_v40  ;;  %v8262_v54 = vadd.f32 %v1972_v15, %v1870_v59  ;;  %v6234_v40 = vld [vmem:[%s8902_s1 + $0xb80] ss:$8 sps:$4 sm:$0xff]   ;;  %v3850_v53 = vrot.slane %v6282_v33, 2  ;;  %v6243_v47 = vld [vmem:[%s8902_s1 + $0xc50] ss:$8 sps:$4 sm:$0xff]  }
 0x1b4   : > { %v1875_v48 = vpop.f32.mrf.mxu0 }
 0x1b5   : > { %v1978_v34 = vpop.f32.mrf.mxu1  ;;  %v1876_v27 = vadd.f32 %v1875_v48, %v7924_v4  ;;  %v8266_v13 = vadd.f32 %v1974_v23, %v1872_v30  ;;  %4316 = vmatpush2.bf16.msra.mxu0 %v6225_v39  ;;  %v6239_v4 = vld [vmem:[%s8902_s1 + $0xc74] ss:$8 sps:$4 sm:$0xff]   ;;  %v6237_v39 = vld [vmem:[%s8902_s1 + $0xc70] ss:$8 sps:$4 sm:$0xff]   ;;  %v8304_v5 = vsel %vm3840_vm3, %v3848_v36, %v3850_v53  ;;  %v8316_v36 = vrot.slane %v6283_v62, 2 }
 0x1b6   : > { %4419 = vmatpush2.bf16.msra.mxu1 %v6228_v8  ;;  %v1877_v25 = vpop.f32.mrf.mxu0  ;;  %4317 = vmatprep.subr.bf16.mxu0 %v6233_v18  ;;  %v6248_v18 = vld [vmem:[%s8902_s1 + $0xc44] ss:$8 sps:$4 sm:$0xff]   ;;  %v6257_v62 = vld [vmem:[%s8902_s1 + $0xc14] ss:$8 sps:$4 sm:$0xff]  }
 0x1b7   : > { %8961 = vst [vmem:[#allocation5_spill] sm:$0xff] %v8266_v13  ;;  %4420 = vmatprep.subr.bf16.mxu1 %v6236_v3  ;;  %v1980_v12 = vpop.f32.mrf.mxu1  ;;  %v1878_v17 = vadd.f32 %v1877_v25, %v7938_v51  ;;  %v8278_v22 = vadd.f32 %v1978_v34, %v1876_v27  ;;  %v3847_v51 = vsel %vm3840_vm3, %v3844_v24, %v3846_v55  ;;  %v6240_v55 = vld [vmem:[%s8902_s1 + $0xc60] ss:$8 sps:$4 sm:$0xff]   ;;  %v6284_v27 = vld [vmem:[%s6478_s7 + $0x38] sm:$0xff]  }
 0x1b8   : > { %v1879_v19 = vpop.f32.mrf.mxu0  ;;  %v8323_v23 = vsel %vm3840_vm3, %v3850_v53, %v8316_v36 }
 0x1b9   : > { %8962 = vst [vmem:[#allocation2_spill] sm:$0xff] %v8278_v22  ;;  %v1982_v52 = vpop.f32.mrf.mxu1  ;;  %v1880_v15 = vadd.f32 %v1879_v19, %v7942_v44  ;;  %v8285_v59 = vadd.f32 %v1980_v12, %v1878_v17  ;;  %4318 = vmatpush2.bf16.msra.mxu0 %v6231_v32  ;;  %v6242_v44 = vld [vmem:[%s8902_s1 + $0xc64] ss:$8 sps:$4 sm:$0xff]   ;;  %v6249_v19 = vld [vmem:[%s8902_s1 + $0xc30] ss:$8 sps:$4 sm:$0xff]  }
 0x1ba   : > { %4421 = vmatpush2.bf16.msra.mxu1 %v6234_v40  ;;  %v1881_v8 = vpop.f32.mrf.mxu0  ;;  %4493 = vmatprep.subr.bf16.mxu0 %v6239_v4  ;;  %v6251_v40 = vld [vmem:[%s8902_s1 + $0xc34] ss:$8 sps:$4 sm:$0xff]  }
 0x1bb   : > { %8963 = vst [vmem:[#allocation3_spill] sm:$0xff] %v8285_v59  ;;  %v1984_v43 = vpop.f32.mrf.mxu1  ;;  %5618 = vmatprep.subr.bf16.mxu1 %v6239_v4  ;;  %v1882_v61 = vadd.f32 %v1881_v8, %v7956_v58  ;;  %v8299_v9 = vadd.f32 %v1982_v52, %v1880_v15  ;;  %v6245_v58 = vld [vmem:[%s8902_s1 + $0xc54] ss:$8 sps:$4 sm:$0xff]  }
 0x1bc   : > { %4320 = vmatmul.mubr.bf16.vlgmr.msra.gmra.mxu0 %v3843_v0  ;;  %v6254_v0 = vld [vmem:[%s8902_s1 + $0xc24] ss:$8 sps:$4 sm:$0xff]  }
 0x1bd   : > { %8964 = vst [vmem:[#allocation4_spill] sm:$0xff] %v8299_v9  ;;  %4423 = vmatmul.mubr.bf16.vlgmr.msra.gmra.mxu1 %v3847_v51  ;;  %v8306_v24 = vadd.f32 %v1984_v43, %v1882_v61  ;;  %4494 = vmatpush1.bf16.msra.mxu0 %v6237_v39  ;;  %v6285_v61 = vld [vmem:[%s6478_s7 + $0x40] sm:$0xff]  }
 0x1be   : > { %4329 = vmatprep.mubr.bf16.mxu0 %v3847_v51  ;;  %4432 = vmatprep.mubr.bf16.mxu1 %v8304_v5 }
 0x1bf   : > { %8965 = vst [vmem:[#allocation6_spill] sm:$0xff] %v8306_v24  ;;  %4495 = vmatprep.subr.bf16.mxu0 %v6242_v44  ;;  %5626 = vmatpush1.bf16.msra.mxu1 %v6237_v39 }
 0x1c0   : > { %5619 = vmatprep.subr.bf16.mxu1 %v6242_v44 }
 0x1c1   : > { %4496 = vmatpush1.bf16.msra.mxu0 %v6240_v55 }
 0x1c2   : > { %4497 = vmatprep.subr.bf16.mxu0 %v6245_v58 }
 0x1c3   : > { %5627 = vmatpush1.bf16.msra.mxu1 %v6240_v55  ;;  %v8366_v55 = vrot.slane %v6285_v61, 2 }
 0x1c4   : > { %4330 = vmatmul.mubr.bf16.gmra.mxu0 %v8217_v20  ;;  %v2549_v3 = vpop.f32.mrf.mxu0  ;;  %5620 = vmatprep.subr.bf16.mxu1 %v6245_v58  ;;  %v8338_v20 = vrot.slane %v6284_v27, 2 }
 0x1c5   : > { %4433 = vmatmul.mubr.bf16.gmra.mxu1 %v8224_v7  ;;  %v2652_v30 = vpop.f32.mrf.mxu1  ;;  %4339 = vmatprep.mubr.bf16.mxu0 %v8224_v7 }
 0x1c6   : > { %v8330_v48 = vadd.f32 %v2652_v30, %v2549_v3  ;;  %4442 = vmatprep.mubr.bf16.mxu1 %v8323_v23  ;;  %v2551_v34 = vpop.f32.mrf.mxu0  ;;  %4498 = vmatpush1.bf16.msra.mxu0 %v6243_v47  ;;  %v8350_v53 = vsel %vm3840_vm3, %v8316_v36, %v8338_v20 }
 0x1c7   : > { %v2654_v14 = vpop.f32.mrf.mxu1  ;;  %4499 = vmatprep.subr.bf16.mxu0 %v6248_v18  ;;  %5628 = vmatpush1.bf16.msra.mxu1 %v6243_v47 }
 0x1c8   : > { %v8340_v32 = vadd.f32 %v2654_v14, %v2551_v34  ;;  %v2553_v25 = vpop.f32.mrf.mxu0  ;;  %5621 = vmatprep.subr.bf16.mxu1 %v6248_v18  ;;  %v8381_v14 = vsel %vm3840_vm3, %v8338_v20, %v8366_v55 }
 0x1c9   : > { %v2656_v12 = vpop.f32.mrf.mxu1 }
 0x1ca   : > { %v8345_v4 = vadd.f32 %v2656_v12, %v2553_v25  ;;  %v2555_v17 = vpop.f32.mrf.mxu0  ;;  %4500 = vmatpush1.bf16.msra.mxu0 %v6246_v28 }
 0x1cb   : > { %v2658_v33 = vpop.f32.mrf.mxu1  ;;  %4501 = vmatprep.subr.bf16.mxu0 %v6251_v40  ;;  %5629 = vmatpush1.bf16.msra.mxu1 %v6246_v28  ;;  %v6255_v28 = vld [vmem:[%s8902_s1 + $0xc10] ss:$8 sps:$4 sm:$0xff]  }
 0x1cc   : > { %v8355_v52 = vadd.f32 %v2658_v33, %v2555_v17  ;;  %4340 = vmatmul.mubr.bf16.gmra.mxu0 %v3847_v51  ;;  %v2559_v15 = vpop.f32.mrf.mxu0  ;;  %v6252_v51 = vld [vmem:[%s8902_s1 + $0xc20] ss:$8 sps:$4 sm:$0xff]   ;;  %5622 = vmatprep.subr.bf16.mxu1 %v6251_v40  ;;  %v6260_v40 = vld [vmem:[%s8902_s1 + $0xc04] ss:$8 sps:$4 sm:$0xff]  }
 0x1cd   : > { %4443 = vmatmul.mubr.bf16.gmra.mxu1 %v8304_v5  ;;  %v2662_v39 = vpop.f32.mrf.mxu1  ;;  %4349 = vmatprep.mubr.bf16.mxu0 %v8304_v5 }
 0x1ce   : > { %v8361_v8 = vadd.f32 %v2662_v39, %v2559_v15  ;;  %4452 = vmatprep.mubr.bf16.mxu1 %v8350_v53  ;;  %v2561_v43 = vpop.f32.mrf.mxu0  ;;  %4502 = vmatpush1.bf16.msra.mxu0 %v6249_v19 }
 0x1cf   : > { %v2664_v44 = vpop.f32.mrf.mxu1  ;;  %4503 = vmatprep.subr.bf16.mxu0 %v6254_v0  ;;  %5630 = vmatpush1.bf16.msra.mxu1 %v6249_v19 }
 0x1d0   : > { %v8371_v58 = vadd.f32 %v2664_v44, %v2561_v43  ;;  %v2563_v47 = vpop.f32.mrf.mxu0  ;;  %5623 = vmatprep.subr.bf16.mxu1 %v6254_v0  ;;  %v6286_v0 = vld [vmem:[%s6478_s7 + $0x48] sm:$0xff]  }
 0x1d1   : > { %v2666_v18 = vpop.f32.mrf.mxu1  ;;  %v8398_v15 = vrot.slane %v6286_v0, 2 }
 0x1d2   : > { %v8376_v3 = vadd.f32 %v2666_v18, %v2563_v47  ;;  %v2565_v30 = vpop.f32.mrf.mxu0  ;;  %4504 = vmatpush1.bf16.msra.mxu0 %v6252_v51 }
 0x1d3   : > { %v2668_v34 = vpop.f32.mrf.mxu1  ;;  %4505 = vmatprep.subr.bf16.mxu0 %v6257_v62  ;;  %5631 = vmatpush1.bf16.msra.mxu1 %v6252_v51 }
 0x1d4   : > { %v8386_v27 = vadd.f32 %v2668_v34, %v2565_v30  ;;  %4350 = vmatmul.mubr.bf16.gmra.mxu0 %v8224_v7  ;;  %v2569_v25 = vpop.f32.mrf.mxu0  ;;  %5624 = vmatprep.subr.bf16.mxu1 %v6257_v62  ;;  %v6258_v7 = vld [vmem:[%s8902_s1 + $0xc00] ss:$8 sps:$4 sm:$0xff]   ;;  %v8410_v62 = vsel %vm3840_vm3, %v8366_v55, %v8398_v15 }
 0x1d5   : > { %4453 = vmatmul.mubr.bf16.gmra.mxu1 %v8323_v23  ;;  %v2672_v12 = vpop.f32.mrf.mxu1  ;;  %4359 = vmatprep.mubr.bf16.mxu0 %v8323_v23 }
 0x1d6   : > { %v8393_v17 = vadd.f32 %v2672_v12, %v2569_v25  ;;  %4462 = vmatprep.mubr.bf16.mxu1 %v8381_v14  ;;  %v2571_v33 = vpop.f32.mrf.mxu0  ;;  %4506 = vmatpush1.bf16.msra.mxu0 %v6255_v28  ;;  %v6287_v12 = vld [vmem:[%s6478_s7 + $0x40] ss:$0 sps:$4 sm:$0x33]  }
 0x1d7   : > { %v2674_v19 = vpop.f32.mrf.mxu1  ;;  %5632 = vmatpush1.bf16.msra.mxu1 %v6255_v28  ;;  %4507 = vmatprep.subr.bf16.mxu0 %v6260_v40 }
 0x1d8   : > { %v8403_v39 = vadd.f32 %v2674_v19, %v2571_v33  ;;  %v2573_v43 = vpop.f32.mrf.mxu0  ;;  %5625 = vmatprep.subr.bf16.mxu1 %v6260_v40  ;;  %v3864_v33 = vrot.slane %v6287_v12, 2  ;;  %v6288_v19 = vld [vmem:[%s6478_s7 + $0x50] ss:$0 sps:$4 sm:$0x33]  }
 0x1d9   : > { %v2676_v44 = vpop.f32.mrf.mxu1  ;;  %v3868_v0 = vrot.slane %v6288_v19, 2  ;;  %v6289_v19 = vld [vmem:[%s6478_s7 + $0x38] ss:$0 sps:$4 sm:$0x33]  }
 0x1da   : > { %v8405_v61 = vadd.f32 %v2676_v44, %v2573_v43  ;;  %v2575_v51 = vpop.f32.mrf.mxu0  ;;  %4508 = vmatpush1.bf16.msra.mxu0 %v6258_v7 }
 0x1db   : > { %v2678_v47 = vpop.f32.mrf.mxu1  ;;  %5633 = vmatpush1.bf16.msra.mxu1 %v6258_v7  ;;  %v3869_v24 = vsel %vm3840_vm3, %v8398_v15, %v3868_v0 }
 0x1dc   : > { %v8412_v18 = vadd.f32 %v2678_v47, %v2575_v51  ;;  %4360 = vmatmul.mubr.bf16.gmra.mxu0 %v8304_v5  ;;  %v2579_v30 = vpop.f32.mrf.mxu0 }
 0x1dd   : > { %4463 = vmatmul.mubr.bf16.gmra.mxu1 %v8350_v53  ;;  %v2682_v34 = vpop.f32.mrf.mxu1  ;;  %4369 = vmatprep.mubr.bf16.mxu0 %v8350_v53 }
 0x1de   : > { %v8416_v28 = vadd.f32 %v2682_v34, %v2579_v30  ;;  %4472 = vmatprep.mubr.bf16.mxu1 %v8410_v62  ;;  %v2581_v40 = vpop.f32.mrf.mxu0  ;;  %v3865_v34 = vsel %vm3840_vm3, %v8338_v20, %v3864_v33 }
 0x1df   : > { %v2684_v25 = vpop.f32.mrf.mxu1 }
 0x1e0   : > { %v8422_v43 = vadd.f32 %v2684_v25, %v2581_v40  ;;  %v2583_v7 = vpop.f32.mrf.mxu0 }
 0x1e1   : > { %v2686_v44 = vpop.f32.mrf.mxu1 }
 0x1e2   : > { %v8424_v51 = vadd.f32 %v2686_v44, %v2583_v7  ;;  %v2585_v47 = vpop.f32.mrf.mxu0  ;;  %v3862_v7 = vrot.slane %v6289_v19, 2  ;;  %v6290_v44 = vld [vmem:[%s6478_s7 + $0x48] ss:$0 sps:$4 sm:$0x33]  }
 0x1e3   : > { %v2688_v30 = vpop.f32.mrf.mxu1  ;;  %v3866_v59 = vrot.slane %v6290_v44, 2 }
 0x1e4   : > { %v8430_v9 = vadd.f32 %v2688_v30, %v2585_v47  ;;  %4370 = vmatmul.mubr.bf16.gmra.mxu0 %v8323_v23  ;;  %v2589_v40 = vpop.f32.mrf.mxu0  ;;  %v3863_v13 = vsel %vm3840_vm3, %v8316_v36, %v3862_v7 }
 0x1e5   : > { %4473 = vmatmul.mubr.bf16.gmra.mxu1 %v8381_v14  ;;  %v2692_v25 = vpop.f32.mrf.mxu1  ;;  %4379 = vmatprep.mubr.bf16.mxu0 %v3865_v34 }
 0x1e6   : > { %v8434_v12 = vadd.f32 %v2692_v25, %v2589_v40  ;;  %4482 = vmatprep.mubr.bf16.mxu1 %v3869_v24  ;;  %v2591_v20 = vpop.f32.mrf.mxu0  ;;  %v3867_v40 = vsel %vm3840_vm3, %v8366_v55, %v3866_v59 }
 0x1e7   : > { %v2694_v33 = vpop.f32.mrf.mxu1 }
 0x1e8   : > { %v8438_v22 = vadd.f32 %v2694_v33, %v2591_v20  ;;  %v2593_v0 = vpop.f32.mrf.mxu0 }
 0x1e9   : > { %v2696_v47 = vpop.f32.mrf.mxu1 }
 0x1ea   : > { %v8440_v30 = vadd.f32 %v2696_v47, %v2593_v0  ;;  %v2595_v34 = vpop.f32.mrf.mxu0 }
 0x1eb   : > { %v2698_v24 = vpop.f32.mrf.mxu1 }
 0x1ec   : > { %v8446_v25 = vadd.f32 %v2698_v24, %v2595_v34  ;;  %4380 = vmatmul.mubr.bf16.gmra.mxu0 %v3863_v13  ;;  %v2599_v19 = vpop.f32.mrf.mxu0 }
 0x1ed   : > { %4483 = vmatmul.mubr.bf16.gmra.mxu1 %v3867_v40  ;;  %v2702_v44 = vpop.f32.mrf.mxu1  ;;  %4525 = vmatprep.mubr.bf16.mxu0 %v8936_v42 }
 0x1ee   : > { %v8448_v20 = vadd.f32 %v2702_v44, %v2599_v19  ;;  %4565 = vmatprep.mubr.bf16.mxu1 %v8936_v42  ;;  %v2601_v33 = vpop.f32.mrf.mxu0  ;;  %v6291_v44 = vld [vmem:[%s6478_s7 + $0x50] sm:$0xff]  }
 0x1ef   : > { %v2704_v36 = vpop.f32.mrf.mxu1 }
 0x1f0   : > { %v8452_v7 = vadd.f32 %v2704_v36, %v2601_v33  ;;  %v2603_v59 = vpop.f32.mrf.mxu0  ;;  %v3860_v33 = vrot.slane %v6291_v44, 2 }
 0x1f1   : > { %v2706_v55 = vpop.f32.mrf.mxu1 }
 0x1f2   : > { %v8454_v0 = vadd.f32 %v2706_v55, %v2603_v59  ;;  %v2605_v47 = vpop.f32.mrf.mxu0 }
 0x1f3   : > { %v2708_v13 = vpop.f32.mrf.mxu1 }
 0x1f4   : > { %v8456_v40 = vadd.f32 %v2708_v13, %v2605_v47  ;;  %4526 = vmatmul.mubr.bf16.vlgmr.msra.gmra.mxu0 %v8304_v5  ;;  %v2609_v34 = vpop.f32.mrf.mxu0 }
 0x1f5   : > { %4566 = vmatmul.mubr.bf16.vlgmr.msra.gmra.mxu1 %v8410_v62  ;;  %v2712_v24 = vpop.f32.mrf.mxu1  ;;  %4535 = vmatprep.mubr.bf16.mxu0 %v8936_v42  ;;  %v3861_v62 = vsel %vm3840_vm3, %v8398_v15, %v3860_v33 }
 0x1f6   : > { %8966 = vst [vmem:[#allocation7_spill] sm:$0xff] %v8456_v40  ;;  %v8460_v19 = vadd.f32 %v2712_v24, %v2609_v34  ;;  %4575 = vmatprep.mubr.bf16.mxu1 %v8936_v42  ;;  %v2611_v36 = vpop.f32.mrf.mxu0 }
 0x1f7   : > { %v2714_v59 = vpop.f32.mrf.mxu1 }
 0x1f8   : > { %8967 = vst [vmem:[#allocation8_spill] sm:$0xff] %v8460_v19  ;;  %v8465_v55 = vadd.f32 %v2714_v59, %v2611_v36  ;;  %v2613_v47 = vpop.f32.mrf.mxu0  ;;  %v6292_v36 = vld [vmem:[%s6478_s7 + $0x58] ss:$0 sps:$4 sm:$0x33]  }
 0x1f9   : > { %v2716_v13 = vpop.f32.mrf.mxu1  ;;  %v3870_v59 = vrot.slane %v6292_v36, 2 }
 0x1fa   : > { %v8467_v5 = vadd.f32 %v2716_v13, %v2613_v47  ;;  %v2615_v34 = vpop.f32.mrf.mxu0 }
 0x1fb   : > { %v2718_v24 = vpop.f32.mrf.mxu1 }
 0x1fc   : > { %v8471_v19 = vadd.f32 %v2718_v24, %v2615_v34  ;;  %4536 = vmatmul.mubr.bf16.gmra.mxu0 %v8323_v23  ;;  %v2755_v44 = vpop.f32.mrf.mxu0 }
 0x1fd   : > { %4576 = vmatmul.mubr.bf16.gmra.mxu1 %v3861_v62  ;;  %v2756_v40 = vadd.f32 %v2755_v44, %v8330_v48  ;;  %4545 = vmatprep.mubr.bf16.mxu0 %v8936_v42  ;;  %v3871_v48 = vsel %vm3840_vm3, %v3860_v33, %v3870_v59 }
 0x1fe   : > { %4585 = vmatprep.mubr.bf16.mxu1 %v8936_v42  ;;  %v2757_v47 = vpop.f32.mrf.mxu0 }
 0x1ff   : > { %v8479_v13 = vadd.f32 %v2756_v40, %v7974_v41  ;;  %v2758_v15 = vadd.f32 %v2757_v47, %v8340_v32 }
 0x200   : > { %v2759_v34 = vpop.f32.mrf.mxu0 }
 0x201   : > { %v8483_v24 = vadd.f32 %v2758_v15, %v7983_v2  ;;  %v2760_v23 = vadd.f32 %v2759_v34, %v8345_v4 }
 0x202   : > { %v2761_v62 = vpop.f32.mrf.mxu0 }
 0x203   : > { %v8488_v44 = vadd.f32 %v2760_v23, %v7998_v16  ;;  %v2762_v36 = vadd.f32 %v2761_v62, %v8355_v52 }
 0x204   : > { %4546 = vmatmul.mubr.bf16.gmra.mxu0 %v8350_v53  ;;  %v2765_v41 = vpop.f32.mrf.mxu0 }
 0x205   : > { %4586 = vmatmul.mubr.bf16.gmra.mxu1 %v3871_v48  ;;  %v8492_v40 = vpop.f32.mrf.mxu1  ;;  %v8495_v32 = vadd.f32 %v2762_v36, %v8005_v56  ;;  %v2766_v2 = vadd.f32 %v2765_v41, %v8361_v8  ;;  %4555 = vmatprep.mubr.bf16.mxu0 %v8936_v42 }
 0x206   : > { %v2767_v4 = vpop.f32.mrf.mxu0 }
 0x207   : > { %v8499_v33 = vpop.f32.mrf.mxu1  ;;  %v8502_v16 = vadd.f32 %v2766_v2, %v8020_v11  ;;  %v2768_v52 = vadd.f32 %v2767_v4, %v8371_v58 }
 0x208   : > { %v2769_v53 = vpop.f32.mrf.mxu0 }
 0x209   : > { %v8505_v59 = vpop.f32.mrf.mxu1  ;;  %v8508_v47 = vadd.f32 %v2768_v52, %v8030_v1  ;;  %v2770_v56 = vadd.f32 %v2769_v53, %v8376_v3 }
 0x20a   : > { %v2771_v15 = vpop.f32.mrf.mxu0 }
 0x20b   : > { %v8511_v8 = vpop.f32.mrf.mxu1  ;;  %v8514_v42 = vadd.f32 %v2770_v56, %v8049_v35  ;;  %v2772_v34 = vadd.f32 %v2771_v15, %v8386_v27 }
 0x20c   : > { %4556 = vmatmul.mubr.bf16.gmra.mxu0 %v8381_v14  ;;  %v2775_v11 = vpop.f32.mrf.mxu0 }
 0x20d   : > { %v8518_v58 = vpop.f32.mrf.mxu1  ;;  %v8521_v23 = vadd.f32 %v2772_v34, %v8054_v50  ;;  %v2776_v1 = vadd.f32 %v2775_v11, %v8393_v17 }
 0x20e   : > { %v2777_v48 = vpop.f32.mrf.mxu0 }
 0x20f   : > { %v8524_v3 = vpop.f32.mrf.mxu1  ;;  %v8527_v62 = vadd.f32 %v2776_v1, %v8071_v31  ;;  %v2778_v35 = vadd.f32 %v2777_v48, %v8403_v39 }
 0x210   : > { %v2779_v36 = vpop.f32.mrf.mxu0 }
 0x211   : > { %v8530_v27 = vpop.f32.mrf.mxu1  ;;  %v8533_v14 = vadd.f32 %v2778_v35, %v8081_v49  ;;  %v2780_v41 = vadd.f32 %v2779_v36, %v8405_v61 }
 0x212   : > { %v2781_v50 = vpop.f32.mrf.mxu0 }
 0x213   : > { %v8536_v2 = vpop.f32.mrf.mxu1  ;;  %v8539_v17 = vadd.f32 %v2780_v41, %v8099_v6  ;;  %v2782_v4 = vadd.f32 %v2781_v50, %v8412_v18 }
 0x214   : > { %v2785_v31 = vpop.f32.mrf.mxu0 }
 0x215   : > { %v8542_v52 = vpop.f32.mrf.mxu1  ;;  %v8545_v39 = vadd.f32 %v2782_v4, %v8108_v63  ;;  %v2786_v53 = vadd.f32 %v2785_v31, %v8416_v28 }
 0x216   : > { %v2787_v49 = vpop.f32.mrf.mxu0 }
 0x217   : > { %v8548_v56 = vpop.f32.mrf.mxu1  ;;  %v8551_v61 = vadd.f32 %v2786_v53, %v8124_v38  ;;  %v2788_v15 = vadd.f32 %v2787_v49, %v8422_v43 }
 0x218   : > { %v2789_v6 = vpop.f32.mrf.mxu0 }
 0x219   : > { %v8554_v34 = vpop.f32.mrf.mxu1  ;;  %v8557_v18 = vadd.f32 %v2788_v15, %v8133_v21  ;;  %v2790_v11 = vadd.f32 %v2789_v6, %v8424_v51 }
 0x21a   : > { %v2791_v63 = vpop.f32.mrf.mxu0 }
 0x21b   : > { %v8560_v1 = vpop.f32.mrf.mxu1  ;;  %v8563_v28 = vadd.f32 %v2790_v11, %v8150_v57  ;;  %v2792_v48 = vadd.f32 %v2791_v63, %v8430_v9 }
 0x21c   : > { %v2795_v38 = vpop.f32.mrf.mxu0 }
 0x21d   : > { %v8566_v35 = vpop.f32.mrf.mxu1  ;;  %v8569_v43 = vadd.f32 %v2792_v48, %v8156_v45  ;;  %v2796_v36 = vadd.f32 %v2795_v38, %v8434_v12 }
 0x21e   : > { %v2797_v21 = vpop.f32.mrf.mxu0 }
 0x21f   : > { %v8572_v41 = vpop.f32.mrf.mxu1  ;;  %v8575_v51 = vadd.f32 %v2796_v36, %v8171_v10  ;;  %v2798_v50 = vadd.f32 %v2797_v21, %v8438_v22  ;;  %v8968_v21 = vld [vmem:[#allocation7_spill] sm:$0xff] }
 0x220   : > { %v2799_v57 = vpop.f32.mrf.mxu0 }
 0x221   : > { %v8578_v4 = vpop.f32.mrf.mxu1  ;;  %v8581_v9 = vadd.f32 %v2798_v50, %v8193_v29  ;;  %v2800_v31 = vadd.f32 %v2799_v57, %v8440_v30 }
 0x222   : > { %v2801_v45 = vpop.f32.mrf.mxu0 }
 0x223   : > { %v8584_v53 = vpop.f32.mrf.mxu1  ;;  %v8587_v12 = vadd.f32 %v2800_v31, %v8210_v26  ;;  %v2802_v49 = vadd.f32 %v2801_v45, %v8446_v25  ;;  %v8971_v45 = vld [vmem:[#allocation8_spill] sm:$0xff] }
 0x224   : > { %v2805_v10 = vpop.f32.mrf.mxu0 }
 0x225   : > { %v8590_v15 = vpop.f32.mrf.mxu1  ;;  %v8593_v22 = vadd.f32 %v2802_v49, %v8227_v60  ;;  %v2806_v6 = vadd.f32 %v2805_v10, %v8448_v20 }
 0x226   : > { %v2807_v29 = vpop.f32.mrf.mxu0 }
 0x227   : > { %v8596_v11 = vpop.f32.mrf.mxu1  ;;  %v8599_v30 = vadd.f32 %v2806_v6, %v8242_v37  ;;  %v2808_v63 = vadd.f32 %v2807_v29, %v8452_v7  ;;  %v8969_v7 = vld [vmem:[#allocation5_spill] sm:$0xff] }
 0x228   : > { %v2809_v26 = vpop.f32.mrf.mxu0 }
 0x229   : > { %v8602_v48 = vpop.f32.mrf.mxu1  ;;  %v8605_v25 = vadd.f32 %v2808_v63, %v8247_v46  ;;  %v2810_v38 = vadd.f32 %v2809_v26, %v8454_v0  ;;  %v8972_v0 = vld [vmem:[#allocation2_spill] sm:$0xff]  ;;  %v8974_v26 = vld [vmem:[#allocation3_spill] sm:$0xff] }
 0x22a   : > { %v2811_v60 = vpop.f32.mrf.mxu0 }
 0x22b   : > { %v8608_v36 = vpop.f32.mrf.mxu1  ;;  %v8611_v20 = vadd.f32 %v2810_v38, %v8262_v54  ;;  %v2812_v50 = vadd.f32 %v2811_v60, %v8968_v21 }
 0x22c   : > { %v2815_v37 = vpop.f32.mrf.mxu0 }
 0x22d   : > { %v8614_v57 = vpop.f32.mrf.mxu1  ;;  %v8617_v31 = vadd.f32 %v2812_v50, %v8969_v7  ;;  %v2816_v49 = vadd.f32 %v2815_v37, %v8971_v45  ;;  %v8976_v37 = vld [vmem:[#allocation4_spill] sm:$0xff] }
 0x22e   : > { %v2817_v46 = vpop.f32.mrf.mxu0 }
 0x22f   : > { %8970 = vst [vmem:[#allocation7_spill] sm:$0xff] %v8617_v31  ;;  %v8620_v10 = vpop.f32.mrf.mxu1  ;;  %v8623_v6 = vadd.f32 %v2816_v49, %v8972_v0  ;;  %v2818_v29 = vadd.f32 %v2817_v46, %v8465_v55  ;;  %v8979_v0 = vld [vmem:[#allocation6_spill] sm:$0xff] }
 0x230   : > { %v2819_v54 = vpop.f32.mrf.mxu0 }
 0x231   : > { %8973 = vst [vmem:[#allocation5_spill] sm:$0xff] %v8623_v6  ;;  %v8626_v63 = vpop.f32.mrf.mxu1  ;;  %v8629_v38 = vadd.f32 %v2818_v29, %v8974_v26  ;;  %v2820_v60 = vadd.f32 %v2819_v54, %v8467_v5 }
 0x232   : > { %v2821_v21 = vpop.f32.mrf.mxu0 }
 0x233   : > { %8975 = vst [vmem:[#allocation8_spill] sm:$0xff] %v8629_v38  ;;  %v8632_v50 = vpop.f32.mrf.mxu1  ;;  %v8635_v7 = vadd.f32 %v2820_v60, %v8976_v37  ;;  %v2822_v45 = vadd.f32 %v2821_v21, %v8471_v19 }
 0x235   : > { %8977 = vst [vmem:[#allocation2_spill] sm:$0xff] %v8635_v7  ;;  %v8638_v49 = vpop.f32.mrf.mxu1  ;;  %v8641_v55 = vadd.f32 %v2822_v45, %v8979_v0 }
 0x236   : > { %8978 = vst [vmem:[#allocation3_spill] sm:$0xff] %v8638_v49 }
 0x237   : > { %8980 = vst [vmem:[#allocation4_spill] sm:$0xff] %v8641_v55  ;;  %v8643_v46 = vpop.f32.mrf.mxu1 }
 0x238   : > { %8981 = vst [vmem:[#allocation6_spill] sm:$0xff] %v8643_v46 }
 0x239   : > { %v8645_v6 = vpop.f32.mrf.mxu1 }
 0x23a   : > { %8982 = vst [vmem:[#allocation9_spill] sm:$0xff] %v8645_v6 }
 0x23b   : > { %v8647_v29 = vpop.f32.mrf.mxu1 }
 0x23c   : > { %8983 = vst [vmem:[#allocation10_spill] sm:$0xff] %v8647_v29  ;;  %v3559_v5 = vpop.f32.mrf.mxu0 }
 0x23d   : > { %v3662_v54 = vpop.f32.mrf.mxu1  ;;  %v3560_v26 = vadd.f32 %v3559_v5, %v8492_v40 }
 0x23e   : > { %v3561_v38 = vpop.f32.mrf.mxu0 }
 0x23f   : > { %v3664_v60 = vpop.f32.mrf.mxu1  ;;  %v3562_v37 = vadd.f32 %v3561_v38, %v8499_v33  ;;  %v3663_v19 = vadd.f32 %v3662_v54, %v3560_v26 }
 0x240   : > { %v3563_v21 = vpop.f32.mrf.mxu0 }
 0x241   : > { %v3666_v7 = vpop.f32.mrf.mxu1  ;;  %v8652_v45 = vadd.f32 %v3663_v19, %v8479_v13  ;;  %v3564_v0 = vadd.f32 %v3563_v21, %v8505_v59  ;;  %v3665_v55 = vadd.f32 %v3664_v60, %v3562_v37 }
 0x242   : > { %v3565_v6 = vpop.f32.mrf.mxu0 }
 0x243   : > { %8984 = vst [vmem:[#allocation11_spill] sm:$0xff] %v8652_v45  ;;  %v3668_v46 = vpop.f32.mrf.mxu1  ;;  %v8656_v29 = vadd.f32 %v3665_v55, %v8483_v24  ;;  %v3566_v40 = vadd.f32 %v3565_v6, %v8511_v8  ;;  %v3667_v5 = vadd.f32 %v3666_v7, %v3564_v0 }
 0x244   : > { %v3569_v31 = vpop.f32.mrf.mxu0 }
 0x245   : > { %8985 = vst [vmem:[#allocation12_spill] sm:$0xff] %v8656_v29  ;;  %v3672_v49 = vpop.f32.mrf.mxu1  ;;  %v8660_v33 = vadd.f32 %v3667_v5, %v8488_v44  ;;  %v3570_v38 = vadd.f32 %v3569_v31, %v8518_v58  ;;  %v3669_v13 = vadd.f32 %v3668_v46, %v3566_v40 }
 0x246   : > { %v3571_v54 = vpop.f32.mrf.mxu0 }
 0x247   : > { %8986 = vst [vmem:[#allocation13_spill] sm:$0xff] %v8660_v33  ;;  %v3674_v26 = vpop.f32.mrf.mxu1  ;;  %v8664_v59 = vadd.f32 %v3669_v13, %v8495_v32  ;;  %v3572_v60 = vadd.f32 %v3571_v54, %v8524_v3  ;;  %v3673_v24 = vadd.f32 %v3672_v49, %v3570_v38 }
 0x248   : > { %v3573_v55 = vpop.f32.mrf.mxu0 }
 0x249   : > { %8987 = vst [vmem:[#allocation14_spill] sm:$0xff] %v8664_v59  ;;  %v3676_v37 = vpop.f32.mrf.mxu1  ;;  %v8668_v8 = vadd.f32 %v3673_v24, %v8502_v16  ;;  %v3574_v6 = vadd.f32 %v3573_v55, %v8530_v27  ;;  %v3675_v44 = vadd.f32 %v3674_v26, %v3572_v60 }
 0x24a   : > { %v3575_v7 = vpop.f32.mrf.mxu0 }
 0x24b   : > { %8988 = vst [vmem:[#allocation15_spill] sm:$0xff] %v8668_v8  ;;  %v3678_v19 = vpop.f32.mrf.mxu1  ;;  %v8672_v58 = vadd.f32 %v3675_v44, %v8508_v47  ;;  %v3576_v31 = vadd.f32 %v3575_v7, %v8536_v2  ;;  %v3677_v32 = vadd.f32 %v3676_v37, %v3574_v6 }
 0x24c   : > { %v3579_v46 = vpop.f32.mrf.mxu0 }
 0x24d   : > { %8989 = vst [vmem:[#allocation16_spill] sm:$0xff] %v8672_v58  ;;  %v3682_v21 = vpop.f32.mrf.mxu1  ;;  %v8676_v3 = vadd.f32 %v3677_v32, %v8514_v42  ;;  %v3580_v49 = vadd.f32 %v3579_v46, %v8542_v52  ;;  %v3679_v16 = vadd.f32 %v3678_v19, %v3576_v31 }
 0x24e   : > { %v3581_v0 = vpop.f32.mrf.mxu0 }
 0x24f   : > { %8990 = vst [vmem:[#allocation17_spill] sm:$0xff] %v8676_v3  ;;  %v3684_v40 = vpop.f32.mrf.mxu1  ;;  %v8680_v27 = vadd.f32 %v3679_v16, %v8521_v23  ;;  %v3582_v5 = vadd.f32 %v3581_v0, %v8548_v56  ;;  %v3683_v47 = vadd.f32 %v3682_v21, %v3580_v49 }
 0x250   : > { %v3583_v38 = vpop.f32.mrf.mxu0 }
 0x251   : > { %8991 = vst [vmem:[#allocation18_spill] sm:$0xff] %v8680_v27  ;;  %v3686_v13 = vpop.f32.mrf.mxu1  ;;  %v8684_v2 = vadd.f32 %v3683_v47, %v8527_v62  ;;  %v3584_v54 = vadd.f32 %v3583_v38, %v8554_v34  ;;  %v3685_v42 = vadd.f32 %v3684_v40, %v3582_v5 }
 0x252   : > { %v3585_v26 = vpop.f32.mrf.mxu0 }
 0x253   : > { %8992 = vst [vmem:[#allocation19_spill] sm:$0xff] %v8684_v2  ;;  %v3688_v60 = vpop.f32.mrf.mxu1  ;;  %v8688_v52 = vadd.f32 %v3685_v42, %v8533_v14  ;;  %v3586_v24 = vadd.f32 %v3585_v26, %v8560_v1  ;;  %v3687_v23 = vadd.f32 %v3686_v13, %v3584_v54 }
 0x254   : > { %v3589_v55 = vpop.f32.mrf.mxu0 }
 0x255   : > { %8993 = vst [vmem:[#allocation20_spill] sm:$0xff] %v8688_v52  ;;  %v3692_v37 = vpop.f32.mrf.mxu1  ;;  %v8692_v56 = vadd.f32 %v3687_v23, %v8539_v17  ;;  %v3590_v6 = vadd.f32 %v3589_v55, %v8566_v35  ;;  %v3689_v62 = vadd.f32 %v3688_v60, %v3586_v24 }
 0x256   : > { %v3591_v44 = vpop.f32.mrf.mxu0 }
 0x257   : > { %8994 = vst [vmem:[#allocation21_spill] sm:$0xff] %v8692_v56  ;;  %v3694_v7 = vpop.f32.mrf.mxu1  ;;  %v8696_v34 = vadd.f32 %v3689_v62, %v8545_v39  ;;  %v3592_v19 = vadd.f32 %v3591_v44, %v8572_v41  ;;  %v3693_v14 = vadd.f32 %v3692_v37, %v3590_v6 }
 0x258   : > { %v3593_v31 = vpop.f32.mrf.mxu0 }
 0x259   : > { %8995 = vst [vmem:[#allocation22_spill] sm:$0xff] %v8696_v34  ;;  %v3696_v32 = vpop.f32.mrf.mxu1  ;;  %v8700_v1 = vadd.f32 %v3693_v14, %v8551_v61  ;;  %v3594_v46 = vadd.f32 %v3593_v31, %v8578_v4  ;;  %v3695_v17 = vadd.f32 %v3694_v7, %v3592_v19 }
 0x25a   : > { %v3595_v21 = vpop.f32.mrf.mxu0 }
 0x25b   : > { %8996 = vst [vmem:[#allocation23_spill] sm:$0xff] %v8700_v1  ;;  %v3698_v49 = vpop.f32.mrf.mxu1  ;;  %v8704_v35 = vadd.f32 %v3695_v17, %v8557_v18  ;;  %v3596_v16 = vadd.f32 %v3595_v21, %v8584_v53  ;;  %v3697_v39 = vadd.f32 %v3696_v32, %v3594_v46 }
 0x25c   : > { %v3599_v0 = vpop.f32.mrf.mxu0 }
 0x25d   : > { %8997 = vst [vmem:[#allocation24_spill] sm:$0xff] %v8704_v35  ;;  %v3702_v40 = vpop.f32.mrf.mxu1  ;;  %v8708_v41 = vadd.f32 %v3697_v39, %v8563_v28  ;;  %v3600_v5 = vadd.f32 %v3599_v0, %v8590_v15  ;;  %v3699_v61 = vadd.f32 %v3698_v49, %v3596_v16  ;;  %v9007_v16 = vld [vmem:[#allocation3_spill] sm:$0xff] }
 0x25e   : > { %v3601_v47 = vpop.f32.mrf.mxu0 }
 0x25f   : > { %8998 = vst [vmem:[#allocation25_spill] sm:$0xff] %v8708_v41  ;;  %v3704_v38 = vpop.f32.mrf.mxu1  ;;  %v8712_v4 = vadd.f32 %v3699_v61, %v8569_v43  ;;  %v3602_v13 = vadd.f32 %v3601_v47, %v8596_v11  ;;  %v3703_v18 = vadd.f32 %v3702_v40, %v3600_v5  ;;  %v9010_v61 = vld [vmem:[#allocation6_spill] sm:$0xff] }
 0x260   : > { %v3603_v54 = vpop.f32.mrf.mxu0 }
 0x261   : > { %8999 = vst [vmem:[#allocation26_spill] sm:$0xff] %v8712_v4  ;;  %v3706_v42 = vpop.f32.mrf.mxu1  ;;  %v8716_v53 = vadd.f32 %v3703_v18, %v8575_v51  ;;  %v3604_v26 = vadd.f32 %v3603_v54, %v8602_v48  ;;  %v3705_v28 = vadd.f32 %v3704_v38, %v3602_v13  ;;  %v9013_v54 = vld [vmem:[#allocation9_spill] sm:$0xff] }
 0x262   : > { %v3605_v60 = vpop.f32.mrf.mxu0 }
 0x263   : > { %9000 = vst [vmem:[#allocation27_spill] sm:$0xff] %v8716_v53  ;;  %v3708_v24 = vpop.f32.mrf.mxu1  ;;  %v8720_v15 = vadd.f32 %v3705_v28, %v8581_v9  ;;  %v3606_v23 = vadd.f32 %v3605_v60, %v8608_v36  ;;  %v3707_v43 = vadd.f32 %v3706_v42, %v3604_v26  ;;  %v9014_v60 = vld [vmem:[#allocation8_spill] sm:$0xff] }
 0x264   : > { %v3609_v55 = vpop.f32.mrf.mxu0 }
 0x265   : > { %9001 = vst [vmem:[#allocation28_spill] sm:$0xff] %v8720_v15  ;;  %v3712_v37 = vpop.f32.mrf.mxu1  ;;  %v8724_v11 = vadd.f32 %v3707_v43, %v8587_v12  ;;  %v3610_v6 = vadd.f32 %v3609_v55, %v8614_v57  ;;  %v3709_v51 = vadd.f32 %v3708_v24, %v3606_v23  ;;  %v9016_v23 = vld [vmem:[#allocation10_spill] sm:$0xff] }
 0x266   : > { %v3611_v62 = vpop.f32.mrf.mxu0 }
 0x267   : > { %9002 = vst [vmem:[#allocation29_spill] sm:$0xff] %v8724_v11  ;;  %v3714_v44 = vpop.f32.mrf.mxu1  ;;  %v8728_v48 = vadd.f32 %v3709_v51, %v8593_v22  ;;  %v3612_v7 = vadd.f32 %v3611_v62, %v8620_v10  ;;  %v3713_v9 = vadd.f32 %v3712_v37, %v3610_v6  ;;  %v9017_v37 = vld [vmem:[#allocation2_spill] sm:$0xff]  ;;  %v9019_v62 = vld [vmem:[#allocation4_spill] sm:$0xff] }
 0x268   : > { %v3613_v19 = vpop.f32.mrf.mxu0 }
 0x269   : > { %9003 = vst [vmem:[#allocation30_spill] sm:$0xff] %v8728_v48  ;;  %v3716_v14 = vpop.f32.mrf.mxu1  ;;  %v8732_v36 = vadd.f32 %v3713_v9, %v8599_v30  ;;  %v3614_v31 = vadd.f32 %v3613_v19, %v8626_v63  ;;  %v3715_v12 = vadd.f32 %v3714_v44, %v3612_v7  ;;  %v9008_v63 = vld [vmem:[#allocation7_spill] sm:$0xff] }
 0x26a   : > { %v3615_v32 = vpop.f32.mrf.mxu0 }
 0x26b   : > { %9004 = vst [vmem:[#allocation31_spill] sm:$0xff] %v8732_v36  ;;  %v3718_v46 = vpop.f32.mrf.mxu1  ;;  %v8736_v57 = vadd.f32 %v3715_v12, %v8605_v25  ;;  %v3616_v17 = vadd.f32 %v3615_v32, %v8632_v50  ;;  %v3717_v22 = vadd.f32 %v3716_v14, %v3614_v31  ;;  %v9011_v50 = vld [vmem:[#allocation5_spill] sm:$0xff] }
 0x26c   : > { %v3619_v21 = vpop.f32.mrf.mxu0 }
 0x26d   : > { %9005 = vst [vmem:[#allocation32_spill] sm:$0xff] %v8736_v57  ;;  %v3722_v49 = vpop.f32.mrf.mxu1  ;;  %v8740_v10 = vadd.f32 %v3717_v22, %v8611_v20  ;;  %v3620_v39 = vadd.f32 %v3619_v21, %v9007_v16  ;;  %v3719_v30 = vadd.f32 %v3718_v46, %v3616_v17  ;;  %v4624_v57 = vld [vmem:[%s8903_s2] sm:$0x3] }
 0x26e   : > { %v3621_v0 = vpop.f32.mrf.mxu0 }
 0x26f   : > { %9006 = vst [vmem:[#allocation33_spill] sm:$0xff] %v8740_v10  ;;  %v3724_v40 = vpop.f32.mrf.mxu1  ;;  %v8744_v5 = vadd.f32 %v3719_v30, %v9008_v63  ;;  %v3622_v47 = vadd.f32 %v3621_v0, %v9010_v61  ;;  %v3723_v25 = vadd.f32 %v3722_v49, %v3620_v39 }
 0x270   : > { %v3623_v38 = vpop.f32.mrf.mxu0 }
 0x271   : > { %9009 = vst [vmem:[#allocation3_spill] sm:$0xff] %v8744_v5  ;;  %v3726_v13 = vpop.f32.mrf.mxu1  ;;  %v8748_v18 = vadd.f32 %v3723_v25, %v9011_v50  ;;  %v3624_v42 = vadd.f32 %v3623_v38, %v9013_v54  ;;  %v3725_v20 = vadd.f32 %v3724_v40, %v3622_v47 }
 0x272   : > { %v3625_v26 = vpop.f32.mrf.mxu0 }
 0x273   : > { %9012 = vst [vmem:[#allocation7_spill] sm:$0xff] %v8748_v18  ;;  %v3728_v28 = vpop.f32.mrf.mxu1  ;;  %v8752_v24 = vadd.f32 %v3725_v20, %v9014_v60  ;;  %v3626_v43 = vadd.f32 %v3625_v26, %v9016_v23  ;;  %v3727_v55 = vadd.f32 %v3726_v13, %v3624_v42 }
 0x275   : > { %9015 = vst [vmem:[#allocation6_spill] sm:$0xff] %v8752_v24  ;;  %v8756_v6 = vadd.f32 %v3727_v55, %v9017_v37  ;;  %v3729_v51 = vadd.f32 %v3728_v28, %v3626_v43 }
 0x277   : > { %9018 = vst [vmem:[#allocation5_spill] sm:$0xff] %v8756_v6  ;;  %v8759_v44 = vadd.f32 %v3729_v51, %v9019_v62  ;;  %v4626_v6 = vlaneseq }
 0x279   : > { %9020 = vst [vmem:[#allocation9_spill] sm:$0xff] %v8759_v44 }
 0x27c   : > { %v4321_v7 = vpop.f32.mrf.mxu0 }
 0x27d   : > { %v4424_v9 = vpop.f32.mrf.mxu1 }
 0x27e   : > { %v4323_v19 = vpop.f32.mrf.mxu0  ;;  %v4425_v8 = vadd.f32 %v4424_v9, %v4321_v7 }
 0x27f   : > { %v4426_v14 = vpop.f32.mrf.mxu1 }
 0x280   : > { %v4325_v31 = vpop.f32.mrf.mxu0  ;;  %v4427_v48 = vadd.f32 %v4426_v14, %v4323_v19 }
 0x281   : > { %v4428_v12 = vpop.f32.mrf.mxu1 }
 0x282   : > { %v4327_v32 = vpop.f32.mrf.mxu0 }
 0x283   : > { %v4430_v46 = vpop.f32.mrf.mxu1 }
 0x284   : > { %v4331_v17 = vpop.f32.mrf.mxu0  ;;  %v4431_v33 = vadd.f32 %v4430_v46, %v4327_v32 }
 0x285   : > { %v4434_v22 = vpop.f32.mrf.mxu1 }
 0x286   : > { %v4333_v21 = vpop.f32.mrf.mxu0  ;;  %v4435_v15 = vadd.f32 %v4434_v22, %v4331_v17 }
 0x287   : > { %v4436_v49 = vpop.f32.mrf.mxu1 }
 0x288   : > { %v4335_v16 = vpop.f32.mrf.mxu0  ;;  %v8776_v29 = vadd.f32 %v4436_v49, %v4333_v21 }
 0x289   : > { %v4438_v39 = vpop.f32.mrf.mxu1 }
 0x28a   : > { %v4337_v30 = vpop.f32.mrf.mxu0  ;;  %v8778_v45 = vadd.f32 %v4438_v39, %v4335_v16 }
 0x28b   : > { %v4440_v0 = vpop.f32.mrf.mxu1 }
 0x28c   : > { %v4341_v40 = vpop.f32.mrf.mxu0  ;;  %v8780_v7 = vadd.f32 %v4440_v0, %v4337_v30 }
 0x28d   : > { %v4444_v63 = vpop.f32.mrf.mxu1 }
 0x28e   : > { %v4343_v61 = vpop.f32.mrf.mxu0  ;;  %v8782_v9 = vadd.f32 %v4444_v63, %v4341_v40  ;;  %v9025_v40 = vld [vmem:[#allocation11_spill] sm:$0xff] }
 0x28f   : > { %v4446_v47 = vpop.f32.mrf.mxu1 }
 0x290   : > { %v4345_v25 = vpop.f32.mrf.mxu0  ;;  %v8784_v19 = vadd.f32 %v4446_v47, %v4343_v61  ;;  %v9026_v61 = vld [vmem:[#allocation27_spill] sm:$0xff] }
 0x291   : > { %v4448_v38 = vpop.f32.mrf.mxu1 }
 0x292   : > { %v4347_v13 = vpop.f32.mrf.mxu0 }
 0x293   : > { %v4450_v50 = vpop.f32.mrf.mxu1 }
 0x294   : > { %v4351_v54 = vpop.f32.mrf.mxu0 }
 0x295   : > { %v4454_v42 = vpop.f32.mrf.mxu1 }
 0x296   : > { %v4353_v20 = vpop.f32.mrf.mxu0 }
 0x297   : > { %v4456_v26 = vpop.f32.mrf.mxu1 }
 0x298   : > { %v8761_v28 = vpop.f32.mrf.mxu0  ;;  %v8792_v32 = vadd.f32 %v4456_v26, %v4353_v20 }
 0x299   : > { %9021 = vst [vmem:[#allocation8_spill] sm:$0xff] %v8761_v28  ;;  %v8763_v60 = vpop.f32.mrf.mxu1 }
 0x29a   : > { %9022 = vst [vmem:[#allocation10_spill] sm:$0xff] %v8763_v60  ;;  %v8765_v23 = vpop.f32.mrf.mxu0  ;;  %v4627_v60 = vshrl.u32 %v4626_v6, 7  ;;  %v4429_v6 = vadd.f32 %v4428_v12, %v4325_v31 }
 0x29b   : > { %9023 = vst [vmem:[#allocation2_spill] sm:$0xff] %v8765_v23  ;;  %v8767_v43 = vpop.f32.mrf.mxu1 }
 0x29c   : > { %9024 = vst [vmem:[#allocation4_spill] sm:$0xff] %v8767_v43  ;;  %v4361_v55 = vpop.f32.mrf.mxu0  ;;  %v4628_v5 = vsub.s32 0, %v4627_v60  ;;  %v4632_v27 = vsub.s32 1, %v4627_v60 }
 0x29d   : > { %v4464_v37 = vpop.f32.mrf.mxu1 }
 0x29e   : > { %v4363_v51 = vpop.f32.mrf.mxu0  ;;  %v8772_v59 = vrot.slane %v4624_v57, %v4628_v5  ;;  %v8774_v11 = vrot.slane %v4624_v57, %v4632_v27  ;;  %v4465_v14 = vadd.f32 %v4464_v37, %v4361_v55  ;;  %v8786_v5 = vadd.f32 %v4448_v38, %v4345_v25  ;;  %v9030_v55 = vld [vmem:[#allocation29_spill] sm:$0xff] }
 0x29f   : > { %v4466_v62 = vpop.f32.mrf.mxu1  ;;  %v8788_v27 = vadd.f32 %v4450_v50, %v4347_v13  ;;  %v8790_v57 = vadd.f32 %v4454_v42, %v4351_v54 }
 0x2a0   : > { %v4365_v4 = vpop.f32.mrf.mxu0  ;;  %v4467_v46 = vadd.f32 %v4466_v62, %v4363_v51 }
 0x2a1   : > { %v4468_v41 = vpop.f32.mrf.mxu1 }
 0x2a2   : > { %v4367_v35 = vpop.f32.mrf.mxu0  ;;  %v4469_v21 = vadd.f32 %v4468_v41, %v4365_v4 }
 0x2a3   : > { %v4470_v1 = vpop.f32.mrf.mxu1 }
 0x2a4   : > { %v4371_v44 = vpop.f32.mrf.mxu0  ;;  %v4471_v49 = vadd.f32 %v4470_v1, %v4367_v35  ;;  %v9027_v35 = vld [vmem:[#allocation12_spill] sm:$0xff] }
 0x2a5   : > { %v4474_v34 = vpop.f32.mrf.mxu1 }
 0x2a6   : > { %v4373_v56 = vpop.f32.mrf.mxu0  ;;  %v4475_v16 = vadd.f32 %v4474_v34, %v4371_v44 }
 0x2a7   : > { %v4476_v24 = vpop.f32.mrf.mxu1 }
 0x2a8   : > { %v4375_v28 = vpop.f32.mrf.mxu0  ;;  %v4477_v39 = vadd.f32 %v4476_v24, %v4373_v56  ;;  %v9028_v24 = vld [vmem:[#allocation28_spill] sm:$0xff] }
 0x2a9   : > { %v4478_v52 = vpop.f32.mrf.mxu1 }
 0x2aa   : > { %v4377_v18 = vpop.f32.mrf.mxu0  ;;  %v4479_v13 = vadd.f32 %v4478_v52, %v4375_v28 }
 0x2ab   : > { %v4480_v23 = vpop.f32.mrf.mxu1 }
 0x2ac   : > { %v4381_v2 = vpop.f32.mrf.mxu0  ;;  %v8796_v50 = vadd.f32 %v4480_v23, %v4377_v18  ;;  %v9029_v23 = vld [vmem:[#allocation13_spill] sm:$0xff] }
 0x2ad   : > { %v4484_v43 = vpop.f32.mrf.mxu1 }
 0x2ae   : > { %v4383_v10 = vpop.f32.mrf.mxu0  ;;  %v8798_v54 = vadd.f32 %v4484_v43, %v4381_v2 }
 0x2af   : > { %v4486_v3 = vpop.f32.mrf.mxu1 }
 0x2b0   : > { %v4385_v58 = vpop.f32.mrf.mxu0 }
 0x2b1   : > { %v4488_v36 = vpop.f32.mrf.mxu1 }
 0x2b2   : > { %v4387_v60 = vpop.f32.mrf.mxu0  ;;  %v8806_v42 = vadd.f32 %v4488_v36, %v4385_v58 }
 0x2b3   : > { %v4490_v53 = vpop.f32.mrf.mxu1 }
 0x2b4   : > { %v4527_v31 = vpop.f32.mrf.mxu0 }
 0x2b5   : > { %v4567_v12 = vpop.f32.mrf.mxu1  ;;  %v4528_v17 = vadd.f32 %v4527_v31, %v4425_v8  ;;  %v8800_v8 = vadd.f32 %v4486_v3, %v4383_v10 }
 0x2b6   : > { %v4568_v22 = vadd.f32 %v4567_v12, %v4465_v14  ;;  %v4529_v30 = vpop.f32.mrf.mxu0 }
 0x2b7   : > { %v4569_v0 = vpop.f32.mrf.mxu1  ;;  %v4596_v63 = vadd.f32 %v4528_v17, %v9025_v40  ;;  %v4530_v25 = vadd.f32 %v4529_v30, %v4427_v48  ;;  %v8808_v48 = vadd.f32 %v4490_v53, %v4387_v60  ;;  %v9032_v17 = vld [vmem:[#allocation30_spill] sm:$0xff]  ;;  %v9034_v40 = vld [vmem:[#allocation31_spill] sm:$0xff] }
 0x2b8   : > { %v4612_v47 = vadd.f32 %v4568_v22, %v9026_v61  ;;  %v4570_v38 = vadd.f32 %v4569_v0, %v4467_v46  ;;  %v4531_v41 = vpop.f32.mrf.mxu0  ;;  %v9031_v46 = vld [vmem:[#allocation14_spill] sm:$0xff] }
 0x2b9   : > { %v4571_v1 = vpop.f32.mrf.mxu1  ;;  %v4636_v56 = vadd.f32 %v8772_v59, %v4596_v63  ;;  %v4597_v4 = vadd.f32 %v4530_v25, %v9027_v35  ;;  %v4532_v52 = vadd.f32 %v4531_v41, %v4429_v6 }
 0x2ba   : > { %v4652_v34 = vadd.f32 %v8772_v59, %v4612_v47  ;;  %v4613_v44 = vadd.f32 %v4570_v38, %v9028_v24  ;;  %v4572_v2 = vadd.f32 %v4571_v1, %v4469_v21  ;;  %v4533_v18 = vpop.f32.mrf.mxu0 }
 0x2bb   : > { %v4573_v3 = vpop.f32.mrf.mxu1  ;;  %v4664_v10 = vmax.f32 %v4636_v56, 0.0  ;;  %v4637_v26 = vadd.f32 %v8774_v11, %v4597_v4  ;;  %v4598_v43 = vadd.f32 %v4532_v52, %v9029_v23  ;;  %v4534_v51 = vadd.f32 %v4533_v18, %v4431_v33  ;;  %v9036_v23 = vld [vmem:[#allocation32_spill] sm:$0xff] }
 0x2bc   : > { %v4680_v20 = vmax.f32 %v4652_v34, 0.0  ;;  %v4653_v28 = vadd.f32 %v8774_v11, %v4613_v44  ;;  %v4614_v37 = vadd.f32 %v4572_v2, %v9030_v55  ;;  %v4574_v58 = vadd.f32 %v4573_v3, %v4471_v49  ;;  %v4537_v36 = vpop.f32.mrf.mxu0 }
 0x2bd   : > { %v4577_v53 = vpop.f32.mrf.mxu1  ;;  %v4665_v62 = vmax.f32 %v4637_v26, 0.0  ;;  %v4538_v6 = vadd.f32 %v4537_v36, %v4435_v15  ;;  %v4638_v31 = vadd.f32 %v8772_v59, %v4598_v43  ;;  %v4599_v33 = vadd.f32 %v4534_v51, %v9031_v46  ;;  %v9035_v26 = vld [vmem:[#allocation16_spill] sm:$0xff]  ;;  %v9037_v51 = vld [vmem:[#allocation17_spill] sm:$0xff] }
 0x2be   : > { %v4681_v60 = vmax.f32 %v4653_v28, 0.0  ;;  %v4578_v14 = vadd.f32 %v4577_v53, %v4475_v16  ;;  %v4654_v12 = vadd.f32 %v8772_v59, %v4614_v37  ;;  %v4615_v22 = vadd.f32 %v4574_v58, %v9032_v17  ;;  %v4539_v21 = vpop.f32.mrf.mxu0  ;;  %v9033_v16 = vld [vmem:[#allocation15_spill] sm:$0xff] }
 0x2bf   : > { %v4579_v49 = vpop.f32.mrf.mxu1  ;;  %v5604_v30 = vpack.c.bf16 %v4665_v62, %v4664_v10  ;;  %v4600_v0 = vadd.f32 %v4538_v6, %v9033_v16  ;;  %v4666_v61 = vmax.f32 %v4638_v31, 0.0  ;;  %v4639_v25 = vadd.f32 %v8774_v11, %v4599_v33  ;;  %v9041_v16 = vld [vmem:[#allocation19_spill] sm:$0xff] }
 0x2c0   : > { %v5612_v15 = vpack.c.bf16 %v4681_v60, %v4680_v20  ;;  %v4616_v63 = vadd.f32 %v4578_v14, %v9034_v40  ;;  %v4682_v47 = vmax.f32 %v4654_v12, 0.0  ;;  %v4655_v38 = vadd.f32 %v8774_v11, %v4615_v22  ;;  %v4541_v41 = vpop.f32.mrf.mxu0  ;;  %v9042_v40 = vld [vmem:[#allocation7_spill] sm:$0xff] }
 0x2c1   : > { %v4581_v1 = vpop.f32.mrf.mxu1  ;;  %4776 = vst [vmem:[%s8818_s25] sm:$0xff] %v5604_v30  ;;  %v4640_v56 = vadd.f32 %v8772_v59, %v4600_v0  ;;  %v4540_v35 = vadd.f32 %v4539_v21, %v8776_v29  ;;  %v4580_v4 = vadd.f32 %v4579_v49, %v4477_v39  ;;  %v4667_v24 = vmax.f32 %v4639_v25, 0.0  ;;  %v9038_v39 = vld [vmem:[#allocation33_spill] sm:$0xff]  ;;  %v9039_v21 = vld [vmem:[#allocation18_spill] sm:$0xff]  ;;  %v9040_v30 = vld [vmem:[#allocation3_spill] sm:$0xff] }
 0x2c2   : > { %4784 = vst [vmem:[%s8818_s25 + $0x40] sm:$0xff] %v5612_v15  ;;  %v4656_v34 = vadd.f32 %v8772_v59, %v4616_v63  ;;  %v4683_v44 = vmax.f32 %v4655_v38, 0.0  ;;  %v4542_v52 = vadd.f32 %v4541_v41, %v8778_v45  ;;  %v4582_v2 = vadd.f32 %v4581_v1, %v4479_v13  ;;  %v4543_v18 = vpop.f32.mrf.mxu0 }
 0x2c3   : > { %v4583_v3 = vpop.f32.mrf.mxu1  ;;  %v4668_v10 = vmax.f32 %v4640_v56, 0.0  ;;  %v4601_v28 = vadd.f32 %v4540_v35, %v9035_v26  ;;  %v4617_v43 = vadd.f32 %v4580_v4, %v9036_v23  ;;  %v5605_v55 = vpack.c.bf16 %v4667_v24, %v4666_v61  ;;  %v9044_v26 = vld [vmem:[#allocation6_spill] sm:$0xff] }
 0x2c4   : > { %v4684_v20 = vmax.f32 %v4656_v34, 0.0  ;;  %v5613_v37 = vpack.c.bf16 %v4683_v44, %v4682_v47  ;;  %v4602_v29 = vadd.f32 %v4542_v52, %v9037_v51  ;;  %v4618_v58 = vadd.f32 %v4582_v2, %v9038_v39  ;;  %v4547_v36 = vpop.f32.mrf.mxu0 }
 0x2c5   : > { %v4587_v53 = vpop.f32.mrf.mxu1  ;;  %v4641_v45 = vadd.f32 %v8774_v11, %v4601_v28  ;;  %v4657_v13 = vadd.f32 %v8774_v11, %v4617_v43  ;;  %v4544_v62 = vadd.f32 %v4543_v18, %v8780_v7  ;;  %v4584_v60 = vadd.f32 %v4583_v3, %v8796_v50  ;;  %4777 = vst [vmem:[%s8818_s25 + $0x8] sm:$0xff] %v5605_v55  ;;  %v9045_v43 = vld [vmem:[#allocation21_spill] sm:$0xff] }
 0x2c6   : > { %4785 = vst [vmem:[%s8818_s25 + $0x48] sm:$0xff] %v5613_v37  ;;  %v4642_v6 = vadd.f32 %v8772_v59, %v4602_v29  ;;  %v4658_v14 = vadd.f32 %v8772_v59, %v4618_v58  ;;  %v4548_v31 = vadd.f32 %v4547_v36, %v8782_v9  ;;  %v4588_v12 = vadd.f32 %v4587_v53, %v8798_v54  ;;  %v4549_v46 = vpop.f32.mrf.mxu0  ;;  %v9046_v37 = vld [vmem:[#allocation5_spill] sm:$0xff] }
 0x2c7   : > { %v4589_v33 = vpop.f32.mrf.mxu1  ;;  %v4669_v17 = vmax.f32 %v4641_v45, 0.0  ;;  %v4685_v22 = vmax.f32 %v4657_v13, 0.0  ;;  %v4603_v49 = vadd.f32 %v4544_v62, %v9039_v21  ;;  %v4619_v7 = vadd.f32 %v4584_v60, %v9040_v30 }
 0x2c8   : > { %v4670_v50 = vmax.f32 %v4642_v6, 0.0  ;;  %v4686_v15 = vmax.f32 %v4658_v14, 0.0  ;;  %v4604_v0 = vadd.f32 %v4548_v31, %v9041_v16  ;;  %v4620_v63 = vadd.f32 %v4588_v12, %v9042_v40  ;;  %v4551_v61 = vpop.f32.mrf.mxu0  ;;  %v9047_v6 = vld [vmem:[#allocation22_spill] sm:$0xff]  ;;  %v9048_v31 = vld [vmem:[#allocation9_spill] sm:$0xff]  ;;  %v9049_v12 = vld [vmem:[#allocation8_spill] sm:$0xff] }
 0x2c9   : > { %v4591_v9 = vpop.f32.mrf.mxu1  ;;  %v5606_v47 = vpack.c.bf16 %v4669_v17, %v4668_v10  ;;  %v5614_v54 = vpack.c.bf16 %v4685_v22, %v4684_v20  ;;  %v4643_v25 = vadd.f32 %v8774_v11, %v4603_v49  ;;  %v4659_v38 = vadd.f32 %v8774_v11, %v4619_v7  ;;  %v9043_v10 = vld [vmem:[#allocation20_spill] sm:$0xff]  ;;  %v9051_v17 = vld [vmem:[#allocation2_spill] sm:$0xff]  ;;  %v9053_v49 = vld [vmem:[#allocation23_spill] sm:$0xff] }
 0x2ca   : > { %v4644_v41 = vadd.f32 %v8772_v59, %v4604_v0  ;;  %v4660_v1 = vadd.f32 %v8772_v59, %v4620_v63  ;;  %v4550_v56 = vadd.f32 %v4549_v46, %v8784_v19  ;;  %v4590_v34 = vadd.f32 %v4589_v33, %v8800_v8  ;;  %v4553_v35 = vpop.f32.mrf.mxu0  ;;  %v9050_v46 = vld [vmem:[#allocation10_spill] sm:$0xff]  ;;  %v9052_v22 = vld [vmem:[#allocation4_spill] sm:$0xff] }
 0x2cb   : > { %4778 = vst [vmem:[%s8818_s25 + $0x10] sm:$0xff] %v5606_v47  ;;  %4786 = vst [vmem:[%s8818_s25 + $0x50] sm:$0xff] %v5614_v54  ;;  %v4671_v4 = vmax.f32 %v4643_v25, 0.0  ;;  %v4687_v24 = vmax.f32 %v4659_v38, 0.0  ;;  %v4552_v44 = vadd.f32 %v4551_v61, %v8786_v5  ;;  %v4592_v52 = vadd.f32 %v4591_v9, %v8806_v42  ;;  %v4593_v2 = vpop.f32.mrf.mxu1 }
 0x2cc   : > { %v4672_v18 = vmax.f32 %v4644_v41, 0.0  ;;  %v4688_v3 = vmax.f32 %v4660_v1, 0.0  ;;  %v4605_v20 = vadd.f32 %v4550_v56, %v9043_v10  ;;  %v4621_v19 = vadd.f32 %v4590_v34, %v9044_v26  ;;  %v4557_v28 = vpop.f32.mrf.mxu0  ;;  %v9055_v56 = vld [vmem:[#allocation25_spill] sm:$0xff] }
 0x2cd   : > { %v5607_v8 = vpack.c.bf16 %v4671_v4, %v4670_v50  ;;  %v5615_v23 = vpack.c.bf16 %v4687_v24, %v4686_v15  ;;  %v4606_v55 = vadd.f32 %v4552_v44, %v9045_v43  ;;  %v4622_v51 = vadd.f32 %v4592_v52, %v9046_v37 }
 0x2ce   : > { %v4645_v5 = vadd.f32 %v8774_v11, %v4605_v20  ;;  %v4661_v42 = vadd.f32 %v8774_v11, %v4621_v19  ;;  %v4554_v29 = vadd.f32 %v4553_v35, %v8788_v27  ;;  %v4594_v39 = vadd.f32 %v4593_v2, %v8808_v48  ;;  %v4559_v58 = vpop.f32.mrf.mxu0  ;;  %v9056_v35 = vld [vmem:[#allocation26_spill] sm:$0xff] }
 0x2cf   : > { %4779 = vst [vmem:[%s8818_s25 + $0x18] sm:$0xff] %v5607_v8  ;;  %4787 = vst [vmem:[%s8818_s25 + $0x58] sm:$0xff] %v5615_v23  ;;  %v4646_v36 = vadd.f32 %v8772_v59, %v4606_v55  ;;  %v4662_v53 = vadd.f32 %v8772_v59, %v4622_v51  ;;  %v4558_v45 = vadd.f32 %v4557_v28, %v8790_v57  ;;  %v9054_v57 = vld [vmem:[#allocation24_spill] sm:$0xff] }
 0x2d0   : > { %v4560_v13 = vadd.f32 %v4559_v58, %v8792_v32  ;;  %v4673_v62 = vmax.f32 %v4645_v5, 0.0  ;;  %v4689_v60 = vmax.f32 %v4661_v42, 0.0  ;;  %v4607_v14 = vadd.f32 %v4554_v29, %v9047_v6  ;;  %v4561_v48 = vpop.f32.mrf.mxu0 }
 0x2d1   : > { %v4623_v27 = vadd.f32 %v4594_v39, %v9048_v31  ;;  %v4459_v33 = vadd.f32 %v9050_v46, %v9049_v12  ;;  %v4461_v21 = vadd.f32 %v9052_v22, %v9051_v17  ;;  %v4608_v30 = vadd.f32 %v4558_v45, %v9053_v49 }
 0x2d2   : > { %v4609_v7 = vadd.f32 %v4560_v13, %v9054_v57  ;;  %v5608_v32 = vpack.c.bf16 %v4673_v62, %v4672_v18  ;;  %v5616_v50 = vpack.c.bf16 %v4689_v60, %v4688_v3  ;;  %v4647_v15 = vadd.f32 %v8774_v11, %v4607_v14  ;;  %v4563_v0 = vpop.f32.mrf.mxu0 }
 0x2d3   : > { %v4663_v16 = vadd.f32 %v8774_v11, %v4623_v27  ;;  %v4648_v40 = vadd.f32 %v8772_v59, %v4608_v30  ;;  %v4562_v61 = vadd.f32 %v4561_v48, %v4459_v33  ;;  %v4564_v9 = vadd.f32 %v4563_v0, %v4461_v21 }
 0x2d4   : > { %v4649_v63 = vadd.f32 %v8774_v11, %v4609_v7  ;;  %4780 = vst [vmem:[%s8818_s25 + $0x20] sm:$0xff] %v5608_v32  ;;  %4788 = vst [vmem:[%s8818_s25 + $0x60] sm:$0xff] %v5616_v50  ;;  %v4674_v47 = vmax.f32 %v4646_v36, 0.0  ;;  %v4690_v54 = vmax.f32 %v4662_v53, 0.0  ;;  %v4675_v25 = vmax.f32 %v4647_v15, 0.0 }
 0x2d5   : > { %v4691_v38 = vmax.f32 %v4663_v16, 0.0  ;;  %v4676_v41 = vmax.f32 %v4648_v40, 0.0  ;;  %v4610_v34 = vadd.f32 %v4562_v61, %v9055_v56  ;;  %v4611_v4 = vadd.f32 %v4564_v9, %v9056_v35 }
 0x2d6   : > { %v4677_v1 = vmax.f32 %v4649_v63, 0.0  ;;  %v5609_v24 = vpack.c.bf16 %v4675_v25, %v4674_v47 }
 0x2d7   : > { %v5617_v44 = vpack.c.bf16 %v4691_v38, %v4690_v54  ;;  %v4650_v2 = vadd.f32 %v8772_v59, %v4610_v34  ;;  %v4651_v18 = vadd.f32 %v8774_v11, %v4611_v4 }
 0x2d8   : > { %v5610_v52 = vpack.c.bf16 %v4677_v1, %v4676_v41  ;;  %4781 = vst [vmem:[%s8818_s25 + $0x28] sm:$0xff] %v5609_v24 }
 0x2d9   : > { %4789 = vst [vmem:[%s8818_s25 + $0x68] sm:$0xff] %v5617_v44  ;;  %v4678_v3 = vmax.f32 %v4650_v2, 0.0  ;;  %v4679_v10 = vmax.f32 %v4651_v18, 0.0 }
 0x2da   : > { %4782 = vst [vmem:[%s8818_s25 + $0x30] sm:$0xff] %v5610_v52 }
 0x2db   : > { %v5611_v20 = vpack.c.bf16 %v4679_v10, %v4678_v3 }
 0x2dd   : > { %4783 = vst [vmem:[%s8818_s25 + $0x38] sm:$0xff] %v5611_v20 }
 0x2de PF: > { %s13_s12 = sadd.s32 1, %s6299_s12  }
 0x2df   : > { %p10_p4 = scmp.ge.s32.totalorder %s13_s12, 4  }
 0x2e1   :  { %12 = sbr.rel (!%p10_p4) target bundleno = 1 (0x1), region = 66 }

// kernel: alexnet_forward.11
= control target key start
LH: loop header
LB: loop body
LE: loop exit
PB: predicated region body
PF: predicated region fallthrough
CT: control target
= control target key end

     0   :  { %s6028_s12 = smov 0   ;;  %s7727_s0 = inlined_call_operand.vmem [shape: bf16[2,48,256], index: 0, kind: input, shape index: {}]   ;;  %s7728_s1 = inlined_call_operand.vmem [shape: bf16[3,768,384], index: 1, kind: input, shape index: {}]   ;;  %s7729_s2 = inlined_call_operand.vmem [shape: f32[1,384], index: 2, kind: input, shape index: {}]   ;;  %s7730_s3 = inlined_call_operand.vmem [shape: bf16[2,24,384], index: 3, kind: output, shape index: {}]  }
   0x1 LB: > { %s4281_s13 = sadd.s32 4294967295, %s6006_s12   ;;  %p4285_p0 = scmp.ge.s32.totalorder %s6006_s12, 1  ;;  %s6006_s12 = sphi %s6028_s12, %s13_s12  }
   0x2   : > { %p137_p1 = scmp.lt.s32.totalorder %s6006_s12, 3 }
   0x4   : > { %p138_p2 = pnand %p4285_p0, %p137_p1 }
   0x5   : > { %p161_p3 = scmp.lt.s32.totalorder (!%p138_p2), %s4281_s13, 1 }
   0x6   : > { %141 = sbr.rel (%p138_p2) target bundleno = 672 (0x2a0), region = 32 }
   0xb   : > { %v5408_v0 = vld [vmem:[%s7728_s1 + $0x52c] ss:$12 sps:$4 sm:$0xff]   ;;  %v5412_v2 = vld [vmem:[%s7728_s1 + $0x528] ss:$12 sps:$4 sm:$0xff]   ;;  %v5418_v6 = vld [vmem:[%s7728_s1 + $0x510] ss:$12 sps:$4 sm:$0xff]  }
   0xc   : > { %v5410_v1 = vld [vmem:[%s7728_s1 + $0x6ac] ss:$12 sps:$4 sm:$0xff]   ;;  %1492 = vmatprep.subr.bf16.mxu0 %v5408_v0  ;;  %v5413_v3 = vld [vmem:[%s7728_s1 + $0x6a8] ss:$12 sps:$4 sm:$0xff]   ;;  %v5419_v7 = vld [vmem:[%s7728_s1 + $0x690] ss:$12 sps:$4 sm:$0xff]  }
   0xd   : > { %1543 = vmatprep.subr.bf16.mxu1 %v5410_v1  ;;  %v5414_v4 = vld [vmem:[%s7728_s1 + $0x514] ss:$12 sps:$4 sm:$0xff]   ;;  %1493 = vmatpush1.bf16.msra.mxu0 %v5412_v2  ;;  %v5420_v8 = vld [vmem:[%s7728_s1 + $0x4fc] ss:$12 sps:$4 sm:$0xff]   ;;  %v5424_v10 = vld [vmem:[%s7728_s1 + $0x4f8] ss:$12 sps:$4 sm:$0xff]  }
   0xe   : > { %1544 = vmatpush1.bf16.msra.mxu1 %v5413_v3  ;;  %v5416_v5 = vld [vmem:[%s7728_s1 + $0x694] ss:$12 sps:$4 sm:$0xff]   ;;  %1494 = vmatprep.subr.bf16.mxu0 %v5414_v4  ;;  %v5422_v9 = vld [vmem:[%s7728_s1 + $0x67c] ss:$12 sps:$4 sm:$0xff]   ;;  %v5425_v11 = vld [vmem:[%s7728_s1 + $0x678] ss:$12 sps:$4 sm:$0xff]  }
   0xf   : > { %1545 = vmatprep.subr.bf16.mxu1 %v5416_v5  ;;  %v5426_v12 = vld [vmem:[%s7728_s1 + $0x4e4] ss:$12 sps:$4 sm:$0xff]   ;;  %v5430_v14 = vld [vmem:[%s7728_s1 + $0x4e0] ss:$12 sps:$4 sm:$0xff]   ;;  %v5436_v18 = vld [vmem:[%s7728_s1 + $0x4c8] ss:$12 sps:$4 sm:$0xff]  }
  0x10   : > { %v5428_v13 = vld [vmem:[%s7728_s1 + $0x664] ss:$12 sps:$4 sm:$0xff]   ;;  %v5431_v15 = vld [vmem:[%s7728_s1 + $0x660] ss:$12 sps:$4 sm:$0xff]   ;;  %v5437_v19 = vld [vmem:[%s7728_s1 + $0x648] ss:$12 sps:$4 sm:$0xff]  }
  0x11   : > { %1495 = vmatpush1.bf16.msra.mxu0 %v5418_v6  ;;  %v5432_v16 = vld [vmem:[%s7728_s1 + $0x4cc] ss:$12 sps:$4 sm:$0xff]   ;;  %v5438_v20 = vld [vmem:[%s7728_s1 + $0x4b4] ss:$12 sps:$4 sm:$0xff]   ;;  %v5442_v22 = vld [vmem:[%s7728_s1 + $0x4b0] ss:$12 sps:$4 sm:$0xff]  }
  0x12   : > { %1546 = vmatpush1.bf16.msra.mxu1 %v5419_v7  ;;  %1496 = vmatprep.subr.bf16.mxu0 %v5420_v8  ;;  %v5434_v17 = vld [vmem:[%s7728_s1 + $0x64c] ss:$12 sps:$4 sm:$0xff]   ;;  %v5440_v21 = vld [vmem:[%s7728_s1 + $0x634] ss:$12 sps:$4 sm:$0xff]   ;;  %v5443_v23 = vld [vmem:[%s7728_s1 + $0x630] ss:$12 sps:$4 sm:$0xff]  }
  0x13   : > { %1547 = vmatprep.subr.bf16.mxu1 %v5422_v9  ;;  %v5444_v24 = vld [vmem:[%s7728_s1 + $0x49c] ss:$12 sps:$4 sm:$0xff]   ;;  %v5448_v26 = vld [vmem:[%s7728_s1 + $0x498] ss:$12 sps:$4 sm:$0xff]   ;;  %v5454_v30 = vld [vmem:[%s7728_s1 + $0x480] ss:$12 sps:$4 sm:$0xff]  }
  0x14   : > { %v5446_v25 = vld [vmem:[%s7728_s1 + $0x61c] ss:$12 sps:$4 sm:$0xff]   ;;  %v5449_v27 = vld [vmem:[%s7728_s1 + $0x618] ss:$12 sps:$4 sm:$0xff]   ;;  %v5455_v31 = vld [vmem:[%s7728_s1 + $0x600] ss:$12 sps:$4 sm:$0xff]  }
  0x15   : > { %1497 = vmatpush1.bf16.msra.mxu0 %v5424_v10  ;;  %v5450_v28 = vld [vmem:[%s7728_s1 + $0x484] ss:$12 sps:$4 sm:$0xff]   ;;  %v5456_v32 = vld [vmem:[%s7728_s1 + $0x5ec] ss:$12 sps:$4 sm:$0xff]   ;;  %v5460_v34 = vld [vmem:[%s7728_s1 + $0x5e8] ss:$12 sps:$4 sm:$0xff]  }
  0x16   : > { %1548 = vmatpush1.bf16.msra.mxu1 %v5425_v11  ;;  %1498 = vmatprep.subr.bf16.mxu0 %v5426_v12  ;;  %v5452_v29 = vld [vmem:[%s7728_s1 + $0x604] ss:$12 sps:$4 sm:$0xff]   ;;  %v5458_v33 = vld [vmem:[%s7728_s1 + $0x76c] ss:$12 sps:$4 sm:$0xff]   ;;  %v5461_v35 = vld [vmem:[%s7728_s1 + $0x768] ss:$12 sps:$4 sm:$0xff]  }
  0x17   : > { %1549 = vmatprep.subr.bf16.mxu1 %v5428_v13  ;;  %s7732_s13 = smov (!%p161_p3, %s4281_s13), 1  ;;  %v5462_v36 = vld [vmem:[%s7728_s1 + $0x5d4] ss:$12 sps:$4 sm:$0xff]   ;;  %v5466_v38 = vld [vmem:[%s7728_s1 + $0x5d0] ss:$12 sps:$4 sm:$0xff]   ;;  %vm3047_vm1 = vcmask 1046528  }
  0x18   : > { %v5464_v37 = vld [vmem:[%s7728_s1 + $0x754] ss:$12 sps:$4 sm:$0xff]   ;;  %s5398_s17 = smul.u32 48, %s7732_s13  ;;  %v5467_v39 = vld [vmem:[%s7728_s1 + $0x750] ss:$12 sps:$4 sm:$0xff]  }
  0x19   : > { %1499 = vmatpush1.bf16.msra.mxu0 %v5430_v14  ;;  %v5468_v40 = vld [vmem:[%s7728_s1 + $0x5bc] ss:$12 sps:$4 sm:$0xff]   ;;  %v5472_v42 = vld [vmem:[%s7728_s1 + $0x5b8] ss:$12 sps:$4 sm:$0xff]   ;;  %v5478_v46 = vld [vmem:[%s7728_s1 + $0x5a0] ss:$12 sps:$4 sm:$0xff]  }
  0x1a   : > { %1550 = vmatpush1.bf16.msra.mxu1 %v5431_v15  ;;  %1500 = vmatprep.subr.bf16.mxu0 %v5432_v16  ;;  %v5470_v41 = vld [vmem:[%s7728_s1 + $0x73c] ss:$12 sps:$4 sm:$0xff]   ;;  %v5473_v43 = vld [vmem:[%s7728_s1 + $0x738] ss:$12 sps:$4 sm:$0xff]   ;;  %s6178_s30 = scalar_lea.vmem %s7727_s0, %s5398_s17  ;;  %v5479_v47 = vld [vmem:[%s7728_s1 + $0x720] ss:$12 sps:$4 sm:$0xff]  }
  0x1b   : > { %1551 = vmatprep.subr.bf16.mxu1 %v5434_v17  ;;  %v5474_v44 = vld [vmem:[%s7728_s1 + $0x5a4] ss:$12 sps:$4 sm:$0xff]   ;;  %v173_v49 = vld [vmem:[%s6178_s30 + $0x8] sm:$0xff]  ;;  %v175_v51 = vld [vmem:[%s6178_s30 + $0x18] sm:$0x11]  ;;  %s5399_s14 = smul.u32 36, %s7732_s13 }
  0x1c   : > { %v5476_v45 = vld [vmem:[%s7728_s1 + $0x724] ss:$12 sps:$4 sm:$0xff]   ;;  %vm621_vm0 = vsmask.f32 7424  ;;  %v6204_v54 = vld [vmem:[%s6178_s30 + $0x18] sm:$0xff] }
  0x1d   : > { %1501 = vmatpush1.bf16.msra.mxu0 %v5436_v18  ;;  %v172_v48 = vld [vmem:[%s6178_s30] sm:$0xff]  ;;  %v6195_v50 = vld [vmem:[%s6178_s30 + $0x10] sm:$0xff]  ;;  %v5480_v57 = vld [vmem:[%s7728_s1 + $0x58c] ss:$12 sps:$4 sm:$0xff]   ;;  %s7703_s17 = scalar_lea.vmem %s7730_s3, %s5399_s14 }
  0x1e   : > { %1552 = vmatpush1.bf16.msra.mxu1 %v5437_v19  ;;  %1502 = vmatprep.subr.bf16.mxu0 %v5438_v20  ;;  %v6198_v52 = vcombine.high %v172_v48, %v173_v49  ;;  %v6201_v53 = vcombine.high %v6195_v50, %v175_v51  ;;  %v177_v55 = vld [vmem:[%s6178_s30 + $0x20] sm:$0x11]  ;;  %v6208_v56 = vcombine.high %v173_v49, %v6195_v50  ;;  %v5482_v58 = vld [vmem:[%s7728_s1 + $0x70c] ss:$12 sps:$4 sm:$0xff]   ;;  %v5484_v60 = vld [vmem:[%s7728_s1 + $0x588] ss:$12 sps:$4 sm:$0xff]  }
  0x1f   : > { %1553 = vmatprep.subr.bf16.mxu1 %v5440_v21  ;;  %v6217_v59 = vcombine.high %v6204_v54, %v177_v55  ;;  %v5485_v61 = vld [vmem:[%s7728_s1 + $0x708] ss:$12 sps:$4 sm:$0xff]   ;;  %v6234_v5 = vcombine.low %v172_v48, %v173_v49  ;;  %v6242_v9 = vcombine.low %v173_v49, %v6195_v50  ;;  %v5490_v13 = vld [vmem:[%s7728_s1 + $0x570] ss:$12 sps:$4 sm:$0xff]   ;;  %v6251_v16 = vcombine.low %v6195_v50, %v175_v51  ;;  %v5520_v51 = vld [vmem:[%s7728_s1 + $0x5d8] ss:$12 sps:$4 sm:$0xff]  }
  0x20   : > { %v635_v62 = vshrl.u32 %v6198_v52, 16  ;;  %v637_v63 = vshll.u32 %v6198_v52, 16  ;;  %v642_v0 = vshll.u32 %v6201_v53, 16  ;;  %v5486_v1 = vld [vmem:[%s7728_s1 + $0x574] ss:$12 sps:$4 sm:$0xff]   ;;  %v659_v2 = vshrl.u32 %v6208_v56, 16 }
  0x21   : > { %1503 = vmatpush1.bf16.msra.mxu0 %v5442_v22  ;;  %v661_v3 = vshll.u32 %v6208_v56, 16  ;;  %v666_v4 = vshll.u32 %v6217_v59, 16  ;;  %v5488_v6 = vld [vmem:[%s7728_s1 + $0x6f4] ss:$12 sps:$4 sm:$0xff]   ;;  %v5491_v14 = vld [vmem:[%s7728_s1 + $0x6f0] ss:$12 sps:$4 sm:$0xff]   ;;  %v6256_v18 = vcombine.low %v6195_v50, %v6204_v54  ;;  %v6266_v21 = vcombine.low %v6204_v54, %v177_v55 }
  0x22   : > { %1554 = vmatpush1.bf16.msra.mxu1 %v5443_v23  ;;  %1504 = vmatprep.subr.bf16.mxu0 %v5444_v24  ;;  %v639_v7 = vrot.slane %v637_v63, 1  ;;  %v6239_v8 = vrot.slane %v642_v0, 1  ;;  %v625_v17 = vshll.u32 %v6234_v5, 16  ;;  %v5492_v19 = vld [vmem:[%s7728_s1 + $0x55c] ss:$12 sps:$4 sm:$0xff]   ;;  %v649_v22 = vshll.u32 %v6242_v9, 16 }
  0x23   : > { %1555 = vmatprep.subr.bf16.mxu1 %v5446_v25  ;;  %v663_v10 = vrot.slane %v661_v3, 1  ;;  %v668_v11 = vrot.slane %v666_v4, 1  ;;  %v5494_v23 = vld [vmem:[%s7728_s1 + $0x6dc] ss:$12 sps:$4 sm:$0xff]   ;;  %v5496_v25 = vld [vmem:[%s7728_s1 + $0x558] ss:$12 sps:$4 sm:$0xff]  }
  0x24   : > { %v640_v12 = vor.u32 %v639_v7, %v635_v62  ;;  %v5516_v48 = vld [vmem:[%s7728_s1 + $0x530] ss:$12 sps:$4 sm:$0xff]   ;;  %v5519_v49 = vld [vmem:[%s7728_s1 + $0x814] ss:$12 sps:$4 sm:$0xff]   ;;  %v694_v62 = vshrl.u32 %v6251_v16, 16 }
  0x25   : > { %1505 = vmatpush1.bf16.msra.mxu0 %v5448_v26  ;;  %v664_v15 = vor.u32 %v663_v10, %v659_v2  ;;  %v5497_v26 = vld [vmem:[%s7728_s1 + $0x6d8] ss:$12 sps:$4 sm:$0xff]   ;;  %v5517_v55 = vld [vmem:[%s7728_s1 + $0x810] ss:$12 sps:$4 sm:$0xff]   ;;  %v5525_v0 = vld [vmem:[%s7728_s1 + $0x5c0] ss:$12 sps:$4 sm:$0xff]  }
  0x26   : > { %1556 = vmatpush1.bf16.msra.mxu1 %v5449_v27  ;;  %1506 = vmatprep.subr.bf16.mxu0 %v5450_v28  ;;  %v6263_v20 = vsel %vm621_vm0, %v640_v12, %v6239_v8  ;;  %v623_v27 = vshrl.u32 %v6234_v5, 16  ;;  %v627_v28 = vrot.slane %v625_v17, 1  ;;  %v5524_v63 = vld [vmem:[%s7728_s1 + $0x7fc] ss:$12 sps:$4 sm:$0xff]   ;;  %v5526_v2 = vld [vmem:[%s7728_s1 + $0x500] ss:$12 sps:$4 sm:$0xff]  }
  0x27   : > { %1557 = vmatprep.subr.bf16.mxu1 %v5452_v29  ;;  %v6273_v24 = vsel %vm621_vm0, %v664_v15, %v668_v11  ;;  %1524 = vmatprep.mubr.bf16.mxu0 %v6263_v20  ;;  %v630_v29 = vshll.u32 %v6251_v16, 16  ;;  %v5530_v7 = vld [vmem:[%s7728_s1 + $0x5a8] ss:$12 sps:$4 sm:$0xff]   ;;  %v5535_v12 = vld [vmem:[%s7728_s1 + $0x590] ss:$12 sps:$4 sm:$0xff]  }
  0x28   : > { %1575 = vmatprep.mubr.bf16.mxu1 %v6273_v24  ;;  %v5531_v10 = vld [vmem:[%s7728_s1 + $0x4e8] ss:$12 sps:$4 sm:$0xff]   ;;  %v5540_v17 = vld [vmem:[%s7728_s1 + $0x578] ss:$12 sps:$4 sm:$0xff]  }
  0x29   : > { %1507 = vmatpush1.bf16.msra.mxu0 %v5454_v30  ;;  %v647_v30 = vshrl.u32 %v6242_v9, 16  ;;  %v5539_v15 = vld [vmem:[%s7728_s1 + $0x7b4] ss:$12 sps:$4 sm:$0xff]  }
  0x2a   : > { %1558 = vmatpush1.bf16.msra.mxu1 %v5455_v31  ;;  %1508 = vmatprep.subr.bf16.mxu0 %v5456_v32  ;;  %v651_v31 = vrot.slane %v649_v22, 1  ;;  %v654_v32 = vshll.u32 %v6266_v21, 16  ;;  %v5544_v22 = vld [vmem:[%s7728_s1 + $0x79c] ss:$12 sps:$4 sm:$0xff]  }
  0x2b   : > { %1559 = vmatprep.subr.bf16.mxu1 %v5458_v33  ;;  %v5498_v33 = vld [vmem:[%s7728_s1 + $0x544] ss:$12 sps:$4 sm:$0xff]  }
  0x2d   : > { %1509 = vmatpush2.bf16.msra.mxu0 %v5460_v34  ;;  %v5500_v34 = vld [vmem:[%s7728_s1 + $0x6c4] ss:$12 sps:$4 sm:$0xff]  }
  0x2e   : > { %1560 = vmatpush2.bf16.msra.mxu1 %v5461_v35  ;;  %1510 = vmatprep.subr.bf16.mxu0 %v5462_v36  ;;  %v5502_v35 = vld [vmem:[%s7728_s1 + $0x540] ss:$12 sps:$4 sm:$0xff]  }
  0x2f   : > { %1561 = vmatprep.subr.bf16.mxu1 %v5464_v37  ;;  %v5503_v36 = vld [vmem:[%s7728_s1 + $0x6c0] ss:$12 sps:$4 sm:$0xff]   ;;  %v628_v37 = vor.u32 %v627_v28, %v623_v27  ;;  %v5549_v27 = vld [vmem:[%s7728_s1 + $0x784] ss:$12 sps:$4 sm:$0xff]   ;;  %v5550_v28 = vld [vmem:[%s7728_s1 + $0x548] ss:$12 sps:$4 sm:$0xff]  }
  0x31   : > { %1511 = vmatpush2.bf16.msra.mxu0 %v5466_v38  ;;  %v632_v38 = vrot.slane %v630_v29, 1  ;;  %v6417_v29 = vcombine.high %v6195_v50, %v6204_v54  ;;  %v5555_v50 = vld [vmem:[%s7728_s1 + $0x770] ss:$12 sps:$4 sm:$0xff]  }
  0x32   : > { %1562 = vmatpush2.bf16.msra.mxu1 %v5467_v39  ;;  %1512 = vmatprep.subr.bf16.mxu0 %v5468_v40  ;;  %v652_v39 = vor.u32 %v651_v31, %v647_v30  ;;  %v656_v40 = vrot.slane %v654_v32, 1  ;;  %v5547_v30 = vld [vmem:[%s7728_s1 + $0x780] ss:$12 sps:$4 sm:$0xff]   ;;  %v5551_v31 = vld [vmem:[%s7728_s1 + $0x488] ss:$12 sps:$4 sm:$0xff]  }
  0x33   : > { %1563 = vmatprep.subr.bf16.mxu1 %v5470_v41  ;;  %v5514_v41 = vld [vmem:[%s7728_s1 + $0x82c] ss:$12 sps:$4 sm:$0xff]   ;;  %v6356_v4 = vor.u32 %v694_v62, %v632_v38  ;;  %v685_v54 = vshll.u32 %v6417_v29, 16 }
  0x34   : > { %v5554_v32 = vld [vmem:[%s7728_s1 + $0x8ec] ss:$12 sps:$4 sm:$0xff]  }
  0x35   : > { %1513 = vmatpush2.bf16.msra.mxu0 %v5472_v42  ;;  %v5515_v42 = vld [vmem:[%s7728_s1 + $0x5f0] ss:$12 sps:$4 sm:$0xff]   ;;  %v5574_v62 = vld [vmem:[%s7728_s1 + $0x88c] ss:$12 sps:$4 sm:$0xff]  }
  0x36   : > { %1564 = vmatpush2.bf16.msra.mxu1 %v5473_v43  ;;  %1514 = vmatprep.subr.bf16.mxu0 %v5474_v44  ;;  %v703_v43 = vshrl.u32 %v6217_v59, 16  ;;  %v5512_v44 = vld [vmem:[%s7728_s1 + $0x828] ss:$12 sps:$4 sm:$0xff]  }
  0x37   : > { %1565 = vmatprep.subr.bf16.mxu1 %v5476_v45  ;;  %v697_v45 = vshrl.u32 %v6201_v53, 16 }
  0x39   : > { %1515 = vmatpush2.bf16.msra.mxu0 %v5478_v46  ;;  %v6311_v46 = vsel %vm621_vm0, %v628_v37, %v632_v38  ;;  %v683_v37 = vshrl.u32 %v6417_v29, 16  ;;  %v687_v38 = vrot.slane %v685_v54, 1  ;;  %v5602_v54 = vld [vmem:[%s7728_s1 + $0x8d8] ss:$12 sps:$4 sm:$0xff]  }
  0x3a   : > { %1566 = vmatpush2.bf16.msra.mxu1 %v5479_v47  ;;  %1516 = vmatprep.subr.bf16.mxu0 %v5480_v57  ;;  %v6314_v47 = vsel %vm621_vm0, %v652_v39, %v656_v40  ;;  %v6328_v57 = vor.u32 %v703_v43, %v668_v11  ;;  %v5534_v11 = vld [vmem:[%s7728_s1 + $0x7cc] ss:$12 sps:$4 sm:$0xff]   ;;  %v5557_v39 = vld [vmem:[%s7728_s1 + $0x8d0] ss:$12 sps:$4 sm:$0xff]  }
  0x3b   : > { %1567 = vmatprep.subr.bf16.mxu1 %v5482_v58  ;;  %v6331_v58 = vor.u32 %v697_v45, %v6239_v8  ;;  %v5527_v8 = vld [vmem:[%s7728_s1 + $0x7e0] ss:$12 sps:$4 sm:$0xff]  }
  0x3c   : > { %v6459_v43 = vld [vmem:[%s6178_s30 + $0x24] ss:$8 sps:$4 sm:$0x1f]  }
  0x3d   : > { %1517 = vmatpush2.bf16.msra.mxu0 %v5484_v60  ;;  %v5521_v60 = vld [vmem:[%s7728_s1 + $0x518] ss:$12 sps:$4 sm:$0xff]   ;;  %v5566_v45 = vld [vmem:[%s7728_s1 + $0x680] ss:$12 sps:$4 sm:$0xff]  }
  0x3e   : > { %1568 = vmatpush2.bf16.msra.mxu1 %v5485_v61  ;;  %1518 = vmatprep.subr.bf16.mxu0 %v5486_v1  ;;  %v700_v61 = vshrl.u32 %v6266_v21, 16  ;;  %v5522_v1 = vld [vmem:[%s7728_s1 + $0x7f8] ss:$12 sps:$4 sm:$0xff]  }
  0x3f   : > { %1569 = vmatprep.subr.bf16.mxu1 %v5488_v6  ;;  %v5529_v6 = vld [vmem:[%s7728_s1 + $0x7e4] ss:$12 sps:$4 sm:$0xff]  }
  0x40   : > { %v6354_v3 = vor.u32 %v700_v61, %v656_v40  ;;  %v5561_v40 = vld [vmem:[%s7728_s1 + $0x698] ss:$12 sps:$4 sm:$0xff]  }
  0x41   : > { %1519 = vmatpush2.bf16.msra.mxu0 %v5490_v13  ;;  %v5532_v13 = vld [vmem:[%s7728_s1 + $0x7c8] ss:$12 sps:$4 sm:$0xff]  }
  0x42   : > { %1570 = vmatpush2.bf16.msra.mxu1 %v5491_v14  ;;  %1520 = vmatprep.subr.bf16.mxu0 %v5492_v19  ;;  %v5536_v14 = vld [vmem:[%s7728_s1 + $0x4d0] ss:$12 sps:$4 sm:$0xff]  }
  0x43   : > { %1571 = vmatprep.subr.bf16.mxu1 %v5494_v23  ;;  %v5537_v19 = vld [vmem:[%s7728_s1 + $0x7b0] ss:$12 sps:$4 sm:$0xff]   ;;  %v5545_v23 = vld [vmem:[%s7728_s1 + $0x560] ss:$12 sps:$4 sm:$0xff]  }
  0x45   : > { %1521 = vmatpush2.bf16.msra.mxu0 %v5496_v25  ;;  %v5542_v25 = vld [vmem:[%s7728_s1 + $0x798] ss:$12 sps:$4 sm:$0xff]  }
  0x46   : > { %1572 = vmatpush2.bf16.msra.mxu1 %v5497_v26  ;;  %1522 = vmatprep.subr.bf16.mxu0 %v5498_v33  ;;  %v5546_v26 = vld [vmem:[%s7728_s1 + $0x4a0] ss:$12 sps:$4 sm:$0xff]   ;;  %v5552_v33 = vld [vmem:[%s7728_s1 + $0x8e8] ss:$12 sps:$4 sm:$0xff]  }
  0x47   : > { %1573 = vmatprep.subr.bf16.mxu1 %v5500_v34  ;;  %v5556_v34 = vld [vmem:[%s7728_s1 + $0x6b0] ss:$12 sps:$4 sm:$0xff]  }
  0x49   : > { %1523 = vmatpush2.bf16.msra.mxu0 %v5502_v35  ;;  %v5559_v35 = vld [vmem:[%s7728_s1 + $0x8d4] ss:$12 sps:$4 sm:$0xff]  }
  0x4a   : > { %1574 = vmatpush2.bf16.msra.mxu1 %v5503_v36  ;;  %1594 = vmatprep.subr.bf16.mxu0 %v5514_v41  ;;  %v5560_v36 = vld [vmem:[%s7728_s1 + $0x758] ss:$12 sps:$4 sm:$0xff]   ;;  %v5564_v41 = vld [vmem:[%s7728_s1 + $0x8bc] ss:$12 sps:$4 sm:$0xff]  }
  0x4b   : > { %5130 = vmatprep.subr.bf16.mxu1 %v5515_v42  ;;  %v5565_v42 = vld [vmem:[%s7728_s1 + $0x740] ss:$12 sps:$4 sm:$0xff]  }
  0x4c   : > { %1525 = vmatmul.mubr.bf16.vlgmr.msra.gmra.mxu0 %v6311_v46 }
  0x4d   : > { %1576 = vmatmul.mubr.bf16.vlgmr.msra.gmra.mxu1 %v6314_v47  ;;  %1595 = vmatpush1.bf16.msra.mxu0 %v5512_v44  ;;  %v5562_v44 = vld [vmem:[%s7728_s1 + $0x8b8] ss:$12 sps:$4 sm:$0xff]  }
  0x4e   : > { %5131 = vmatpush3.bf16.msra.mxu1 %v5516_v48  ;;  %1596 = vmatprep.subr.bf16.mxu0 %v5519_v49  ;;  %v690_v48 = vshll.u32 %v6459_v43, 16  ;;  %v5569_v49 = vld [vmem:[%s7728_s1 + $0x8a4] ss:$12 sps:$4 sm:$0xff]  }
  0x4f   : > { %5132 = vmatprep.subr.bf16.mxu1 %v5520_v51  ;;  %1585 = vmatprep.mubr.bf16.mxu1 %v6328_v57  ;;  %v5570_v51 = vld [vmem:[%s7728_s1 + $0x728] ss:$12 sps:$4 sm:$0xff]  }
  0x50   : > { %1534 = vmatprep.mubr.bf16.mxu0 %v6331_v58 }
  0x51   : > { %1597 = vmatpush1.bf16.msra.mxu0 %v5517_v55  ;;  %v692_v55 = vrot.slane %v690_v48, 1  ;;  %v5621_v48 = vld [vmem:[%s7728_s1 + $0x7d0] ss:$12 sps:$4 sm:$0xff]  }
  0x52   : > { %5133 = vmatpush3.bf16.msra.mxu1 %v5521_v60  ;;  %1598 = vmatprep.subr.bf16.mxu0 %v5524_v63  ;;  %v5571_v60 = vld [vmem:[%s7728_s1 + $0x668] ss:$12 sps:$4 sm:$0xff]   ;;  %v5575_v63 = vld [vmem:[%s7728_s1 + $0x710] ss:$12 sps:$4 sm:$0xff]  }
  0x53   : > { %5134 = vmatprep.subr.bf16.mxu1 %v5525_v0  ;;  %v5572_v0 = vld [vmem:[%s7728_s1 + $0x888] ss:$12 sps:$4 sm:$0xff]  }
  0x54   : > { %1535 = vmatmul.mubr.bf16.gmra.mxu0 %v6356_v4 }
  0x55   : > { %1586 = vmatmul.mubr.bf16.gmra.mxu1 %v6354_v3  ;;  %1599 = vmatpush1.bf16.msra.mxu0 %v5522_v1  ;;  %v5576_v1 = vld [vmem:[%s7728_s1 + $0x650] ss:$12 sps:$4 sm:$0xff]  }
  0x56   : > { %5135 = vmatpush3.bf16.msra.mxu1 %v5526_v2  ;;  %1600 = vmatprep.subr.bf16.mxu0 %v5529_v6  ;;  %v5579_v2 = vld [vmem:[%s7728_s1 + $0x874] ss:$12 sps:$4 sm:$0xff]   ;;  %v673_v6 = vshll.u32 %v6256_v18, 16 }
  0x57   : > { %5136 = vmatprep.subr.bf16.mxu1 %v5530_v7  ;;  %1677 = vmatprep.mubr.bf16.mxu1 %v6263_v20  ;;  %v5541_v20 = vld [vmem:[%s7728_s1 + $0x4b8] ss:$12 sps:$4 sm:$0xff]  }
  0x58   : > { %v5581_v7 = vld [vmem:[%s7728_s1 + $0x638] ss:$12 sps:$4 sm:$0xff]  }
  0x59   : > { %1601 = vmatpush1.bf16.msra.mxu0 %v5527_v8  ;;  %v5594_v8 = vld [vmem:[%s6178_s30 + $0x20] ss:$8 sps:$4 sm:$0x1f]  }
  0x5a   : > { %5137 = vmatpush3.bf16.msra.mxu1 %v5531_v10  ;;  %1602 = vmatprep.subr.bf16.mxu0 %v5534_v11  ;;  %v5584_v10 = vld [vmem:[%s7728_s1 + $0x85c] ss:$12 sps:$4 sm:$0xff]   ;;  %v5585_v11 = vld [vmem:[%s7728_s1 + $0x6e0] ss:$12 sps:$4 sm:$0xff]  }
  0x5b   : > { %5138 = vmatprep.subr.bf16.mxu1 %v5535_v12  ;;  %v671_v12 = vshrl.u32 %v6256_v18, 16 }
  0x5d   : > { %1603 = vmatpush1.bf16.msra.mxu0 %v5532_v13  ;;  %v5582_v13 = vld [vmem:[%s7728_s1 + $0x858] ss:$12 sps:$4 sm:$0xff]  }
  0x5e   : > { %5139 = vmatpush3.bf16.msra.mxu1 %v5536_v14  ;;  %1604 = vmatprep.subr.bf16.mxu0 %v5539_v15  ;;  %v5586_v14 = vld [vmem:[%s7728_s1 + $0x620] ss:$12 sps:$4 sm:$0xff]   ;;  %v5589_v15 = vld [vmem:[%s7728_s1 + $0x844] ss:$12 sps:$4 sm:$0xff]  }
  0x5f   : > { %5140 = vmatprep.subr.bf16.mxu1 %v5540_v17  ;;  %v675_v17 = vrot.slane %v673_v6, 1  ;;  %v5642_v6 = vld [vmem:[%s7728_s1 + $0x22c] ss:$12 sps:$4 sm:$0xff]  }
  0x61   : > { %1605 = vmatpush1.bf16.msra.mxu0 %v5537_v19  ;;  %v678_v19 = vshll.u32 %v5594_v8, 16 }
  0x62   : > { %5141 = vmatpush3.bf16.msra.mxu1 %v5541_v20  ;;  %1606 = vmatprep.subr.bf16.mxu0 %v5544_v22  ;;  %v5590_v20 = vld [vmem:[%s7728_s1 + $0x6c8] ss:$12 sps:$4 sm:$0xff]   ;;  %v5587_v22 = vld [vmem:[%s7728_s1 + $0x840] ss:$12 sps:$4 sm:$0xff]  }
  0x63   : > { %5142 = vmatprep.subr.bf16.mxu1 %v5545_v23  ;;  %v5591_v23 = vld [vmem:[%s7728_s1 + $0x608] ss:$12 sps:$4 sm:$0xff]  }
  0x65   : > { %1607 = vmatpush1.bf16.msra.mxu0 %v5542_v25  ;;  %v676_v25 = vor.u32 %v675_v17, %v671_v12  ;;  %v5643_v12 = vld [vmem:[%s7728_s1 + $0x150] ss:$12 sps:$4 sm:$0xff]   ;;  %v5649_v17 = vld [vmem:[%s7728_s1 + $0x138] ss:$12 sps:$4 sm:$0xff]  }
  0x66   : > { %5143 = vmatpush3.bf16.msra.mxu1 %v5546_v26  ;;  %1608 = vmatprep.subr.bf16.mxu0 %v5549_v27  ;;  %v680_v26 = vrot.slane %v678_v19, 1  ;;  %v5597_v27 = vld [vmem:[%s7728_s1 + $0x8f0] ss:$12 sps:$4 sm:$0xff]   ;;  %v5652_v19 = vld [vmem:[%s7728_s1 + $0x1f8] ss:$12 sps:$4 sm:$0xff]  }
  0x67   : > { %5144 = vmatprep.subr.bf16.mxu1 %v5550_v28  ;;  %v5600_v28 = vld [vmem:[%s7728_s1 + $0xac] ss:$12 sps:$4 sm:$0xff]  }
  0x69   : > { %1609 = vmatpush1.bf16.msra.mxu0 %v5547_v30  ;;  %v709_v30 = vshrl.u32 %v6459_v43, 16  ;;  %v5613_v43 = vld [vmem:[%s7728_s1 + $0x60] ss:$12 sps:$4 sm:$0xff]  }
  0x6a   : > { %5145 = vmatpush3.bf16.msra.mxu1 %v5551_v31  ;;  %1610 = vmatprep.subr.bf16.mxu0 %v5554_v32  ;;  %v5598_v31 = vld [vmem:[%s7728_s1 + $0xa8] ss:$12 sps:$4 sm:$0xff]   ;;  %v5601_v32 = vld [vmem:[%s7728_s1 + $0x830] ss:$12 sps:$4 sm:$0xff]  }
  0x6b   : > { %5158 = vmatprep.subr.bf16.mxu1 %v5555_v50  ;;  %v6552_v50 = vsel %vm621_vm0, %v676_v25, %v680_v26  ;;  %v5658_v25 = vld [vmem:[%s7728_s1 + $0x1e0] ss:$12 sps:$4 sm:$0xff]  }
  0x6d   : > { %1678 = vmatmul.mubr.bf16.vlgmr.msra.gmra.mxu1 %v6311_v46  ;;  %1611 = vmatpush2.bf16.msra.mxu0 %v5552_v33  ;;  %v688_v46 = vor.u32 %v687_v38, %v683_v37  ;;  %v5605_v33 = vld [vmem:[%s7728_s1 + $0x94] ss:$12 sps:$4 sm:$0xff]   ;;  %v5606_v37 = vld [vmem:[%s7728_s1 + $0x818] ss:$12 sps:$4 sm:$0xff]  }
  0x6e   : > { %5159 = vmatpush3.bf16.msra.mxu1 %v5556_v34  ;;  %1612 = vmatprep.subr.bf16.mxu0 %v5559_v35  ;;  %v6560_v34 = vor.u32 %v709_v30, %v692_v55  ;;  %v5603_v35 = vld [vmem:[%s7728_s1 + $0x90] ss:$12 sps:$4 sm:$0xff]   ;;  %v5607_v38 = vld [vmem:[%s7728_s1 + $0x8c0] ss:$12 sps:$4 sm:$0xff]   ;;  %v5664_v30 = vld [vmem:[%s7728_s1 + $0x1c8] ss:$12 sps:$4 sm:$0xff]  }
  0x6f   : > { %5160 = vmatprep.subr.bf16.mxu1 %v5560_v36  ;;  %1685 = vmatprep.mubr.bf16.mxu1 %v6331_v58  ;;  %v5567_v58 = vld [vmem:[%s7728_s1 + $0x8a0] ss:$12 sps:$4 sm:$0xff]   ;;  %v6483_v61 = vsel %vm621_vm0, %v688_v46, %v692_v55  ;;  %v706_v36 = vshrl.u32 %v5594_v8, 16  ;;  %v5618_v46 = vld [vmem:[%s7728_s1 + $0x48] ss:$12 sps:$4 sm:$0xff]  }
  0x70   : > { %1626 = vmatprep.mubr.bf16.mxu0 %v6483_v61  ;;  %v5623_v55 = vld [vmem:[%s7728_s1 + $0x30] ss:$12 sps:$4 sm:$0xff]   ;;  %v5640_v8 = vld [vmem:[%s7728_s1 + $0x228] ss:$12 sps:$4 sm:$0xff]  }
  0x71   : > { %1613 = vmatpush2.bf16.msra.mxu0 %v5557_v39  ;;  %v6578_v39 = vor.u32 %v706_v36, %v680_v26  ;;  %v5663_v26 = vld [vmem:[%s7728_s1 + $0x10c] ss:$12 sps:$4 sm:$0xff]  }
  0x72   : > { %5161 = vmatpush3.bf16.msra.mxu1 %v5561_v40  ;;  %1614 = vmatprep.subr.bf16.mxu0 %v5564_v41  ;;  %v5608_v40 = vld [vmem:[%s7728_s1 + $0x78] ss:$12 sps:$4 sm:$0xff]   ;;  %v5611_v41 = vld [vmem:[%s7728_s1 + $0x800] ss:$12 sps:$4 sm:$0xff]  }
  0x73   : > { %5162 = vmatprep.subr.bf16.mxu1 %v5565_v42  ;;  %v5612_v42 = vld [vmem:[%s7728_s1 + $0x8a8] ss:$12 sps:$4 sm:$0xff]   ;;  %v5676_v36 = vld [vmem:[%s7728_s1 + $0x198] ss:$12 sps:$4 sm:$0xff]  }
  0x75   : > { %1686 = vmatmul.mubr.bf16.gmra.mxu1 %v6356_v4  ;;  %1615 = vmatpush2.bf16.msra.mxu0 %v5562_v44  ;;  %v5580_v4 = vld [vmem:[%s7728_s1 + $0x6f8] ss:$12 sps:$4 sm:$0xff]   ;;  %v5616_v44 = vld [vmem:[%s7728_s1 + $0x7e8] ss:$12 sps:$4 sm:$0xff]  }
  0x76   : > { %5163 = vmatpush3.bf16.msra.mxu1 %v5566_v45  ;;  %1616 = vmatprep.subr.bf16.mxu0 %v5569_v49  ;;  %v5617_v45 = vld [vmem:[%s7728_s1 + $0x890] ss:$12 sps:$4 sm:$0xff]   ;;  %v5622_v49 = vld [vmem:[%s7728_s1 + $0x878] ss:$12 sps:$4 sm:$0xff]  }
  0x77   : > { %5164 = vmatprep.subr.bf16.mxu1 %v5570_v51  ;;  %1725 = vmatprep.mubr.bf16.mxu1 %v6273_v24  ;;  %v5577_v24 = vld [vmem:[%s7728_s1 + $0x870] ss:$12 sps:$4 sm:$0xff]   ;;  %v5625_v51 = vld [vmem:[%s7728_s1 + $0x34] ss:$12 sps:$4 sm:$0xff]  }
  0x79   : > { %1617 = vmatpush2.bf16.msra.mxu0 %v5567_v58  ;;  %v5626_v58 = vld [vmem:[%s7728_s1 + $0x7b8] ss:$12 sps:$4 sm:$0xff]  }
  0x7a   : > { %5165 = vmatpush3.bf16.msra.mxu1 %v5571_v60  ;;  %1618 = vmatprep.subr.bf16.mxu0 %v5574_v62  ;;  %v5627_v60 = vld [vmem:[%s7728_s1 + $0x860] ss:$12 sps:$4 sm:$0xff]   ;;  %v5628_v62 = vld [vmem:[%s7728_s1 + $0x18] ss:$12 sps:$4 sm:$0xff]  }
  0x7b   : > { %5166 = vmatprep.subr.bf16.mxu1 %v5575_v63  ;;  %v5631_v63 = vld [vmem:[%s7728_s1 + $0x7a0] ss:$12 sps:$4 sm:$0xff]  }
  0x7d   : > { %1619 = vmatpush2.bf16.msra.mxu0 %v5572_v0  ;;  %v5632_v0 = vld [vmem:[%s7728_s1 + $0x848] ss:$12 sps:$4 sm:$0xff]  }
  0x7e   : > { %5167 = vmatpush3.bf16.msra.mxu1 %v5576_v1  ;;  %1620 = vmatprep.subr.bf16.mxu0 %v5579_v2  ;;  %v5635_v1 = vld [vmem:[%s7728_s1 + $0x4] ss:$12 sps:$4 sm:$0xff]   ;;  %v5633_v2 = vld [vmem:[%s7728_s1] ss:$12 sps:$4 sm:$0xff]  }
  0x7f   : > { %5168 = vmatprep.subr.bf16.mxu1 %v5580_v4  ;;  %v5636_v4 = vld [vmem:[%s7728_s1 + $0x788] ss:$12 sps:$4 sm:$0xff]  }
  0x81   : > { %1621 = vmatpush2.bf16.msra.mxu0 %v5577_v24  ;;  %v5639_v24 = vld [vmem:[%s7728_s1 + $0x16c] ss:$12 sps:$4 sm:$0xff]  }
  0x82   : > { %5169 = vmatpush3.bf16.msra.mxu1 %v5581_v7  ;;  %1622 = vmatprep.subr.bf16.mxu0 %v5584_v10  ;;  %v5637_v7 = vld [vmem:[%s7728_s1 + $0x168] ss:$12 sps:$4 sm:$0xff]  }
  0x83   : > { %5170 = vmatprep.subr.bf16.mxu1 %v5585_v11  ;;  %v5645_v10 = vld [vmem:[%s7728_s1 + $0x154] ss:$12 sps:$4 sm:$0xff]  }
  0x84   : > { %v5648_v11 = vld [vmem:[%s7728_s1 + $0x214] ss:$12 sps:$4 sm:$0xff]  }
  0x85   : > { %1623 = vmatpush2.bf16.msra.mxu0 %v5582_v13  ;;  %v5646_v13 = vld [vmem:[%s7728_s1 + $0x210] ss:$12 sps:$4 sm:$0xff]  }
  0x86   : > { %5171 = vmatpush3.bf16.msra.mxu1 %v5586_v14  ;;  %1624 = vmatprep.subr.bf16.mxu0 %v5589_v15  ;;  %v5651_v14 = vld [vmem:[%s7728_s1 + $0x13c] ss:$12 sps:$4 sm:$0xff]  }
  0x87   : > { %5172 = vmatprep.subr.bf16.mxu1 %v5590_v20  ;;  %v5654_v15 = vld [vmem:[%s7728_s1 + $0x1fc] ss:$12 sps:$4 sm:$0xff]   ;;  %v5657_v20 = vld [vmem:[%s7728_s1 + $0x124] ss:$12 sps:$4 sm:$0xff]  }
  0x89   : > { %1625 = vmatpush2.bf16.msra.mxu0 %v5587_v22  ;;  %v5660_v22 = vld [vmem:[%s7728_s1 + $0x1e4] ss:$12 sps:$4 sm:$0xff]  }
  0x8a   : > { %5173 = vmatpush3.bf16.msra.mxu1 %v5591_v23  ;;  %5186 = vmatprep.subr.bf16.mxu0 %v5597_v27  ;;  %v5655_v23 = vld [vmem:[%s7728_s1 + $0x120] ss:$12 sps:$4 sm:$0xff]  }
  0x8b   : > { %2557 = vmatprep.subr.bf16.mxu1 %v5600_v28  ;;  %v5666_v27 = vld [vmem:[%s7728_s1 + $0x1cc] ss:$12 sps:$4 sm:$0xff]   ;;  %v5661_v28 = vld [vmem:[%s7728_s1 + $0x108] ss:$12 sps:$4 sm:$0xff]  }
  0x8c   : > { %1627 = vmatmul.mubr.bf16.vlgmr.msra.gmra.mxu0 %v6552_v50 }
  0x8d   : > { %1726 = vmatmul.mubr.bf16.vlgmr.msra.gmra.mxu1 %v6314_v47  ;;  %5187 = vmatpush3.bf16.msra.mxu0 %v5601_v32  ;;  %v5610_v47 = vld [vmem:[%s7728_s1 + $0x7c] ss:$12 sps:$4 sm:$0xff]   ;;  %v5672_v32 = vld [vmem:[%s7728_s1 + $0x1b4] ss:$12 sps:$4 sm:$0xff]  }
  0x8e   : > { %2558 = vmatpush1.bf16.msra.mxu1 %v5598_v31  ;;  %5188 = vmatprep.subr.bf16.mxu0 %v5602_v54  ;;  %v5669_v31 = vld [vmem:[%s7728_s1 + $0xf4] ss:$12 sps:$4 sm:$0xff]   ;;  %v5670_v54 = vld [vmem:[%s7728_s1 + $0x1b0] ss:$12 sps:$4 sm:$0xff]  }
  0x8f   : > { %2559 = vmatprep.subr.bf16.mxu1 %v5605_v33  ;;  %1636 = vmatprep.mubr.bf16.mxu0 %v6560_v34  ;;  %v5675_v33 = vld [vmem:[%s7728_s1 + $0xdc] ss:$12 sps:$4 sm:$0xff]  }
  0x90   : > { %1733 = vmatprep.mubr.bf16.mxu1 %v6328_v57  ;;  %v5615_v57 = vld [vmem:[%s7728_s1 + $0x64] ss:$12 sps:$4 sm:$0xff]  }
  0x91   : > { %5189 = vmatpush3.bf16.msra.mxu0 %v5606_v37  ;;  %v5681_v37 = vld [vmem:[%s7728_s1 + $0xc4] ss:$12 sps:$4 sm:$0xff]  }
  0x92   : > { %2560 = vmatpush1.bf16.msra.mxu1 %v5603_v35  ;;  %5190 = vmatprep.subr.bf16.mxu0 %v5607_v38  ;;  %v5673_v35 = vld [vmem:[%s7728_s1 + $0xd8] ss:$12 sps:$4 sm:$0xff]  }
  0x93   : > { %2561 = vmatprep.subr.bf16.mxu1 %v5610_v47  ;;  %v5684_v38 = vld [vmem:[%s7728_s1 + $0x184] ss:$12 sps:$4 sm:$0xff]   ;;  %v5679_v47 = vld [vmem:[%s7728_s1 + $0xc0] ss:$12 sps:$4 sm:$0xff]  }
  0x94   : > { %1637 = vmatmul.mubr.bf16.gmra.mxu0 %v6578_v39 }
  0x95   : > { %1734 = vmatmul.mubr.bf16.gmra.mxu1 %v6354_v3  ;;  %5191 = vmatpush3.bf16.msra.mxu0 %v5611_v41  ;;  %v5620_v3 = vld [vmem:[%s7728_s1 + $0x4c] ss:$12 sps:$4 sm:$0xff]  }
  0x96   : > { %2562 = vmatpush1.bf16.msra.mxu1 %v5608_v40  ;;  %5192 = vmatprep.subr.bf16.mxu0 %v5612_v42  ;;  %v5687_v40 = vld [vmem:[%s7728_s1 + $0x2ec] ss:$12 sps:$4 sm:$0xff]   ;;  %v5685_v42 = vld [vmem:[%s7728_s1 + $0x2e8] ss:$12 sps:$4 sm:$0xff]  }
  0x97   : > { %2563 = vmatprep.subr.bf16.mxu1 %v5615_v57  ;;  %1773 = vmatprep.mubr.bf16.mxu0 %v6483_v61  ;;  %v5630_v61 = vld [vmem:[%s7728_s1 + $0x1c] ss:$12 sps:$4 sm:$0xff]   ;;  %v5690_v41 = vld [vmem:[%s7728_s1 + $0x3ac] ss:$12 sps:$4 sm:$0xff]  }
  0x98   : > { %2589 = vmatprep.mubr.bf16.mxu1 %v6198_v52  ;;  %v5688_v57 = vld [vmem:[%s7728_s1 + $0x3a8] ss:$12 sps:$4 sm:$0xff]  }
  0x99   : > { %5193 = vmatpush3.bf16.msra.mxu0 %v5616_v44  ;;  %v5696_v44 = vld [vmem:[%s7728_s1 + $0x394] ss:$12 sps:$4 sm:$0xff]  }
  0x9a   : > { %2564 = vmatpush1.bf16.msra.mxu1 %v5613_v43  ;;  %5194 = vmatprep.subr.bf16.mxu0 %v5617_v45  ;;  %v5693_v43 = vld [vmem:[%s7728_s1 + $0x2d4] ss:$12 sps:$4 sm:$0xff]   ;;  %v5691_v45 = vld [vmem:[%s7728_s1 + $0x2d0] ss:$12 sps:$4 sm:$0xff]  }
  0x9b   : > { %2565 = vmatprep.subr.bf16.mxu1 %v5620_v3  ;;  %v5694_v3 = vld [vmem:[%s7728_s1 + $0x390] ss:$12 sps:$4 sm:$0xff]  }
  0x9d   : > { %5195 = vmatpush3.bf16.msra.mxu0 %v5621_v48  ;;  %v5702_v48 = vld [vmem:[%s7728_s1 + $0x37c] ss:$12 sps:$4 sm:$0xff]  }
  0x9e   : > { %2566 = vmatpush1.bf16.msra.mxu1 %v5618_v46  ;;  %5196 = vmatprep.subr.bf16.mxu0 %v5622_v49  ;;  %v5699_v46 = vld [vmem:[%s7728_s1 + $0x2bc] ss:$12 sps:$4 sm:$0xff]   ;;  %v5697_v49 = vld [vmem:[%s7728_s1 + $0x2b8] ss:$12 sps:$4 sm:$0xff]  }
  0x9f   : > { %2567 = vmatprep.subr.bf16.mxu1 %v5625_v51  ;;  %v5700_v51 = vld [vmem:[%s7728_s1 + $0x378] ss:$12 sps:$4 sm:$0xff]  }
  0xa1   : > { %5197 = vmatpush3.bf16.msra.mxu0 %v5626_v58  ;;  %v5708_v58 = vld [vmem:[%s7728_s1 + $0x364] ss:$12 sps:$4 sm:$0xff]  }
  0xa2   : > { %2568 = vmatpush1.bf16.msra.mxu1 %v5623_v55  ;;  %5198 = vmatprep.subr.bf16.mxu0 %v5627_v60  ;;  %v5705_v55 = vld [vmem:[%s7728_s1 + $0x2a4] ss:$12 sps:$4 sm:$0xff]   ;;  %v5703_v60 = vld [vmem:[%s7728_s1 + $0x2a0] ss:$12 sps:$4 sm:$0xff]  }
  0xa3   : > { %2569 = vmatprep.subr.bf16.mxu1 %v5630_v61  ;;  %v5706_v61 = vld [vmem:[%s7728_s1 + $0x360] ss:$12 sps:$4 sm:$0xff]  }
  0xa5   : > { %5199 = vmatpush3.bf16.msra.mxu0 %v5631_v63  ;;  %v5714_v63 = vld [vmem:[%s7728_s1 + $0x34c] ss:$12 sps:$4 sm:$0xff]  }
  0xa6   : > { %2570 = vmatpush1.bf16.msra.mxu1 %v5628_v62  ;;  %5200 = vmatprep.subr.bf16.mxu0 %v5632_v0  ;;  %v5711_v62 = vld [vmem:[%s7728_s1 + $0x28c] ss:$12 sps:$4 sm:$0xff]   ;;  %v5709_v0 = vld [vmem:[%s7728_s1 + $0x288] ss:$12 sps:$4 sm:$0xff]  }
  0xa7   : > { %2571 = vmatprep.subr.bf16.mxu1 %v5635_v1  ;;  %v5712_v1 = vld [vmem:[%s7728_s1 + $0x348] ss:$12 sps:$4 sm:$0xff]  }
  0xa9   : > { %5201 = vmatpush3.bf16.msra.mxu0 %v5636_v4  ;;  %v5720_v4 = vld [vmem:[%s7728_s1 + $0x334] ss:$12 sps:$4 sm:$0xff]  }
  0xaa   : > { %2572 = vmatpush1.bf16.msra.mxu1 %v5633_v2  ;;  %2608 = vmatprep.subr.bf16.mxu0 %v5642_v6  ;;  %v5717_v2 = vld [vmem:[%s7728_s1 + $0x274] ss:$12 sps:$4 sm:$0xff]   ;;  %v5718_v6 = vld [vmem:[%s7728_s1 + $0x330] ss:$12 sps:$4 sm:$0xff]  }
  0xab   : > { %2573 = vmatprep.subr.bf16.mxu1 %v5639_v24  ;;  %v5715_v24 = vld [vmem:[%s7728_s1 + $0x270] ss:$12 sps:$4 sm:$0xff]  }
  0xac   : > { %1774 = vmatmul.mubr.bf16.vlgmr.msra.gmra.mxu0 %v6552_v50  ;;  %v5667_v50 = vld [vmem:[%s7728_s1 + $0xf0] ss:$12 sps:$4 sm:$0xff]  }
  0xad   : > { %2609 = vmatpush1.bf16.msra.mxu0 %v5640_v8  ;;  %1781 = vmatprep.mubr.bf16.mxu0 %v6560_v34  ;;  %v5678_v34 = vld [vmem:[%s7728_s1 + $0x19c] ss:$12 sps:$4 sm:$0xff]  }
  0xae   : > { %2574 = vmatpush2.bf16.msra.mxu1 %v5637_v7  ;;  %2610 = vmatprep.subr.bf16.mxu0 %v5648_v11  ;;  %v5723_v7 = vld [vmem:[%s7728_s1 + $0x25c] ss:$12 sps:$4 sm:$0xff]   ;;  %v5724_v11 = vld [vmem:[%s7728_s1 + $0x318] ss:$12 sps:$4 sm:$0xff]  }
  0xaf   : > { %2575 = vmatprep.subr.bf16.mxu1 %v5645_v10  ;;  %v5726_v8 = vld [vmem:[%s7728_s1 + $0x31c] ss:$12 sps:$4 sm:$0xff]   ;;  %v5721_v10 = vld [vmem:[%s7728_s1 + $0x258] ss:$12 sps:$4 sm:$0xff]  }
  0xb1   : > { %2611 = vmatpush1.bf16.msra.mxu0 %v5646_v13  ;;  %v5732_v13 = vld [vmem:[%s7728_s1 + $0x304] ss:$12 sps:$4 sm:$0xff]  }
  0xb2   : > { %2576 = vmatpush2.bf16.msra.mxu1 %v5643_v12  ;;  %2612 = vmatprep.subr.bf16.mxu0 %v5654_v15  ;;  %v5729_v12 = vld [vmem:[%s7728_s1 + $0x244] ss:$12 sps:$4 sm:$0xff]   ;;  %v5730_v15 = vld [vmem:[%s7728_s1 + $0x300] ss:$12 sps:$4 sm:$0xff]  }
  0xb3   : > { %2577 = vmatprep.subr.bf16.mxu1 %v5651_v14  ;;  %v5727_v14 = vld [vmem:[%s7728_s1 + $0x240] ss:$12 sps:$4 sm:$0xff]  }
  0xb4   : > { %1782 = vmatmul.mubr.bf16.gmra.mxu0 %v6578_v39  ;;  %v5682_v39 = vld [vmem:[%s7728_s1 + $0x180] ss:$12 sps:$4 sm:$0xff]  }
  0xb5   : > { %2613 = vmatpush1.bf16.msra.mxu0 %v5652_v19  ;;  %2640 = vmatprep.mubr.bf16.mxu0 %v6208_v56  ;;  %v5736_v19 = vld [vmem:[%s7728_s1 + $0x170] ss:$12 sps:$4 sm:$0xff]  }
  0xb6   : > { %2578 = vmatpush2.bf16.msra.mxu1 %v5649_v17  ;;  %2614 = vmatprep.subr.bf16.mxu0 %v5660_v22  ;;  %v5735_v17 = vld [vmem:[%s7728_s1 + $0x46c] ss:$12 sps:$4 sm:$0xff]   ;;  %v5737_v22 = vld [vmem:[%s7728_s1 + $0xb0] ss:$12 sps:$4 sm:$0xff]  }
  0xb7   : > { %2579 = vmatprep.subr.bf16.mxu1 %v5657_v20  ;;  %v5733_v20 = vld [vmem:[%s7728_s1 + $0x468] ss:$12 sps:$4 sm:$0xff]  }
  0xb9   : > { %2615 = vmatpush1.bf16.msra.mxu0 %v5658_v25  ;;  %v5741_v25 = vld [vmem:[%s7728_s1 + $0x158] ss:$12 sps:$4 sm:$0xff]  }
  0xba   : > { %2580 = vmatpush2.bf16.msra.mxu1 %v5655_v23  ;;  %2616 = vmatprep.subr.bf16.mxu0 %v5666_v27  ;;  %v5740_v23 = vld [vmem:[%s7728_s1 + $0x454] ss:$12 sps:$4 sm:$0xff]   ;;  %v5742_v27 = vld [vmem:[%s7728_s1 + $0x98] ss:$12 sps:$4 sm:$0xff]  }
  0xbb   : > { %2581 = vmatprep.subr.bf16.mxu1 %v5663_v26  ;;  %v5738_v26 = vld [vmem:[%s7728_s1 + $0x450] ss:$12 sps:$4 sm:$0xff]  }
  0xbd   : > { %2617 = vmatpush1.bf16.msra.mxu0 %v5664_v30  ;;  %v5746_v30 = vld [vmem:[%s7728_s1 + $0x140] ss:$12 sps:$4 sm:$0xff]  }
  0xbe   : > { %2582 = vmatpush2.bf16.msra.mxu1 %v5661_v28  ;;  %2618 = vmatprep.subr.bf16.mxu0 %v5672_v32  ;;  %v5745_v28 = vld [vmem:[%s7728_s1 + $0x43c] ss:$12 sps:$4 sm:$0xff]   ;;  %v5747_v32 = vld [vmem:[%s7728_s1 + $0x80] ss:$12 sps:$4 sm:$0xff]  }
  0xbf   : > { %2583 = vmatprep.subr.bf16.mxu1 %v5669_v31  ;;  %v5743_v31 = vld [vmem:[%s7728_s1 + $0x438] ss:$12 sps:$4 sm:$0xff]  }
  0xc1   : > { %2619 = vmatpush1.bf16.msra.mxu0 %v5670_v54  ;;  %v5751_v54 = vld [vmem:[%s7728_s1 + $0x128] ss:$12 sps:$4 sm:$0xff]  }
  0xc2   : > { %2584 = vmatpush2.bf16.msra.mxu1 %v5667_v50  ;;  %2620 = vmatprep.subr.bf16.mxu0 %v5678_v34  ;;  %v5750_v50 = vld [vmem:[%s7728_s1 + $0x424] ss:$12 sps:$4 sm:$0xff]   ;;  %v5752_v34 = vld [vmem:[%s7728_s1 + $0x68] ss:$12 sps:$4 sm:$0xff]  }
  0xc3   : > { %2585 = vmatprep.subr.bf16.mxu1 %v5675_v33  ;;  %v5748_v33 = vld [vmem:[%s7728_s1 + $0x420] ss:$12 sps:$4 sm:$0xff]  }
  0xc5   : > { %2621 = vmatpush1.bf16.msra.mxu0 %v5676_v36  ;;  %v5756_v36 = vld [vmem:[%s7728_s1 + $0x110] ss:$12 sps:$4 sm:$0xff]  }
  0xc6   : > { %2586 = vmatpush2.bf16.msra.mxu1 %v5673_v35  ;;  %2622 = vmatprep.subr.bf16.mxu0 %v5684_v38  ;;  %v5755_v35 = vld [vmem:[%s7728_s1 + $0x40c] ss:$12 sps:$4 sm:$0xff]   ;;  %v5757_v38 = vld [vmem:[%s7728_s1 + $0x50] ss:$12 sps:$4 sm:$0xff]  }
  0xc7   : > { %2587 = vmatprep.subr.bf16.mxu1 %v5681_v37  ;;  %v5753_v37 = vld [vmem:[%s7728_s1 + $0x408] ss:$12 sps:$4 sm:$0xff]  }
  0xc9   : > { %2623 = vmatpush1.bf16.msra.mxu0 %v5682_v39  ;;  %v5761_v39 = vld [vmem:[%s7728_s1 + $0xf8] ss:$12 sps:$4 sm:$0xff]  }
  0xca   : > { %2588 = vmatpush2.bf16.msra.mxu1 %v5679_v47  ;;  %2624 = vmatprep.subr.bf16.mxu0 %v5687_v40  ;;  %v5760_v47 = vld [vmem:[%s7728_s1 + $0x3f4] ss:$12 sps:$4 sm:$0xff]   ;;  %v5758_v40 = vld [vmem:[%s7728_s1 + $0x3f0] ss:$12 sps:$4 sm:$0xff]  }
  0xcb   : > { %2659 = vmatprep.subr.bf16.mxu1 %v5690_v41  ;;  %v5762_v41 = vld [vmem:[%s7728_s1 + $0x38] ss:$12 sps:$4 sm:$0xff]  }
  0xcd   : > { %2590 = vmatmul.mubr.bf16.vlgmr.msra.gmra.mxu1 %v6234_v5  ;;  %2625 = vmatpush2.bf16.msra.mxu0 %v5685_v42  ;;  %v5765_v42 = vld [vmem:[%s7728_s1 + $0x3dc] ss:$12 sps:$4 sm:$0xff]  }
  0xce   : > { %2660 = vmatpush1.bf16.msra.mxu1 %v5688_v57  ;;  %2626 = vmatprep.subr.bf16.mxu0 %v5693_v43  ;;  %v5766_v57 = vld [vmem:[%s7728_s1 + $0xe0] ss:$12 sps:$4 sm:$0xff]   ;;  %v5763_v43 = vld [vmem:[%s7728_s1 + $0x3d8] ss:$12 sps:$4 sm:$0xff]  }
  0xcf   : > { %2661 = vmatprep.subr.bf16.mxu1 %v5696_v44  ;;  %2599 = vmatprep.mubr.bf16.mxu1 %v6201_v53  ;;  %v5767_v44 = vld [vmem:[%s7728_s1 + $0x20] ss:$12 sps:$4 sm:$0xff]  }
  0xd1   : > { %2627 = vmatpush2.bf16.msra.mxu0 %v5691_v45  ;;  %v5770_v45 = vld [vmem:[%s7728_s1 + $0x3c4] ss:$12 sps:$4 sm:$0xff]  }
  0xd2   : > { %2662 = vmatpush1.bf16.msra.mxu1 %v5694_v3  ;;  %2628 = vmatprep.subr.bf16.mxu0 %v5699_v46  ;;  %v5771_v3 = vld [vmem:[%s7728_s1 + $0xc8] ss:$12 sps:$4 sm:$0xff]   ;;  %v5768_v46 = vld [vmem:[%s7728_s1 + $0x3c0] ss:$12 sps:$4 sm:$0xff]  }
  0xd3   : > { %2663 = vmatprep.subr.bf16.mxu1 %v5702_v48  ;;  %v5772_v48 = vld [vmem:[%s7728_s1 + $0x8] ss:$12 sps:$4 sm:$0xff]  }
  0xd5   : > { %2600 = vmatmul.mubr.bf16.gmra.mxu1 %v6251_v16  ;;  %2629 = vmatpush2.bf16.msra.mxu0 %v5697_v49  ;;  %v5773_v49 = vld [vmem:[%s7728_s1 + $0x2f0] ss:$12 sps:$4 sm:$0xff]  }
  0xd6   : > { %2664 = vmatpush1.bf16.msra.mxu1 %v5700_v51  ;;  %2630 = vmatprep.subr.bf16.mxu0 %v5705_v55  ;;  %v5774_v51 = vld [vmem:[%s7728_s1 + $0x470] ss:$12 sps:$4 sm:$0xff]  }
  0xd7   : > { %2665 = vmatprep.subr.bf16.mxu1 %v5708_v58  ;;  %2691 = vmatprep.mubr.bf16.mxu1 %v6417_v29  ;;  %v5775_v55 = vld [vmem:[%s7728_s1 + $0x230] ss:$12 sps:$4 sm:$0xff]  }
  0xd8   : > { %v5776_v58 = vld [vmem:[%s7728_s1 + $0x3b0] ss:$12 sps:$4 sm:$0xff]  }
  0xd9   : > { %2631 = vmatpush2.bf16.msra.mxu0 %v5703_v60  ;;  %v5777_v60 = vld [vmem:[%s7728_s1 + $0x2d8] ss:$12 sps:$4 sm:$0xff]  }
  0xda   : > { %2666 = vmatpush1.bf16.msra.mxu1 %v5706_v61  ;;  %2632 = vmatprep.subr.bf16.mxu0 %v5711_v62  ;;  %v5778_v61 = vld [vmem:[%s7728_s1 + $0x458] ss:$12 sps:$4 sm:$0xff]  }
  0xdb   : > { %2667 = vmatprep.subr.bf16.mxu1 %v5714_v63 }
  0xdd   : > { %2633 = vmatpush2.bf16.msra.mxu0 %v5709_v0  ;;  %v5779_v0 = vld [vmem:[%s7728_s1 + $0x218] ss:$12 sps:$4 sm:$0xff]  }
  0xde   : > { %2668 = vmatpush1.bf16.msra.mxu1 %v5712_v1  ;;  %2634 = vmatprep.subr.bf16.mxu0 %v5717_v2  ;;  %v5780_v2 = vld [vmem:[%s7728_s1 + $0x398] ss:$12 sps:$4 sm:$0xff]  }
  0xdf   : > { %2669 = vmatprep.subr.bf16.mxu1 %v5720_v4  ;;  %v5781_v4 = vld [vmem:[%s7728_s1 + $0x2c0] ss:$12 sps:$4 sm:$0xff]  }
  0xe1   : > { %2635 = vmatpush2.bf16.msra.mxu0 %v5715_v24 }
  0xe2   : > { %2670 = vmatpush1.bf16.msra.mxu1 %v5718_v6  ;;  %2636 = vmatprep.subr.bf16.mxu0 %v5723_v7  ;;  %v5782_v7 = vld [vmem:[%s7728_s1 + $0x440] ss:$12 sps:$4 sm:$0xff]  }
  0xe3   : > { %2671 = vmatprep.subr.bf16.mxu1 %v5726_v8 }
  0xe5   : > { %2637 = vmatpush2.bf16.msra.mxu0 %v5721_v10  ;;  %v6987_v10 = vld [vmem:[%s6178_s30 + $0x24] ss:$8 sps:$4 sm:$0x1f]  }
  0xe6   : > { %2672 = vmatpush1.bf16.msra.mxu1 %v5724_v11  ;;  %2638 = vmatprep.subr.bf16.mxu0 %v5729_v12 }
  0xe7   : > { %2673 = vmatprep.subr.bf16.mxu1 %v5732_v13  ;;  %v5783_v13 = vld [vmem:[%s7728_s1 + $0x200] ss:$12 sps:$4 sm:$0xff]  }
  0xe9   : > { %2639 = vmatpush2.bf16.msra.mxu0 %v5727_v14 }
  0xea   : > { %2674 = vmatpush1.bf16.msra.mxu1 %v5730_v15  ;;  %5214 = vmatprep.subr.bf16.mxu0 %v5736_v19  ;;  %v5784_v15 = vld [vmem:[%s7728_s1 + $0x380] ss:$12 sps:$4 sm:$0xff]  }
  0xeb   : > { %2675 = vmatprep.subr.bf16.mxu1 %v5735_v17  ;;  %v5785_v17 = vld [vmem:[%s7728_s1 + $0x2a8] ss:$12 sps:$4 sm:$0xff]  }
  0xec   : > { %2641 = vmatmul.mubr.bf16.vlgmr.msra.gmra.mxu0 %v6242_v9 }
  0xed   : > { %5215 = vmatpush3.bf16.msra.mxu0 %v5737_v22  ;;  %2650 = vmatprep.mubr.bf16.mxu0 %v6217_v59  ;;  %v5786_v22 = vld [vmem:[%s7728_s1 + $0x428] ss:$12 sps:$4 sm:$0xff]  }
  0xee   : > { %2676 = vmatpush2.bf16.msra.mxu1 %v5733_v20  ;;  %5216 = vmatprep.subr.bf16.mxu0 %v5741_v25  ;;  %v7008_v25 = vld [vmem:[%s6178_s30 + $0x20] ss:$8 sps:$4 sm:$0x1f]  }
  0xef   : > { %2677 = vmatprep.subr.bf16.mxu1 %v5740_v23 }
  0xf1   : > { %5217 = vmatpush3.bf16.msra.mxu0 %v5742_v27 }
  0xf2   : > { %2678 = vmatpush2.bf16.msra.mxu1 %v5738_v26  ;;  %5218 = vmatprep.subr.bf16.mxu0 %v5746_v30  ;;  %v5787_v26 = vld [vmem:[%s7728_s1 + $0x1e8] ss:$12 sps:$4 sm:$0xff]  }
  0xf3   : > { %2679 = vmatprep.subr.bf16.mxu1 %v5745_v28  ;;  %v5788_v30 = vld [vmem:[%s7728_s1 + $0x368] ss:$12 sps:$4 sm:$0xff]  }
  0xf4   : > { %2651 = vmatmul.mubr.bf16.gmra.mxu0 %v6266_v21 }
  0xf5   : > { %5219 = vmatpush3.bf16.msra.mxu0 %v5747_v32  ;;  %2742 = vmatprep.mubr.bf16.mxu0 %v6198_v52 }
  0xf6   : > { %2680 = vmatpush2.bf16.msra.mxu1 %v5743_v31  ;;  %5220 = vmatprep.subr.bf16.mxu0 %v5751_v54  ;;  %v5789_v31 = vld [vmem:[%s7728_s1 + $0x290] ss:$12 sps:$4 sm:$0xff]  }
  0xf7   : > { %2681 = vmatprep.subr.bf16.mxu1 %v5750_v50  ;;  %v5790_v50 = vld [vmem:[%s7728_s1 + $0x410] ss:$12 sps:$4 sm:$0xff]  }
  0xf9   : > { %5221 = vmatpush3.bf16.msra.mxu0 %v5752_v34 }
  0xfa   : > { %2682 = vmatpush2.bf16.msra.mxu1 %v5748_v33  ;;  %5222 = vmatprep.subr.bf16.mxu0 %v5756_v36 }
  0xfb   : > { %2683 = vmatprep.subr.bf16.mxu1 %v5755_v35  ;;  %v5791_v35 = vld [vmem:[%s7728_s1 + $0x1d0] ss:$12 sps:$4 sm:$0xff]  }
  0xfd   : > { %5223 = vmatpush3.bf16.msra.mxu0 %v5757_v38  ;;  %v5792_v38 = vld [vmem:[%s7728_s1 + $0x350] ss:$12 sps:$4 sm:$0xff]  }
  0xfe   : > { %2684 = vmatpush2.bf16.msra.mxu1 %v5753_v37  ;;  %5224 = vmatprep.subr.bf16.mxu0 %v5761_v39  ;;  %v5794_v39 = vld [vmem:[%s7728_s1 + $0x3f8] ss:$12 sps:$4 sm:$0xff]  }
  0xff   : > { %2685 = vmatprep.subr.bf16.mxu1 %v5760_v47  ;;  %v5793_v47 = vld [vmem:[%s7728_s1 + $0x278] ss:$12 sps:$4 sm:$0xff]  }
 0x101   : > { %5225 = vmatpush3.bf16.msra.mxu0 %v5762_v41 }
 0x102   : > { %2686 = vmatpush2.bf16.msra.mxu1 %v5758_v40  ;;  %5226 = vmatprep.subr.bf16.mxu0 %v5766_v57  ;;  %v5796_v57 = vld [vmem:[%s7728_s1 + $0x338] ss:$12 sps:$4 sm:$0xff]  }
 0x103   : > { %2687 = vmatprep.subr.bf16.mxu1 %v5765_v42  ;;  %v5795_v42 = vld [vmem:[%s7728_s1 + $0x1b8] ss:$12 sps:$4 sm:$0xff]  }
 0x105   : > { %5227 = vmatpush3.bf16.msra.mxu0 %v5767_v44  ;;  %v5798_v44 = vld [vmem:[%s7728_s1 + $0x3e0] ss:$12 sps:$4 sm:$0xff]  }
 0x106   : > { %2688 = vmatpush2.bf16.msra.mxu1 %v5763_v43  ;;  %5228 = vmatprep.subr.bf16.mxu0 %v5771_v3  ;;  %v5797_v43 = vld [vmem:[%s7728_s1 + $0x260] ss:$12 sps:$4 sm:$0xff]  }
 0x107   : > { %2689 = vmatprep.subr.bf16.mxu1 %v5770_v45  ;;  %v5799_v45 = vld [vmem:[%s7728_s1 + $0x1a0] ss:$12 sps:$4 sm:$0xff]  }
 0x108   : > { %v5800_v3 = vld [vmem:[%s7728_s1 + $0x320] ss:$12 sps:$4 sm:$0xff]  }
 0x109   : > { %5229 = vmatpush3.bf16.msra.mxu0 %v5772_v48  ;;  %v5802_v48 = vld [vmem:[%s7728_s1 + $0x3c8] ss:$12 sps:$4 sm:$0xff]  }
 0x10a   : > { %2690 = vmatpush2.bf16.msra.mxu1 %v5768_v46  ;;  %5242 = vmatprep.subr.bf16.mxu0 %v5773_v49  ;;  %v5801_v46 = vld [vmem:[%s7728_s1 + $0x248] ss:$12 sps:$4 sm:$0xff]  }
 0x10b   : > { %5270 = vmatprep.subr.bf16.mxu1 %v5774_v51  ;;  %v5803_v49 = vld [vmem:[%s7728_s1 + $0x188] ss:$12 sps:$4 sm:$0xff]  }
 0x10c   : > { %v1526_v62 = vpop.f32.mrf.mxu0  ;;  %2743 = vmatmul.mubr.bf16.vlgmr.msra.gmra.mxu0 %v6234_v5  ;;  %v5804_v51 = vld [vmem:[%s7728_s1 + $0x308] ss:$12 sps:$4 sm:$0xff]  }
 0x10d   : > { %v1577_v63 = vpop.f32.mrf.mxu1  ;;  %2692 = vmatmul.mubr.bf16.vlgmr.msra.gmra.mxu1 %v6256_v18  ;;  %5243 = vmatpush3.bf16.msra.mxu0 %v5775_v55  ;;  %v5807_v55 = vld [vmem:[%s7728_s1 + $0x9ac] ss:$12 sps:$4 sm:$0xff]  }
 0x10e   : > { %v6973_v1 = vadd.f32 %v1577_v63, %v1526_v62  ;;  %5271 = vmatpush3.bf16.msra.mxu1 %v5776_v58  ;;  %v1528_v24 = vpop.f32.mrf.mxu0  ;;  %5244 = vmatprep.subr.bf16.mxu0 %v5777_v60  ;;  %v5810_v58 = vld [vmem:[%s7728_s1 + $0xb2c] ss:$12 sps:$4 sm:$0xff]   ;;  %v5805_v60 = vld [vmem:[%s7728_s1 + $0x9a8] ss:$12 sps:$4 sm:$0xff]  }
 0x10f   : > { %v1579_v6 = vpop.f32.mrf.mxu1  ;;  %5272 = vmatprep.subr.bf16.mxu1 %v5778_v61  ;;  %2701 = vmatprep.mubr.bf16.mxu1 %v6987_v10  ;;  %v5808_v61 = vld [vmem:[%s7728_s1 + $0xb28] ss:$12 sps:$4 sm:$0xff]  }
 0x110   : > { %v6984_v8 = vadd.f32 %v1579_v6, %v1528_v24  ;;  %2750 = vmatprep.mubr.bf16.mxu0 %v6201_v53  ;;  %v1530_v11 = vpop.f32.mrf.mxu0  ;;  %v5813_v62 = vld [vmem:[%s7728_s1 + $0x994] ss:$12 sps:$4 sm:$0xff]   ;;  %v5819_v24 = vld [vmem:[%s7728_s1 + $0x97c] ss:$12 sps:$4 sm:$0xff]  }
 0x111   : > { %v1581_v12 = vpop.f32.mrf.mxu1  ;;  %5245 = vmatpush3.bf16.msra.mxu0 %v5779_v0  ;;  %v5816_v63 = vld [vmem:[%s7728_s1 + $0xb14] ss:$12 sps:$4 sm:$0xff]   ;;  %v5811_v0 = vld [vmem:[%s7728_s1 + $0x990] ss:$12 sps:$4 sm:$0xff]  }
 0x112   : > { %v6994_v14 = vadd.f32 %v1581_v12, %v1530_v11  ;;  %5273 = vmatpush3.bf16.msra.mxu1 %v5780_v2  ;;  %v1532_v19 = vpop.f32.mrf.mxu0  ;;  %5246 = vmatprep.subr.bf16.mxu0 %v5781_v4  ;;  %v5814_v4 = vld [vmem:[%s7728_s1 + $0xb10] ss:$12 sps:$4 sm:$0xff]   ;;  %v3051_v11 = vrot.slane %v6198_v52, 1  ;;  %v7106_v12 = vrot.slane %v6201_v53, 1  ;;  %v5820_v52 = vld [vmem:[%s7728_s1 + $0xaf8] ss:$12 sps:$4 sm:$0xff]  }
 0x113   : > { %v1583_v20 = vpop.f32.mrf.mxu1  ;;  %5274 = vmatprep.subr.bf16.mxu1 %v5782_v7  ;;  %v5822_v7 = vld [vmem:[%s7728_s1 + $0xafc] ss:$12 sps:$4 sm:$0xff]  }
 0x114   : > { %v7005_v23 = vadd.f32 %v1583_v20, %v1532_v19  ;;  %2751 = vmatmul.mubr.bf16.gmra.mxu0 %v6251_v16  ;;  %v1536_v28 = vpop.f32.mrf.mxu0  ;;  %v5817_v20 = vld [vmem:[%s7728_s1 + $0x978] ss:$12 sps:$4 sm:$0xff]  }
 0x115   : > { %2702 = vmatmul.mubr.bf16.gmra.mxu1 %v7008_v25  ;;  %v1587_v27 = vpop.f32.mrf.mxu1  ;;  %5247 = vmatpush3.bf16.msra.mxu0 %v5783_v13 }
 0x116   : > { %5275 = vmatpush3.bf16.msra.mxu1 %v5784_v15  ;;  %v7021_v32 = vadd.f32 %v1587_v27, %v1536_v28  ;;  %5248 = vmatprep.subr.bf16.mxu0 %v5785_v17  ;;  %v1538_v33 = vpop.f32.mrf.mxu0  ;;  %v3057_v15 = vrot.slane %v6208_v56, 1  ;;  %v7114_v17 = vrot.slane %v6217_v59, 1  ;;  %v7137_v28 = vsel %vm3047_vm1, %v3051_v11, %v7106_v12  ;;  %v5870_v11 = vld [vmem:[%s7728_s1 + $0xbbc] ss:$12 sps:$4 sm:$0xff]  }
 0x117   : > { %5276 = vmatprep.subr.bf16.mxu1 %v5786_v22  ;;  %v1589_v54 = vpop.f32.mrf.mxu1  ;;  %2790 = vmatprep.mubr.bf16.mxu0 %v6208_v56  ;;  %v5825_v56 = vld [vmem:[%s7728_s1 + $0x964] ss:$12 sps:$4 sm:$0xff]  }
 0x118   : > { %v7026_v34 = vadd.f32 %v1589_v54, %v1538_v33  ;;  %2838 = vmatprep.mubr.bf16.mxu1 %v6417_v29  ;;  %v1540_v37 = vpop.f32.mrf.mxu0  ;;  %v5829_v33 = vld [vmem:[%s7728_s1 + $0x948] ss:$12 sps:$4 sm:$0xff]  }
 0x119   : > { %v1591_v36 = vpop.f32.mrf.mxu1  ;;  %5249 = vmatpush3.bf16.msra.mxu0 %v5787_v26  ;;  %v5823_v26 = vld [vmem:[%s7728_s1 + $0x960] ss:$12 sps:$4 sm:$0xff]  }
 0x11a   : > { %5277 = vmatpush3.bf16.msra.mxu1 %v5788_v30  ;;  %5250 = vmatprep.subr.bf16.mxu0 %v5789_v31  ;;  %v1541_v41 = vpop.f32.mrf.mxu0  ;;  %v7141_v30 = vsel %vm3047_vm1, %v3057_v15, %v7114_v17  ;;  %v5826_v31 = vld [vmem:[%s7728_s1 + $0xae0] ss:$12 sps:$4 sm:$0xff]   ;;  %v5832_v36 = vld [vmem:[%s7728_s1 + $0xac8] ss:$12 sps:$4 sm:$0xff]  }
 0x11b   : > { %5278 = vmatprep.subr.bf16.mxu1 %v5790_v50  ;;  %v1592_v40 = vpop.f32.mrf.mxu1  ;;  %v5834_v50 = vld [vmem:[%s7728_s1 + $0xacc] ss:$12 sps:$4 sm:$0xff]   ;;  %v5838_v41 = vld [vmem:[%s7728_s1 + $0xab0] ss:$12 sps:$4 sm:$0xff]  }
 0x11c   : > { %v5835_v40 = vld [vmem:[%s7728_s1 + $0x930] ss:$12 sps:$4 sm:$0xff]  }
 0x11d   : > { %5251 = vmatpush3.bf16.msra.mxu0 %v5791_v35 }
 0x11e   : > { %5279 = vmatpush3.bf16.msra.mxu1 %v5792_v38  ;;  %5252 = vmatprep.subr.bf16.mxu0 %v5793_v47  ;;  %v5837_v38 = vld [vmem:[%s7728_s1 + $0x934] ss:$12 sps:$4 sm:$0xff]  }
 0x11f   : > { %5280 = vmatprep.subr.bf16.mxu1 %v5794_v39  ;;  %v5840_v47 = vld [vmem:[%s7728_s1 + $0xab4] ss:$12 sps:$4 sm:$0xff]  }
 0x121   : > { %5253 = vmatpush3.bf16.msra.mxu0 %v5795_v42  ;;  %v5843_v42 = vld [vmem:[%s7728_s1 + $0x91c] ss:$12 sps:$4 sm:$0xff]  }
 0x122   : > { %5281 = vmatpush3.bf16.msra.mxu1 %v5796_v57  ;;  %5254 = vmatprep.subr.bf16.mxu0 %v5797_v43  ;;  %v5846_v57 = vld [vmem:[%s7728_s1 + $0xa9c] ss:$12 sps:$4 sm:$0xff]   ;;  %v5841_v43 = vld [vmem:[%s7728_s1 + $0x918] ss:$12 sps:$4 sm:$0xff]  }
 0x123   : > { %5282 = vmatprep.subr.bf16.mxu1 %v5798_v44  ;;  %v5844_v44 = vld [vmem:[%s7728_s1 + $0xa98] ss:$12 sps:$4 sm:$0xff]  }
 0x125   : > { %5255 = vmatpush3.bf16.msra.mxu0 %v5799_v45  ;;  %v5849_v45 = vld [vmem:[%s7728_s1 + $0x904] ss:$12 sps:$4 sm:$0xff]  }
 0x126   : > { %5283 = vmatpush3.bf16.msra.mxu1 %v5800_v3  ;;  %5256 = vmatprep.subr.bf16.mxu0 %v5801_v46  ;;  %v5852_v3 = vld [vmem:[%s7728_s1 + $0xa84] ss:$12 sps:$4 sm:$0xff]   ;;  %v5847_v46 = vld [vmem:[%s7728_s1 + $0x900] ss:$12 sps:$4 sm:$0xff]  }
 0x127   : > { %5284 = vmatprep.subr.bf16.mxu1 %v5802_v48  ;;  %v5850_v48 = vld [vmem:[%s7728_s1 + $0xa80] ss:$12 sps:$4 sm:$0xff]  }
 0x129   : > { %5257 = vmatpush3.bf16.msra.mxu0 %v5803_v49  ;;  %v5855_v49 = vld [vmem:[%s7728_s1 + $0xa6c] ss:$12 sps:$4 sm:$0xff]  }
 0x12a   : > { %5285 = vmatpush3.bf16.msra.mxu1 %v5804_v51  ;;  %3846 = vmatprep.subr.bf16.mxu0 %v5807_v55  ;;  %v5858_v51 = vld [vmem:[%s7728_s1 + $0xbec] ss:$12 sps:$4 sm:$0xff]   ;;  %v5853_v55 = vld [vmem:[%s7728_s1 + $0xa68] ss:$12 sps:$4 sm:$0xff]  }
 0x12b   : > { %3897 = vmatprep.subr.bf16.mxu1 %v5810_v58  ;;  %v5856_v58 = vld [vmem:[%s7728_s1 + $0xbe8] ss:$12 sps:$4 sm:$0xff]  }
 0x12c   : > { %2791 = vmatmul.mubr.bf16.vlgmr.msra.gmra.mxu0 %v6242_v9 }
 0x12d   : > { %v5146_v2 = vpop.f32.mrf.mxu1  ;;  %2839 = vmatmul.mubr.bf16.vlgmr.msra.gmra.mxu1 %v6256_v18  ;;  %3847 = vmatpush1.bf16.msra.mxu0 %v5805_v60  ;;  %v5861_v60 = vld [vmem:[%s7728_s1 + $0xa54] ss:$12 sps:$4 sm:$0xff]  }
 0x12e   : > { %3898 = vmatpush1.bf16.msra.mxu1 %v5808_v61  ;;  %3848 = vmatprep.subr.bf16.mxu0 %v5813_v62  ;;  %v5864_v61 = vld [vmem:[%s7728_s1 + $0xbd4] ss:$12 sps:$4 sm:$0xff]   ;;  %v5859_v62 = vld [vmem:[%s7728_s1 + $0xa50] ss:$12 sps:$4 sm:$0xff]  }
 0x12f   : > { %v5147_v6 = vpop.f32.mrf.mxu1  ;;  %3899 = vmatprep.subr.bf16.mxu1 %v5816_v63  ;;  %2798 = vmatprep.mubr.bf16.mxu0 %v6217_v59  ;;  %v5828_v59 = vld [vmem:[%s7728_s1 + $0xae4] ss:$12 sps:$4 sm:$0xff]  }
 0x130   : > { %v7108_v13 = vadd.f32 %v5147_v6, %v5146_v2  ;;  %2846 = vmatprep.mubr.bf16.mxu1 %v6987_v10  ;;  %v5862_v2 = vld [vmem:[%s7728_s1 + $0xbd0] ss:$12 sps:$4 sm:$0xff]  }
 0x131   : > { %v5149_v19 = vpop.f32.mrf.mxu1  ;;  %3849 = vmatpush1.bf16.msra.mxu0 %v5811_v0 }
 0x132   : > { %3900 = vmatpush1.bf16.msra.mxu1 %v5814_v4  ;;  %3850 = vmatprep.subr.bf16.mxu0 %v5819_v24  ;;  %v5867_v24 = vld [vmem:[%s7728_s1 + $0xa3c] ss:$12 sps:$4 sm:$0xff]  }
 0x133   : > { %v5150_v53 = vpop.f32.mrf.mxu1  ;;  %3901 = vmatprep.subr.bf16.mxu1 %v5822_v7 }
 0x134   : > { %v7128_v22 = vadd.f32 %v5150_v53, %v5149_v19  ;;  %2799 = vmatmul.mubr.bf16.gmra.mxu0 %v6266_v21  ;;  %v5868_v53 = vld [vmem:[%s7728_s1 + $0xbb8] ss:$12 sps:$4 sm:$0xff]  }
 0x135   : > { %2847 = vmatmul.mubr.bf16.gmra.mxu1 %v7008_v25  ;;  %v5152_v27 = vpop.f32.mrf.mxu1  ;;  %3851 = vmatpush1.bf16.msra.mxu0 %v5817_v20  ;;  %v5831_v25 = vld [vmem:[%s7728_s1 + $0x94c] ss:$12 sps:$4 sm:$0xff]  }
 0x136   : > { %3902 = vmatpush1.bf16.msra.mxu1 %v5820_v52  ;;  %3852 = vmatprep.subr.bf16.mxu0 %v5825_v56 }
 0x137   : > { %3903 = vmatprep.subr.bf16.mxu1 %v5828_v59  ;;  %v5153_v54 = vpop.f32.mrf.mxu1  ;;  %3878 = vmatprep.mubr.bf16.mxu0 %v7137_v28 }
 0x138   : > { %v7155_v35 = vadd.f32 %v5153_v54, %v5152_v27  ;;  %3929 = vmatprep.mubr.bf16.mxu1 %v7141_v30 }
 0x139   : > { %v5155_v37 = vpop.f32.mrf.mxu1  ;;  %3853 = vmatpush1.bf16.msra.mxu0 %v5823_v26 }
 0x13a   : > { %3904 = vmatpush1.bf16.msra.mxu1 %v5826_v31  ;;  %3854 = vmatprep.subr.bf16.mxu0 %v5831_v25  ;;  %v5876_v31 = vld [vmem:[%s7728_s1 + $0xba4] ss:$12 sps:$4 sm:$0xff]  }
 0x13b   : > { %3905 = vmatprep.subr.bf16.mxu1 %v5834_v50  ;;  %v5156_v39 = vpop.f32.mrf.mxu1 }
 0x13c   : > { %v5882_v39 = vld [vmem:[%s7728_s1 + $0xb8c] ss:$12 sps:$4 sm:$0xff]  }
 0x13d   : > { %3855 = vmatpush1.bf16.msra.mxu0 %v5829_v33  ;;  %v5874_v33 = vld [vmem:[%s7728_s1 + $0xba0] ss:$12 sps:$4 sm:$0xff]  }
 0x13e   : > { %3906 = vmatpush1.bf16.msra.mxu1 %v5832_v36  ;;  %3856 = vmatprep.subr.bf16.mxu0 %v5837_v38 }
 0x13f   : > { %3907 = vmatprep.subr.bf16.mxu1 %v5840_v47 }
 0x141   : > { %3857 = vmatpush1.bf16.msra.mxu0 %v5835_v40 }
 0x142   : > { %3908 = vmatpush1.bf16.msra.mxu1 %v5838_v41  ;;  %3858 = vmatprep.subr.bf16.mxu0 %v5843_v42  ;;  %v5880_v41 = vld [vmem:[%s7728_s1 + $0xb88] ss:$12 sps:$4 sm:$0xff]  }
 0x143   : > { %3909 = vmatprep.subr.bf16.mxu1 %v5846_v57 }
 0x145   : > { %3859 = vmatpush1.bf16.msra.mxu0 %v5841_v43 }
 0x146   : > { %3910 = vmatpush1.bf16.msra.mxu1 %v5844_v44  ;;  %3860 = vmatprep.subr.bf16.mxu0 %v5849_v45  ;;  %v5888_v44 = vld [vmem:[%s7728_s1 + $0xb74] ss:$12 sps:$4 sm:$0xff]  }
 0x147   : > { %3911 = vmatprep.subr.bf16.mxu1 %v5852_v3 }
 0x149   : > { %3861 = vmatpush1.bf16.msra.mxu0 %v5847_v46  ;;  %v5883_v46 = vld [vmem:[%s7728_s1 + $0x9f0] ss:$12 sps:$4 sm:$0xff]  }
 0x14a   : > { %3912 = vmatpush1.bf16.msra.mxu1 %v5850_v48  ;;  %3862 = vmatprep.subr.bf16.mxu0 %v5855_v49  ;;  %v5891_v48 = vld [vmem:[%s7728_s1 + $0x9dc] ss:$12 sps:$4 sm:$0xff]  }
 0x14b   : > { %3913 = vmatprep.subr.bf16.mxu1 %v5858_v51  ;;  %v5894_v49 = vld [vmem:[%s7728_s1 + $0xb5c] ss:$12 sps:$4 sm:$0xff]   ;;  %v5889_v51 = vld [vmem:[%s7728_s1 + $0x9d8] ss:$12 sps:$4 sm:$0xff]  }
 0x14c   : > { %v1628_v63 = vpop.f32.mrf.mxu0 }
 0x14d   : > { %v5174_v0 = vpop.f32.mrf.mxu1  ;;  %v7223_v4 = vadd.f32 %v1628_v63, %v6973_v1  ;;  %3863 = vmatpush2.bf16.msra.mxu0 %v5853_v55  ;;  %v5865_v1 = vld [vmem:[%s7728_s1 + $0xa38] ss:$12 sps:$4 sm:$0xff]   ;;  %v5895_v63 = vld [vmem:[%s7728_s1 + $0x9c0] ss:$12 sps:$4 sm:$0xff]  }
 0x14e   : > { %3914 = vmatpush2.bf16.msra.mxu1 %v5856_v58  ;;  %v1630_v6 = vpop.f32.mrf.mxu0  ;;  %3864 = vmatprep.subr.bf16.mxu0 %v5861_v60  ;;  %v5892_v55 = vld [vmem:[%s7728_s1 + $0xb58] ss:$12 sps:$4 sm:$0xff]  }
 0x14f   : > { %v5175_v7 = vpop.f32.mrf.mxu1  ;;  %3915 = vmatprep.subr.bf16.mxu1 %v5864_v61  ;;  %v7232_v15 = vadd.f32 %v1630_v6, %v6984_v8  ;;  %v5873_v8 = vld [vmem:[%s7728_s1 + $0xa24] ss:$12 sps:$4 sm:$0xff]   ;;  %v3048_v61 = vrot.slane %v6234_v5, 1  ;;  %v5903_v5 = vld [vmem:[%s7728_s1 + $0xcac] ss:$12 sps:$4 sm:$0xff]  }
 0x150   : > { %v5176_v19 = vadd.f32 %v5175_v7, %v5174_v0  ;;  %v1632_v20 = vpop.f32.mrf.mxu0  ;;  %v5897_v58 = vld [vmem:[%s7728_s1 + $0x9c4] ss:$12 sps:$4 sm:$0xff]   ;;  %v5898_v0 = vld [vmem:[%s7728_s1 + $0xb40] ss:$12 sps:$4 sm:$0xff]  }
 0x151   : > { %v5177_v52 = vpop.f32.mrf.mxu1  ;;  %v7244_v59 = vadd.f32 %v1632_v20, %v6994_v14  ;;  %3865 = vmatpush2.bf16.msra.mxu0 %v5859_v62  ;;  %v5871_v14 = vld [vmem:[%s7728_s1 + $0xa20] ss:$12 sps:$4 sm:$0xff]   ;;  %v5900_v60 = vld [vmem:[%s7728_s1 + $0xb44] ss:$12 sps:$4 sm:$0xff]   ;;  %v7317_v62 = vrot.slane %v6251_v16, 1 }
 0x152   : > { %v7241_v56 = vadd.f32 %v5176_v19, %v7108_v13  ;;  %3916 = vmatpush2.bf16.msra.mxu1 %v5862_v2  ;;  %v1634_v26 = vpop.f32.mrf.mxu0  ;;  %3866 = vmatprep.subr.bf16.mxu0 %v5867_v24  ;;  %v3054_v2 = vrot.slane %v6242_v9, 1  ;;  %v7327_v24 = vrot.slane %v6266_v21, 1  ;;  %v5904_v16 = vld [vmem:[%s7728_s1 + $0xa70] ss:$12 sps:$4 sm:$0xff]   ;;  %v5901_v21 = vld [vmem:[%s7728_s1 + $0xca8] ss:$12 sps:$4 sm:$0xff]  }
 0x153   : > { %v5178_v27 = vpop.f32.mrf.mxu1  ;;  %3917 = vmatprep.subr.bf16.mxu1 %v5870_v11  ;;  %v7253_v13 = vadd.f32 %v1634_v26, %v7005_v23  ;;  %v5879_v23 = vld [vmem:[%s7728_s1 + $0xa0c] ss:$12 sps:$4 sm:$0xff]   ;;  %v7337_v6 = vsel %vm3047_vm1, %v3048_v61, %v7317_v62  ;;  %v5905_v7 = vld [vmem:[%s7728_s1 + $0x9b0] ss:$12 sps:$4 sm:$0xff]   ;;  %v5908_v11 = vld [vmem:[%s7728_s1 + $0xc94] ss:$12 sps:$4 sm:$0xff]  }
 0x154   : > { %v5179_v25 = vadd.f32 %v5178_v27, %v5177_v52  ;;  %v1638_v50 = vpop.f32.mrf.mxu0  ;;  %v7341_v9 = vsel %vm3047_vm1, %v3054_v2, %v7327_v24  ;;  %v5909_v19 = vld [vmem:[%s7728_s1 + $0xa58] ss:$12 sps:$4 sm:$0xff]   ;;  %v5906_v20 = vld [vmem:[%s7728_s1 + $0xc90] ss:$12 sps:$4 sm:$0xff]   ;;  %v5914_v26 = vld [vmem:[%s7728_s1 + $0xa40] ss:$12 sps:$4 sm:$0xff]  }
 0x155   : > { %v5180_v54 = vpop.f32.mrf.mxu1  ;;  %v7265_v37 = vadd.f32 %v1638_v50, %v7021_v32  ;;  %3867 = vmatpush2.bf16.msra.mxu0 %v5865_v1  ;;  %v5877_v32 = vld [vmem:[%s7728_s1 + $0xa08] ss:$12 sps:$4 sm:$0xff]   ;;  %v5910_v52 = vld [vmem:[%s7728_s1 + $0x998] ss:$12 sps:$4 sm:$0xff]  }
 0x156   : > { %v7262_v36 = vadd.f32 %v5179_v25, %v7128_v22  ;;  %3918 = vmatpush2.bf16.msra.mxu1 %v5868_v53  ;;  %v1640_v38 = vpop.f32.mrf.mxu0  ;;  %3868 = vmatprep.subr.bf16.mxu0 %v5873_v8  ;;  %v5913_v8 = vld [vmem:[%s7728_s1 + $0xc7c] ss:$12 sps:$4 sm:$0xff]   ;;  %v3063_v25 = vrot.slane %v6417_v29, 1  ;;  %v5918_v29 = vld [vmem:[%s7728_s1 + $0xc64] ss:$12 sps:$4 sm:$0xff]  }
 0x157   : > { %v5181_v47 = vpop.f32.mrf.mxu1  ;;  %3919 = vmatprep.subr.bf16.mxu1 %v5876_v31  ;;  %v7274_v22 = vadd.f32 %v1640_v38, %v7026_v34  ;;  %v5885_v34 = vld [vmem:[%s7728_s1 + $0x9f4] ss:$12 sps:$4 sm:$0xff]   ;;  %v5943_v2 = vld [vmem:[%s7728_s1 + $0xd6c] ss:$12 sps:$4 sm:$0xff]  }
 0x158   : > { %v5182_v40 = vadd.f32 %v5181_v47, %v5180_v54  ;;  %v1642_v42 = vpop.f32.mrf.mxu0  ;;  %v5911_v54 = vld [vmem:[%s7728_s1 + $0xc78] ss:$12 sps:$4 sm:$0xff]   ;;  %v5939_v61 = vld [vmem:[%s7728_s1 + $0x9c8] ss:$12 sps:$4 sm:$0xff]  }
 0x159   : > { %v5183_v57 = vpop.f32.mrf.mxu1  ;;  %3869 = vmatpush2.bf16.msra.mxu0 %v5871_v14  ;;  %v7373_v14 = vrot.slane %v6987_v10, 1  ;;  %v5919_v10 = vld [vmem:[%s7728_s1 + $0xa28] ss:$12 sps:$4 sm:$0xff]   ;;  %v5923_v42 = vld [vmem:[%s7728_s1 + $0xc4c] ss:$12 sps:$4 sm:$0xff]  }
 0x15a   : > { %v7283_v43 = vadd.f32 %v5182_v40, %v7155_v35  ;;  %3920 = vmatpush2.bf16.msra.mxu1 %v5874_v33  ;;  %3870 = vmatprep.subr.bf16.mxu0 %v5879_v23  ;;  %v1643_v45 = vpop.f32.mrf.mxu0  ;;  %v5886_v35 = vld [vmem:[%s7728_s1 + $0xb70] ss:$12 sps:$4 sm:$0xff]   ;;  %v5915_v33 = vld [vmem:[%s7728_s1 + $0x980] ss:$12 sps:$4 sm:$0xff]  }
 0x15b   : > { %3921 = vmatprep.subr.bf16.mxu1 %v5882_v39  ;;  %v5184_v3 = vpop.f32.mrf.mxu1  ;;  %v7394_v47 = vsel %vm3047_vm1, %v3063_v25, %v7373_v14  ;;  %v5916_v40 = vld [vmem:[%s7728_s1 + $0xc60] ss:$12 sps:$4 sm:$0xff]   ;;  %v5921_v45 = vld [vmem:[%s7728_s1 + $0xc48] ss:$12 sps:$4 sm:$0xff]  }
 0x15c   : > { %v5925_v3 = vld [vmem:[%s7728_s1 + $0x950] ss:$12 sps:$4 sm:$0xff]   ;;  %v5955_v25 = vld [vmem:[%s7728_s1 + $0xb00] ss:$12 sps:$4 sm:$0xff]  }
 0x15d   : > { %3871 = vmatpush2.bf16.msra.mxu0 %v5877_v32  ;;  %v5920_v32 = vld [vmem:[%s7728_s1 + $0x968] ss:$12 sps:$4 sm:$0xff]  }
 0x15e   : > { %3922 = vmatpush2.bf16.msra.mxu1 %v5880_v41  ;;  %3872 = vmatprep.subr.bf16.mxu0 %v5885_v34 }
 0x15f   : > { %3923 = vmatprep.subr.bf16.mxu1 %v5888_v44 }
 0x161   : > { %3873 = vmatpush2.bf16.msra.mxu0 %v5883_v46 }
 0x162   : > { %3924 = vmatpush2.bf16.msra.mxu1 %v5886_v35  ;;  %3874 = vmatprep.subr.bf16.mxu0 %v5891_v48  ;;  %v5926_v35 = vld [vmem:[%s7728_s1 + $0xc30] ss:$12 sps:$4 sm:$0xff]   ;;  %v5930_v48 = vld [vmem:[%s7728_s1 + $0x938] ss:$12 sps:$4 sm:$0xff]  }
 0x163   : > { %3925 = vmatprep.subr.bf16.mxu1 %v5894_v49  ;;  %v5933_v49 = vld [vmem:[%s7728_s1 + $0xc1c] ss:$12 sps:$4 sm:$0xff]  }
 0x165   : > { %3875 = vmatpush2.bf16.msra.mxu0 %v5889_v51  ;;  %v5934_v51 = vld [vmem:[%s7728_s1 + $0x9e0] ss:$12 sps:$4 sm:$0xff]  }
 0x166   : > { %3926 = vmatpush2.bf16.msra.mxu1 %v5892_v55  ;;  %3876 = vmatprep.subr.bf16.mxu0 %v5897_v58  ;;  %v5931_v55 = vld [vmem:[%s7728_s1 + $0xc18] ss:$12 sps:$4 sm:$0xff]   ;;  %v5935_v58 = vld [vmem:[%s7728_s1 + $0x920] ss:$12 sps:$4 sm:$0xff]  }
 0x167   : > { %3927 = vmatprep.subr.bf16.mxu1 %v5900_v60  ;;  %v5938_v60 = vld [vmem:[%s7728_s1 + $0xc04] ss:$12 sps:$4 sm:$0xff]  }
 0x169   : > { %3877 = vmatpush2.bf16.msra.mxu0 %v5895_v63  ;;  %v5936_v63 = vld [vmem:[%s7728_s1 + $0xc00] ss:$12 sps:$4 sm:$0xff]  }
 0x16a   : > { %3928 = vmatpush2.bf16.msra.mxu1 %v5898_v0  ;;  %3948 = vmatprep.subr.bf16.mxu0 %v5903_v5  ;;  %v5940_v0 = vld [vmem:[%s7728_s1 + $0x908] ss:$12 sps:$4 sm:$0xff]   ;;  %v5944_v5 = vld [vmem:[%s7728_s1 + $0xbf0] ss:$12 sps:$4 sm:$0xff]  }
 0x16b   : > { %5298 = vmatprep.subr.bf16.mxu1 %v5904_v16  ;;  %v5941_v16 = vld [vmem:[%s7728_s1 + $0xd68] ss:$12 sps:$4 sm:$0xff]  }
 0x16c   : > { %v5202_v1 = vpop.f32.mrf.mxu0  ;;  %3879 = vmatmul.mubr.bf16.vlgmr.msra.gmra.mxu0 %v7337_v6 }
 0x16d   : > { %3930 = vmatmul.mubr.bf16.vlgmr.msra.gmra.mxu1 %v7341_v9  ;;  %3949 = vmatpush1.bf16.msra.mxu0 %v5901_v21  ;;  %v5945_v21 = vld [vmem:[%s7728_s1 + $0xb30] ss:$12 sps:$4 sm:$0xff]  }
 0x16e   : > { %5299 = vmatpush3.bf16.msra.mxu1 %v5905_v7  ;;  %v5203_v53 = vpop.f32.mrf.mxu0  ;;  %3950 = vmatprep.subr.bf16.mxu0 %v5908_v11  ;;  %v5948_v7 = vld [vmem:[%s7728_s1 + $0xd54] ss:$12 sps:$4 sm:$0xff]   ;;  %v5949_v11 = vld [vmem:[%s7728_s1 + $0xbd8] ss:$12 sps:$4 sm:$0xff]  }
 0x16f   : > { %5300 = vmatprep.subr.bf16.mxu1 %v5909_v19  ;;  %v5204_v27 = vadd.f32 %v5203_v53, %v5202_v1  ;;  %3939 = vmatprep.mubr.bf16.mxu1 %v7114_v17 }
 0x170   : > { %3888 = vmatprep.mubr.bf16.mxu0 %v7106_v12  ;;  %v5205_v31 = vpop.f32.mrf.mxu0 }
 0x171   : > { %v7376_v50 = vadd.f32 %v5204_v27, %v7241_v56  ;;  %3951 = vmatpush1.bf16.msra.mxu0 %v5906_v20  ;;  %v5946_v20 = vld [vmem:[%s7728_s1 + $0xd50] ss:$12 sps:$4 sm:$0xff]  }
 0x172   : > { %5301 = vmatpush3.bf16.msra.mxu1 %v5910_v52  ;;  %v5206_v23 = vpop.f32.mrf.mxu0  ;;  %3952 = vmatprep.subr.bf16.mxu0 %v5913_v8  ;;  %v5950_v52 = vld [vmem:[%s7728_s1 + $0xb18] ss:$12 sps:$4 sm:$0xff]  }
 0x173   : > { %5302 = vmatprep.subr.bf16.mxu1 %v5914_v26  ;;  %v5207_v56 = vadd.f32 %v5206_v23, %v5205_v31  ;;  %v5951_v31 = vld [vmem:[%s7728_s1 + $0xd38] ss:$12 sps:$4 sm:$0xff]  }
 0x174   : > { %v5208_v38 = vpop.f32.mrf.mxu0  ;;  %3889 = vmatmul.mubr.bf16.gmra.mxu0 %v7317_v62 }
 0x175   : > { %3940 = vmatmul.mubr.bf16.gmra.mxu1 %v7327_v24  ;;  %v7397_v39 = vadd.f32 %v5207_v56, %v7262_v36  ;;  %3953 = vmatpush1.bf16.msra.mxu0 %v5911_v54  ;;  %v5924_v36 = vld [vmem:[%s7728_s1 + $0xa10] ss:$12 sps:$4 sm:$0xff]  }
 0x176   : > { %5303 = vmatpush3.bf16.msra.mxu1 %v5915_v33  ;;  %v5209_v41 = vpop.f32.mrf.mxu0  ;;  %3954 = vmatprep.subr.bf16.mxu0 %v5918_v29  ;;  %v5956_v29 = vld [vmem:[%s7728_s1 + $0xd20] ss:$12 sps:$4 sm:$0xff]  }
 0x177   : > { %5304 = vmatprep.subr.bf16.mxu1 %v5919_v10  ;;  %v5210_v57 = vadd.f32 %v5209_v41, %v5208_v38  ;;  %4031 = vmatprep.mubr.bf16.mxu1 %v7137_v28  ;;  %v5928_v28 = vld [vmem:[%s7728_s1 + $0xc34] ss:$12 sps:$4 sm:$0xff]  }
 0x178   : > { %3980 = vmatprep.mubr.bf16.mxu0 %v7394_v47  ;;  %v5211_v34 = vpop.f32.mrf.mxu0  ;;  %v5960_v10 = vld [vmem:[%s7728_s1 + $0xae8] ss:$12 sps:$4 sm:$0xff]  }
 0x179   : > { %v7414_v44 = vadd.f32 %v5210_v57, %v7283_v43  ;;  %3955 = vmatpush1.bf16.msra.mxu0 %v5916_v40  ;;  %v5929_v43 = vld [vmem:[%s7728_s1 + $0x9f8] ss:$12 sps:$4 sm:$0xff]   ;;  %v5961_v40 = vld [vmem:[%s7728_s1 + $0xd08] ss:$12 sps:$4 sm:$0xff]   ;;  %v5974_v34 = vld [vmem:[%s7728_s1 + $0xb60] ss:$12 sps:$4 sm:$0xff]  }
 0x17a   : > { %5305 = vmatpush3.bf16.msra.mxu1 %v5920_v32  ;;  %3956 = vmatprep.subr.bf16.mxu0 %v5923_v42  ;;  %v5212_v46 = vpop.f32.mrf.mxu0  ;;  %v5965_v32 = vld [vmem:[%s7728_s1 + $0xad0] ss:$12 sps:$4 sm:$0xff]  }
 0x17b   : > { %5306 = vmatprep.subr.bf16.mxu1 %v5924_v36  ;;  %v5966_v42 = vld [vmem:[%s7728_s1 + $0xcf0] ss:$12 sps:$4 sm:$0xff]   ;;  %v5970_v36 = vld [vmem:[%s7728_s1 + $0xab8] ss:$12 sps:$4 sm:$0xff]   ;;  %v5976_v46 = vld [vmem:[%s7728_s1 + $0xcc0] ss:$12 sps:$4 sm:$0xff]  }
 0x17c   : > { %v5973_v57 = vld [vmem:[%s7728_s1 + $0xcdc] ss:$12 sps:$4 sm:$0xff]  }
 0x17d   : > { %3957 = vmatpush1.bf16.msra.mxu0 %v5921_v45  ;;  %v5971_v45 = vld [vmem:[%s7728_s1 + $0xcd8] ss:$12 sps:$4 sm:$0xff]  }
 0x17e   : > { %5307 = vmatpush3.bf16.msra.mxu1 %v5925_v3  ;;  %3958 = vmatprep.subr.bf16.mxu0 %v5928_v28  ;;  %v5975_v3 = vld [vmem:[%s7728_s1 + $0xaa0] ss:$12 sps:$4 sm:$0xff]   ;;  %v5978_v28 = vld [vmem:[%s7728_s1 + $0xcc4] ss:$12 sps:$4 sm:$0xff]  }
 0x17f   : > { %5308 = vmatprep.subr.bf16.mxu1 %v5929_v43  ;;  %v5979_v43 = vld [vmem:[%s7728_s1 + $0xb48] ss:$12 sps:$4 sm:$0xff]  }
 0x181   : > { %3959 = vmatpush1.bf16.msra.mxu0 %v5926_v35  ;;  %v5980_v35 = vld [vmem:[%s7728_s1 + $0xa88] ss:$12 sps:$4 sm:$0xff]  }
 0x182   : > { %5309 = vmatpush3.bf16.msra.mxu1 %v5930_v48  ;;  %3960 = vmatprep.subr.bf16.mxu0 %v5933_v49  ;;  %v3060_v48 = vrot.slane %v6256_v18, 1  ;;  %v5999_v49 = vld [vmem:[%s6178_s30 + $0x20] ss:$8 sps:$4 sm:$0x1f]   ;;  %v5983_v18 = vld [vmem:[%s7728_s1 + $0xd58] ss:$12 sps:$4 sm:$0xff]  }
 0x183   : > { %5310 = vmatprep.subr.bf16.mxu1 %v5934_v51  ;;  %v7578_v51 = vrot.slane %v5999_v49, 1 }
 0x185   : > { %3961 = vmatpush1.bf16.msra.mxu0 %v5931_v55  ;;  %v5981_v55 = vld [vmem:[%s7728_s1 + $0xd70] ss:$12 sps:$4 sm:$0xff]  }
 0x186   : > { %5311 = vmatpush3.bf16.msra.mxu1 %v5935_v58  ;;  %3962 = vmatprep.subr.bf16.mxu0 %v5938_v60  ;;  %v7585_v58 = vsel %vm3047_vm1, %v3060_v48, %v7578_v51  ;;  %v5982_v60 = vld [vmem:[%s7728_s1 + $0xcb0] ss:$12 sps:$4 sm:$0xff]  }
 0x187   : > { %5312 = vmatprep.subr.bf16.mxu1 %v5939_v61 }
 0x189   : > { %3963 = vmatpush1.bf16.msra.mxu0 %v5936_v63 }
 0x18a   : > { %5313 = vmatpush3.bf16.msra.mxu1 %v5940_v0  ;;  %3964 = vmatprep.subr.bf16.mxu0 %v5943_v2  ;;  %v5984_v0 = vld [vmem:[%s7728_s1 + $0xc98] ss:$12 sps:$4 sm:$0xff]  }
 0x18b   : > { %5326 = vmatprep.subr.bf16.mxu1 %v5944_v5  ;;  %v5985_v5 = vld [vmem:[%s7728_s1 + $0xd40] ss:$12 sps:$4 sm:$0xff]  }
 0x18d   : > { %v2591_v19 = vpop.f32.mrf.mxu1  ;;  %4032 = vmatmul.mubr.bf16.vlgmr.msra.gmra.mxu1 %v7337_v6  ;;  %3965 = vmatpush2.bf16.msra.mxu0 %v5941_v16  ;;  %v5953_v6 = vld [vmem:[%s7728_s1 + $0xd3c] ss:$12 sps:$4 sm:$0xff]  }
 0x18e   : > { %v7478_v1 = vadd.f32 %v2591_v19, %v7223_v4  ;;  %5327 = vmatpush3.bf16.msra.mxu1 %v5945_v21  ;;  %3966 = vmatprep.subr.bf16.mxu0 %v5948_v7  ;;  %v5954_v4 = vld [vmem:[%s7728_s1 + $0xbc0] ss:$12 sps:$4 sm:$0xff]   ;;  %v5987_v19 = vld [vmem:[%s7728_s1 + $0xd28] ss:$12 sps:$4 sm:$0xff]  }
 0x18f   : > { %v2593_v53 = vpop.f32.mrf.mxu1  ;;  %5328 = vmatprep.subr.bf16.mxu1 %v5949_v11  ;;  %4039 = vmatprep.mubr.bf16.mxu1 %v7106_v12  ;;  %v5958_v12 = vld [vmem:[%s7728_s1 + $0xd24] ss:$12 sps:$4 sm:$0xff]   ;;  %v5986_v7 = vld [vmem:[%s7728_s1 + $0xc80] ss:$12 sps:$4 sm:$0xff]  }
 0x190   : > { %v7493_v8 = vadd.f32 %v2593_v53, %v7232_v15  ;;  %v5959_v15 = vld [vmem:[%s7728_s1 + $0xba8] ss:$12 sps:$4 sm:$0xff]  }
 0x191   : > { %v2595_v26 = vpop.f32.mrf.mxu1  ;;  %3967 = vmatpush2.bf16.msra.mxu0 %v5946_v20 }
 0x192   : > { %v7497_v27 = vadd.f32 %v2595_v26, %v7244_v59  ;;  %5329 = vmatpush3.bf16.msra.mxu1 %v5950_v52  ;;  %3968 = vmatprep.subr.bf16.mxu0 %v5953_v6  ;;  %v5988_v52 = vld [vmem:[%s7728_s1 + $0xc68] ss:$12 sps:$4 sm:$0xff]   ;;  %v5989_v6 = vld [vmem:[%s7728_s1 + $0xd10] ss:$12 sps:$4 sm:$0xff]   ;;  %v5991_v26 = vld [vmem:[%s7728_s1 + $0xcf8] ss:$12 sps:$4 sm:$0xff]  }
 0x193   : > { %v2597_v54 = vpop.f32.mrf.mxu1  ;;  %5330 = vmatprep.subr.bf16.mxu1 %v5954_v4 }
 0x194   : > { %v7512_v59 = vadd.f32 %v2597_v54, %v7253_v13  ;;  %v5963_v13 = vld [vmem:[%s7728_s1 + $0xd0c] ss:$12 sps:$4 sm:$0xff]   ;;  %v5996_v54 = vld [vmem:[%s7728_s1 + $0xc08] ss:$12 sps:$4 sm:$0xff]  }
 0x195   : > { %v2601_v33 = vpop.f32.mrf.mxu1  ;;  %4040 = vmatmul.mubr.bf16.gmra.mxu1 %v7317_v62  ;;  %3969 = vmatpush2.bf16.msra.mxu0 %v5951_v31  ;;  %v5994_v31 = vld [vmem:[%s7728_s1 + $0xc20] ss:$12 sps:$4 sm:$0xff]  }
 0x196   : > { %v7516_v23 = vadd.f32 %v2601_v33, %v7265_v37  ;;  %5331 = vmatpush3.bf16.msra.mxu1 %v5955_v25  ;;  %3970 = vmatprep.subr.bf16.mxu0 %v5958_v12  ;;  %v5964_v37 = vld [vmem:[%s7728_s1 + $0xb90] ss:$12 sps:$4 sm:$0xff]   ;;  %v5995_v25 = vld [vmem:[%s7728_s1 + $0xcc8] ss:$12 sps:$4 sm:$0xff]  }
 0x197   : > { %v2603_v56 = vpop.f32.mrf.mxu1  ;;  %5332 = vmatprep.subr.bf16.mxu1 %v5959_v15  ;;  %4079 = vmatprep.mubr.bf16.mxu1 %v7141_v30  ;;  %v5969_v30 = vld [vmem:[%s7728_s1 + $0xb78] ss:$12 sps:$4 sm:$0xff]  }
 0x198   : > { %v7531_v62 = vadd.f32 %v2603_v56, %v7274_v22  ;;  %v5968_v22 = vld [vmem:[%s7728_s1 + $0xcf4] ss:$12 sps:$4 sm:$0xff]  }
 0x199   : > { %v2605_v38 = vpop.f32.mrf.mxu1  ;;  %3971 = vmatpush2.bf16.msra.mxu0 %v5956_v29 }
 0x19a   : > { %5333 = vmatpush3.bf16.msra.mxu1 %v5960_v10  ;;  %3972 = vmatprep.subr.bf16.mxu0 %v5963_v13 }
 0x19b   : > { %5334 = vmatprep.subr.bf16.mxu1 %v5964_v37  ;;  %v2606_v41 = vpop.f32.mrf.mxu1 }
 0x19d   : > { %3973 = vmatpush2.bf16.msra.mxu0 %v5961_v40 }
 0x19e   : > { %5335 = vmatpush3.bf16.msra.mxu1 %v5965_v32  ;;  %3974 = vmatprep.subr.bf16.mxu0 %v5968_v22 }
 0x19f   : > { %5336 = vmatprep.subr.bf16.mxu1 %v5969_v30 }
 0x1a1   : > { %3975 = vmatpush2.bf16.msra.mxu0 %v5966_v42 }
 0x1a2   : > { %5337 = vmatpush3.bf16.msra.mxu1 %v5970_v36  ;;  %3976 = vmatprep.subr.bf16.mxu0 %v5973_v57 }
 0x1a3   : > { %5338 = vmatprep.subr.bf16.mxu1 %v5974_v34 }
 0x1a5   : > { %3977 = vmatpush2.bf16.msra.mxu0 %v5971_v45 }
 0x1a6   : > { %5339 = vmatpush3.bf16.msra.mxu1 %v5975_v3  ;;  %3978 = vmatprep.subr.bf16.mxu0 %v5978_v28 }
 0x1a7   : > { %5340 = vmatprep.subr.bf16.mxu1 %v5979_v43 }
 0x1a9   : > { %3979 = vmatpush2.bf16.msra.mxu0 %v5976_v46 }
 0x1aa   : > { %5341 = vmatpush3.bf16.msra.mxu1 %v5980_v35  ;;  %5354 = vmatprep.subr.bf16.mxu0 %v5981_v55 }
 0x1ab   : > { %5382 = vmatprep.subr.bf16.mxu1 %v5981_v55 }
 0x1ac   : > { %v2642_v61 = vpop.f32.mrf.mxu0  ;;  %3981 = vmatmul.mubr.bf16.vlgmr.msra.gmra.mxu0 %v7585_v58 }
 0x1ad   : > { %4080 = vmatmul.mubr.bf16.vlgmr.msra.gmra.mxu1 %v7341_v9  ;;  %v7596_v63 = vadd.f32 %v2642_v61, %v7478_v1  ;;  %5355 = vmatpush3.bf16.msra.mxu0 %v5982_v60 }
 0x1ae   : > { %5390 = vmatpush3.bf16.msra.mxu1 %v5982_v60  ;;  %v2644_v2 = vpop.f32.mrf.mxu0  ;;  %5356 = vmatprep.subr.bf16.mxu0 %v5983_v18 }
 0x1af   : > { %5383 = vmatprep.subr.bf16.mxu1 %v5983_v18  ;;  %v2645_v16 = vadd.f32 %v2644_v2, %v7493_v8  ;;  %3990 = vmatprep.mubr.bf16.mxu0 %v7373_v14  ;;  %v5990_v8 = vld [vmem:[%s7728_s1 + $0xc50] ss:$12 sps:$4 sm:$0xff]  }
 0x1b0   : > { %4087 = vmatprep.mubr.bf16.mxu1 %v7114_v17  ;;  %v2646_v9 = vpop.f32.mrf.mxu0 }
 0x1b1   : > { %v2647_v21 = vadd.f32 %v2646_v9, %v7497_v27  ;;  %5357 = vmatpush3.bf16.msra.mxu0 %v5984_v0 }
 0x1b2   : > { %5391 = vmatpush3.bf16.msra.mxu1 %v5984_v0  ;;  %v2648_v11 = vpop.f32.mrf.mxu0  ;;  %5358 = vmatprep.subr.bf16.mxu0 %v5985_v5 }
 0x1b3   : > { %5384 = vmatprep.subr.bf16.mxu1 %v5985_v5  ;;  %v2649_v1 = vadd.f32 %v2648_v11, %v7512_v59 }
 0x1b4   : > { %v2652_v20 = vpop.f32.mrf.mxu0  ;;  %3991 = vmatmul.mubr.bf16.gmra.mxu0 %v7578_v51 }
 0x1b5   : > { %4088 = vmatmul.mubr.bf16.gmra.mxu1 %v7327_v24  ;;  %v2653_v17 = vadd.f32 %v2652_v20, %v7516_v23  ;;  %5359 = vmatpush3.bf16.msra.mxu0 %v5986_v7 }
 0x1b6   : > { %5392 = vmatpush3.bf16.msra.mxu1 %v5986_v7  ;;  %v2654_v53 = vpop.f32.mrf.mxu0  ;;  %5360 = vmatprep.subr.bf16.mxu0 %v5987_v19 }
 0x1b7   : > { %5385 = vmatprep.subr.bf16.mxu1 %v5987_v19  ;;  %v2655_v4 = vadd.f32 %v2654_v53, %v7531_v62  ;;  %4127 = vmatprep.mubr.bf16.mxu0 %v7394_v47  ;;  %v5993_v47 = vld [vmem:[%s7728_s1 + $0xce0] ss:$12 sps:$4 sm:$0xff]  }
 0x1b8   : > { %4135 = vmatprep.mubr.bf16.mxu1 %v7373_v14  ;;  %v2656_v24 = vpop.f32.mrf.mxu0  ;;  %v5992_v14 = vld [vmem:[%s7728_s1 + $0xc38] ss:$12 sps:$4 sm:$0xff]  }
 0x1b9   : > { %5361 = vmatpush3.bf16.msra.mxu0 %v5988_v52 }
 0x1ba   : > { %5393 = vmatpush3.bf16.msra.mxu1 %v5988_v52  ;;  %5362 = vmatprep.subr.bf16.mxu0 %v5989_v6  ;;  %v2657_v27 = vpop.f32.mrf.mxu0 }
 0x1bb   : > { %5386 = vmatprep.subr.bf16.mxu1 %v5989_v6 }
 0x1bd   : > { %5363 = vmatpush3.bf16.msra.mxu0 %v5990_v8 }
 0x1be   : > { %5394 = vmatpush3.bf16.msra.mxu1 %v5990_v8  ;;  %5364 = vmatprep.subr.bf16.mxu0 %v5991_v26 }
 0x1bf   : > { %5387 = vmatprep.subr.bf16.mxu1 %v5991_v26 }
 0x1c1   : > { %5365 = vmatpush3.bf16.msra.mxu0 %v5992_v14 }
 0x1c2   : > { %5395 = vmatpush3.bf16.msra.mxu1 %v5992_v14  ;;  %5366 = vmatprep.subr.bf16.mxu0 %v5993_v47 }
 0x1c3   : > { %5388 = vmatprep.subr.bf16.mxu1 %v5993_v47 }
 0x1c5   : > { %5367 = vmatpush3.bf16.msra.mxu0 %v5994_v31 }
 0x1c6   : > { %5396 = vmatpush3.bf16.msra.mxu1 %v5994_v31  ;;  %5368 = vmatprep.subr.bf16.mxu0 %v5995_v25 }
 0x1c7   : > { %5389 = vmatprep.subr.bf16.mxu1 %v5995_v25 }
 0x1c9   : > { %5369 = vmatpush3.bf16.msra.mxu0 %v5996_v54 }
 0x1ca   : > { %5397 = vmatpush3.bf16.msra.mxu1 %v5996_v54 }
 0x1cc   : > { %v5230_v15 = vpop.f32.mrf.mxu0  ;;  %4128 = vmatmul.mubr.bf16.vlgmr.msra.gmra.mxu0 %v7585_v58 }
 0x1cd   : > { %v2693_v12 = vpop.f32.mrf.mxu1  ;;  %4136 = vmatmul.mubr.bf16.vlgmr.msra.gmra.mxu1 %v7578_v51 }
 0x1ce   : > { %v7651_v59 = vadd.f32 %v2693_v12, %v7596_v63  ;;  %v5231_v23 = vpop.f32.mrf.mxu0 }
 0x1cf   : > { %v2695_v33 = vpop.f32.mrf.mxu1  ;;  %v5232_v10 = vadd.f32 %v5231_v23, %v5230_v15 }
 0x1d0   : > { %v7653_v29 = vadd.f32 %v2695_v33, %v2645_v16  ;;  %v5233_v13 = vpop.f32.mrf.mxu0 }
 0x1d1   : > { %v2697_v56 = vpop.f32.mrf.mxu1  ;;  %v2745_v37 = vadd.f32 %v5232_v10, %v7376_v50 }
 0x1d2   : > { %v7656_v62 = vadd.f32 %v2697_v56, %v2647_v21  ;;  %v5234_v40 = vpop.f32.mrf.mxu0 }
 0x1d3   : > { %v2699_v38 = vpop.f32.mrf.mxu1  ;;  %v5235_v22 = vadd.f32 %v5234_v40, %v5233_v13 }
 0x1d4   : > { %v7658_v32 = vadd.f32 %v2699_v38, %v2649_v1  ;;  %v5236_v41 = vpop.f32.mrf.mxu0 }
 0x1d5   : > { %v2703_v30 = vpop.f32.mrf.mxu1  ;;  %v2748_v42 = vadd.f32 %v5235_v22, %v7397_v39 }
 0x1d6   : > { %v7661_v36 = vadd.f32 %v2703_v30, %v2653_v17  ;;  %v5237_v34 = vpop.f32.mrf.mxu0 }
 0x1d7   : > { %v2705_v57 = vpop.f32.mrf.mxu1  ;;  %v5238_v3 = vadd.f32 %v5237_v34, %v5236_v41 }
 0x1d8   : > { %v7663_v45 = vadd.f32 %v2705_v57, %v2655_v4  ;;  %v5239_v28 = vpop.f32.mrf.mxu0 }
 0x1d9   : > { %v2707_v50 = vpop.f32.mrf.mxu1  ;;  %v2753_v43 = vadd.f32 %v5238_v3, %v7414_v44 }
 0x1da   : > { %v5240_v46 = vpop.f32.mrf.mxu0 }
 0x1db   : > { %v2708_v35 = vpop.f32.mrf.mxu1 }
 0x1ec   : > { %v5258_v48 = vpop.f32.mrf.mxu0 }
 0x1ed   : > { %v5286_v49 = vpop.f32.mrf.mxu1 }
 0x1ee   : > { %v5259_v51 = vpop.f32.mrf.mxu0 }
 0x1ef   : > { %v5287_v55 = vpop.f32.mrf.mxu1  ;;  %v5260_v58 = vadd.f32 %v5259_v51, %v5258_v48  ;;  %v7690_v48 = vld [vmem:[%s7729_s2] sm:$0x7] }
 0x1f0   : > { %v5288_v60 = vadd.f32 %v5287_v55, %v5286_v49  ;;  %v5261_v39 = vpop.f32.mrf.mxu0 }
 0x1f1   : > { %v5289_v18 = vpop.f32.mrf.mxu1  ;;  %v2793_v61 = vadd.f32 %v5260_v58, %v2745_v37 }
 0x1f2   : > { %v5262_v63 = vpop.f32.mrf.mxu0 }
 0x1f3   : > { %v5290_v0 = vpop.f32.mrf.mxu1  ;;  %v7666_v2 = vadd.f32 %v5288_v60, %v2793_v61  ;;  %v5263_v5 = vadd.f32 %v5262_v63, %v5261_v39 }
 0x1f4   : > { %v5291_v16 = vadd.f32 %v5290_v0, %v5289_v18  ;;  %v5264_v9 = vpop.f32.mrf.mxu0 }
 0x1f5   : > { %v5292_v21 = vpop.f32.mrf.mxu1  ;;  %v2796_v44 = vadd.f32 %v5263_v5, %v2748_v42 }
 0x1f6   : > { %v5265_v7 = vpop.f32.mrf.mxu0 }
 0x1f7   : > { %v5293_v11 = vpop.f32.mrf.mxu1  ;;  %v7668_v19 = vadd.f32 %v5291_v16, %v2796_v44  ;;  %v5266_v1 = vadd.f32 %v5265_v7, %v5264_v9 }
 0x1f8   : > { %v5294_v20 = vadd.f32 %v5293_v11, %v5292_v21  ;;  %v5267_v17 = vpop.f32.mrf.mxu0 }
 0x1f9   : > { %v5295_v52 = vpop.f32.mrf.mxu1  ;;  %v2801_v53 = vadd.f32 %v5266_v1, %v2753_v43  ;;  %v4154_v43 = vlaneseq }
 0x1fa   : > { %v5268_v6 = vpop.f32.mrf.mxu0 }
 0x1fb   : > { %v5296_v4 = vpop.f32.mrf.mxu1  ;;  %v7670_v24 = vadd.f32 %v5294_v20, %v2801_v53  ;;  %v7684_v46 = vshrl.u32 %v4154_v43, 7 }
 0x1fd   : > { %v4156_v35 = vsub.s32 0, %v7684_v46  ;;  %v4160_v49 = vsub.s32 1, %v7684_v46 }
 0x1ff   : > { %v4157_v39 = vrot.slane %v7690_v48, %v4156_v35  ;;  %v4161_v5 = vrot.slane %v7690_v48, %v4160_v49 }
 0x22c   : > { %v3880_v8 = vpop.f32.mrf.mxu0 }
 0x22d   : > { %v3931_v26 = vpop.f32.mrf.mxu1 }
 0x22e   : > { %v3932_v27 = vadd.f32 %v3931_v26, %v3880_v8  ;;  %v3882_v14 = vpop.f32.mrf.mxu0 }
 0x22f   : > { %v3933_v47 = vpop.f32.mrf.mxu1 }
 0x230   : > { %v3884_v31 = vpop.f32.mrf.mxu0  ;;  %v3934_v58 = vadd.f32 %v3933_v47, %v3882_v14 }
 0x231   : > { %v3935_v25 = vpop.f32.mrf.mxu1 }
 0x232   : > { %v3936_v54 = vadd.f32 %v3935_v25, %v3884_v31  ;;  %v3886_v12 = vpop.f32.mrf.mxu0 }
 0x233   : > { %v3937_v15 = vpop.f32.mrf.mxu1 }
 0x234   : > { %v3890_v23 = vpop.f32.mrf.mxu0  ;;  %v3938_v21 = vadd.f32 %v3937_v15, %v3886_v12 }
 0x235   : > { %v3941_v33 = vpop.f32.mrf.mxu1 }
 0x236   : > { %v3942_v10 = vadd.f32 %v3941_v33, %v3890_v23  ;;  %v3892_v13 = vpop.f32.mrf.mxu0 }
 0x237   : > { %v3943_v56 = vpop.f32.mrf.mxu1 }
 0x238   : > { %v3894_v38 = vpop.f32.mrf.mxu0  ;;  %v3944_v47 = vadd.f32 %v3943_v56, %v3892_v13 }
 0x239   : > { %v3945_v37 = vpop.f32.mrf.mxu1 }
 0x23a   : > { %v3895_v22 = vpop.f32.mrf.mxu0 }
 0x23b   : > { %v3946_v40 = vpop.f32.mrf.mxu1 }
 0x24d   : > { %v7672_v30 = vpop.f32.mrf.mxu1 }
 0x24f   : > { %v7674_v41 = vpop.f32.mrf.mxu1 }
 0x250   : > { %v5316_v35 = vadd.f32 %v7674_v41, %v7672_v30 }
 0x251   : > { %v7676_v42 = vpop.f32.mrf.mxu1 }
 0x253   : > { %v7678_v57 = vpop.f32.mrf.mxu1 }
 0x255   : > { %v7680_v34 = vpop.f32.mrf.mxu1 }
 0x257   : > { %v7682_v3 = vpop.f32.mrf.mxu1 }
 0x259   : > { %v5323_v28 = vpop.f32.mrf.mxu1 }
 0x25b   : > { %v5324_v50 = vpop.f32.mrf.mxu1 }
 0x26c   : > { %v3982_v51 = vpop.f32.mrf.mxu0 }
 0x26d   : > { %v5342_v55 = vpop.f32.mrf.mxu1  ;;  %v3983_v60 = vadd.f32 %v3982_v51, %v3932_v27 }
 0x26e   : > { %v3984_v18 = vpop.f32.mrf.mxu0 }
 0x26f   : > { %v5343_v61 = vpop.f32.mrf.mxu1  ;;  %v4143_v63 = vadd.f32 %v3983_v60, %v7651_v59  ;;  %v3985_v0 = vadd.f32 %v3984_v18, %v3934_v58  ;;  %v5322_v58 = vadd.f32 %v7682_v3, %v7680_v34 }
 0x270   : > { %v3986_v16 = vpop.f32.mrf.mxu0 }
 0x271   : > { %v5345_v9 = vpop.f32.mrf.mxu1  ;;  %v4169_v44 = vadd.f32 %v4157_v39, %v4143_v63  ;;  %v4144_v7 = vadd.f32 %v3985_v0, %v7653_v29  ;;  %v3987_v11 = vadd.f32 %v3986_v16, %v3936_v54 }
 0x272   : > { %v3988_v1 = vpop.f32.mrf.mxu0 }
 0x273   : > { %v5346_v20 = vpop.f32.mrf.mxu1  ;;  %v4170_v17 = vadd.f32 %v4161_v5, %v4144_v7  ;;  %v4146_v52 = vadd.f32 %v3987_v11, %v7656_v62  ;;  %v3989_v53 = vadd.f32 %v3988_v1, %v3938_v21  ;;  %v4178_v6 = vmax.f32 %v4169_v44, 0.0 }
 0x274   : > { %v3992_v4 = vpop.f32.mrf.mxu0  ;;  %v5347_v63 = vadd.f32 %v5346_v20, %v5345_v9 }
 0x275   : > { %v5348_v59 = vpop.f32.mrf.mxu1  ;;  %v4179_v8 = vmax.f32 %v4170_v17, 0.0  ;;  %v4172_v26 = vadd.f32 %v4157_v39, %v4146_v52  ;;  %v4147_v27 = vadd.f32 %v3989_v53, %v7658_v32  ;;  %v3993_v14 = vadd.f32 %v3992_v4, %v3942_v10 }
 0x276   : > { %v3994_v29 = vpop.f32.mrf.mxu0 }
 0x277   : > { %v5349_v31 = vpop.f32.mrf.mxu1  ;;  %v5124_v62 = vpack.c.bf16 %v4179_v8, %v4178_v6  ;;  %v4173_v25 = vadd.f32 %v4161_v5, %v4147_v27  ;;  %v4149_v54 = vadd.f32 %v3993_v14, %v7661_v36  ;;  %v3995_v12 = vadd.f32 %v3994_v29, %v3944_v47 }
 0x278   : > { %v3996_v15 = vpop.f32.mrf.mxu0  ;;  %v4181_v32 = vmax.f32 %v4172_v26, 0.0  ;;  %v5344_v36 = vadd.f32 %v5343_v61, %v5342_v55  ;;  %v5350_v43 = vadd.f32 %v5349_v31, %v5348_v59  ;;  %v5319_v61 = vadd.f32 %v7678_v57, %v7676_v42 }
 0x279   : > { %v5351_v33 = vpop.f32.mrf.mxu1  ;;  %4220 = vst [vmem:[%s7703_s17] sm:$0xff] %v5124_v62  ;;  %v4182_v23 = vmax.f32 %v4173_v25, 0.0  ;;  %v4175_v10 = vadd.f32 %v4157_v39, %v4149_v54  ;;  %v4150_v56 = vadd.f32 %v3995_v12, %v7663_v45  ;;  %v4164_v45 = vsub.s32 2, %v7684_v46 }
 0x27a   : > { %v3997_v13 = vpop.f32.mrf.mxu0  ;;  %v4082_v60 = vadd.f32 %v5344_v36, %v5316_v35  ;;  %v4090_v0 = vadd.f32 %v5350_v43, %v5322_v58  ;;  %v4085_v46 = vadd.f32 %v5347_v63, %v5319_v61 }
 0x27b   : > { %v5352_v37 = vpop.f32.mrf.mxu1  ;;  %v5126_v38 = vpack.c.bf16 %v4182_v23, %v4181_v32  ;;  %v4176_v40 = vadd.f32 %v4161_v5, %v4150_v56  ;;  %v4184_v22 = vmax.f32 %v4175_v10, 0.0  ;;  %v4165_v41 = vrot.slane %v7690_v48, %v4164_v45 }
 0x27d   : > { %4222 = vst [vmem:[%s7703_s17 + $0xc] sm:$0xff] %v5126_v38  ;;  %v4185_v28 = vmax.f32 %v4176_v40, 0.0 }
 0x27f   : > { %v5128_v50 = vpack.c.bf16 %v4185_v28, %v4184_v22 }
 0x281   : > { %4224 = vst [vmem:[%s7703_s17 + $0x18] sm:$0xff] %v5128_v50 }
 0x28c   : > { %v5370_v49 = vpop.f32.mrf.mxu0 }
 0x28d   : > { %v5376_v51 = vpop.f32.mrf.mxu1 }
 0x28e   : > { %v5371_v39 = vpop.f32.mrf.mxu0 }
 0x28f   : > { %v5377_v18 = vpop.f32.mrf.mxu1  ;;  %v5372_v5 = vadd.f32 %v5371_v39, %v5370_v49 }
 0x290   : > { %v5378_v16 = vadd.f32 %v5377_v18, %v5376_v51  ;;  %v5373_v21 = vpop.f32.mrf.mxu0 }
 0x291   : > { %v5379_v55 = vpop.f32.mrf.mxu1  ;;  %v4130_v30 = vadd.f32 %v5372_v5, %v4082_v60 }
 0x292   : > { %v4138_v44 = vadd.f32 %v5378_v16, %v4090_v0  ;;  %v5374_v34 = vpop.f32.mrf.mxu0 }
 0x293   : > { %v5380_v3 = vpop.f32.mrf.mxu1  ;;  %v4145_v7 = vadd.f32 %v4130_v30, %v7666_v2  ;;  %v5375_v11 = vadd.f32 %v5374_v34, %v5373_v21 }
 0x294   : > { %v4151_v9 = vadd.f32 %v4138_v44, %v7670_v24 }
 0x295   : > { %v4171_v1 = vadd.f32 %v4165_v41, %v4145_v7  ;;  %v4133_v17 = vadd.f32 %v5375_v11, %v4085_v46 }
 0x296   : > { %v4177_v20 = vadd.f32 %v4165_v41, %v4151_v9 }
 0x297   : > { %v4180_v52 = vmax.f32 %v4171_v1, 0.0  ;;  %v4148_v57 = vadd.f32 %v4133_v17, %v7668_v19 }
 0x298   : > { %v4186_v42 = vmax.f32 %v4177_v20, 0.0 }
 0x299   : > { %v5125_v48 = vpack.c.bf16 %v4180_v52, %v4180_v52  ;;  %v4174_v6 = vadd.f32 %v4165_v41, %v4148_v57 }
 0x29a   : > { %v5129_v53 = vpack.c.bf16 %v4186_v42, %v4186_v42 }
 0x29b   : > { %4221 = vst [vmem:[%s7703_s17 + $0x8] sm:$0xf] %v5125_v48  ;;  %v4183_v4 = vmax.f32 %v4174_v6, 0.0 }
 0x29c   : > { %4225 = vst [vmem:[%s7703_s17 + $0x20] sm:$0xf] %v5129_v53 }
 0x29d   : > { %v5127_v59 = vpack.c.bf16 %v4183_v4, %v4183_v4 }
 0x29f   : > { %4223 = vst [vmem:[%s7703_s17 + $0x14] sm:$0xf] %v5127_v59 }
 0x2a0 PF: > { %s13_s12 = sadd.s32 1, %s6006_s12  }
 0x2a1   : > { %p10_p4 = scmp.ge.s32.totalorder %s13_s12, 4  }
 0x2a3   :  { %12 = sbr.rel (!%p10_p4) target bundleno = 1 (0x1), region = 64 }

// kernel: alexnet_forward.12
= control target key start
LH: loop header
LB: loop body
LE: loop exit
PB: predicated region body
PF: predicated region fallthrough
CT: control target
= control target key end

     0   :  { %s5426_s12 = smov 0   ;;  %s7051_s0 = inlined_call_operand.vmem [shape: bf16[2,48,384], index: 0, kind: input, shape index: {}]   ;;  %s7052_s1 = inlined_call_operand.vmem [shape: bf16[3,1152,256], index: 1, kind: input, shape index: {}]   ;;  %s7053_s2 = inlined_call_operand.vmem [shape: f32[1,256], index: 2, kind: input, shape index: {}]   ;;  %s7054_s3 = inlined_call_operand.vmem [shape: bf16[2,24,256], index: 3, kind: output, shape index: {}]  }
   0x1 LB: > { %s3945_s13 = sadd.s32 4294967295, %s5403_s12   ;;  %p3949_p0 = scmp.ge.s32.totalorder %s5403_s12, 1  ;;  %s5403_s12 = sphi %s5426_s12, %s13_s12  }
   0x2   : > { %p137_p1 = scmp.lt.s32.totalorder %s5403_s12, 3 }
   0x4   : > { %p138_p2 = pnand %p3949_p0, %p137_p1 }
   0x5   : > { %p161_p3 = scmp.lt.s32.totalorder (!%p138_p2), %s3945_s13, 1 }
   0x6   : > { %141 = sbr.rel (%p138_p2) target bundleno = 670 (0x29e), region = 32 }
   0xb   : > { %v4725_v0 = vld [vmem:[%s7052_s1 + $0x4f4] ss:$8 sps:$4 sm:$0xff]   ;;  %v4729_v2 = vld [vmem:[%s7052_s1 + $0x4f0] ss:$8 sps:$4 sm:$0xff]   ;;  %v4731_v4 = vld [vmem:[%s7052_s1 + $0x4e4] ss:$8 sps:$4 sm:$0xff]  }
   0xc   : > { %v4727_v1 = vld [vmem:[%s7052_s1 + $0x5f4] ss:$8 sps:$4 sm:$0xff]   ;;  %1441 = vmatprep.subr.bf16.mxu0 %v4725_v0  ;;  %v4730_v3 = vld [vmem:[%s7052_s1 + $0x5f0] ss:$8 sps:$4 sm:$0xff]   ;;  %v4733_v5 = vld [vmem:[%s7052_s1 + $0x5e4] ss:$8 sps:$4 sm:$0xff]  }
   0xd   : > { %1492 = vmatprep.subr.bf16.mxu1 %v4727_v1  ;;  %1442 = vmatpush1.bf16.msra.mxu0 %v4729_v2  ;;  %v4735_v6 = vld [vmem:[%s7052_s1 + $0x4e0] ss:$8 sps:$4 sm:$0xff]   ;;  %v4737_v8 = vld [vmem:[%s7052_s1 + $0x4d4] ss:$8 sps:$4 sm:$0xff]   ;;  %v4741_v10 = vld [vmem:[%s7052_s1 + $0x4d0] ss:$8 sps:$4 sm:$0xff]  }
   0xe   : > { %1493 = vmatpush1.bf16.msra.mxu1 %v4730_v3  ;;  %1443 = vmatprep.subr.bf16.mxu0 %v4731_v4  ;;  %v4736_v7 = vld [vmem:[%s7052_s1 + $0x5e0] ss:$8 sps:$4 sm:$0xff]   ;;  %v4739_v9 = vld [vmem:[%s7052_s1 + $0x5d4] ss:$8 sps:$4 sm:$0xff]   ;;  %v4742_v11 = vld [vmem:[%s7052_s1 + $0x5d0] ss:$8 sps:$4 sm:$0xff]  }
   0xf   : > { %1494 = vmatprep.subr.bf16.mxu1 %v4733_v5  ;;  %v4743_v12 = vld [vmem:[%s7052_s1 + $0x4c4] ss:$8 sps:$4 sm:$0xff]   ;;  %v4747_v14 = vld [vmem:[%s7052_s1 + $0x4c0] ss:$8 sps:$4 sm:$0xff]   ;;  %v4749_v16 = vld [vmem:[%s7052_s1 + $0x4b4] ss:$8 sps:$4 sm:$0xff]  }
  0x10   : > { %v4745_v13 = vld [vmem:[%s7052_s1 + $0x5c4] ss:$8 sps:$4 sm:$0xff]   ;;  %v4748_v15 = vld [vmem:[%s7052_s1 + $0x5c0] ss:$8 sps:$4 sm:$0xff]   ;;  %v4751_v17 = vld [vmem:[%s7052_s1 + $0x5b4] ss:$8 sps:$4 sm:$0xff]  }
  0x11   : > { %1444 = vmatpush1.bf16.msra.mxu0 %v4735_v6  ;;  %v4753_v18 = vld [vmem:[%s7052_s1 + $0x4b0] ss:$8 sps:$4 sm:$0xff]   ;;  %v4755_v20 = vld [vmem:[%s7052_s1 + $0x4a4] ss:$8 sps:$4 sm:$0xff]   ;;  %v4759_v22 = vld [vmem:[%s7052_s1 + $0x4a0] ss:$8 sps:$4 sm:$0xff]  }
  0x12   : > { %1495 = vmatpush1.bf16.msra.mxu1 %v4736_v7  ;;  %1445 = vmatprep.subr.bf16.mxu0 %v4737_v8  ;;  %v4754_v19 = vld [vmem:[%s7052_s1 + $0x5b0] ss:$8 sps:$4 sm:$0xff]   ;;  %v4757_v21 = vld [vmem:[%s7052_s1 + $0x5a4] ss:$8 sps:$4 sm:$0xff]   ;;  %v4760_v23 = vld [vmem:[%s7052_s1 + $0x5a0] ss:$8 sps:$4 sm:$0xff]  }
  0x13   : > { %1496 = vmatprep.subr.bf16.mxu1 %v4739_v9  ;;  %v4761_v24 = vld [vmem:[%s7052_s1 + $0x494] ss:$8 sps:$4 sm:$0xff]   ;;  %v4765_v26 = vld [vmem:[%s7052_s1 + $0x490] ss:$8 sps:$4 sm:$0xff]   ;;  %v4767_v28 = vld [vmem:[%s7052_s1 + $0x484] ss:$8 sps:$4 sm:$0xff]  }
  0x14   : > { %v4763_v25 = vld [vmem:[%s7052_s1 + $0x594] ss:$8 sps:$4 sm:$0xff]   ;;  %v4766_v27 = vld [vmem:[%s7052_s1 + $0x590] ss:$8 sps:$4 sm:$0xff]   ;;  %v4769_v29 = vld [vmem:[%s7052_s1 + $0x584] ss:$8 sps:$4 sm:$0xff]  }
  0x15   : > { %1446 = vmatpush1.bf16.msra.mxu0 %v4741_v10  ;;  %v4771_v30 = vld [vmem:[%s7052_s1 + $0x480] ss:$8 sps:$4 sm:$0xff]   ;;  %v4773_v32 = vld [vmem:[%s7052_s1 + $0x574] ss:$8 sps:$4 sm:$0xff]   ;;  %v4777_v34 = vld [vmem:[%s7052_s1 + $0x570] ss:$8 sps:$4 sm:$0xff]  }
  0x16   : > { %1497 = vmatpush1.bf16.msra.mxu1 %v4742_v11  ;;  %1447 = vmatprep.subr.bf16.mxu0 %v4743_v12  ;;  %v4772_v31 = vld [vmem:[%s7052_s1 + $0x580] ss:$8 sps:$4 sm:$0xff]   ;;  %v4775_v33 = vld [vmem:[%s7052_s1 + $0x674] ss:$8 sps:$4 sm:$0xff]   ;;  %v4778_v35 = vld [vmem:[%s7052_s1 + $0x670] ss:$8 sps:$4 sm:$0xff]  }
  0x17   : > { %1498 = vmatprep.subr.bf16.mxu1 %v4745_v13  ;;  %s7056_s13 = smov (!%p161_p3, %s3945_s13), 1  ;;  %v4779_v36 = vld [vmem:[%s7052_s1 + $0x564] ss:$8 sps:$4 sm:$0xff]   ;;  %v4783_v38 = vld [vmem:[%s7052_s1 + $0x560] ss:$8 sps:$4 sm:$0xff]   ;;  %vm2816_vm1 = vcmask 1046528  }
  0x18   : > { %v4781_v37 = vld [vmem:[%s7052_s1 + $0x664] ss:$8 sps:$4 sm:$0xff]   ;;  %s4714_s17 = smul.u32 72, %s7056_s13  ;;  %v4784_v39 = vld [vmem:[%s7052_s1 + $0x660] ss:$8 sps:$4 sm:$0xff]  }
  0x19   : > { %1448 = vmatpush1.bf16.msra.mxu0 %v4747_v14  ;;  %v4785_v40 = vld [vmem:[%s7052_s1 + $0x554] ss:$8 sps:$4 sm:$0xff]   ;;  %v4789_v42 = vld [vmem:[%s7052_s1 + $0x550] ss:$8 sps:$4 sm:$0xff]   ;;  %v4791_v44 = vld [vmem:[%s7052_s1 + $0x544] ss:$8 sps:$4 sm:$0xff]  }
  0x1a   : > { %1499 = vmatpush1.bf16.msra.mxu1 %v4748_v15  ;;  %1449 = vmatprep.subr.bf16.mxu0 %v4749_v16  ;;  %v4787_v41 = vld [vmem:[%s7052_s1 + $0x654] ss:$8 sps:$4 sm:$0xff]   ;;  %v4790_v43 = vld [vmem:[%s7052_s1 + $0x650] ss:$8 sps:$4 sm:$0xff]   ;;  %s5576_s30 = scalar_lea.vmem %s7051_s0, %s4714_s17  ;;  %v4793_v45 = vld [vmem:[%s7052_s1 + $0x644] ss:$8 sps:$4 sm:$0xff]  }
  0x1b   : > { %1500 = vmatprep.subr.bf16.mxu1 %v4751_v17  ;;  %v4795_v46 = vld [vmem:[%s7052_s1 + $0x540] ss:$8 sps:$4 sm:$0xff]   ;;  %v5592_v49 = vld [vmem:[%s5576_s30 + $0xc] sm:$0xff]  ;;  %v5595_v50 = vld [vmem:[%s5576_s30 + $0x18] sm:$0xff]  ;;  %vm567_vm0 = vsmask.f32 7424 }
  0x1c   : > { %v4796_v47 = vld [vmem:[%s7052_s1 + $0x640] ss:$8 sps:$4 sm:$0xff]   ;;  %v4797_v52 = vld [vmem:[%s7052_s1 + $0x534] ss:$8 sps:$4 sm:$0xff]   ;;  %v5613_v57 = vcombine.low %v5592_v49, %v5595_v50  ;;  %v4801_v63 = vld [vmem:[%s7052_s1 + $0x530] ss:$8 sps:$4 sm:$0xff]  }
  0x1d   : > { %1450 = vmatpush1.bf16.msra.mxu0 %v4753_v18  ;;  %v172_v48 = vld [vmem:[%s5576_s30] sm:$0xff]  ;;  %v182_v56 = vld [vmem:[%s5576_s30 + $0x30] sm:$0x11]  ;;  %v173_v61 = vld [vmem:[%s5576_s30 + $0x8] sm:$0xf]  ;;  %s4715_s29 = smul.u32 24, %s7056_s13 }
  0x1e   : > { %1501 = vmatpush1.bf16.msra.mxu1 %v4754_v19  ;;  %1451 = vmatprep.subr.bf16.mxu0 %v4755_v20  ;;  %v178_v51 = vld [vmem:[%s5576_s30 + $0x24] sm:$0x11]  ;;  %v5602_v53 = vcombine.high %v172_v48, %v5592_v49  ;;  %v4799_v58 = vld [vmem:[%s7052_s1 + $0x634] ss:$8 sps:$4 sm:$0xff]   ;;  %v4802_v0 = vld [vmem:[%s7052_s1 + $0x630] ss:$8 sps:$4 sm:$0xff]   ;;  %v5649_v11 = vcombine.low %v172_v48, %v5592_v49 }
  0x1f   : > { %1502 = vmatprep.subr.bf16.mxu1 %v4757_v21  ;;  %v5605_v54 = vcombine.high %v5595_v50, %v178_v51  ;;  %v5608_v55 = vld [vmem:[%s5576_s30 + $0x24] sm:$0xff]  ;;  %v5626_v62 = vld [vmem:[%s5576_s30 + $0x14] sm:$0xf]  ;;  %v605_v6 = vshrl.u32 %v5613_v57, 16  ;;  %v607_v7 = vshll.u32 %v5613_v57, 16  ;;  %v5665_v21 = vcombine.low %v5595_v50, %v178_v51  ;;  %s170_s6 = scalar_lea.vmem %s7054_s3, %s4715_s29 }
  0x20   : > { %v5619_v59 = vcombine.low %v5608_v55, %v182_v56  ;;  %v5622_v60 = vcombine.high %v5608_v55, %v182_v56  ;;  %v581_v1 = vshrl.u32 %v5602_v53, 16  ;;  %v583_v2 = vshll.u32 %v5602_v53, 16  ;;  %v4803_v4 = vld [vmem:[%s7052_s1 + $0x524] ss:$8 sps:$4 sm:$0xff]   ;;  %v5652_v12 = vld [vmem:[%s5576_s30 + $0x20] sm:$0xf] }
  0x21   : > { %1452 = vmatpush1.bf16.msra.mxu0 %v4759_v22  ;;  %v588_v3 = vshll.u32 %v5605_v54, 16  ;;  %v4805_v5 = vld [vmem:[%s7052_s1 + $0x624] ss:$8 sps:$4 sm:$0xff]   ;;  %v5655_v13 = vcombine.low %v173_v61, %v5626_v62  ;;  %v609_v14 = vrot.slane %v607_v7, 1  ;;  %v4807_v18 = vld [vmem:[%s7052_s1 + $0x520] ss:$8 sps:$4 sm:$0xff]  }
  0x22   : > { %1503 = vmatpush1.bf16.msra.mxu1 %v4760_v23  ;;  %1453 = vmatprep.subr.bf16.mxu0 %v4761_v24  ;;  %v612_v8 = vshll.u32 %v5619_v59, 16  ;;  %v585_v9 = vrot.slane %v583_v2, 1  ;;  %v179_v16 = vld [vmem:[%s5576_s30 + $0x2c] sm:$0x1]  ;;  %v4808_v19 = vld [vmem:[%s7052_s1 + $0x620] ss:$8 sps:$4 sm:$0xff]  }
  0x23   : > { %1504 = vmatprep.subr.bf16.mxu1 %v4763_v25  ;;  %v5646_v10 = vrot.slane %v588_v3, 1  ;;  %v610_v20 = vor.u32 %v609_v14, %v605_v6  ;;  %v4809_v22 = vld [vmem:[%s7052_s1 + $0x514] ss:$8 sps:$4 sm:$0xff]   ;;  %v571_v24 = vshll.u32 %v5649_v11, 16  ;;  %v5674_v25 = vcombine.low %v5652_v12, %v179_v16  ;;  %v4833_v56 = vld [vmem:[%s7052_s1 + $0x7f0] ss:$8 sps:$4 sm:$0xff]  }
  0x24   : > { %v614_v15 = vrot.slane %v612_v8, 1  ;;  %v586_v17 = vor.u32 %v585_v9, %v581_v1  ;;  %v4835_v48 = vld [vmem:[%s7052_s1 + $0x7f4] ss:$8 sps:$4 sm:$0xff]   ;;  %v685_v51 = vshrl.u32 %v5619_v59, 16  ;;  %v4836_v1 = vld [vmem:[%s7052_s1 + $0x6e0] ss:$8 sps:$4 sm:$0xff]  }
  0x25   : > { %1454 = vmatpush1.bf16.msra.mxu0 %v4765_v26  ;;  %v595_v26 = vshll.u32 %v5655_v13, 16  ;;  %v682_v6 = vshrl.u32 %v5674_v25, 16  ;;  %v4844_v7 = vld [vmem:[%s7052_s1 + $0x6d4] ss:$8 sps:$4 sm:$0xff]   ;;  %v4842_v9 = vld [vmem:[%s7052_s1 + $0x6d0] ss:$8 sps:$4 sm:$0xff]  }
  0x26   : > { %1505 = vmatpush1.bf16.msra.mxu1 %v4766_v27  ;;  %1455 = vmatprep.subr.bf16.mxu0 %v4767_v28  ;;  %v591_v23 = vsel %vm567_vm0, %v586_v17, %v5646_v10  ;;  %v4811_v27 = vld [vmem:[%s7052_s1 + $0x614] ss:$8 sps:$4 sm:$0xff]   ;;  %v615_v28 = vsel %vm567_vm0, %v610_v20, %v614_v15  ;;  %v687_v3 = vor.u32 %v685_v51, %v614_v15  ;;  %v4850_v16 = vld [vmem:[%s7052_s1 + $0x6c4] ss:$8 sps:$4 sm:$0xff]   ;;  %v4878_v51 = vld [vmem:[%s7052_s1 + $0x770] ss:$8 sps:$4 sm:$0xff]  }
  0x27   : > { %1506 = vmatprep.subr.bf16.mxu1 %v4769_v29  ;;  %v5683_v29 = vcombine.low %v5595_v50, %v5608_v55  ;;  %1473 = vmatprep.mubr.bf16.mxu0 %v591_v23  ;;  %v4847_v8 = vld [vmem:[%s7052_s1 + $0x7d4] ss:$8 sps:$4 sm:$0xff]   ;;  %v4853_v17 = vld [vmem:[%s7052_s1 + $0x7c4] ss:$8 sps:$4 sm:$0xff]   ;;  %v4854_v23 = vld [vmem:[%s7052_s1 + $0x6b0] ss:$8 sps:$4 sm:$0xff]  }
  0x28   : > { %1524 = vmatprep.mubr.bf16.mxu1 %v615_v28  ;;  %v4856_v20 = vld [vmem:[%s7052_s1 + $0x6b4] ss:$8 sps:$4 sm:$0xff]   ;;  %v5786_v28 = vcombine.low %v5626_v62, %v5652_v12  ;;  %v4866_v12 = vld [vmem:[%s7052_s1 + $0x690] ss:$8 sps:$4 sm:$0xff]  }
  0x29   : > { %1456 = vmatpush1.bf16.msra.mxu0 %v4771_v30  ;;  %v4813_v30 = vld [vmem:[%s7052_s1 + $0x510] ss:$8 sps:$4 sm:$0xff]  }
  0x2a   : > { %1507 = vmatpush1.bf16.msra.mxu1 %v4772_v31  ;;  %1457 = vmatprep.subr.bf16.mxu0 %v4773_v32  ;;  %v4814_v31 = vld [vmem:[%s7052_s1 + $0x610] ss:$8 sps:$4 sm:$0xff]   ;;  %v4815_v32 = vld [vmem:[%s7052_s1 + $0x504] ss:$8 sps:$4 sm:$0xff]  }
  0x2b   : > { %1508 = vmatprep.subr.bf16.mxu1 %v4775_v33  ;;  %v569_v33 = vshrl.u32 %v5649_v11, 16 }
  0x2d   : > { %1458 = vmatpush2.bf16.msra.mxu0 %v4777_v34  ;;  %v576_v34 = vshll.u32 %v5665_v21, 16 }
  0x2e   : > { %1509 = vmatpush2.bf16.msra.mxu1 %v4778_v35  ;;  %1459 = vmatprep.subr.bf16.mxu0 %v4779_v36  ;;  %v5698_v35 = vcombine.high %v5592_v49, %v5595_v50  ;;  %v573_v36 = vrot.slane %v571_v24, 1  ;;  %v679_v49 = vshrl.u32 %v5605_v54, 16  ;;  %v4857_v24 = vld [vmem:[%s7052_s1 + $0x7b0] ss:$8 sps:$4 sm:$0xff]  }
  0x2f   : > { %1510 = vmatprep.subr.bf16.mxu1 %v4781_v37  ;;  %v593_v37 = vshrl.u32 %v5655_v13, 16 }
  0x30   : > { %v681_v2 = vor.u32 %v679_v49, %v5646_v10  ;;  %v4845_v10 = vld [vmem:[%s7052_s1 + $0x7d0] ss:$8 sps:$4 sm:$0xff]   ;;  %v5837_v49 = vld [vmem:[%s5576_s30 + $0x34] ss:$12 sps:$4 sm:$0x1f]  }
  0x31   : > { %1460 = vmatpush2.bf16.msra.mxu0 %v4783_v38  ;;  %v597_v38 = vrot.slane %v595_v26, 1  ;;  %v4862_v26 = vld [vmem:[%s7052_s1 + $0x6a4] ss:$8 sps:$4 sm:$0xff]  }
  0x32   : > { %1511 = vmatpush2.bf16.msra.mxu1 %v4784_v39  ;;  %1461 = vmatprep.subr.bf16.mxu0 %v4785_v40  ;;  %v600_v39 = vshll.u32 %v5674_v25, 16  ;;  %v4817_v40 = vld [vmem:[%s7052_s1 + $0x604] ss:$8 sps:$4 sm:$0xff]  }
  0x33   : > { %1512 = vmatprep.subr.bf16.mxu1 %v4787_v41  ;;  %v4819_v41 = vld [vmem:[%s7052_s1 + $0x500] ss:$8 sps:$4 sm:$0xff]  }
  0x35   : > { %1462 = vmatpush2.bf16.msra.mxu0 %v4789_v42  ;;  %v4820_v42 = vld [vmem:[%s7052_s1 + $0x600] ss:$8 sps:$4 sm:$0xff]  }
  0x36   : > { %1513 = vmatpush2.bf16.msra.mxu1 %v4790_v43  ;;  %1463 = vmatprep.subr.bf16.mxu0 %v4791_v44  ;;  %v574_v43 = vor.u32 %v573_v36, %v569_v33  ;;  %v578_v44 = vrot.slane %v576_v34, 1  ;;  %v4868_v33 = vld [vmem:[%s7052_s1 + $0x694] ss:$8 sps:$4 sm:$0xff]   ;;  %v4869_v34 = vld [vmem:[%s7052_s1 + $0x790] ss:$8 sps:$4 sm:$0xff]  }
  0x37   : > { %1514 = vmatprep.subr.bf16.mxu1 %v4793_v45  ;;  %v598_v45 = vor.u32 %v597_v38, %v593_v37  ;;  %v4874_v36 = vld [vmem:[%s7052_s1 + $0x684] ss:$8 sps:$4 sm:$0xff]   ;;  %v629_v37 = vshrl.u32 %v5786_v28, 16 }
  0x39   : > { %1464 = vmatpush2.bf16.msra.mxu0 %v4795_v46  ;;  %v602_v46 = vrot.slane %v600_v39, 1  ;;  %v4877_v39 = vld [vmem:[%s7052_s1 + $0x784] ss:$8 sps:$4 sm:$0xff]  }
  0x3a   : > { %1515 = vmatpush2.bf16.msra.mxu1 %v4796_v47  ;;  %1465 = vmatprep.subr.bf16.mxu0 %v4797_v52  ;;  %v4832_v47 = vld [vmem:[%s7052_s1 + $0x6f4] ss:$8 sps:$4 sm:$0xff]   ;;  %v4830_v52 = vld [vmem:[%s7052_s1 + $0x6f0] ss:$8 sps:$4 sm:$0xff]  }
  0x3b   : > { %1516 = vmatprep.subr.bf16.mxu1 %v4799_v58  ;;  %v579_v58 = vsel %vm567_vm0, %v574_v43, %v578_v44  ;;  %v603_v61 = vsel %vm567_vm0, %v598_v45, %v602_v46  ;;  %v684_v15 = vor.u32 %v682_v6, %v602_v46  ;;  %v4875_v43 = vld [vmem:[%s7052_s1 + $0x780] ss:$8 sps:$4 sm:$0xff]   ;;  %v5830_v45 = vld [vmem:[%s5576_s30 + $0x2c] ss:$12 sps:$4 sm:$0x1f]  }
  0x3c   : > { %v4883_v46 = vld [vmem:[%s7052_s1 + $0x874] ss:$8 sps:$4 sm:$0xff]  }
  0x3d   : > { %1466 = vmatpush2.bf16.msra.mxu0 %v4801_v63  ;;  %v4838_v63 = vld [vmem:[%s7052_s1 + $0x6e4] ss:$8 sps:$4 sm:$0xff]   ;;  %v4892_v6 = vld [vmem:[%s7052_s1 + $0x754] ss:$8 sps:$4 sm:$0xff]  }
  0x3e   : > { %1517 = vmatpush2.bf16.msra.mxu1 %v4802_v0  ;;  %1467 = vmatprep.subr.bf16.mxu0 %v4803_v4  ;;  %v4841_v0 = vld [vmem:[%s7052_s1 + $0x7e4] ss:$8 sps:$4 sm:$0xff]   ;;  %v4839_v4 = vld [vmem:[%s7052_s1 + $0x7e0] ss:$8 sps:$4 sm:$0xff]  }
  0x3f   : > { %1518 = vmatprep.subr.bf16.mxu1 %v4805_v5  ;;  %v676_v5 = vshrl.u32 %v5665_v21, 16 }
  0x41   : > { %1468 = vmatpush2.bf16.msra.mxu0 %v4807_v18  ;;  %v678_v14 = vor.u32 %v676_v5, %v578_v44  ;;  %v4848_v18 = vld [vmem:[%s7052_s1 + $0x6c0] ss:$8 sps:$4 sm:$0xff]   ;;  %v4880_v44 = vld [vmem:[%s7052_s1 + $0x774] ss:$8 sps:$4 sm:$0xff]  }
  0x42   : > { %1519 = vmatpush2.bf16.msra.mxu1 %v4808_v19  ;;  %1469 = vmatprep.subr.bf16.mxu0 %v4809_v22  ;;  %v4851_v19 = vld [vmem:[%s7052_s1 + $0x7c0] ss:$8 sps:$4 sm:$0xff]   ;;  %v4859_v22 = vld [vmem:[%s7052_s1 + $0x7b4] ss:$8 sps:$4 sm:$0xff]  }
  0x43   : > { %1520 = vmatprep.subr.bf16.mxu1 %v4811_v27  ;;  %v4865_v27 = vld [vmem:[%s7052_s1 + $0x7a4] ss:$8 sps:$4 sm:$0xff]  }
  0x45   : > { %1470 = vmatpush2.bf16.msra.mxu0 %v4813_v30  ;;  %v5790_v30 = vcombine.high %v5595_v50, %v5608_v55  ;;  %v4871_v50 = vld [vmem:[%s7052_s1 + $0x794] ss:$8 sps:$4 sm:$0xff]   ;;  %v631_v55 = vshll.u32 %v5786_v28, 16 }
  0x46   : > { %1521 = vmatpush2.bf16.msra.mxu1 %v4814_v31  ;;  %1471 = vmatprep.subr.bf16.mxu0 %v4815_v32  ;;  %v4860_v31 = vld [vmem:[%s7052_s1 + $0x6a0] ss:$8 sps:$4 sm:$0xff]  }
  0x47   : > { %1522 = vmatprep.subr.bf16.mxu1 %v4817_v40  ;;  %v4863_v32 = vld [vmem:[%s7052_s1 + $0x7a0] ss:$8 sps:$4 sm:$0xff]   ;;  %v655_v62 = vshll.u32 %v5790_v30, 16  ;;  %v653_v38 = vshrl.u32 %v5790_v30, 16  ;;  %v633_v40 = vrot.slane %v631_v55, 1  ;;  %v617_v55 = vshrl.u32 %v5698_v35, 16 }
  0x49   : > { %1472 = vmatpush2.bf16.msra.mxu0 %v4819_v41  ;;  %v657_v41 = vrot.slane %v655_v62, 1  ;;  %v4914_v62 = vld [vmem:[%s7052_s1 + $0x710] ss:$8 sps:$4 sm:$0xff]  }
  0x4a   : > { %1523 = vmatpush2.bf16.msra.mxu1 %v4820_v42  ;;  %1543 = vmatprep.subr.bf16.mxu0 %v4832_v47  ;;  %v4872_v42 = vld [vmem:[%s7052_s1 + $0x680] ss:$8 sps:$4 sm:$0xff]   ;;  %v634_v47 = vor.u32 %v633_v40, %v629_v37  ;;  %v4917_v37 = vld [vmem:[%s7052_s1 + $0x810] ss:$8 sps:$4 sm:$0xff]  }
  0x4b   : > { %1594 = vmatprep.subr.bf16.mxu1 %v4835_v48  ;;  %v636_v48 = vshll.u32 %v5830_v45, 16 }
  0x4c   : > { %1474 = vmatmul.mubr.bf16.vlgmr.msra.gmra.mxu0 %v579_v58  ;;  %v658_v58 = vor.u32 %v657_v41, %v653_v38  ;;  %v4922_v38 = vld [vmem:[%s7052_s1 + $0x704] ss:$8 sps:$4 sm:$0xff]  }
  0x4d   : > { %1525 = vmatmul.mubr.bf16.vlgmr.msra.gmra.mxu1 %v603_v61  ;;  %1544 = vmatpush1.bf16.msra.mxu0 %v4830_v52  ;;  %v4881_v52 = vld [vmem:[%s7052_s1 + $0x870] ss:$8 sps:$4 sm:$0xff]   ;;  %v660_v61 = vshll.u32 %v5837_v49, 16  ;;  %v4925_v41 = vld [vmem:[%s7052_s1 + $0x804] ss:$8 sps:$4 sm:$0xff]  }
  0x4e   : > { %1595 = vmatpush1.bf16.msra.mxu1 %v4833_v56  ;;  %1545 = vmatprep.subr.bf16.mxu0 %v4838_v63  ;;  %v5845_v56 = vrot.slane %v636_v48, 1  ;;  %v4886_v63 = vld [vmem:[%s7052_s1 + $0x764] ss:$8 sps:$4 sm:$0xff]  }
  0x4f   : > { %1596 = vmatprep.subr.bf16.mxu1 %v4841_v0  ;;  %1483 = vmatprep.mubr.bf16.mxu0 %v681_v2  ;;  %v4889_v0 = vld [vmem:[%s7052_s1 + $0x864] ss:$8 sps:$4 sm:$0xff]   ;;  %v5856_v2 = vrot.slane %v660_v61, 1  ;;  %v697_v61 = vshrl.u32 %v5837_v49, 16 }
  0x50   : > { %1534 = vmatprep.mubr.bf16.mxu1 %v687_v3  ;;  %v4884_v3 = vld [vmem:[%s7052_s1 + $0x760] ss:$8 sps:$4 sm:$0xff]   ;;  %v4945_v49 = vld [vmem:[%s7052_s1 + $0x64] ss:$8 sps:$4 sm:$0xff]  }
  0x51   : > { %1546 = vmatpush1.bf16.msra.mxu0 %v4836_v1  ;;  %v639_v1 = vsel %vm567_vm0, %v634_v47, %v5845_v56  ;;  %v663_v5 = vsel %vm567_vm0, %v658_v58, %v5856_v2  ;;  %v691_v58 = vshrl.u32 %v5830_v45, 16  ;;  %v4942_v45 = vld [vmem:[%s7052_s1 + $0x8e4] ss:$8 sps:$4 sm:$0xff]  }
  0x52   : > { %1597 = vmatpush1.bf16.msra.mxu1 %v4839_v4  ;;  %1547 = vmatprep.subr.bf16.mxu0 %v4844_v7  ;;  %v4887_v4 = vld [vmem:[%s7052_s1 + $0x860] ss:$8 sps:$4 sm:$0xff]   ;;  %v4895_v7 = vld [vmem:[%s7052_s1 + $0x854] ss:$8 sps:$4 sm:$0xff]  }
  0x53   : > { %1598 = vmatprep.subr.bf16.mxu1 %v4847_v8  ;;  %v4890_v8 = vld [vmem:[%s7052_s1 + $0x750] ss:$8 sps:$4 sm:$0xff]  }
  0x54   : > { %1484 = vmatmul.mubr.bf16.gmra.mxu0 %v678_v14  ;;  %v4901_v14 = vld [vmem:[%s7052_s1 + $0x844] ss:$8 sps:$4 sm:$0xff]  }
  0x55   : > { %1535 = vmatmul.mubr.bf16.gmra.mxu1 %v684_v15  ;;  %1548 = vmatpush1.bf16.msra.mxu0 %v4842_v9  ;;  %v4893_v9 = vld [vmem:[%s7052_s1 + $0x850] ss:$8 sps:$4 sm:$0xff]   ;;  %v4896_v15 = vld [vmem:[%s7052_s1 + $0x740] ss:$8 sps:$4 sm:$0xff]  }
  0x56   : > { %1599 = vmatpush1.bf16.msra.mxu1 %v4845_v10  ;;  %1549 = vmatprep.subr.bf16.mxu0 %v4850_v16  ;;  %v4898_v10 = vld [vmem:[%s7052_s1 + $0x744] ss:$8 sps:$4 sm:$0xff]   ;;  %v4899_v16 = vld [vmem:[%s7052_s1 + $0x840] ss:$8 sps:$4 sm:$0xff]  }
  0x57   : > { %1600 = vmatprep.subr.bf16.mxu1 %v4853_v17  ;;  %1575 = vmatprep.mubr.bf16.mxu0 %v639_v1  ;;  %v4904_v17 = vld [vmem:[%s7052_s1 + $0x734] ss:$8 sps:$4 sm:$0xff]  }
  0x58   : > { %1626 = vmatprep.mubr.bf16.mxu1 %v663_v5  ;;  %v699_v5 = vor.u32 %v697_v61, %v5856_v2  ;;  %v4951_v2 = vld [vmem:[%s7052_s1 + $0x54] ss:$8 sps:$4 sm:$0xff]  }
  0x59   : > { %1550 = vmatpush1.bf16.msra.mxu0 %v4848_v18  ;;  %v4907_v18 = vld [vmem:[%s7052_s1 + $0x834] ss:$8 sps:$4 sm:$0xff]  }
  0x5a   : > { %1601 = vmatpush1.bf16.msra.mxu1 %v4851_v19  ;;  %1551 = vmatprep.subr.bf16.mxu0 %v4856_v20  ;;  %v4902_v19 = vld [vmem:[%s7052_s1 + $0x730] ss:$8 sps:$4 sm:$0xff]  }
  0x5b   : > { %1602 = vmatprep.subr.bf16.mxu1 %v4859_v22  ;;  %v4905_v20 = vld [vmem:[%s7052_s1 + $0x830] ss:$8 sps:$4 sm:$0xff]   ;;  %v4910_v22 = vld [vmem:[%s7052_s1 + $0x724] ss:$8 sps:$4 sm:$0xff]  }
  0x5d   : > { %1552 = vmatpush1.bf16.msra.mxu0 %v4854_v23  ;;  %v4913_v23 = vld [vmem:[%s7052_s1 + $0x824] ss:$8 sps:$4 sm:$0xff]  }
  0x5e   : > { %1603 = vmatpush1.bf16.msra.mxu1 %v4857_v24  ;;  %1553 = vmatprep.subr.bf16.mxu0 %v4862_v26  ;;  %v4908_v24 = vld [vmem:[%s7052_s1 + $0x720] ss:$8 sps:$4 sm:$0xff]   ;;  %v619_v26 = vshll.u32 %v5698_v35, 16 }
  0x5f   : > { %1604 = vmatprep.subr.bf16.mxu1 %v4865_v27  ;;  %v643_v27 = vshll.u32 %v5683_v29, 16 }
  0x61   : > { %1554 = vmatpush1.bf16.msra.mxu0 %v4860_v31  ;;  %v4911_v31 = vld [vmem:[%s7052_s1 + $0x820] ss:$8 sps:$4 sm:$0xff]  }
  0x62   : > { %1605 = vmatpush1.bf16.msra.mxu1 %v4863_v32  ;;  %1555 = vmatprep.subr.bf16.mxu0 %v4868_v33  ;;  %v4930_v32 = vld [vmem:[%s5576_s30 + $0x30] ss:$12 sps:$4 sm:$0x1f]  }
  0x63   : > { %1606 = vmatprep.subr.bf16.mxu1 %v4871_v50  ;;  %v4916_v33 = vld [vmem:[%s7052_s1 + $0x714] ss:$8 sps:$4 sm:$0xff]   ;;  %v648_v40 = vshll.u32 %v4930_v32, 16 }
  0x64   : > { %v4919_v50 = vld [vmem:[%s7052_s1 + $0x814] ss:$8 sps:$4 sm:$0xff]  }
  0x65   : > { %1556 = vmatpush1.bf16.msra.mxu0 %v4866_v12  ;;  %v621_v12 = vrot.slane %v619_v26, 1  ;;  %v650_v48 = vrot.slane %v648_v40, 1  ;;  %v4958_v26 = vld [vmem:[%s7052_s1 + $0x8b0] ss:$8 sps:$4 sm:$0xff]  }
  0x66   : > { %1607 = vmatpush1.bf16.msra.mxu1 %v4869_v34  ;;  %1557 = vmatprep.subr.bf16.mxu0 %v4874_v36  ;;  %v624_v34 = vshll.u32 %v5622_v60, 16  ;;  %v641_v36 = vshrl.u32 %v5683_v29, 16 }
  0x67   : > { %1608 = vmatprep.subr.bf16.mxu1 %v4877_v39  ;;  %v645_v39 = vrot.slane %v643_v27, 1  ;;  %v4961_v27 = vld [vmem:[%s7052_s1 + $0x30] ss:$8 sps:$4 sm:$0xff]  }
  0x69   : > { %1558 = vmatpush1.bf16.msra.mxu0 %v4872_v42  ;;  %v4920_v42 = vld [vmem:[%s7052_s1 + $0x700] ss:$8 sps:$4 sm:$0xff]   ;;  %v646_v47 = vor.u32 %v645_v39, %v641_v36  ;;  %v4975_v36 = vld [vmem:[%s7052_s1 + $0x14] ss:$8 sps:$4 sm:$0xff]   ;;  %v4978_v39 = vld [vmem:[%s7052_s1 + $0x884] ss:$8 sps:$4 sm:$0xff]  }
  0x6a   : > { %1609 = vmatpush1.bf16.msra.mxu1 %v4875_v43  ;;  %1559 = vmatprep.subr.bf16.mxu0 %v4880_v44  ;;  %v626_v43 = vrot.slane %v624_v34, 1  ;;  %v4923_v44 = vld [vmem:[%s7052_s1 + $0x800] ss:$8 sps:$4 sm:$0xff]  }
  0x6b   : > { %1610 = vmatprep.subr.bf16.mxu1 %v4883_v46  ;;  %v622_v46 = vor.u32 %v621_v12, %v617_v55  ;;  %v651_v1 = vsel %vm567_vm0, %v646_v47, %v650_v48  ;;  %v4967_v55 = vld [vmem:[%s7052_s1 + $0x20] ss:$8 sps:$4 sm:$0xff]   ;;  %v4983_v12 = vld [vmem:[%s5576_s30 + $0x38] ss:$12 sps:$4 sm:$0x1f]  }
  0x6d   : > { %1560 = vmatpush2.bf16.msra.mxu0 %v4878_v51  ;;  %v4936_v51 = vld [vmem:[%s7052_s1 + $0x8f4] ss:$8 sps:$4 sm:$0xff]  }
  0x6e   : > { %1611 = vmatpush2.bf16.msra.mxu1 %v4881_v52  ;;  %1561 = vmatprep.subr.bf16.mxu0 %v4886_v63  ;;  %v4939_v52 = vld [vmem:[%s7052_s1 + $0x74] ss:$8 sps:$4 sm:$0xff]   ;;  %v4934_v63 = vld [vmem:[%s7052_s1 + $0x8f0] ss:$8 sps:$4 sm:$0xff]  }
  0x6f   : > { %1612 = vmatprep.subr.bf16.mxu1 %v4889_v0  ;;  %v627_v0 = vsel %vm567_vm0, %v622_v46, %v626_v43  ;;  %v4979_v46 = vld [vmem:[%s7052_s1] ss:$8 sps:$4 sm:$0xff]  }
  0x71   : > { %1562 = vmatpush2.bf16.msra.mxu0 %v4884_v3  ;;  %v4937_v3 = vld [vmem:[%s7052_s1 + $0x70] ss:$8 sps:$4 sm:$0xff]  }
  0x72   : > { %1613 = vmatpush2.bf16.msra.mxu1 %v4887_v4  ;;  %1563 = vmatprep.subr.bf16.mxu0 %v4892_v6  ;;  %v693_v4 = vor.u32 %v691_v58, %v5845_v56  ;;  %v4940_v6 = vld [vmem:[%s7052_s1 + $0x8e0] ss:$8 sps:$4 sm:$0xff]   ;;  %v4948_v56 = vld [vmem:[%s7052_s1 + $0x8d4] ss:$8 sps:$4 sm:$0xff]   ;;  %v4984_v58 = vld [vmem:[%s7052_s1 + $0xf0] ss:$8 sps:$4 sm:$0xff]  }
  0x73   : > { %1614 = vmatprep.subr.bf16.mxu1 %v4895_v7  ;;  %v688_v7 = vshrl.u32 %v5622_v60, 16 }
  0x75   : > { %1564 = vmatpush2.bf16.msra.mxu0 %v4890_v8  ;;  %v694_v8 = vshrl.u32 %v4930_v32, 16  ;;  %v4982_v32 = vld [vmem:[%s5576_s30 + $0x20] ss:$12 sps:$4 sm:$0xff]  }
  0x76   : > { %1615 = vmatpush2.bf16.msra.mxu1 %v4893_v9  ;;  %1565 = vmatprep.subr.bf16.mxu0 %v4898_v10  ;;  %v4943_v9 = vld [vmem:[%s7052_s1 + $0x60] ss:$8 sps:$4 sm:$0xff]   ;;  %v690_v10 = vor.u32 %v688_v7, %v626_v43  ;;  %v667_v34 = vshll.u32 %v4982_v32, 16  ;;  %v665_v40 = vshrl.u32 %v4982_v32, 16  ;;  %v4981_v43 = vld [vmem:[%s7052_s1 + $0x4] ss:$8 sps:$4 sm:$0xff]  }
  0x77   : > { %1616 = vmatprep.subr.bf16.mxu1 %v4901_v14  ;;  %v4946_v14 = vld [vmem:[%s7052_s1 + $0x8d0] ss:$8 sps:$4 sm:$0xff]   ;;  %v5028_v32 = vld [vmem:[%s7052_s1 + $0x84] ss:$8 sps:$4 sm:$0xff]  }
  0x78   : > { %v4996_v7 = vld [vmem:[%s7052_s1 + $0xd0] ss:$8 sps:$4 sm:$0xff]  }
  0x79   : > { %1566 = vmatpush2.bf16.msra.mxu0 %v4896_v15  ;;  %v696_v15 = vor.u32 %v694_v8, %v650_v48  ;;  %v4999_v8 = vld [vmem:[%s7052_s1 + $0x150] ss:$8 sps:$4 sm:$0xff]  }
  0x7a   : > { %1617 = vmatpush2.bf16.msra.mxu1 %v4899_v16  ;;  %1567 = vmatprep.subr.bf16.mxu0 %v4904_v17  ;;  %v4949_v16 = vld [vmem:[%s7052_s1 + $0x50] ss:$8 sps:$4 sm:$0xff]   ;;  %v4954_v17 = vld [vmem:[%s7052_s1 + $0x8c4] ss:$8 sps:$4 sm:$0xff]  }
  0x7b   : > { %1618 = vmatprep.subr.bf16.mxu1 %v4907_v18  ;;  %v4957_v18 = vld [vmem:[%s7052_s1 + $0x44] ss:$8 sps:$4 sm:$0xff]  }
  0x7d   : > { %1568 = vmatpush2.bf16.msra.mxu0 %v4902_v19  ;;  %v4952_v19 = vld [vmem:[%s7052_s1 + $0x8c0] ss:$8 sps:$4 sm:$0xff]  }
  0x7e   : > { %1619 = vmatpush2.bf16.msra.mxu1 %v4905_v20  ;;  %1569 = vmatprep.subr.bf16.mxu0 %v4910_v22  ;;  %v4955_v20 = vld [vmem:[%s7052_s1 + $0x40] ss:$8 sps:$4 sm:$0xff]   ;;  %v4960_v22 = vld [vmem:[%s7052_s1 + $0x8b4] ss:$8 sps:$4 sm:$0xff]  }
  0x7f   : > { %1620 = vmatprep.subr.bf16.mxu1 %v4913_v23  ;;  %v4963_v23 = vld [vmem:[%s7052_s1 + $0x34] ss:$8 sps:$4 sm:$0xff]  }
  0x81   : > { %1570 = vmatpush2.bf16.msra.mxu0 %v4908_v24  ;;  %v5405_v24 = vmov 0  }
  0x82   : > { %1621 = vmatpush2.bf16.msra.mxu1 %v4911_v31  ;;  %1571 = vmatprep.subr.bf16.mxu0 %v4916_v33  ;;  %v4966_v31 = vld [vmem:[%s7052_s1 + $0x8a4] ss:$8 sps:$4 sm:$0xff]  }
  0x83   : > { %1622 = vmatprep.subr.bf16.mxu1 %v4919_v50  ;;  %v4969_v33 = vld [vmem:[%s7052_s1 + $0x24] ss:$8 sps:$4 sm:$0xff]   ;;  %v4964_v50 = vld [vmem:[%s7052_s1 + $0x8a0] ss:$8 sps:$4 sm:$0xff]  }
  0x85   : > { %1572 = vmatpush2.bf16.msra.mxu0 %v4914_v62  ;;  %v4972_v62 = vld [vmem:[%s7052_s1 + $0x894] ss:$8 sps:$4 sm:$0xff]  }
  0x86   : > { %1623 = vmatpush2.bf16.msra.mxu1 %v4917_v37  ;;  %1573 = vmatprep.subr.bf16.mxu0 %v4922_v38  ;;  %v4970_v37 = vld [vmem:[%s7052_s1 + $0x890] ss:$8 sps:$4 sm:$0xff]  }
  0x87   : > { %1624 = vmatprep.subr.bf16.mxu1 %v4925_v41  ;;  %v4973_v38 = vld [vmem:[%s7052_s1 + $0x10] ss:$8 sps:$4 sm:$0xff]   ;;  %v669_v41 = vrot.slane %v667_v34, 1 }
  0x88   : > { %v5032_v34 = vld [vmem:[%s7052_s1 + $0x1f0] ss:$8 sps:$4 sm:$0xff]  }
  0x89   : > { %1574 = vmatpush2.bf16.msra.mxu0 %v4920_v42  ;;  %v672_v42 = vshll.u32 %v4983_v12, 16  ;;  %v670_v47 = vor.u32 %v669_v41, %v665_v40  ;;  %v5041_v40 = vld [vmem:[%s7052_s1 + $0x260] ss:$8 sps:$4 sm:$0xff]   ;;  %v5046_v41 = vld [vmem:[%s7052_s1 + $0x1d4] ss:$8 sps:$4 sm:$0xff]  }
  0x8a   : > { %1625 = vmatpush2.bf16.msra.mxu1 %v4923_v44  ;;  %1645 = vmatprep.subr.bf16.mxu0 %v4936_v51  ;;  %v4976_v44 = vld [vmem:[%s7052_s1 + $0x880] ss:$8 sps:$4 sm:$0xff]   ;;  %v4986_v51 = vld [vmem:[%s7052_s1 + $0xf4] ss:$8 sps:$4 sm:$0xff]  }
  0x8b   : > { %2416 = vmatprep.subr.bf16.mxu1 %v4939_v52  ;;  %v674_v48 = vrot.slane %v672_v42, 1  ;;  %v4989_v52 = vld [vmem:[%s7052_s1 + $0x174] ss:$8 sps:$4 sm:$0xff]  }
  0x8c   : > { %1576 = vmatmul.mubr.bf16.vlgmr.msra.gmra.mxu0 %v627_v0  ;;  %v4992_v0 = vld [vmem:[%s7052_s1 + $0xe4] ss:$8 sps:$4 sm:$0xff]   ;;  %v5049_v42 = vld [vmem:[%s7052_s1 + $0x254] ss:$8 sps:$4 sm:$0xff]  }
  0x8d   : > { %1627 = vmatmul.mubr.bf16.vlgmr.msra.gmra.mxu1 %v651_v1  ;;  %1646 = vmatpush1.bf16.msra.mxu0 %v4934_v63  ;;  %v675_v61 = vsel %vm567_vm0, %v670_v47, %v674_v48  ;;  %v4987_v63 = vld [vmem:[%s7052_s1 + $0x170] ss:$8 sps:$4 sm:$0xff]   ;;  %v4995_v1 = vld [vmem:[%s7052_s1 + $0x164] ss:$8 sps:$4 sm:$0xff]  }
  0x8e   : > { %2417 = vmatpush1.bf16.msra.mxu1 %v4937_v3  ;;  %1647 = vmatprep.subr.bf16.mxu0 %v4942_v45  ;;  %v4990_v3 = vld [vmem:[%s7052_s1 + $0xe0] ss:$8 sps:$4 sm:$0xff]   ;;  %v700_v45 = vshrl.u32 %v4983_v12, 16  ;;  %v5037_v12 = vld [vmem:[%s7052_s1 + $0x274] ss:$8 sps:$4 sm:$0xff]  }
  0x8f   : > { %2418 = vmatprep.subr.bf16.mxu1 %v4945_v49  ;;  %1585 = vmatprep.mubr.bf16.mxu0 %v693_v4  ;;  %v4993_v49 = vld [vmem:[%s7052_s1 + $0x160] ss:$8 sps:$4 sm:$0xff]   ;;  %v4998_v4 = vld [vmem:[%s7052_s1 + $0xd4] ss:$8 sps:$4 sm:$0xff]   ;;  %v5055_v47 = vld [vmem:[%s7052_s1 + $0x244] ss:$8 sps:$4 sm:$0xff]  }
  0x90   : > { %1636 = vmatprep.mubr.bf16.mxu1 %v699_v5  ;;  %v5001_v5 = vld [vmem:[%s7052_s1 + $0x154] ss:$8 sps:$4 sm:$0xff]  }
  0x91   : > { %1648 = vmatpush1.bf16.msra.mxu0 %v4940_v6  ;;  %v702_v6 = vor.u32 %v700_v45, %v674_v48  ;;  %v5050_v48 = vld [vmem:[%s7052_s1 + $0x1c0] ss:$8 sps:$4 sm:$0xff]  }
  0x92   : > { %2419 = vmatpush1.bf16.msra.mxu1 %v4943_v9  ;;  %1649 = vmatprep.subr.bf16.mxu0 %v4948_v56  ;;  %v5004_v9 = vld [vmem:[%s7052_s1 + $0xc4] ss:$8 sps:$4 sm:$0xff]   ;;  %v5065_v45 = vld [vmem:[%s7052_s1 + $0x220] ss:$8 sps:$4 sm:$0xff]  }
  0x93   : > { %2420 = vmatprep.subr.bf16.mxu1 %v4951_v2  ;;  %v5007_v56 = vld [vmem:[%s7052_s1 + $0x144] ss:$8 sps:$4 sm:$0xff]   ;;  %v5002_v2 = vld [vmem:[%s7052_s1 + $0xc0] ss:$8 sps:$4 sm:$0xff]  }
  0x94   : > { %1586 = vmatmul.mubr.bf16.gmra.mxu0 %v690_v10  ;;  %v5005_v10 = vld [vmem:[%s7052_s1 + $0x140] ss:$8 sps:$4 sm:$0xff]  }
  0x95   : > { %1637 = vmatmul.mubr.bf16.gmra.mxu1 %v696_v15  ;;  %1650 = vmatpush1.bf16.msra.mxu0 %v4946_v14  ;;  %v5010_v14 = vld [vmem:[%s7052_s1 + $0xb4] ss:$8 sps:$4 sm:$0xff]  }
  0x96   : > { %2421 = vmatpush1.bf16.msra.mxu1 %v4949_v16  ;;  %1651 = vmatprep.subr.bf16.mxu0 %v4954_v17  ;;  %v5013_v15 = vld [vmem:[%s7052_s1 + $0x134] ss:$8 sps:$4 sm:$0xff]   ;;  %v5008_v16 = vld [vmem:[%s7052_s1 + $0xb0] ss:$8 sps:$4 sm:$0xff]  }
  0x97   : > { %2422 = vmatprep.subr.bf16.mxu1 %v4957_v18  ;;  %1677 = vmatprep.mubr.bf16.mxu0 %v5405_v24  ;;  %v5011_v17 = vld [vmem:[%s7052_s1 + $0x130] ss:$8 sps:$4 sm:$0xff]   ;;  %v5016_v18 = vld [vmem:[%s7052_s1 + $0xa4] ss:$8 sps:$4 sm:$0xff]  }
  0x98   : > { %2448 = vmatprep.mubr.bf16.mxu1 %v5602_v53 }
  0x99   : > { %1652 = vmatpush1.bf16.msra.mxu0 %v4952_v19  ;;  %v5019_v19 = vld [vmem:[%s7052_s1 + $0x124] ss:$8 sps:$4 sm:$0xff]  }
  0x9a   : > { %2423 = vmatpush1.bf16.msra.mxu1 %v4955_v20  ;;  %1653 = vmatprep.subr.bf16.mxu0 %v4960_v22  ;;  %v5014_v20 = vld [vmem:[%s7052_s1 + $0xa0] ss:$8 sps:$4 sm:$0xff]  }
  0x9b   : > { %2424 = vmatprep.subr.bf16.mxu1 %v4963_v23  ;;  %v5017_v22 = vld [vmem:[%s7052_s1 + $0x120] ss:$8 sps:$4 sm:$0xff]   ;;  %v5022_v23 = vld [vmem:[%s7052_s1 + $0x94] ss:$8 sps:$4 sm:$0xff]  }
  0x9d   : > { %1654 = vmatpush1.bf16.msra.mxu0 %v4958_v26  ;;  %v5025_v26 = vld [vmem:[%s7052_s1 + $0x114] ss:$8 sps:$4 sm:$0xff]  }
  0x9e   : > { %2425 = vmatpush1.bf16.msra.mxu1 %v4961_v27  ;;  %1655 = vmatprep.subr.bf16.mxu0 %v4966_v31  ;;  %v5020_v27 = vld [vmem:[%s7052_s1 + $0x90] ss:$8 sps:$4 sm:$0xff]  }
  0x9f   : > { %2426 = vmatprep.subr.bf16.mxu1 %v4969_v33  ;;  %v5023_v31 = vld [vmem:[%s7052_s1 + $0x110] ss:$8 sps:$4 sm:$0xff]   ;;  %v5031_v33 = vld [vmem:[%s7052_s1 + $0x104] ss:$8 sps:$4 sm:$0xff]  }
  0xa1   : > { %1656 = vmatpush1.bf16.msra.mxu0 %v4964_v50  ;;  %v5026_v50 = vld [vmem:[%s7052_s1 + $0x80] ss:$8 sps:$4 sm:$0xff]  }
  0xa2   : > { %2427 = vmatpush1.bf16.msra.mxu1 %v4967_v55  ;;  %1657 = vmatprep.subr.bf16.mxu0 %v4972_v62  ;;  %v5029_v55 = vld [vmem:[%s7052_s1 + $0x100] ss:$8 sps:$4 sm:$0xff]   ;;  %v5034_v62 = vld [vmem:[%s7052_s1 + $0x1f4] ss:$8 sps:$4 sm:$0xff]  }
  0xa3   : > { %2428 = vmatprep.subr.bf16.mxu1 %v4975_v36  ;;  %v5035_v36 = vld [vmem:[%s7052_s1 + $0x270] ss:$8 sps:$4 sm:$0xff]  }
  0xa5   : > { %1658 = vmatpush1.bf16.msra.mxu0 %v4970_v37  ;;  %v5040_v37 = vld [vmem:[%s7052_s1 + $0x1e4] ss:$8 sps:$4 sm:$0xff]  }
  0xa6   : > { %2429 = vmatpush1.bf16.msra.mxu1 %v4973_v38  ;;  %1659 = vmatprep.subr.bf16.mxu0 %v4978_v39  ;;  %v5043_v38 = vld [vmem:[%s7052_s1 + $0x264] ss:$8 sps:$4 sm:$0xff]   ;;  %v5038_v39 = vld [vmem:[%s7052_s1 + $0x1e0] ss:$8 sps:$4 sm:$0xff]  }
  0xa7   : > { %2430 = vmatprep.subr.bf16.mxu1 %v4981_v43  ;;  %v5044_v43 = vld [vmem:[%s7052_s1 + $0x1d0] ss:$8 sps:$4 sm:$0xff]  }
  0xa9   : > { %1660 = vmatpush1.bf16.msra.mxu0 %v4976_v44  ;;  %v5047_v44 = vld [vmem:[%s7052_s1 + $0x250] ss:$8 sps:$4 sm:$0xff]  }
  0xaa   : > { %2431 = vmatpush1.bf16.msra.mxu1 %v4979_v46  ;;  %2467 = vmatprep.subr.bf16.mxu0 %v4989_v52  ;;  %v5052_v46 = vld [vmem:[%s7052_s1 + $0x1c4] ss:$8 sps:$4 sm:$0xff]   ;;  %v5058_v52 = vld [vmem:[%s7052_s1 + $0x1b4] ss:$8 sps:$4 sm:$0xff]  }
  0xab   : > { %2432 = vmatprep.subr.bf16.mxu1 %v4986_v51  ;;  %v5053_v51 = vld [vmem:[%s7052_s1 + $0x240] ss:$8 sps:$4 sm:$0xff]  }
  0xac   : > { %1678 = vmatmul.mubr.bf16.vlgmr.msra.gmra.mxu0 %v675_v61  ;;  %v5056_v61 = vld [vmem:[%s7052_s1 + $0x1b0] ss:$8 sps:$4 sm:$0xff]  }
  0xad   : > { %2468 = vmatpush1.bf16.msra.mxu0 %v4987_v63  ;;  %1687 = vmatprep.mubr.bf16.mxu0 %v5405_v24  ;;  %v5059_v63 = vld [vmem:[%s7052_s1 + $0x230] ss:$8 sps:$4 sm:$0xff]  }
  0xae   : > { %2433 = vmatpush2.bf16.msra.mxu1 %v4984_v58  ;;  %2469 = vmatprep.subr.bf16.mxu0 %v4995_v1  ;;  %v5061_v58 = vld [vmem:[%s7052_s1 + $0x234] ss:$8 sps:$4 sm:$0xff]   ;;  %v5067_v1 = vld [vmem:[%s7052_s1 + $0x224] ss:$8 sps:$4 sm:$0xff]  }
  0xaf   : > { %2434 = vmatprep.subr.bf16.mxu1 %v4992_v0  ;;  %v5064_v0 = vld [vmem:[%s7052_s1 + $0x1a4] ss:$8 sps:$4 sm:$0xff]  }
  0xb1   : > { %2470 = vmatpush1.bf16.msra.mxu0 %v4993_v49  ;;  %v5070_v49 = vld [vmem:[%s7052_s1 + $0x194] ss:$8 sps:$4 sm:$0xff]  }
  0xb2   : > { %2435 = vmatpush2.bf16.msra.mxu1 %v4990_v3  ;;  %2471 = vmatprep.subr.bf16.mxu0 %v5001_v5  ;;  %v5062_v3 = vld [vmem:[%s7052_s1 + $0x1a0] ss:$8 sps:$4 sm:$0xff]   ;;  %v5068_v5 = vld [vmem:[%s7052_s1 + $0x190] ss:$8 sps:$4 sm:$0xff]  }
  0xb3   : > { %2436 = vmatprep.subr.bf16.mxu1 %v4998_v4  ;;  %v5073_v4 = vld [vmem:[%s7052_s1 + $0x214] ss:$8 sps:$4 sm:$0xff]  }
  0xb4   : > { %1688 = vmatmul.mubr.bf16.gmra.mxu0 %v702_v6  ;;  %v5071_v6 = vld [vmem:[%s7052_s1 + $0x210] ss:$8 sps:$4 sm:$0xff]  }
  0xb5   : > { %2472 = vmatpush1.bf16.msra.mxu0 %v4999_v8  ;;  %2499 = vmatprep.mubr.bf16.mxu0 %v5613_v57  ;;  %v5079_v8 = vld [vmem:[%s7052_s1 + $0x204] ss:$8 sps:$4 sm:$0xff]  }
  0xb6   : > { %2437 = vmatpush2.bf16.msra.mxu1 %v4996_v7  ;;  %2473 = vmatprep.subr.bf16.mxu0 %v5007_v56  ;;  %v5076_v7 = vld [vmem:[%s7052_s1 + $0x184] ss:$8 sps:$4 sm:$0xff]   ;;  %v5077_v56 = vld [vmem:[%s7052_s1 + $0x200] ss:$8 sps:$4 sm:$0xff]  }
  0xb7   : > { %2438 = vmatprep.subr.bf16.mxu1 %v5004_v9  ;;  %v5074_v9 = vld [vmem:[%s7052_s1 + $0x180] ss:$8 sps:$4 sm:$0xff]  }
  0xb9   : > { %2474 = vmatpush1.bf16.msra.mxu0 %v5005_v10  ;;  %v5085_v10 = vld [vmem:[%s7052_s1 + $0x374] ss:$8 sps:$4 sm:$0xff]  }
  0xba   : > { %2439 = vmatpush2.bf16.msra.mxu1 %v5002_v2  ;;  %2475 = vmatprep.subr.bf16.mxu0 %v5013_v15  ;;  %v5082_v2 = vld [vmem:[%s7052_s1 + $0x2f4] ss:$8 sps:$4 sm:$0xff]   ;;  %v5083_v15 = vld [vmem:[%s7052_s1 + $0x370] ss:$8 sps:$4 sm:$0xff]  }
  0xbb   : > { %2440 = vmatprep.subr.bf16.mxu1 %v5010_v14  ;;  %v5080_v14 = vld [vmem:[%s7052_s1 + $0x2f0] ss:$8 sps:$4 sm:$0xff]  }
  0xbd   : > { %2476 = vmatpush1.bf16.msra.mxu0 %v5011_v17  ;;  %v5091_v17 = vld [vmem:[%s7052_s1 + $0x364] ss:$8 sps:$4 sm:$0xff]  }
  0xbe   : > { %2441 = vmatpush2.bf16.msra.mxu1 %v5008_v16  ;;  %2477 = vmatprep.subr.bf16.mxu0 %v5019_v19  ;;  %v5088_v16 = vld [vmem:[%s7052_s1 + $0x2e4] ss:$8 sps:$4 sm:$0xff]   ;;  %v5089_v19 = vld [vmem:[%s7052_s1 + $0x360] ss:$8 sps:$4 sm:$0xff]  }
  0xbf   : > { %2442 = vmatprep.subr.bf16.mxu1 %v5016_v18  ;;  %v5086_v18 = vld [vmem:[%s7052_s1 + $0x2e0] ss:$8 sps:$4 sm:$0xff]  }
  0xc1   : > { %2478 = vmatpush1.bf16.msra.mxu0 %v5017_v22  ;;  %v5097_v22 = vld [vmem:[%s7052_s1 + $0x354] ss:$8 sps:$4 sm:$0xff]  }
  0xc2   : > { %2443 = vmatpush2.bf16.msra.mxu1 %v5014_v20  ;;  %2479 = vmatprep.subr.bf16.mxu0 %v5025_v26  ;;  %v5094_v20 = vld [vmem:[%s7052_s1 + $0x2d4] ss:$8 sps:$4 sm:$0xff]   ;;  %v5095_v26 = vld [vmem:[%s7052_s1 + $0x350] ss:$8 sps:$4 sm:$0xff]  }
  0xc3   : > { %2444 = vmatprep.subr.bf16.mxu1 %v5022_v23  ;;  %v5092_v23 = vld [vmem:[%s7052_s1 + $0x2d0] ss:$8 sps:$4 sm:$0xff]  }
  0xc5   : > { %2480 = vmatpush1.bf16.msra.mxu0 %v5023_v31  ;;  %v5103_v31 = vld [vmem:[%s7052_s1 + $0x344] ss:$8 sps:$4 sm:$0xff]  }
  0xc6   : > { %2445 = vmatpush2.bf16.msra.mxu1 %v5020_v27  ;;  %2481 = vmatprep.subr.bf16.mxu0 %v5031_v33  ;;  %v5100_v27 = vld [vmem:[%s7052_s1 + $0x2c4] ss:$8 sps:$4 sm:$0xff]   ;;  %v5101_v33 = vld [vmem:[%s7052_s1 + $0x340] ss:$8 sps:$4 sm:$0xff]  }
  0xc7   : > { %2446 = vmatprep.subr.bf16.mxu1 %v5028_v32  ;;  %v5098_v32 = vld [vmem:[%s7052_s1 + $0x2c0] ss:$8 sps:$4 sm:$0xff]  }
  0xc9   : > { %2482 = vmatpush1.bf16.msra.mxu0 %v5029_v55  ;;  %v5109_v55 = vld [vmem:[%s7052_s1 + $0x334] ss:$8 sps:$4 sm:$0xff]  }
  0xca   : > { %2447 = vmatpush2.bf16.msra.mxu1 %v5026_v50  ;;  %2483 = vmatprep.subr.bf16.mxu0 %v5034_v62  ;;  %v5106_v50 = vld [vmem:[%s7052_s1 + $0x2b4] ss:$8 sps:$4 sm:$0xff]   ;;  %v5104_v62 = vld [vmem:[%s7052_s1 + $0x2b0] ss:$8 sps:$4 sm:$0xff]  }
  0xcb   : > { %2518 = vmatprep.subr.bf16.mxu1 %v5037_v12  ;;  %v5107_v12 = vld [vmem:[%s7052_s1 + $0x330] ss:$8 sps:$4 sm:$0xff]  }
  0xcd   : > { %2449 = vmatmul.mubr.bf16.vlgmr.msra.gmra.mxu1 %v5649_v11  ;;  %2484 = vmatpush2.bf16.msra.mxu0 %v5032_v34  ;;  %v5112_v34 = vld [vmem:[%s7052_s1 + $0x2a4] ss:$8 sps:$4 sm:$0xff]  }
  0xce   : > { %2519 = vmatpush1.bf16.msra.mxu1 %v5035_v36  ;;  %2485 = vmatprep.subr.bf16.mxu0 %v5040_v37  ;;  %v5115_v36 = vld [vmem:[%s7052_s1 + $0x324] ss:$8 sps:$4 sm:$0xff]   ;;  %v5110_v37 = vld [vmem:[%s7052_s1 + $0x2a0] ss:$8 sps:$4 sm:$0xff]  }
  0xcf   : > { %2520 = vmatprep.subr.bf16.mxu1 %v5043_v38  ;;  %2458 = vmatprep.mubr.bf16.mxu1 %v5605_v54  ;;  %v5113_v38 = vld [vmem:[%s7052_s1 + $0x320] ss:$8 sps:$4 sm:$0xff]  }
  0xd1   : > { %2486 = vmatpush2.bf16.msra.mxu0 %v5038_v39  ;;  %v5118_v39 = vld [vmem:[%s7052_s1 + $0x294] ss:$8 sps:$4 sm:$0xff]  }
  0xd2   : > { %2521 = vmatpush1.bf16.msra.mxu1 %v5041_v40  ;;  %2487 = vmatprep.subr.bf16.mxu0 %v5046_v41  ;;  %v5121_v40 = vld [vmem:[%s7052_s1 + $0x314] ss:$8 sps:$4 sm:$0xff]   ;;  %v5116_v41 = vld [vmem:[%s7052_s1 + $0x290] ss:$8 sps:$4 sm:$0xff]  }
  0xd3   : > { %2522 = vmatprep.subr.bf16.mxu1 %v5049_v42  ;;  %v5119_v42 = vld [vmem:[%s7052_s1 + $0x310] ss:$8 sps:$4 sm:$0xff]  }
  0xd5   : > { %2459 = vmatmul.mubr.bf16.gmra.mxu1 %v5665_v21  ;;  %2488 = vmatpush2.bf16.msra.mxu0 %v5044_v43  ;;  %v5124_v43 = vld [vmem:[%s7052_s1 + $0x284] ss:$8 sps:$4 sm:$0xff]  }
  0xd6   : > { %2523 = vmatpush1.bf16.msra.mxu1 %v5047_v44  ;;  %2489 = vmatprep.subr.bf16.mxu0 %v5052_v46  ;;  %v5127_v44 = vld [vmem:[%s7052_s1 + $0x304] ss:$8 sps:$4 sm:$0xff]   ;;  %v5122_v46 = vld [vmem:[%s7052_s1 + $0x280] ss:$8 sps:$4 sm:$0xff]  }
  0xd7   : > { %2524 = vmatprep.subr.bf16.mxu1 %v5055_v47  ;;  %2550 = vmatprep.mubr.bf16.mxu1 %v5786_v28  ;;  %v5125_v47 = vld [vmem:[%s7052_s1 + $0x300] ss:$8 sps:$4 sm:$0xff]  }
  0xd9   : > { %2490 = vmatpush2.bf16.msra.mxu0 %v5050_v48  ;;  %v5130_v48 = vld [vmem:[%s7052_s1 + $0x3f4] ss:$8 sps:$4 sm:$0xff]  }
  0xda   : > { %2525 = vmatpush1.bf16.msra.mxu1 %v5053_v51  ;;  %2491 = vmatprep.subr.bf16.mxu0 %v5058_v52  ;;  %v5133_v51 = vld [vmem:[%s7052_s1 + $0x474] ss:$8 sps:$4 sm:$0xff]   ;;  %v5128_v52 = vld [vmem:[%s7052_s1 + $0x3f0] ss:$8 sps:$4 sm:$0xff]  }
  0xdb   : > { %2526 = vmatprep.subr.bf16.mxu1 %v5061_v58  ;;  %v5131_v58 = vld [vmem:[%s7052_s1 + $0x470] ss:$8 sps:$4 sm:$0xff]  }
  0xdd   : > { %2492 = vmatpush2.bf16.msra.mxu0 %v5056_v61  ;;  %v5136_v61 = vld [vmem:[%s7052_s1 + $0x3e4] ss:$8 sps:$4 sm:$0xff]  }
  0xde   : > { %2527 = vmatpush1.bf16.msra.mxu1 %v5059_v63  ;;  %2493 = vmatprep.subr.bf16.mxu0 %v5064_v0  ;;  %v5139_v63 = vld [vmem:[%s7052_s1 + $0x464] ss:$8 sps:$4 sm:$0xff]  }
  0xdf   : > { %2528 = vmatprep.subr.bf16.mxu1 %v5067_v1 }
  0xe1   : > { %2494 = vmatpush2.bf16.msra.mxu0 %v5062_v3  ;;  %v5134_v3 = vld [vmem:[%s7052_s1 + $0x3e0] ss:$8 sps:$4 sm:$0xff]  }
  0xe2   : > { %2529 = vmatpush1.bf16.msra.mxu1 %v5065_v45  ;;  %2495 = vmatprep.subr.bf16.mxu0 %v5070_v49  ;;  %v5137_v49 = vld [vmem:[%s7052_s1 + $0x460] ss:$8 sps:$4 sm:$0xff]  }
  0xe3   : > { %2530 = vmatprep.subr.bf16.mxu1 %v5073_v4  ;;  %v5142_v4 = vld [vmem:[%s7052_s1 + $0x3d4] ss:$8 sps:$4 sm:$0xff]  }
  0xe5   : > { %2496 = vmatpush2.bf16.msra.mxu0 %v5068_v5 }
  0xe6   : > { %2531 = vmatpush1.bf16.msra.mxu1 %v5071_v6  ;;  %2497 = vmatprep.subr.bf16.mxu0 %v5076_v7  ;;  %v5145_v7 = vld [vmem:[%s7052_s1 + $0x454] ss:$8 sps:$4 sm:$0xff]  }
  0xe7   : > { %2532 = vmatprep.subr.bf16.mxu1 %v5079_v8 }
  0xe9   : > { %2498 = vmatpush2.bf16.msra.mxu0 %v5074_v9  ;;  %v6386_v9 = vld [vmem:[%s5576_s30 + $0x2c] ss:$12 sps:$4 sm:$0x1f]  }
  0xea   : > { %2533 = vmatpush1.bf16.msra.mxu1 %v5077_v56  ;;  %2569 = vmatprep.subr.bf16.mxu0 %v5085_v10  ;;  %v5140_v10 = vld [vmem:[%s7052_s1 + $0x3d0] ss:$8 sps:$4 sm:$0xff]  }
  0xeb   : > { %2534 = vmatprep.subr.bf16.mxu1 %v5082_v2 }
  0xec   : > { %2500 = vmatmul.mubr.bf16.vlgmr.msra.gmra.mxu0 %v5655_v13 }
  0xed   : > { %2570 = vmatpush1.bf16.msra.mxu0 %v5083_v15  ;;  %2509 = vmatprep.mubr.bf16.mxu0 %v5619_v59  ;;  %v5143_v15 = vld [vmem:[%s7052_s1 + $0x450] ss:$8 sps:$4 sm:$0xff]  }
  0xee   : > { %2535 = vmatpush2.bf16.msra.mxu1 %v5080_v14  ;;  %2571 = vmatprep.subr.bf16.mxu0 %v5091_v17 }
  0xef   : > { %2536 = vmatprep.subr.bf16.mxu1 %v5088_v16  ;;  %v5148_v16 = vld [vmem:[%s7052_s1 + $0x3c4] ss:$8 sps:$4 sm:$0xff]  }
  0xf1   : > { %2572 = vmatpush1.bf16.msra.mxu0 %v5089_v19  ;;  %v5151_v19 = vld [vmem:[%s7052_s1 + $0x444] ss:$8 sps:$4 sm:$0xff]  }
  0xf2   : > { %2537 = vmatpush2.bf16.msra.mxu1 %v5086_v18  ;;  %2573 = vmatprep.subr.bf16.mxu0 %v5097_v22  ;;  %v5146_v22 = vld [vmem:[%s7052_s1 + $0x3c0] ss:$8 sps:$4 sm:$0xff]  }
  0xf3   : > { %2538 = vmatprep.subr.bf16.mxu1 %v5094_v20 }
  0xf4   : > { %2510 = vmatmul.mubr.bf16.gmra.mxu0 %v5674_v25 }
  0xf5   : > { %2574 = vmatpush1.bf16.msra.mxu0 %v5095_v26  ;;  %2601 = vmatprep.mubr.bf16.mxu0 %v5790_v30 }
  0xf6   : > { %2539 = vmatpush2.bf16.msra.mxu1 %v5092_v23  ;;  %2575 = vmatprep.subr.bf16.mxu0 %v5103_v31  ;;  %v5154_v31 = vld [vmem:[%s7052_s1 + $0x3b4] ss:$8 sps:$4 sm:$0xff]  }
  0xf7   : > { %2540 = vmatprep.subr.bf16.mxu1 %v5100_v27  ;;  %v5149_v27 = vld [vmem:[%s7052_s1 + $0x440] ss:$8 sps:$4 sm:$0xff]  }
  0xf9   : > { %2576 = vmatpush1.bf16.msra.mxu0 %v5101_v33  ;;  %v5157_v33 = vld [vmem:[%s7052_s1 + $0x434] ss:$8 sps:$4 sm:$0xff]  }
  0xfa   : > { %2541 = vmatpush2.bf16.msra.mxu1 %v5098_v32  ;;  %2577 = vmatprep.subr.bf16.mxu0 %v5109_v55 }
  0xfb   : > { %2542 = vmatprep.subr.bf16.mxu1 %v5106_v50 }
  0xfd   : > { %2578 = vmatpush1.bf16.msra.mxu0 %v5107_v12  ;;  %v5152_v12 = vld [vmem:[%s7052_s1 + $0x3b0] ss:$8 sps:$4 sm:$0xff]  }
  0xfe   : > { %2543 = vmatpush2.bf16.msra.mxu1 %v5104_v62  ;;  %2579 = vmatprep.subr.bf16.mxu0 %v5115_v36 }
  0xff   : > { %2544 = vmatprep.subr.bf16.mxu1 %v5112_v34 }
 0x101   : > { %2580 = vmatpush1.bf16.msra.mxu0 %v5113_v38  ;;  %v5160_v38 = vld [vmem:[%s7052_s1 + $0x3a4] ss:$8 sps:$4 sm:$0xff]  }
 0x102   : > { %2545 = vmatpush2.bf16.msra.mxu1 %v5110_v37  ;;  %2581 = vmatprep.subr.bf16.mxu0 %v5121_v40  ;;  %v5155_v37 = vld [vmem:[%s7052_s1 + $0x430] ss:$8 sps:$4 sm:$0xff]  }
 0x103   : > { %2546 = vmatprep.subr.bf16.mxu1 %v5118_v39  ;;  %v5163_v39 = vld [vmem:[%s7052_s1 + $0x424] ss:$8 sps:$4 sm:$0xff]  }
 0x105   : > { %2582 = vmatpush1.bf16.msra.mxu0 %v5119_v42  ;;  %v5158_v42 = vld [vmem:[%s7052_s1 + $0x3a0] ss:$8 sps:$4 sm:$0xff]  }
 0x106   : > { %2547 = vmatpush2.bf16.msra.mxu1 %v5116_v41  ;;  %2583 = vmatprep.subr.bf16.mxu0 %v5127_v44  ;;  %v5166_v44 = vld [vmem:[%s7052_s1 + $0x394] ss:$8 sps:$4 sm:$0xff]  }
 0x107   : > { %2548 = vmatprep.subr.bf16.mxu1 %v5124_v43  ;;  %v5161_v43 = vld [vmem:[%s7052_s1 + $0x420] ss:$8 sps:$4 sm:$0xff]  }
 0x109   : > { %2584 = vmatpush1.bf16.msra.mxu0 %v5125_v47  ;;  %v5164_v47 = vld [vmem:[%s7052_s1 + $0x390] ss:$8 sps:$4 sm:$0xff]  }
 0x10a   : > { %2549 = vmatpush2.bf16.msra.mxu1 %v5122_v46  ;;  %2585 = vmatprep.subr.bf16.mxu0 %v5130_v48  ;;  %v5169_v46 = vld [vmem:[%s7052_s1 + $0x414] ss:$8 sps:$4 sm:$0xff]   ;;  %v5167_v48 = vld [vmem:[%s7052_s1 + $0x410] ss:$8 sps:$4 sm:$0xff]  }
 0x10b   : > { %2620 = vmatprep.subr.bf16.mxu1 %v5133_v51  ;;  %v5172_v51 = vld [vmem:[%s7052_s1 + $0x384] ss:$8 sps:$4 sm:$0xff]  }
 0x10c   : > { %v1475_v0 = vpop.f32.mrf.mxu0 }
 0x10d   : > { %v1526_v1 = vpop.f32.mrf.mxu1  ;;  %2551 = vmatmul.mubr.bf16.vlgmr.msra.gmra.mxu1 %v5698_v35  ;;  %2586 = vmatpush2.bf16.msra.mxu0 %v5128_v52  ;;  %v5175_v52 = vld [vmem:[%s7052_s1 + $0x404] ss:$8 sps:$4 sm:$0xff]  }
 0x10e   : > { %v6372_v45 = vadd.f32 %v1526_v1, %v1475_v0  ;;  %2621 = vmatpush1.bf16.msra.mxu1 %v5131_v58  ;;  %v1477_v5 = vpop.f32.mrf.mxu0  ;;  %2587 = vmatprep.subr.bf16.mxu0 %v5136_v61  ;;  %v5170_v58 = vld [vmem:[%s7052_s1 + $0x380] ss:$8 sps:$4 sm:$0xff]   ;;  %v5181_v0 = vld [vmem:[%s7052_s1 + $0xa74] ss:$8 sps:$4 sm:$0xff]   ;;  %v5176_v1 = vld [vmem:[%s7052_s1 + $0x970] ss:$8 sps:$4 sm:$0xff]  }
 0x10f   : > { %v1528_v6 = vpop.f32.mrf.mxu1  ;;  %2622 = vmatprep.subr.bf16.mxu1 %v5139_v63  ;;  %2560 = vmatprep.mubr.bf16.mxu1 %v6386_v9  ;;  %v5173_v61 = vld [vmem:[%s7052_s1 + $0x400] ss:$8 sps:$4 sm:$0xff]   ;;  %v5178_v63 = vld [vmem:[%s7052_s1 + $0x974] ss:$8 sps:$4 sm:$0xff]  }
 0x110   : > { %v6383_v8 = vadd.f32 %v1528_v6, %v1477_v5  ;;  %v1479_v56 = vpop.f32.mrf.mxu0  ;;  %v5182_v5 = vld [vmem:[%s7052_s1 + $0x960] ss:$8 sps:$4 sm:$0xff]  }
 0x111   : > { %v1530_v2 = vpop.f32.mrf.mxu1  ;;  %2588 = vmatpush2.bf16.msra.mxu0 %v5134_v3  ;;  %v5179_v3 = vld [vmem:[%s7052_s1 + $0xa70] ss:$8 sps:$4 sm:$0xff]   ;;  %v5185_v6 = vld [vmem:[%s7052_s1 + $0xa60] ss:$8 sps:$4 sm:$0xff]  }
 0x112   : > { %v6392_v14 = vadd.f32 %v1530_v2, %v1479_v56  ;;  %2623 = vmatpush1.bf16.msra.mxu1 %v5137_v49  ;;  %v1481_v17 = vpop.f32.mrf.mxu0  ;;  %2589 = vmatprep.subr.bf16.mxu0 %v5142_v4  ;;  %v5184_v49 = vld [vmem:[%s7052_s1 + $0x964] ss:$8 sps:$4 sm:$0xff]   ;;  %v5190_v56 = vld [vmem:[%s7052_s1 + $0x954] ss:$8 sps:$4 sm:$0xff]  }
 0x113   : > { %v1532_v18 = vpop.f32.mrf.mxu1  ;;  %2624 = vmatprep.subr.bf16.mxu1 %v5145_v7  ;;  %v5187_v4 = vld [vmem:[%s7052_s1 + $0xa64] ss:$8 sps:$4 sm:$0xff]   ;;  %v5193_v2 = vld [vmem:[%s7052_s1 + $0xa54] ss:$8 sps:$4 sm:$0xff]  }
 0x114   : > { %v6403_v20 = vadd.f32 %v1532_v18, %v1481_v17  ;;  %v1485_v23 = vpop.f32.mrf.mxu0  ;;  %v6491_v7 = vld [vmem:[%s5576_s30 + $0x20] ss:$12 sps:$4 sm:$0xff]   ;;  %v2826_v17 = vrot.slane %v5613_v57, 1  ;;  %v2827_v18 = vrot.slane %v5619_v59, 1  ;;  %v5287_v59 = vld [vmem:[%s7052_s1 + $0xc50] ss:$8 sps:$4 sm:$0xff]  }
 0x115   : > { %2561 = vmatmul.mubr.bf16.gmra.mxu1 %v5622_v60  ;;  %v1536_v26 = vpop.f32.mrf.mxu1  ;;  %2590 = vmatpush2.bf16.msra.mxu0 %v5140_v10  ;;  %v6501_v10 = vld [vmem:[%s5576_s30 + $0x34] ss:$12 sps:$4 sm:$0x1f]   ;;  %v5199_v57 = vld [vmem:[%s7052_s1 + $0xa44] ss:$8 sps:$4 sm:$0xff]  }
 0x116   : > { %2625 = vmatpush1.bf16.msra.mxu1 %v5143_v15  ;;  %v6415_v32 = vadd.f32 %v1536_v26, %v1485_v23  ;;  %2591 = vmatprep.subr.bf16.mxu0 %v5148_v16  ;;  %v1487_v50 = vpop.f32.mrf.mxu0  ;;  %v2820_v15 = vrot.slane %v5602_v53, 1  ;;  %v2821_v16 = vrot.slane %v5605_v54, 1  ;;  %v5196_v53 = vld [vmem:[%s7052_s1 + $0x944] ss:$8 sps:$4 sm:$0xff]   ;;  %v5284_v54 = vld [vmem:[%s7052_s1 + $0xb50] ss:$8 sps:$4 sm:$0xff]  }
 0x117   : > { %2626 = vmatprep.subr.bf16.mxu1 %v5151_v19  ;;  %v1538_v55 = vpop.f32.mrf.mxu1  ;;  %2652 = vmatprep.mubr.bf16.mxu1 %v5405_v24  ;;  %v5188_v19 = vld [vmem:[%s7052_s1 + $0x950] ss:$8 sps:$4 sm:$0xff]  }
 0x118   : > { %v6421_v62 = vadd.f32 %v1538_v55, %v1487_v50  ;;  %v1489_v34 = vpop.f32.mrf.mxu0  ;;  %v6522_v23 = vld [vmem:[%s5576_s30 + $0x30] ss:$12 sps:$4 sm:$0x1f]   ;;  %v6526_v26 = vld [vmem:[%s5576_s30 + $0x38] ss:$12 sps:$4 sm:$0x1f]  }
 0x119   : > { %v1540_v36 = vpop.f32.mrf.mxu1  ;;  %2592 = vmatpush2.bf16.msra.mxu0 %v5146_v22  ;;  %v5191_v22 = vld [vmem:[%s7052_s1 + $0xa50] ss:$8 sps:$4 sm:$0xff]   ;;  %v5197_v50 = vld [vmem:[%s7052_s1 + $0xa40] ss:$8 sps:$4 sm:$0xff]   ;;  %v5202_v55 = vld [vmem:[%s7052_s1 + $0x934] ss:$8 sps:$4 sm:$0xff]  }
 0x11a   : > { %2627 = vmatpush1.bf16.msra.mxu1 %v5149_v27  ;;  %2593 = vmatprep.subr.bf16.mxu0 %v5154_v31  ;;  %v1490_v40 = vpop.f32.mrf.mxu0  ;;  %v2822_v27 = vsel %vm2816_vm1, %v2820_v15, %v2821_v16  ;;  %v2828_v31 = vsel %vm2816_vm1, %v2826_v17, %v2827_v18  ;;  %v5200_v34 = vld [vmem:[%s7052_s1 + $0x930] ss:$8 sps:$4 sm:$0xff]   ;;  %v5238_v15 = vld [vmem:[%s7052_s1 + $0x9d4] ss:$8 sps:$4 sm:$0xff]  }
 0x11b   : > { %2628 = vmatprep.subr.bf16.mxu1 %v5157_v33  ;;  %v1541_v41 = vpop.f32.mrf.mxu1  ;;  %v5194_v33 = vld [vmem:[%s7052_s1 + $0x940] ss:$8 sps:$4 sm:$0xff]   ;;  %v5203_v36 = vld [vmem:[%s7052_s1 + $0xa30] ss:$8 sps:$4 sm:$0xff]  }
 0x11c   : > { %v5209_v40 = vld [vmem:[%s7052_s1 + $0xa20] ss:$8 sps:$4 sm:$0xff]   ;;  %v5214_v41 = vld [vmem:[%s7052_s1 + $0x914] ss:$8 sps:$4 sm:$0xff]  }
 0x11d   : > { %2594 = vmatpush2.bf16.msra.mxu0 %v5152_v12  ;;  %v5205_v12 = vld [vmem:[%s7052_s1 + $0xa34] ss:$8 sps:$4 sm:$0xff]  }
 0x11e   : > { %2629 = vmatpush1.bf16.msra.mxu1 %v5155_v37  ;;  %2595 = vmatprep.subr.bf16.mxu0 %v5160_v38  ;;  %v5208_v37 = vld [vmem:[%s7052_s1 + $0x924] ss:$8 sps:$4 sm:$0xff]  }
 0x11f   : > { %2630 = vmatprep.subr.bf16.mxu1 %v5163_v39  ;;  %v5211_v38 = vld [vmem:[%s7052_s1 + $0xa24] ss:$8 sps:$4 sm:$0xff]   ;;  %v5206_v39 = vld [vmem:[%s7052_s1 + $0x920] ss:$8 sps:$4 sm:$0xff]  }
 0x121   : > { %2596 = vmatpush2.bf16.msra.mxu0 %v5158_v42  ;;  %v5217_v42 = vld [vmem:[%s7052_s1 + $0xa14] ss:$8 sps:$4 sm:$0xff]  }
 0x122   : > { %2631 = vmatpush1.bf16.msra.mxu1 %v5161_v43  ;;  %2597 = vmatprep.subr.bf16.mxu0 %v5166_v44  ;;  %v5212_v43 = vld [vmem:[%s7052_s1 + $0x910] ss:$8 sps:$4 sm:$0xff]  }
 0x123   : > { %2632 = vmatprep.subr.bf16.mxu1 %v5169_v46  ;;  %v5215_v44 = vld [vmem:[%s7052_s1 + $0xa10] ss:$8 sps:$4 sm:$0xff]   ;;  %v5220_v46 = vld [vmem:[%s7052_s1 + $0x904] ss:$8 sps:$4 sm:$0xff]  }
 0x125   : > { %2598 = vmatpush2.bf16.msra.mxu0 %v5164_v47  ;;  %v5223_v47 = vld [vmem:[%s7052_s1 + $0xa04] ss:$8 sps:$4 sm:$0xff]  }
 0x126   : > { %2633 = vmatpush1.bf16.msra.mxu1 %v5167_v48  ;;  %2599 = vmatprep.subr.bf16.mxu0 %v5172_v51  ;;  %v5218_v48 = vld [vmem:[%s7052_s1 + $0x900] ss:$8 sps:$4 sm:$0xff]  }
 0x127   : > { %2634 = vmatprep.subr.bf16.mxu1 %v5175_v52  ;;  %v5221_v51 = vld [vmem:[%s7052_s1 + $0xa00] ss:$8 sps:$4 sm:$0xff]   ;;  %v5226_v52 = vld [vmem:[%s7052_s1 + $0x9f4] ss:$8 sps:$4 sm:$0xff]  }
 0x129   : > { %2600 = vmatpush2.bf16.msra.mxu0 %v5170_v58  ;;  %v5229_v58 = vld [vmem:[%s7052_s1 + $0xaf4] ss:$8 sps:$4 sm:$0xff]  }
 0x12a   : > { %2635 = vmatpush1.bf16.msra.mxu1 %v5173_v61  ;;  %3582 = vmatprep.subr.bf16.mxu0 %v5178_v63  ;;  %v5224_v61 = vld [vmem:[%s7052_s1 + $0x9f0] ss:$8 sps:$4 sm:$0xff]  }
 0x12b   : > { %3633 = vmatprep.subr.bf16.mxu1 %v5181_v0  ;;  %v5227_v63 = vld [vmem:[%s7052_s1 + $0xaf0] ss:$8 sps:$4 sm:$0xff]   ;;  %v5232_v0 = vld [vmem:[%s7052_s1 + $0x9e4] ss:$8 sps:$4 sm:$0xff]  }
 0x12c   : > { %2602 = vmatmul.mubr.bf16.vlgmr.msra.gmra.mxu0 %v5683_v29 }
 0x12d   : > { %2653 = vmatmul.mubr.bf16.vlgmr.msra.gmra.mxu1 %v6491_v7  ;;  %3583 = vmatpush1.bf16.msra.mxu0 %v5176_v1  ;;  %v5235_v1 = vld [vmem:[%s7052_s1 + $0xae4] ss:$8 sps:$4 sm:$0xff]  }
 0x12e   : > { %3634 = vmatpush1.bf16.msra.mxu1 %v5179_v3  ;;  %3584 = vmatprep.subr.bf16.mxu0 %v5184_v49 }
 0x12f   : > { %3635 = vmatprep.subr.bf16.mxu1 %v5187_v4  ;;  %2611 = vmatprep.mubr.bf16.mxu0 %v6501_v10 }
 0x130   : > { %2662 = vmatprep.mubr.bf16.mxu1 %v5405_v24 }
 0x131   : > { %3585 = vmatpush1.bf16.msra.mxu0 %v5182_v5  ;;  %v5230_v5 = vld [vmem:[%s7052_s1 + $0x9e0] ss:$8 sps:$4 sm:$0xff]  }
 0x132   : > { %3636 = vmatpush1.bf16.msra.mxu1 %v5185_v6  ;;  %3586 = vmatprep.subr.bf16.mxu0 %v5190_v56  ;;  %v5233_v6 = vld [vmem:[%s7052_s1 + $0xae0] ss:$8 sps:$4 sm:$0xff]  }
 0x133   : > { %3637 = vmatprep.subr.bf16.mxu1 %v5193_v2 }
 0x134   : > { %2612 = vmatmul.mubr.bf16.gmra.mxu0 %v6522_v23 }
 0x135   : > { %2663 = vmatmul.mubr.bf16.gmra.mxu1 %v6526_v26  ;;  %3587 = vmatpush1.bf16.msra.mxu0 %v5188_v19 }
 0x136   : > { %3638 = vmatpush1.bf16.msra.mxu1 %v5191_v22  ;;  %3588 = vmatprep.subr.bf16.mxu0 %v5196_v53 }
 0x137   : > { %3639 = vmatprep.subr.bf16.mxu1 %v5199_v57  ;;  %3614 = vmatprep.mubr.bf16.mxu0 %v2822_v27 }
 0x138   : > { %3665 = vmatprep.mubr.bf16.mxu1 %v2828_v31  ;;  %v5236_v31 = vld [vmem:[%s7052_s1 + $0x9d0] ss:$8 sps:$4 sm:$0xff]  }
 0x139   : > { %3589 = vmatpush1.bf16.msra.mxu0 %v5194_v33  ;;  %v5239_v33 = vld [vmem:[%s7052_s1 + $0xad0] ss:$8 sps:$4 sm:$0xff]  }
 0x13a   : > { %3640 = vmatpush1.bf16.msra.mxu1 %v5197_v50  ;;  %3590 = vmatprep.subr.bf16.mxu0 %v5202_v55 }
 0x13b   : > { %3641 = vmatprep.subr.bf16.mxu1 %v5205_v12 }
 0x13d   : > { %3591 = vmatpush1.bf16.msra.mxu0 %v5200_v34 }
 0x13e   : > { %3642 = vmatpush1.bf16.msra.mxu1 %v5203_v36  ;;  %3592 = vmatprep.subr.bf16.mxu0 %v5208_v37 }
 0x13f   : > { %3643 = vmatprep.subr.bf16.mxu1 %v5211_v38 }
 0x141   : > { %3593 = vmatpush1.bf16.msra.mxu0 %v5206_v39 }
 0x142   : > { %3644 = vmatpush1.bf16.msra.mxu1 %v5209_v40  ;;  %3594 = vmatprep.subr.bf16.mxu0 %v5214_v41  ;;  %v5242_v40 = vld [vmem:[%s7052_s1 + $0x9c0] ss:$8 sps:$4 sm:$0xff]  }
 0x143   : > { %3645 = vmatprep.subr.bf16.mxu1 %v5217_v42  ;;  %v5245_v41 = vld [vmem:[%s7052_s1 + $0xac0] ss:$8 sps:$4 sm:$0xff]  }
 0x145   : > { %3595 = vmatpush1.bf16.msra.mxu0 %v5212_v43 }
 0x146   : > { %3646 = vmatpush1.bf16.msra.mxu1 %v5215_v44  ;;  %3596 = vmatprep.subr.bf16.mxu0 %v5220_v46 }
 0x147   : > { %3647 = vmatprep.subr.bf16.mxu1 %v5223_v47 }
 0x149   : > { %3597 = vmatpush1.bf16.msra.mxu0 %v5218_v48 }
 0x14a   : > { %3648 = vmatpush1.bf16.msra.mxu1 %v5221_v51  ;;  %3598 = vmatprep.subr.bf16.mxu0 %v5226_v52  ;;  %v5248_v52 = vld [vmem:[%s7052_s1 + $0x9b0] ss:$8 sps:$4 sm:$0xff]  }
 0x14b   : > { %3649 = vmatprep.subr.bf16.mxu1 %v5229_v58  ;;  %v5251_v58 = vld [vmem:[%s7052_s1 + $0xab0] ss:$8 sps:$4 sm:$0xff]  }
 0x14c   : > { %v1577_v3 = vpop.f32.mrf.mxu0 }
 0x14d   : > { %v1628_v49 = vpop.f32.mrf.mxu1  ;;  %v1578_v4 = vadd.f32 %v1577_v3, %v6372_v45  ;;  %3599 = vmatpush2.bf16.msra.mxu0 %v5224_v61  ;;  %v5241_v45 = vld [vmem:[%s7052_s1 + $0xad4] ss:$8 sps:$4 sm:$0xff]   ;;  %v5259_v61 = vld [vmem:[%s7052_s1 + $0xaa4] ss:$8 sps:$4 sm:$0xff]   ;;  %v5257_v3 = vld [vmem:[%s7052_s1 + $0xaa0] ss:$8 sps:$4 sm:$0xff]  }
 0x14e   : > { %3650 = vmatpush2.bf16.msra.mxu1 %v5227_v63  ;;  %v1579_v56 = vpop.f32.mrf.mxu0  ;;  %3600 = vmatprep.subr.bf16.mxu0 %v5232_v0 }
 0x14f   : > { %v1630_v2 = vpop.f32.mrf.mxu1  ;;  %3651 = vmatprep.subr.bf16.mxu1 %v5235_v1  ;;  %v6620_v17 = vadd.f32 %v1628_v49, %v1578_v4  ;;  %v1580_v19 = vadd.f32 %v1579_v56, %v6383_v8  ;;  %v5244_v8 = vld [vmem:[%s7052_s1 + $0x9c4] ss:$8 sps:$4 sm:$0xff]   ;;  %v5254_v1 = vld [vmem:[%s7052_s1 + $0x9a0] ss:$8 sps:$4 sm:$0xff]   ;;  %v5262_v49 = vld [vmem:[%s7052_s1 + $0x994] ss:$8 sps:$4 sm:$0xff]  }
 0x150   : > { %v1581_v22 = vpop.f32.mrf.mxu0  ;;  %v5265_v4 = vld [vmem:[%s7052_s1 + $0xa94] ss:$8 sps:$4 sm:$0xff]   ;;  %v5268_v56 = vld [vmem:[%s7052_s1 + $0x984] ss:$8 sps:$4 sm:$0xff]  }
 0x151   : > { %v1632_v53 = vpop.f32.mrf.mxu1  ;;  %v6623_v57 = vadd.f32 %v1630_v2, %v1580_v19  ;;  %v1582_v27 = vadd.f32 %v1581_v22, %v6392_v14  ;;  %3601 = vmatpush2.bf16.msra.mxu0 %v5230_v5  ;;  %v5247_v14 = vld [vmem:[%s7052_s1 + $0xac4] ss:$8 sps:$4 sm:$0xff]   ;;  %v5260_v5 = vld [vmem:[%s7052_s1 + $0x990] ss:$8 sps:$4 sm:$0xff]   ;;  %v5266_v19 = vld [vmem:[%s7052_s1 + $0x980] ss:$8 sps:$4 sm:$0xff]  }
 0x152   : > { %3652 = vmatpush2.bf16.msra.mxu1 %v5233_v6  ;;  %v1583_v50 = vpop.f32.mrf.mxu0  ;;  %3602 = vmatprep.subr.bf16.mxu0 %v5238_v15  ;;  %v5263_v6 = vld [vmem:[%s7052_s1 + $0xa90] ss:$8 sps:$4 sm:$0xff]   ;;  %v5271_v2 = vld [vmem:[%s7052_s1 + $0xa84] ss:$8 sps:$4 sm:$0xff]   ;;  %v2817_v15 = vrot.slane %v5649_v11, 1 }
 0x153   : > { %v1634_v55 = vpop.f32.mrf.mxu1  ;;  %3653 = vmatprep.subr.bf16.mxu1 %v5241_v45  ;;  %v6638_v12 = vadd.f32 %v1632_v53, %v1582_v27  ;;  %v1584_v34 = vadd.f32 %v1583_v50, %v6403_v20  ;;  %v5250_v20 = vld [vmem:[%s7052_s1 + $0x9b4] ss:$8 sps:$4 sm:$0xff]   ;;  %v2818_v45 = vrot.slane %v5665_v21, 1  ;;  %v5269_v22 = vld [vmem:[%s7052_s1 + $0xa80] ss:$8 sps:$4 sm:$0xff]   ;;  %v2823_v53 = vrot.slane %v5655_v13, 1 }
 0x154   : > { %v1587_v36 = vpop.f32.mrf.mxu0  ;;  %v2824_v27 = vrot.slane %v5674_v25, 1  ;;  %v5274_v11 = vld [vmem:[%s7052_s1 + $0xb74] ss:$8 sps:$4 sm:$0xff]   ;;  %v5272_v13 = vld [vmem:[%s7052_s1 + $0xb70] ss:$8 sps:$4 sm:$0xff]  }
 0x155   : > { %v1638_v37 = vpop.f32.mrf.mxu1  ;;  %v6641_v38 = vadd.f32 %v1634_v55, %v1584_v34  ;;  %v1588_v39 = vadd.f32 %v1587_v36, %v6415_v32  ;;  %3603 = vmatpush2.bf16.msra.mxu0 %v5236_v31  ;;  %v5253_v32 = vld [vmem:[%s7052_s1 + $0xab4] ss:$8 sps:$4 sm:$0xff]   ;;  %v2819_v31 = vsel %vm2816_vm1, %v2817_v15, %v2818_v45  ;;  %v5275_v25 = vld [vmem:[%s7052_s1 + $0xc70] ss:$8 sps:$4 sm:$0xff]   ;;  %v5280_v50 = vld [vmem:[%s7052_s1 + $0xb64] ss:$8 sps:$4 sm:$0xff]  }
 0x156   : > { %3654 = vmatpush2.bf16.msra.mxu1 %v5239_v33  ;;  %v1589_v42 = vpop.f32.mrf.mxu0  ;;  %3604 = vmatprep.subr.bf16.mxu0 %v5244_v8  ;;  %v5277_v21 = vld [vmem:[%s7052_s1 + $0xc74] ss:$8 sps:$4 sm:$0xff]   ;;  %v2825_v33 = vsel %vm2816_vm1, %v2823_v53, %v2824_v27  ;;  %v5283_v55 = vld [vmem:[%s7052_s1 + $0xc64] ss:$8 sps:$4 sm:$0xff]   ;;  %v5278_v34 = vld [vmem:[%s7052_s1 + $0xb60] ss:$8 sps:$4 sm:$0xff]  }
 0x157   : > { %v1640_v43 = vpop.f32.mrf.mxu1  ;;  %3655 = vmatprep.subr.bf16.mxu1 %v5247_v14  ;;  %v1590_v44 = vadd.f32 %v1589_v42, %v6421_v62  ;;  %v6657_v46 = vadd.f32 %v1638_v37, %v1588_v39  ;;  %v5256_v62 = vld [vmem:[%s7052_s1 + $0x9a4] ss:$8 sps:$4 sm:$0xff]   ;;  %v5281_v36 = vld [vmem:[%s7052_s1 + $0xc60] ss:$8 sps:$4 sm:$0xff]   ;;  %v5286_v39 = vld [vmem:[%s7052_s1 + $0xb54] ss:$8 sps:$4 sm:$0xff]  }
 0x158   : > { %v1591_v47 = vpop.f32.mrf.mxu0  ;;  %v2832_v42 = vrot.slane %v5786_v28, 1  ;;  %v5311_v15 = vld [vmem:[%s7052_s1 + $0xc10] ss:$8 sps:$4 sm:$0xff]   ;;  %v5317_v53 = vld [vmem:[%s7052_s1 + $0xc00] ss:$8 sps:$4 sm:$0xff]  }
 0x159   : > { %v1642_v48 = vpop.f32.mrf.mxu1  ;;  %v6659_v51 = vadd.f32 %v1640_v43, %v1590_v44  ;;  %3605 = vmatpush2.bf16.msra.mxu0 %v5242_v40  ;;  %v2833_v43 = vrot.slane %v6386_v9, 1  ;;  %v5379_v9 = vld [vmem:[%s7052_s1 + $0xd44] ss:$8 sps:$4 sm:$0xff]  }
 0x15a   : > { %3656 = vmatpush2.bf16.msra.mxu1 %v5245_v41  ;;  %3606 = vmatprep.subr.bf16.mxu0 %v5250_v20  ;;  %v1592_v63 = vpop.f32.mrf.mxu0  ;;  %v2838_v20 = vrot.slane %v5790_v30, 1  ;;  %v5292_v30 = vld [vmem:[%s7052_s1 + $0xb44] ss:$8 sps:$4 sm:$0xff]  }
 0x15b   : > { %3657 = vmatprep.subr.bf16.mxu1 %v5253_v32  ;;  %v1643_v0 = vpop.f32.mrf.mxu1  ;;  %v2839_v32 = vrot.slane %v6501_v10, 1 }
 0x15c   : > { %v5296_v0 = vld [vmem:[%s7052_s1 + $0xb30] ss:$8 sps:$4 sm:$0xff]  }
 0x15d   : > { %3607 = vmatpush2.bf16.msra.mxu0 %v5248_v52  ;;  %v2840_v47 = vsel %vm2816_vm1, %v2838_v20, %v2839_v32  ;;  %v5293_v52 = vld [vmem:[%s7052_s1 + $0xc40] ss:$8 sps:$4 sm:$0xff]  }
 0x15e   : > { %3658 = vmatpush2.bf16.msra.mxu1 %v5251_v58  ;;  %3608 = vmatprep.subr.bf16.mxu0 %v5256_v62  ;;  %v5298_v62 = vld [vmem:[%s7052_s1 + $0xb34] ss:$8 sps:$4 sm:$0xff]  }
 0x15f   : > { %3659 = vmatprep.subr.bf16.mxu1 %v5259_v61 }
 0x161   : > { %3609 = vmatpush2.bf16.msra.mxu0 %v5254_v1  ;;  %v5299_v1 = vld [vmem:[%s7052_s1 + $0xc30] ss:$8 sps:$4 sm:$0xff]  }
 0x162   : > { %3660 = vmatpush2.bf16.msra.mxu1 %v5257_v3  ;;  %3610 = vmatprep.subr.bf16.mxu0 %v5262_v49  ;;  %v5307_v3 = vld [vmem:[%s7052_s1 + $0xc24] ss:$8 sps:$4 sm:$0xff]  }
 0x163   : > { %3661 = vmatprep.subr.bf16.mxu1 %v5265_v4  ;;  %v5302_v4 = vld [vmem:[%s7052_s1 + $0xb20] ss:$8 sps:$4 sm:$0xff]  }
 0x165   : > { %3611 = vmatpush2.bf16.msra.mxu0 %v5260_v5  ;;  %v5305_v5 = vld [vmem:[%s7052_s1 + $0xc20] ss:$8 sps:$4 sm:$0xff]  }
 0x166   : > { %3662 = vmatpush2.bf16.msra.mxu1 %v5263_v6  ;;  %3612 = vmatprep.subr.bf16.mxu0 %v5268_v56  ;;  %v5310_v6 = vld [vmem:[%s7052_s1 + $0xb14] ss:$8 sps:$4 sm:$0xff]  }
 0x167   : > { %3663 = vmatprep.subr.bf16.mxu1 %v5271_v2  ;;  %v5313_v56 = vld [vmem:[%s7052_s1 + $0xc14] ss:$8 sps:$4 sm:$0xff]   ;;  %v5308_v2 = vld [vmem:[%s7052_s1 + $0xb10] ss:$8 sps:$4 sm:$0xff]  }
 0x169   : > { %3613 = vmatpush2.bf16.msra.mxu0 %v5266_v19  ;;  %v5319_v19 = vld [vmem:[%s7052_s1 + $0xc04] ss:$8 sps:$4 sm:$0xff]  }
 0x16a   : > { %3664 = vmatpush2.bf16.msra.mxu1 %v5269_v22  ;;  %3684 = vmatprep.subr.bf16.mxu0 %v5274_v11  ;;  %v5314_v22 = vld [vmem:[%s7052_s1 + $0xb00] ss:$8 sps:$4 sm:$0xff]   ;;  %v5325_v11 = vld [vmem:[%s7052_s1 + $0xcf4] ss:$8 sps:$4 sm:$0xff]  }
 0x16b   : > { %3735 = vmatprep.subr.bf16.mxu1 %v5277_v21  ;;  %v5320_v21 = vld [vmem:[%s7052_s1 + $0xbf0] ss:$8 sps:$4 sm:$0xff]  }
 0x16c   : > { %v1679_v8 = vpop.f32.mrf.mxu0  ;;  %3615 = vmatmul.mubr.bf16.vlgmr.msra.gmra.mxu0 %v2819_v31  ;;  %v5323_v31 = vld [vmem:[%s7052_s1 + $0xcf0] ss:$8 sps:$4 sm:$0xff]  }
 0x16d   : > { %3666 = vmatmul.mubr.bf16.vlgmr.msra.gmra.mxu1 %v2825_v33  ;;  %v6728_v14 = vadd.f32 %v1679_v8, %v6620_v17  ;;  %3685 = vmatpush1.bf16.msra.mxu0 %v5272_v13  ;;  %v5289_v17 = vld [vmem:[%s7052_s1 + $0xc54] ss:$8 sps:$4 sm:$0xff]   ;;  %v5328_v33 = vld [vmem:[%s7052_s1 + $0xbe4] ss:$8 sps:$4 sm:$0xff]   ;;  %v5329_v8 = vld [vmem:[%s7052_s1 + $0xce0] ss:$8 sps:$4 sm:$0xff]  }
 0x16e   : > { %3736 = vmatpush1.bf16.msra.mxu1 %v5275_v25  ;;  %v1681_v37 = vpop.f32.mrf.mxu0  ;;  %3686 = vmatprep.subr.bf16.mxu0 %v5280_v50  ;;  %v5331_v13 = vld [vmem:[%s7052_s1 + $0xce4] ss:$8 sps:$4 sm:$0xff]  }
 0x16f   : > { %3737 = vmatprep.subr.bf16.mxu1 %v5283_v55  ;;  %v6743_v40 = vadd.f32 %v1681_v37, %v6623_v57  ;;  %3624 = vmatprep.mubr.bf16.mxu0 %v2821_v16  ;;  %v5295_v16 = vld [vmem:[%s7052_s1 + $0xc44] ss:$8 sps:$4 sm:$0xff]   ;;  %v5326_v55 = vld [vmem:[%s7052_s1 + $0xbe0] ss:$8 sps:$4 sm:$0xff]  }
 0x170   : > { %3675 = vmatprep.mubr.bf16.mxu1 %v2827_v18  ;;  %v1683_v41 = vpop.f32.mrf.mxu0 }
 0x171   : > { %v6754_v44 = vadd.f32 %v1683_v41, %v6638_v12  ;;  %3687 = vmatpush1.bf16.msra.mxu0 %v5278_v34  ;;  %v2834_v12 = vsel %vm2816_vm1, %v2832_v42, %v2833_v43  ;;  %v5332_v41 = vld [vmem:[%s7052_s1 + $0xbd0] ss:$8 sps:$4 sm:$0xff]  }
 0x172   : > { %3738 = vmatpush1.bf16.msra.mxu1 %v5281_v36  ;;  %v1685_v28 = vpop.f32.mrf.mxu0  ;;  %3688 = vmatprep.subr.bf16.mxu0 %v5286_v39  ;;  %v5334_v36 = vld [vmem:[%s7052_s1 + $0xbd4] ss:$8 sps:$4 sm:$0xff]   ;;  %v5335_v42 = vld [vmem:[%s7052_s1 + $0xcd0] ss:$8 sps:$4 sm:$0xff]  }
 0x173   : > { %3739 = vmatprep.subr.bf16.mxu1 %v5289_v17  ;;  %v6769_v18 = vadd.f32 %v1685_v28, %v6641_v38  ;;  %v5290_v38 = vld [vmem:[%s7052_s1 + $0xb40] ss:$8 sps:$4 sm:$0xff]  }
 0x174   : > { %v1689_v57 = vpop.f32.mrf.mxu0  ;;  %3625 = vmatmul.mubr.bf16.gmra.mxu0 %v2818_v45  ;;  %v5316_v45 = vld [vmem:[%s7052_s1 + $0xb04] ss:$8 sps:$4 sm:$0xff]  }
 0x175   : > { %3676 = vmatmul.mubr.bf16.gmra.mxu1 %v2824_v27  ;;  %v6778_v48 = vadd.f32 %v1689_v57, %v6657_v46  ;;  %3689 = vmatpush1.bf16.msra.mxu0 %v5284_v54  ;;  %v5301_v46 = vld [vmem:[%s7052_s1 + $0xc34] ss:$8 sps:$4 sm:$0xff]  }
 0x176   : > { %3740 = vmatpush1.bf16.msra.mxu1 %v5287_v59  ;;  %v1691_v58 = vpop.f32.mrf.mxu0  ;;  %3690 = vmatprep.subr.bf16.mxu0 %v5292_v30  ;;  %v5322_v27 = vld [vmem:[%s7052_s1 + $0xbf4] ss:$8 sps:$4 sm:$0xff]   ;;  %v5338_v30 = vld [vmem:[%s7052_s1 + $0xbc0] ss:$8 sps:$4 sm:$0xff]  }
 0x177   : > { %3741 = vmatprep.subr.bf16.mxu1 %v5295_v16  ;;  %v6793_v61 = vadd.f32 %v1691_v58, %v6659_v51  ;;  %3716 = vmatprep.mubr.bf16.mxu0 %v2834_v12  ;;  %v5304_v51 = vld [vmem:[%s7052_s1 + $0xb24] ss:$8 sps:$4 sm:$0xff]   ;;  %v5341_v16 = vld [vmem:[%s7052_s1 + $0xcc0] ss:$8 sps:$4 sm:$0xff]   ;;  %v5349_v12 = vld [vmem:[%s7052_s1 + $0xcb4] ss:$8 sps:$4 sm:$0xff]  }
 0x178   : > { %3767 = vmatprep.mubr.bf16.mxu1 %v2840_v47  ;;  %v1693_v63 = vpop.f32.mrf.mxu0  ;;  %v5352_v58 = vld [vmem:[%s7052_s1 + $0xba4] ss:$8 sps:$4 sm:$0xff]  }
 0x179   : > { %3691 = vmatpush1.bf16.msra.mxu0 %v5290_v38  ;;  %v5344_v38 = vld [vmem:[%s7052_s1 + $0xbb0] ss:$8 sps:$4 sm:$0xff]   ;;  %v5353_v63 = vld [vmem:[%s7052_s1 + $0xca0] ss:$8 sps:$4 sm:$0xff]  }
 0x17a   : > { %3742 = vmatpush1.bf16.msra.mxu1 %v5293_v52  ;;  %3692 = vmatprep.subr.bf16.mxu0 %v5298_v62  ;;  %v1694_v49 = vpop.f32.mrf.mxu0  ;;  %v5347_v52 = vld [vmem:[%s7052_s1 + $0xcb0] ss:$8 sps:$4 sm:$0xff]   ;;  %v5355_v62 = vld [vmem:[%s7052_s1 + $0xca4] ss:$8 sps:$4 sm:$0xff]  }
 0x17b   : > { %3743 = vmatprep.subr.bf16.mxu1 %v5301_v46  ;;  %v5364_v49 = vld [vmem:[%s7052_s1 + $0xb84] ss:$8 sps:$4 sm:$0xff]  }
 0x17d   : > { %3693 = vmatpush1.bf16.msra.mxu0 %v5296_v0  ;;  %v5358_v0 = vld [vmem:[%s7052_s1 + $0xb94] ss:$8 sps:$4 sm:$0xff]  }
 0x17e   : > { %3744 = vmatpush1.bf16.msra.mxu1 %v5299_v1  ;;  %3694 = vmatprep.subr.bf16.mxu0 %v5304_v51  ;;  %v5361_v1 = vld [vmem:[%s7052_s1 + $0xc94] ss:$8 sps:$4 sm:$0xff]   ;;  %v5356_v51 = vld [vmem:[%s7052_s1 + $0xb90] ss:$8 sps:$4 sm:$0xff]  }
 0x17f   : > { %3745 = vmatprep.subr.bf16.mxu1 %v5307_v3  ;;  %v5359_v3 = vld [vmem:[%s7052_s1 + $0xc90] ss:$8 sps:$4 sm:$0xff]  }
 0x181   : > { %3695 = vmatpush1.bf16.msra.mxu0 %v5302_v4  ;;  %v5367_v4 = vld [vmem:[%s7052_s1 + $0xc84] ss:$8 sps:$4 sm:$0xff]  }
 0x182   : > { %3746 = vmatpush1.bf16.msra.mxu1 %v5305_v5  ;;  %3696 = vmatprep.subr.bf16.mxu0 %v5310_v6  ;;  %v5362_v5 = vld [vmem:[%s7052_s1 + $0xb80] ss:$8 sps:$4 sm:$0xff]  }
 0x183   : > { %3747 = vmatprep.subr.bf16.mxu1 %v5313_v56  ;;  %v5365_v6 = vld [vmem:[%s7052_s1 + $0xc80] ss:$8 sps:$4 sm:$0xff]   ;;  %v2829_v56 = vrot.slane %v5698_v35, 1 }
 0x185   : > { %3697 = vmatpush1.bf16.msra.mxu0 %v5308_v2  ;;  %v2830_v2 = vrot.slane %v5622_v60, 1  ;;  %v5368_v60 = vld [vmem:[%s7052_s1 + $0xd70] ss:$8 sps:$4 sm:$0xff]  }
 0x186   : > { %3748 = vmatpush1.bf16.msra.mxu1 %v5311_v15  ;;  %3698 = vmatprep.subr.bf16.mxu0 %v5316_v45  ;;  %v2835_v15 = vrot.slane %v5683_v29, 1  ;;  %v2836_v45 = vrot.slane %v6522_v23, 1  ;;  %v5373_v29 = vld [vmem:[%s7052_s1 + $0xd64] ss:$8 sps:$4 sm:$0xff]  }
 0x187   : > { %3749 = vmatprep.subr.bf16.mxu1 %v5319_v19  ;;  %v5370_v19 = vld [vmem:[%s7052_s1 + $0xd74] ss:$8 sps:$4 sm:$0xff]  }
 0x189   : > { %3699 = vmatpush1.bf16.msra.mxu0 %v5314_v22  ;;  %v2831_v22 = vsel %vm2816_vm1, %v2829_v56, %v2830_v2 }
 0x18a   : > { %3750 = vmatpush1.bf16.msra.mxu1 %v5317_v53  ;;  %3700 = vmatprep.subr.bf16.mxu0 %v5322_v27  ;;  %v2837_v53 = vsel %vm2816_vm1, %v2835_v15, %v2836_v45  ;;  %v5371_v27 = vld [vmem:[%s7052_s1 + $0xd60] ss:$8 sps:$4 sm:$0xff]  }
 0x18b   : > { %3751 = vmatprep.subr.bf16.mxu1 %v5325_v11 }
 0x18d   : > { %v2450_v25 = vpop.f32.mrf.mxu1  ;;  %3701 = vmatpush2.bf16.msra.mxu0 %v5320_v21  ;;  %v5376_v21 = vld [vmem:[%s7052_s1 + $0xd54] ss:$8 sps:$4 sm:$0xff]  }
 0x18e   : > { %v6856_v50 = vadd.f32 %v2450_v25, %v6728_v14  ;;  %3752 = vmatpush2.bf16.msra.mxu1 %v5323_v31  ;;  %3702 = vmatprep.subr.bf16.mxu0 %v5328_v33  ;;  %v5337_v14 = vld [vmem:[%s7052_s1 + $0xcd4] ss:$8 sps:$4 sm:$0xff]   ;;  %v5374_v25 = vld [vmem:[%s7052_s1 + $0xd50] ss:$8 sps:$4 sm:$0xff]  }
 0x18f   : > { %v2452_v34 = vpop.f32.mrf.mxu1  ;;  %3753 = vmatprep.subr.bf16.mxu1 %v5331_v13 }
 0x190   : > { %v6871_v37 = vadd.f32 %v2452_v34, %v6743_v40  ;;  %v5340_v40 = vld [vmem:[%s7052_s1 + $0xbc4] ss:$8 sps:$4 sm:$0xff]   ;;  %v5382_v34 = vld [vmem:[%s7052_s1 + $0xd34] ss:$8 sps:$4 sm:$0xff]  }
 0x191   : > { %v2454_v39 = vpop.f32.mrf.mxu1  ;;  %3703 = vmatpush2.bf16.msra.mxu0 %v5326_v55  ;;  %v5377_v55 = vld [vmem:[%s7052_s1 + $0xd40] ss:$8 sps:$4 sm:$0xff]  }
 0x192   : > { %v6874_v17 = vadd.f32 %v2454_v39, %v6754_v44  ;;  %3754 = vmatpush2.bf16.msra.mxu1 %v5329_v8  ;;  %3704 = vmatprep.subr.bf16.mxu0 %v5334_v36  ;;  %v5343_v44 = vld [vmem:[%s7052_s1 + $0xcc4] ss:$8 sps:$4 sm:$0xff]  }
 0x193   : > { %v2456_v20 = vpop.f32.mrf.mxu1  ;;  %3755 = vmatprep.subr.bf16.mxu1 %v5337_v14  ;;  %v5385_v39 = vld [vmem:[%s7052_s1 + $0xd24] ss:$8 sps:$4 sm:$0xff]  }
 0x194   : > { %v6889_v54 = vadd.f32 %v2456_v20, %v6769_v18  ;;  %v5346_v18 = vld [vmem:[%s7052_s1 + $0xbb4] ss:$8 sps:$4 sm:$0xff]   ;;  %v5391_v20 = vld [vmem:[%s7052_s1 + $0xd04] ss:$8 sps:$4 sm:$0xff]  }
 0x195   : > { %v2460_v59 = vpop.f32.mrf.mxu1  ;;  %3705 = vmatpush2.bf16.msra.mxu0 %v5332_v41  ;;  %v5388_v41 = vld [vmem:[%s7052_s1 + $0xd14] ss:$8 sps:$4 sm:$0xff]  }
 0x196   : > { %v6892_v28 = vadd.f32 %v2460_v59, %v6778_v48  ;;  %3756 = vmatpush2.bf16.msra.mxu1 %v5335_v42  ;;  %3706 = vmatprep.subr.bf16.mxu0 %v5340_v40  ;;  %v5386_v42 = vld [vmem:[%s7052_s1 + $0xd10] ss:$8 sps:$4 sm:$0xff]   ;;  %v5389_v40 = vld [vmem:[%s7052_s1 + $0xd00] ss:$8 sps:$4 sm:$0xff]  }
 0x197   : > { %v2462_v57 = vpop.f32.mrf.mxu1  ;;  %3757 = vmatprep.subr.bf16.mxu1 %v5343_v44  ;;  %v2841_v44 = vrot.slane %v6491_v7, 1 }
 0x198   : > { %v6907_v47 = vadd.f32 %v2462_v57, %v6793_v61  ;;  %v5350_v61 = vld [vmem:[%s7052_s1 + $0xba0] ss:$8 sps:$4 sm:$0xff]  }
 0x199   : > { %v2464_v48 = vpop.f32.mrf.mxu1  ;;  %3707 = vmatpush2.bf16.msra.mxu0 %v5338_v30 }
 0x19a   : > { %3758 = vmatpush2.bf16.msra.mxu1 %v5341_v16  ;;  %3708 = vmatprep.subr.bf16.mxu0 %v5346_v18 }
 0x19b   : > { %3759 = vmatprep.subr.bf16.mxu1 %v5349_v12  ;;  %v2465_v46 = vpop.f32.mrf.mxu1 }
 0x19d   : > { %3709 = vmatpush2.bf16.msra.mxu0 %v5344_v38 }
 0x19e   : > { %3760 = vmatpush2.bf16.msra.mxu1 %v5347_v52  ;;  %3710 = vmatprep.subr.bf16.mxu0 %v5352_v58 }
 0x19f   : > { %3761 = vmatprep.subr.bf16.mxu1 %v5355_v62 }
 0x1a1   : > { %3711 = vmatpush2.bf16.msra.mxu0 %v5350_v61 }
 0x1a2   : > { %3762 = vmatpush2.bf16.msra.mxu1 %v5353_v63  ;;  %3712 = vmatprep.subr.bf16.mxu0 %v5358_v0 }
 0x1a3   : > { %3763 = vmatprep.subr.bf16.mxu1 %v5361_v1 }
 0x1a5   : > { %3713 = vmatpush2.bf16.msra.mxu0 %v5356_v51 }
 0x1a6   : > { %3764 = vmatpush2.bf16.msra.mxu1 %v5359_v3  ;;  %3714 = vmatprep.subr.bf16.mxu0 %v5364_v49 }
 0x1a7   : > { %3765 = vmatprep.subr.bf16.mxu1 %v5367_v4 }
 0x1a9   : > { %3715 = vmatpush2.bf16.msra.mxu0 %v5362_v5 }
 0x1aa   : > { %3766 = vmatpush2.bf16.msra.mxu1 %v5365_v6  ;;  %3786 = vmatprep.subr.bf16.mxu0 %v5370_v19 }
 0x1ab   : > { %4698 = vmatprep.subr.bf16.mxu1 %v5370_v19 }
 0x1ac   : > { %v2501_v35 = vpop.f32.mrf.mxu0  ;;  %3717 = vmatmul.mubr.bf16.vlgmr.msra.gmra.mxu0 %v2831_v22 }
 0x1ad   : > { %3768 = vmatmul.mubr.bf16.vlgmr.msra.gmra.mxu1 %v2837_v53  ;;  %v6967_v23 = vadd.f32 %v2501_v35, %v6856_v50  ;;  %3787 = vmatpush1.bf16.msra.mxu0 %v5368_v60 }
 0x1ae   : > { %4706 = vmatpush1.bf16.msra.mxu1 %v5368_v60  ;;  %v2503_v11 = vpop.f32.mrf.mxu0  ;;  %3788 = vmatprep.subr.bf16.mxu0 %v5373_v29 }
 0x1af   : > { %4699 = vmatprep.subr.bf16.mxu1 %v5373_v29  ;;  %v2504_v31 = vadd.f32 %v2503_v11, %v6871_v37  ;;  %3726 = vmatprep.mubr.bf16.mxu0 %v2833_v43  ;;  %v5380_v37 = vld [vmem:[%s7052_s1 + $0xd30] ss:$8 sps:$4 sm:$0xff]  }
 0x1b0   : > { %3777 = vmatprep.mubr.bf16.mxu1 %v2839_v32  ;;  %v2505_v33 = vpop.f32.mrf.mxu0 }
 0x1b1   : > { %v2506_v13 = vadd.f32 %v2505_v33, %v6874_v17  ;;  %3789 = vmatpush1.bf16.msra.mxu0 %v5371_v27 }
 0x1b2   : > { %4707 = vmatpush1.bf16.msra.mxu1 %v5371_v27  ;;  %v2507_v50 = vpop.f32.mrf.mxu0  ;;  %3790 = vmatprep.subr.bf16.mxu0 %v5376_v21 }
 0x1b3   : > { %4700 = vmatprep.subr.bf16.mxu1 %v5376_v21  ;;  %v2508_v43 = vadd.f32 %v2507_v50, %v6889_v54  ;;  %v2842_v54 = vrot.slane %v6526_v26, 1 }
 0x1b4   : > { %v2511_v10 = vpop.f32.mrf.mxu0  ;;  %3727 = vmatmul.mubr.bf16.gmra.mxu0 %v2830_v2 }
 0x1b5   : > { %3778 = vmatmul.mubr.bf16.gmra.mxu1 %v2836_v45  ;;  %v2512_v32 = vadd.f32 %v2511_v10, %v6892_v28  ;;  %3791 = vmatpush1.bf16.msra.mxu0 %v5374_v25  ;;  %v2843_v59 = vsel %vm2816_vm1, %v2841_v44, %v2842_v54 }
 0x1b6   : > { %4708 = vmatpush1.bf16.msra.mxu1 %v5374_v25  ;;  %v2513_v8 = vpop.f32.mrf.mxu0  ;;  %3792 = vmatprep.subr.bf16.mxu0 %v5379_v9 }
 0x1b7   : > { %4701 = vmatprep.subr.bf16.mxu1 %v5379_v9  ;;  %v2514_v36 = vadd.f32 %v2513_v8, %v6907_v47  ;;  %3818 = vmatprep.mubr.bf16.mxu0 %v5405_v24 }
 0x1b8   : > { %3828 = vmatprep.mubr.bf16.mxu1 %v5405_v24  ;;  %v2515_v14 = vpop.f32.mrf.mxu0  ;;  %v5383_v24 = vld [vmem:[%s7052_s1 + $0xd20] ss:$8 sps:$4 sm:$0xff]  }
 0x1b9   : > { %3793 = vmatpush1.bf16.msra.mxu0 %v5377_v55 }
 0x1ba   : > { %4709 = vmatpush1.bf16.msra.mxu1 %v5377_v55  ;;  %3794 = vmatprep.subr.bf16.mxu0 %v5382_v34  ;;  %v2516_v17 = vpop.f32.mrf.mxu0 }
 0x1bb   : > { %4702 = vmatprep.subr.bf16.mxu1 %v5382_v34 }
 0x1bd   : > { %3795 = vmatpush1.bf16.msra.mxu0 %v5380_v37 }
 0x1be   : > { %4710 = vmatpush1.bf16.msra.mxu1 %v5380_v37  ;;  %3796 = vmatprep.subr.bf16.mxu0 %v5385_v39 }
 0x1bf   : > { %4703 = vmatprep.subr.bf16.mxu1 %v5385_v39 }
 0x1c1   : > { %3797 = vmatpush1.bf16.msra.mxu0 %v5383_v24 }
 0x1c2   : > { %4711 = vmatpush1.bf16.msra.mxu1 %v5383_v24  ;;  %3798 = vmatprep.subr.bf16.mxu0 %v5388_v41 }
 0x1c3   : > { %4704 = vmatprep.subr.bf16.mxu1 %v5388_v41 }
 0x1c5   : > { %3799 = vmatpush1.bf16.msra.mxu0 %v5386_v42 }
 0x1c6   : > { %4712 = vmatpush1.bf16.msra.mxu1 %v5386_v42  ;;  %3800 = vmatprep.subr.bf16.mxu0 %v5391_v20 }
 0x1c7   : > { %4705 = vmatprep.subr.bf16.mxu1 %v5391_v20 }
 0x1c9   : > { %3801 = vmatpush1.bf16.msra.mxu0 %v5389_v40 }
 0x1ca   : > { %4713 = vmatpush1.bf16.msra.mxu1 %v5389_v40 }
 0x1cc   : > { %3819 = vmatmul.mubr.bf16.vlgmr.msra.gmra.mxu0 %v2843_v59 }
 0x1cd   : > { %v2552_v28 = vpop.f32.mrf.mxu1  ;;  %3829 = vmatmul.mubr.bf16.vlgmr.msra.gmra.mxu1 %v2842_v54 }
 0x1ce   : > { %v2553_v30 = vadd.f32 %v2552_v28, %v6967_v23 }
 0x1cf   : > { %v2554_v16 = vpop.f32.mrf.mxu1 }
 0x1d0   : > { %v2555_v57 = vadd.f32 %v2554_v16, %v2504_v31 }
 0x1d1   : > { %v2556_v18 = vpop.f32.mrf.mxu1 }
 0x1d2   : > { %v2557_v12 = vadd.f32 %v2556_v18, %v2506_v13 }
 0x1d3   : > { %v2558_v47 = vpop.f32.mrf.mxu1 }
 0x1d4   : > { %v2559_v48 = vadd.f32 %v2558_v47, %v2508_v43 }
 0x1d5   : > { %v2562_v7 = vpop.f32.mrf.mxu1 }
 0x1d6   : > { %v2563_v38 = vadd.f32 %v2562_v7, %v2512_v32 }
 0x1d7   : > { %v2564_v26 = vpop.f32.mrf.mxu1 }
 0x1d8   : > { %v2565_v52 = vadd.f32 %v2564_v26, %v2514_v36 }
 0x1d9   : > { %v2566_v58 = vpop.f32.mrf.mxu1 }
 0x1db   : > { %v2567_v62 = vpop.f32.mrf.mxu1 }
 0x1ec   : > { %v2603_v46 = vpop.f32.mrf.mxu0 }
 0x1ed   : > { %v2654_v61 = vpop.f32.mrf.mxu1  ;;  %v2604_v63 = vadd.f32 %v2603_v46, %v2553_v30 }
 0x1ee   : > { %v2605_v0 = vpop.f32.mrf.mxu0 }
 0x1ef   : > { %v2656_v1 = vpop.f32.mrf.mxu1  ;;  %v7023_v51 = vadd.f32 %v2654_v61, %v2604_v63  ;;  %v2606_v3 = vadd.f32 %v2605_v0, %v2555_v57  ;;  %v3845_v63 = vlaneseq }
 0x1f0   : > { %v2607_v49 = vpop.f32.mrf.mxu0 }
 0x1f1   : > { %v2658_v4 = vpop.f32.mrf.mxu1  ;;  %v7025_v5 = vadd.f32 %v2656_v1, %v2606_v3  ;;  %v2608_v6 = vadd.f32 %v2607_v49, %v2557_v12  ;;  %v3846_v0 = vshrl.u32 %v3845_v63, 7 }
 0x1f2   : > { %v2609_v56 = vpop.f32.mrf.mxu0 }
 0x1f3   : > { %v2660_v2 = vpop.f32.mrf.mxu1  ;;  %v7027_v15 = vadd.f32 %v2658_v4, %v2608_v6  ;;  %v2610_v45 = vadd.f32 %v2609_v56, %v2559_v48  ;;  %v3847_v49 = vsub.s32 0, %v3846_v0  ;;  %v3843_v56 = vld [vmem:[%s7053_s2] sm:$0x3] }
 0x1f4   : > { %v2613_v19 = vpop.f32.mrf.mxu0 }
 0x1f5   : > { %v2664_v22 = vpop.f32.mrf.mxu1  ;;  %v7029_v53 = vadd.f32 %v2660_v2, %v2610_v45  ;;  %v2614_v60 = vadd.f32 %v2613_v19, %v2563_v38  ;;  %v3851_v2 = vsub.s32 1, %v3846_v0 }
 0x1f6   : > { %v2615_v29 = vpop.f32.mrf.mxu0 }
 0x1f7   : > { %v2666_v35 = vpop.f32.mrf.mxu1  ;;  %v2616_v23 = vadd.f32 %v2615_v29, %v2565_v52  ;;  %v7031_v27 = vadd.f32 %v2664_v22, %v2614_v60  ;;  %v3848_v29 = vrot.slane %v3843_v56, %v3847_v49 }
 0x1f8   : > { %v2617_v11 = vpop.f32.mrf.mxu0 }
 0x1f9   : > { %v2668_v21 = vpop.f32.mrf.mxu1  ;;  %v7033_v31 = vadd.f32 %v2666_v35, %v2616_v23 }
 0x1fa   : > { %v2618_v33 = vpop.f32.mrf.mxu0 }
 0x1fb   : > { %v2669_v13 = vpop.f32.mrf.mxu1 }
 0x22c   : > { %v3616_v25 = vpop.f32.mrf.mxu0 }
 0x22d   : > { %v3667_v50 = vpop.f32.mrf.mxu1 }
 0x22e   : > { %v3668_v9 = vadd.f32 %v3667_v50, %v3616_v25  ;;  %v3618_v43 = vpop.f32.mrf.mxu0  ;;  %v3852_v50 = vrot.slane %v3843_v56, %v3851_v2 }
 0x22f   : > { %v3669_v10 = vpop.f32.mrf.mxu1 }
 0x230   : > { %v3670_v32 = vadd.f32 %v3669_v10, %v3618_v43  ;;  %v3620_v55 = vpop.f32.mrf.mxu0 }
 0x231   : > { %v3671_v8 = vpop.f32.mrf.mxu1 }
 0x232   : > { %v3672_v34 = vadd.f32 %v3671_v8, %v3620_v55  ;;  %v3622_v36 = vpop.f32.mrf.mxu0 }
 0x233   : > { %v3673_v14 = vpop.f32.mrf.mxu1 }
 0x234   : > { %v3674_v37 = vadd.f32 %v3673_v14, %v3622_v36  ;;  %v3626_v39 = vpop.f32.mrf.mxu0 }
 0x235   : > { %v3677_v17 = vpop.f32.mrf.mxu1 }
 0x236   : > { %v3678_v24 = vadd.f32 %v3677_v17, %v3626_v39  ;;  %v3628_v41 = vpop.f32.mrf.mxu0 }
 0x237   : > { %v3679_v42 = vpop.f32.mrf.mxu1 }
 0x238   : > { %v3680_v20 = vadd.f32 %v3679_v42, %v3628_v41  ;;  %v3630_v40 = vpop.f32.mrf.mxu0 }
 0x239   : > { %v3681_v44 = vpop.f32.mrf.mxu1 }
 0x23a   : > { %v3631_v54 = vpop.f32.mrf.mxu0 }
 0x23b   : > { %v3682_v59 = vpop.f32.mrf.mxu1 }
 0x26c   : > { %v3718_v28 = vpop.f32.mrf.mxu0 }
 0x26d   : > { %v3769_v30 = vpop.f32.mrf.mxu1  ;;  %v3719_v1 = vadd.f32 %v3718_v28, %v3668_v9 }
 0x26e   : > { %v3720_v16 = vpop.f32.mrf.mxu0 }
 0x26f   : > { %v3771_v57 = vpop.f32.mrf.mxu1  ;;  %v3721_v4 = vadd.f32 %v3720_v16, %v3670_v32  ;;  %v3770_v45 = vadd.f32 %v3769_v30, %v3719_v1 }
 0x270   : > { %v3722_v18 = vpop.f32.mrf.mxu0 }
 0x271   : > { %v3773_v12 = vpop.f32.mrf.mxu1  ;;  %v3723_v22 = vadd.f32 %v3722_v18, %v3672_v34  ;;  %v3772_v23 = vadd.f32 %v3771_v57, %v3721_v4 }
 0x272   : > { %v3724_v47 = vpop.f32.mrf.mxu0 }
 0x273   : > { %v3775_v48 = vpop.f32.mrf.mxu1  ;;  %v3725_v13 = vadd.f32 %v3724_v47, %v3674_v37  ;;  %v3774_v8 = vadd.f32 %v3773_v12, %v3723_v22 }
 0x274   : > { %v3728_v7 = vpop.f32.mrf.mxu0 }
 0x275   : > { %v3779_v38 = vpop.f32.mrf.mxu1  ;;  %v3729_v3 = vadd.f32 %v3728_v7, %v3678_v24  ;;  %v3776_v37 = vadd.f32 %v3775_v48, %v3725_v13 }
 0x276   : > { %v3730_v26 = vpop.f32.mrf.mxu0 }
 0x277   : > { %v3781_v52 = vpop.f32.mrf.mxu1  ;;  %v3731_v6 = vadd.f32 %v3730_v26, %v3680_v20  ;;  %v3780_v19 = vadd.f32 %v3779_v38, %v3729_v3 }
 0x278   : > { %v3732_v58 = vpop.f32.mrf.mxu0 }
 0x279   : > { %v3783_v62 = vpop.f32.mrf.mxu1  ;;  %v3782_v11 = vadd.f32 %v3781_v52, %v3731_v6 }
 0x27a   : > { %v3733_v46 = vpop.f32.mrf.mxu0 }
 0x27b   : > { %v3784_v61 = vpop.f32.mrf.mxu1 }
 0x28c   : > { %v3820_v60 = vpop.f32.mrf.mxu0 }
 0x28d   : > { %v3830_v35 = vpop.f32.mrf.mxu1  ;;  %v3821_v21 = vadd.f32 %v3820_v60, %v3770_v45 }
 0x28e   : > { %v3831_v33 = vadd.f32 %v3830_v35, %v3780_v19  ;;  %v3822_v25 = vpop.f32.mrf.mxu0 }
 0x28f   : > { %v3832_v9 = vpop.f32.mrf.mxu1  ;;  %v3837_v43 = vadd.f32 %v3821_v21, %v7023_v51  ;;  %v3823_v32 = vadd.f32 %v3822_v25, %v3772_v23 }
 0x290   : > { %v3841_v10 = vadd.f32 %v3831_v33, %v7031_v27  ;;  %v3833_v55 = vadd.f32 %v3832_v9, %v3782_v11  ;;  %v3824_v34 = vpop.f32.mrf.mxu0 }
 0x291   : > { %v3834_v36 = vpop.f32.mrf.mxu1  ;;  %v3855_v14 = vadd.f32 %v3848_v29, %v3837_v43  ;;  %v3838_v17 = vadd.f32 %v3823_v32, %v7025_v5  ;;  %v3825_v41 = vadd.f32 %v3824_v34, %v3774_v8 }
 0x292   : > { %v3859_v39 = vadd.f32 %v3848_v29, %v3841_v10  ;;  %v3842_v24 = vadd.f32 %v3833_v55, %v7033_v31  ;;  %v3826_v42 = vpop.f32.mrf.mxu0 }
 0x293   : > { %v3835_v20 = vpop.f32.mrf.mxu1  ;;  %v3856_v40 = vadd.f32 %v3852_v50, %v3838_v17  ;;  %v3839_v27 = vadd.f32 %v3825_v41, %v7027_v15  ;;  %v3827_v44 = vadd.f32 %v3826_v42, %v3776_v37  ;;  %v3861_v54 = vmax.f32 %v3855_v14, 0.0 }
 0x294   : > { %v3860_v51 = vadd.f32 %v3852_v50, %v3842_v24  ;;  %v3865_v59 = vmax.f32 %v3859_v39, 0.0 }
 0x295   : > { %v3862_v28 = vmax.f32 %v3856_v40, 0.0  ;;  %v3857_v5 = vadd.f32 %v3848_v29, %v3839_v27  ;;  %v3840_v31 = vadd.f32 %v3827_v44, %v7029_v53 }
 0x296   : > { %v3866_v30 = vmax.f32 %v3860_v51, 0.0 }
 0x297   : > { %v4695_v16 = vpack.c.bf16 %v3862_v28, %v3861_v54  ;;  %v3858_v18 = vadd.f32 %v3852_v50, %v3840_v31  ;;  %v3863_v12 = vmax.f32 %v3857_v5, 0.0 }
 0x298   : > { %v4697_v57 = vpack.c.bf16 %v3866_v30, %v3865_v59 }
 0x299   : > { %3887 = vst [vmem:[%s170_s6] sm:$0xff] %v4695_v16  ;;  %v3864_v47 = vmax.f32 %v3858_v18, 0.0 }
 0x29a   : > { %3889 = vst [vmem:[%s170_s6 + $0x10] sm:$0xff] %v4697_v57 }
 0x29b   : > { %v4696_v15 = vpack.c.bf16 %v3864_v47, %v3863_v12 }
 0x29d   : > { %3888 = vst [vmem:[%s170_s6 + $0x8] sm:$0xff] %v4696_v15 }
 0x29e PF: > { %s13_s12 = sadd.s32 1, %s5403_s12  }
 0x29f   : > { %p10_p4 = scmp.ge.s32.totalorder %s13_s12, 4  }
 0x2a1   :  { %12 = sbr.rel (!%p10_p4) target bundleno = 1 (0x1), region = 64 }

// kernel: alexnet_forward.13
= control target key start
LH: loop header
LB: loop body
LE: loop exit
PB: predicated region body
PF: predicated region fallthrough
CT: control target
= control target key end

     0   :  { %s3690_s12 = smov 0   ;;  %s4730_s0 = inlined_call_operand.vmem [shape: bf16[2,48,256], index: 0, kind: input, shape index: {}]   ;;  %s4731_s1 = inlined_call_operand.vmem [shape: bf16[3,768,256], index: 1, kind: input, shape index: {}]   ;;  %s4732_s2 = inlined_call_operand.vmem [shape: f32[1,256], index: 2, kind: input, shape index: {}]   ;;  %s4733_s3 = inlined_call_operand.vmem [shape: bf16[2,24,256], index: 3, kind: output, shape index: {}]  }
   0x1 LB: > { %s2666_s13 = sadd.s32 4294967295, %s3668_s12   ;;  %p2670_p0 = scmp.ge.s32.totalorder %s3668_s12, 1  ;;  %s3668_s12 = sphi %s3690_s12, %s13_s12  }
   0x2   : > { %p137_p1 = scmp.lt.s32.totalorder %s3668_s12, 3 }
   0x4   : > { %p138_p2 = pnand %p2670_p0, %p137_p1 }
   0x5   : > { %p161_p3 = scmp.lt.s32.totalorder (!%p138_p2), %s2666_s13, 1 }
   0x6   : > { %141 = sbr.rel (%p138_p2) target bundleno = 542 (0x21e), region = 32 }
   0xb   : > { %v3215_v0 = vld [vmem:[%s4731_s1 + $0x374] ss:$8 sps:$4 sm:$0xff]   ;;  %v3219_v2 = vld [vmem:[%s4731_s1 + $0x370] ss:$8 sps:$4 sm:$0xff]   ;;  %v3221_v4 = vld [vmem:[%s4731_s1 + $0x364] ss:$8 sps:$4 sm:$0xff]  }
   0xc   : > { %v3217_v1 = vld [vmem:[%s4731_s1 + $0x474] ss:$8 sps:$4 sm:$0xff]   ;;  %1011 = vmatprep.subr.bf16.mxu0 %v3215_v0  ;;  %v3220_v3 = vld [vmem:[%s4731_s1 + $0x470] ss:$8 sps:$4 sm:$0xff]   ;;  %v3223_v5 = vld [vmem:[%s4731_s1 + $0x464] ss:$8 sps:$4 sm:$0xff]  }
   0xd   : > { %1062 = vmatprep.subr.bf16.mxu1 %v3217_v1  ;;  %1012 = vmatpush1.bf16.msra.mxu0 %v3219_v2  ;;  %v3225_v6 = vld [vmem:[%s4731_s1 + $0x360] ss:$8 sps:$4 sm:$0xff]   ;;  %v3227_v8 = vld [vmem:[%s4731_s1 + $0x354] ss:$8 sps:$4 sm:$0xff]   ;;  %v3231_v10 = vld [vmem:[%s4731_s1 + $0x350] ss:$8 sps:$4 sm:$0xff]  }
   0xe   : > { %1063 = vmatpush1.bf16.msra.mxu1 %v3220_v3  ;;  %1013 = vmatprep.subr.bf16.mxu0 %v3221_v4  ;;  %v3226_v7 = vld [vmem:[%s4731_s1 + $0x460] ss:$8 sps:$4 sm:$0xff]   ;;  %v3229_v9 = vld [vmem:[%s4731_s1 + $0x454] ss:$8 sps:$4 sm:$0xff]   ;;  %v3232_v11 = vld [vmem:[%s4731_s1 + $0x450] ss:$8 sps:$4 sm:$0xff]  }
   0xf   : > { %1064 = vmatprep.subr.bf16.mxu1 %v3223_v5  ;;  %v3233_v12 = vld [vmem:[%s4731_s1 + $0x344] ss:$8 sps:$4 sm:$0xff]   ;;  %v3237_v14 = vld [vmem:[%s4731_s1 + $0x340] ss:$8 sps:$4 sm:$0xff]   ;;  %v3239_v16 = vld [vmem:[%s4731_s1 + $0x334] ss:$8 sps:$4 sm:$0xff]  }
  0x10   : > { %v3235_v13 = vld [vmem:[%s4731_s1 + $0x444] ss:$8 sps:$4 sm:$0xff]   ;;  %v3238_v15 = vld [vmem:[%s4731_s1 + $0x440] ss:$8 sps:$4 sm:$0xff]   ;;  %v3241_v17 = vld [vmem:[%s4731_s1 + $0x434] ss:$8 sps:$4 sm:$0xff]  }
  0x11   : > { %1014 = vmatpush1.bf16.msra.mxu0 %v3225_v6  ;;  %v3243_v18 = vld [vmem:[%s4731_s1 + $0x330] ss:$8 sps:$4 sm:$0xff]   ;;  %v3245_v20 = vld [vmem:[%s4731_s1 + $0x324] ss:$8 sps:$4 sm:$0xff]   ;;  %v3249_v22 = vld [vmem:[%s4731_s1 + $0x320] ss:$8 sps:$4 sm:$0xff]  }
  0x12   : > { %1065 = vmatpush1.bf16.msra.mxu1 %v3226_v7  ;;  %1015 = vmatprep.subr.bf16.mxu0 %v3227_v8  ;;  %v3244_v19 = vld [vmem:[%s4731_s1 + $0x430] ss:$8 sps:$4 sm:$0xff]   ;;  %v3247_v21 = vld [vmem:[%s4731_s1 + $0x424] ss:$8 sps:$4 sm:$0xff]   ;;  %v3250_v23 = vld [vmem:[%s4731_s1 + $0x420] ss:$8 sps:$4 sm:$0xff]  }
  0x13   : > { %1066 = vmatprep.subr.bf16.mxu1 %v3229_v9  ;;  %v3251_v24 = vld [vmem:[%s4731_s1 + $0x314] ss:$8 sps:$4 sm:$0xff]   ;;  %v3255_v26 = vld [vmem:[%s4731_s1 + $0x310] ss:$8 sps:$4 sm:$0xff]   ;;  %v3257_v28 = vld [vmem:[%s4731_s1 + $0x304] ss:$8 sps:$4 sm:$0xff]  }
  0x14   : > { %v3253_v25 = vld [vmem:[%s4731_s1 + $0x414] ss:$8 sps:$4 sm:$0xff]   ;;  %v3256_v27 = vld [vmem:[%s4731_s1 + $0x410] ss:$8 sps:$4 sm:$0xff]   ;;  %v3259_v29 = vld [vmem:[%s4731_s1 + $0x404] ss:$8 sps:$4 sm:$0xff]  }
  0x15   : > { %1016 = vmatpush1.bf16.msra.mxu0 %v3231_v10  ;;  %v3261_v30 = vld [vmem:[%s4731_s1 + $0x300] ss:$8 sps:$4 sm:$0xff]   ;;  %v3263_v32 = vld [vmem:[%s4731_s1 + $0x3f4] ss:$8 sps:$4 sm:$0xff]   ;;  %v3267_v34 = vld [vmem:[%s4731_s1 + $0x3f0] ss:$8 sps:$4 sm:$0xff]  }
  0x16   : > { %1067 = vmatpush1.bf16.msra.mxu1 %v3232_v11  ;;  %1017 = vmatprep.subr.bf16.mxu0 %v3233_v12  ;;  %v3262_v31 = vld [vmem:[%s4731_s1 + $0x400] ss:$8 sps:$4 sm:$0xff]   ;;  %v3265_v33 = vld [vmem:[%s4731_s1 + $0x4f4] ss:$8 sps:$4 sm:$0xff]   ;;  %v3268_v35 = vld [vmem:[%s4731_s1 + $0x4f0] ss:$8 sps:$4 sm:$0xff]  }
  0x17   : > { %1068 = vmatprep.subr.bf16.mxu1 %v3235_v13  ;;  %s4735_s13 = smov (!%p161_p3, %s2666_s13), 1  ;;  %v3269_v36 = vld [vmem:[%s4731_s1 + $0x3e4] ss:$8 sps:$4 sm:$0xff]   ;;  %v3273_v38 = vld [vmem:[%s4731_s1 + $0x3e0] ss:$8 sps:$4 sm:$0xff]   ;;  %vm1894_vm1 = vcmask 1046528  }
  0x18   : > { %v3271_v37 = vld [vmem:[%s4731_s1 + $0x4e4] ss:$8 sps:$4 sm:$0xff]   ;;  %s3205_s17 = smul.u32 48, %s4735_s13  ;;  %v3274_v39 = vld [vmem:[%s4731_s1 + $0x4e0] ss:$8 sps:$4 sm:$0xff]  }
  0x19   : > { %1018 = vmatpush1.bf16.msra.mxu0 %v3237_v14  ;;  %v3275_v40 = vld [vmem:[%s4731_s1 + $0x3d4] ss:$8 sps:$4 sm:$0xff]   ;;  %v3279_v42 = vld [vmem:[%s4731_s1 + $0x3d0] ss:$8 sps:$4 sm:$0xff]   ;;  %v3281_v44 = vld [vmem:[%s4731_s1 + $0x3c4] ss:$8 sps:$4 sm:$0xff]  }
  0x1a   : > { %1069 = vmatpush1.bf16.msra.mxu1 %v3238_v15  ;;  %1019 = vmatprep.subr.bf16.mxu0 %v3239_v16  ;;  %v3277_v41 = vld [vmem:[%s4731_s1 + $0x4d4] ss:$8 sps:$4 sm:$0xff]   ;;  %v3280_v43 = vld [vmem:[%s4731_s1 + $0x4d0] ss:$8 sps:$4 sm:$0xff]   ;;  %s3840_s30 = scalar_lea.vmem %s4730_s0, %s3205_s17  ;;  %v3283_v45 = vld [vmem:[%s4731_s1 + $0x4c4] ss:$8 sps:$4 sm:$0xff]  }
  0x1b   : > { %1070 = vmatprep.subr.bf16.mxu1 %v3241_v17  ;;  %v3285_v46 = vld [vmem:[%s4731_s1 + $0x3c0] ss:$8 sps:$4 sm:$0xff]   ;;  %v3857_v50 = vld [vmem:[%s3840_s30 + $0x10] sm:$0xff]  ;;  %v174_v51 = vld [vmem:[%s3840_s30 + $0x18] sm:$0x11]  ;;  %s3206_s15 = smul.u32 24, %s4735_s13 }
  0x1c   : > { %v3286_v47 = vld [vmem:[%s4731_s1 + $0x4c0] ss:$8 sps:$4 sm:$0xff]   ;;  %v3863_v53 = vcombine.high %v3857_v50, %v174_v51  ;;  %vm428_vm0 = vsmask.f32 7424  ;;  %v3866_v54 = vld [vmem:[%s3840_s30 + $0x18] sm:$0xff]  ;;  %v3913_v16 = vcombine.low %v3857_v50, %v174_v51 }
  0x1d   : > { %1020 = vmatpush1.bf16.msra.mxu0 %v3243_v18  ;;  %v171_v48 = vld [vmem:[%s3840_s30] sm:$0xff]  ;;  %v172_v49 = vld [vmem:[%s3840_s30 + $0x8] sm:$0xff]  ;;  %v3287_v57 = vld [vmem:[%s4731_s1 + $0x3b4] ss:$8 sps:$4 sm:$0xff]   ;;  %v3917_v17 = vcombine.low %v3857_v50, %v3866_v54  ;;  %s170_s18 = scalar_lea.vmem %s4733_s3, %s3206_s15 }
  0x1e   : > { %1071 = vmatpush1.bf16.msra.mxu1 %v3244_v19  ;;  %1021 = vmatprep.subr.bf16.mxu0 %v3245_v20  ;;  %v3860_v52 = vcombine.high %v171_v48, %v172_v49  ;;  %v176_v55 = vld [vmem:[%s3840_s30 + $0x20] sm:$0x11]  ;;  %v3870_v56 = vcombine.high %v172_v49, %v3857_v50  ;;  %v3289_v58 = vld [vmem:[%s4731_s1 + $0x4b4] ss:$8 sps:$4 sm:$0xff]   ;;  %v3291_v60 = vld [vmem:[%s4731_s1 + $0x3b0] ss:$8 sps:$4 sm:$0xff]   ;;  %v3898_v7 = vcombine.low %v171_v48, %v172_v49 }
  0x1f   : > { %1072 = vmatprep.subr.bf16.mxu1 %v3247_v21  ;;  %v3879_v59 = vcombine.high %v3866_v54, %v176_v55  ;;  %v449_v63 = vshll.u32 %v3863_v53, 16  ;;  %v3292_v0 = vld [vmem:[%s4731_s1 + $0x4b0] ss:$8 sps:$4 sm:$0xff]   ;;  %v3293_v4 = vld [vmem:[%s4731_s1 + $0x3a4] ss:$8 sps:$4 sm:$0xff]   ;;  %v3901_v8 = vcombine.low %v172_v49, %v3857_v50  ;;  %v3926_v21 = vcombine.low %v3866_v54, %v176_v55 }
  0x20   : > { %v442_v61 = vshrl.u32 %v3860_v52, 16  ;;  %v444_v62 = vshll.u32 %v3860_v52, 16  ;;  %v466_v1 = vshrl.u32 %v3870_v56, 16  ;;  %v468_v2 = vshll.u32 %v3870_v56, 16  ;;  %v3295_v9 = vld [vmem:[%s4731_s1 + $0x4a4] ss:$8 sps:$4 sm:$0xff]  }
  0x21   : > { %1022 = vmatpush1.bf16.msra.mxu0 %v3249_v22  ;;  %v473_v3 = vshll.u32 %v3879_v59, 16  ;;  %v3896_v6 = vrot.slane %v449_v63, 1  ;;  %v3297_v13 = vld [vmem:[%s4731_s1 + $0x3a0] ss:$8 sps:$4 sm:$0xff]   ;;  %v3299_v18 = vld [vmem:[%s4731_s1 + $0x394] ss:$8 sps:$4 sm:$0xff]  }
  0x22   : > { %1073 = vmatpush1.bf16.msra.mxu1 %v3250_v23  ;;  %1023 = vmatprep.subr.bf16.mxu0 %v3251_v24  ;;  %v446_v5 = vrot.slane %v444_v62, 1  ;;  %v470_v10 = vrot.slane %v468_v2, 1  ;;  %v3298_v14 = vld [vmem:[%s4731_s1 + $0x4a0] ss:$8 sps:$4 sm:$0xff]   ;;  %v432_v20 = vshll.u32 %v3898_v7, 16  ;;  %v456_v22 = vshll.u32 %v3901_v8, 16 }
  0x23   : > { %1074 = vmatprep.subr.bf16.mxu1 %v3253_v25  ;;  %v475_v11 = vrot.slane %v473_v3, 1  ;;  %v3301_v23 = vld [vmem:[%s4731_s1 + $0x494] ss:$8 sps:$4 sm:$0xff]   ;;  %v3303_v25 = vld [vmem:[%s4731_s1 + $0x390] ss:$8 sps:$4 sm:$0xff]   ;;  %v507_v62 = vshrl.u32 %v3926_v21, 16 }
  0x24   : > { %v447_v12 = vor.u32 %v446_v5, %v442_v61  ;;  %v471_v15 = vor.u32 %v470_v10, %v466_v1  ;;  %v3327_v49 = vld [vmem:[%s4731_s1 + $0x564] ss:$8 sps:$4 sm:$0xff]   ;;  %v3325_v55 = vld [vmem:[%s4731_s1 + $0x560] ss:$8 sps:$4 sm:$0xff]   ;;  %v501_v61 = vshrl.u32 %v3913_v16, 16 }
  0x25   : > { %1024 = vmatpush1.bf16.msra.mxu0 %v3255_v26  ;;  %v3304_v26 = vld [vmem:[%s4731_s1 + $0x490] ss:$8 sps:$4 sm:$0xff]   ;;  %v3330_v51 = vld [vmem:[%s4731_s1 + $0x64] ss:$8 sps:$4 sm:$0xff]   ;;  %v3333_v63 = vld [vmem:[%s4731_s1 + $0x554] ss:$8 sps:$4 sm:$0xff]  }
  0x26   : > { %1075 = vmatpush1.bf16.msra.mxu1 %v3256_v27  ;;  %1025 = vmatprep.subr.bf16.mxu0 %v3257_v28  ;;  %v452_v19 = vsel %vm428_vm0, %v447_v12, %v3896_v6  ;;  %v476_v24 = vsel %vm428_vm0, %v471_v15, %v475_v11  ;;  %v3305_v27 = vld [vmem:[%s4731_s1 + $0x384] ss:$8 sps:$4 sm:$0xff]   ;;  %v430_v28 = vshrl.u32 %v3898_v7, 16  ;;  %v3331_v1 = vld [vmem:[%s4731_s1 + $0x550] ss:$8 sps:$4 sm:$0xff]  }
  0x27   : > { %1076 = vmatprep.subr.bf16.mxu1 %v3259_v29  ;;  %1043 = vmatprep.mubr.bf16.mxu0 %v452_v19  ;;  %v437_v29 = vshll.u32 %v3913_v16, 16  ;;  %v3334_v2 = vld [vmem:[%s4731_s1 + $0x50] ss:$8 sps:$4 sm:$0xff]   ;;  %v3339_v5 = vld [vmem:[%s4731_s1 + $0x544] ss:$8 sps:$4 sm:$0xff]  }
  0x28   : > { %1094 = vmatprep.mubr.bf16.mxu1 %v476_v24  ;;  %v3340_v10 = vld [vmem:[%s4731_s1 + $0x40] ss:$8 sps:$4 sm:$0xff]   ;;  %v3348_v12 = vld [vmem:[%s4731_s1 + $0x34] ss:$8 sps:$4 sm:$0xff]   ;;  %v3351_v15 = vld [vmem:[%s4731_s1 + $0x524] ss:$8 sps:$4 sm:$0xff]  }
  0x29   : > { %1026 = vmatpush1.bf16.msra.mxu0 %v3261_v30  ;;  %v434_v30 = vrot.slane %v432_v20, 1  ;;  %v3354_v19 = vld [vmem:[%s4731_s1 + $0x24] ss:$8 sps:$4 sm:$0xff]   ;;  %v3349_v20 = vld [vmem:[%s4731_s1 + $0x520] ss:$8 sps:$4 sm:$0xff]  }
  0x2a   : > { %1077 = vmatpush1.bf16.msra.mxu1 %v3262_v31  ;;  %1027 = vmatprep.subr.bf16.mxu0 %v3263_v32  ;;  %v454_v31 = vshrl.u32 %v3901_v8, 16  ;;  %v458_v32 = vrot.slane %v456_v22, 1  ;;  %v3352_v22 = vld [vmem:[%s4731_s1 + $0x20] ss:$8 sps:$4 sm:$0xff]   ;;  %v3355_v24 = vld [vmem:[%s4731_s1 + $0x510] ss:$8 sps:$4 sm:$0xff]  }
  0x2b   : > { %1078 = vmatprep.subr.bf16.mxu1 %v3265_v33  ;;  %v461_v33 = vshll.u32 %v3926_v21, 16 }
  0x2d   : > { %1028 = vmatpush2.bf16.msra.mxu0 %v3267_v34  ;;  %v3307_v34 = vld [vmem:[%s4731_s1 + $0x484] ss:$8 sps:$4 sm:$0xff]  }
  0x2e   : > { %1079 = vmatpush2.bf16.msra.mxu1 %v3268_v35  ;;  %1029 = vmatprep.subr.bf16.mxu0 %v3269_v36  ;;  %v3309_v35 = vld [vmem:[%s4731_s1 + $0x380] ss:$8 sps:$4 sm:$0xff]  }
  0x2f   : > { %1080 = vmatprep.subr.bf16.mxu1 %v3271_v37  ;;  %v3310_v36 = vld [vmem:[%s4731_s1 + $0x480] ss:$8 sps:$4 sm:$0xff]   ;;  %v435_v37 = vor.u32 %v434_v30, %v430_v28  ;;  %v4060_v30 = vld [vmem:[%s3840_s30 + $0x24] ss:$8 sps:$4 sm:$0x1f]  }
  0x31   : > { %1030 = vmatpush2.bf16.msra.mxu0 %v3273_v38  ;;  %v439_v38 = vrot.slane %v437_v29, 1  ;;  %v3366_v29 = vld [vmem:[%s4731_s1 + $0x4] ss:$8 sps:$4 sm:$0xff]  }
  0x32   : > { %1081 = vmatpush2.bf16.msra.mxu1 %v3274_v39  ;;  %1031 = vmatprep.subr.bf16.mxu0 %v3275_v40  ;;  %v459_v39 = vor.u32 %v458_v32, %v454_v31  ;;  %v463_v40 = vrot.slane %v461_v33, 1  ;;  %v3361_v31 = vld [vmem:[%s4731_s1 + $0x500] ss:$8 sps:$4 sm:$0xff]  }
  0x33   : > { %1082 = vmatprep.subr.bf16.mxu1 %v3277_v41  ;;  %v3321_v41 = vld [vmem:[%s4731_s1 + $0x574] ss:$8 sps:$4 sm:$0xff]   ;;  %v503_v3 = vor.u32 %v501_v61, %v439_v38  ;;  %v3364_v32 = vld [vmem:[%s4731_s1] ss:$8 sps:$4 sm:$0xff]   ;;  %v3391_v61 = vld [vmem:[%s4731_s1 + $0x5b0] ss:$8 sps:$4 sm:$0xff]  }
  0x34   : > { %v464_v48 = vsel %vm428_vm0, %v459_v39, %v463_v40  ;;  %v3370_v39 = vld [vmem:[%s4731_s1 + $0xf0] ss:$8 sps:$4 sm:$0xff]  }
  0x35   : > { %1032 = vmatpush2.bf16.msra.mxu0 %v3279_v42  ;;  %v3324_v42 = vld [vmem:[%s4731_s1 + $0x74] ss:$8 sps:$4 sm:$0xff]  }
  0x36   : > { %1083 = vmatpush2.bf16.msra.mxu1 %v3280_v43  ;;  %1033 = vmatprep.subr.bf16.mxu0 %v3281_v44  ;;  %v504_v43 = vshrl.u32 %v3863_v53, 16  ;;  %v510_v44 = vshrl.u32 %v3879_v59, 16 }
  0x37   : > { %1084 = vmatprep.subr.bf16.mxu1 %v3283_v45  ;;  %v3319_v45 = vld [vmem:[%s4731_s1 + $0x570] ss:$8 sps:$4 sm:$0xff]  }
  0x39   : > { %1034 = vmatpush2.bf16.msra.mxu0 %v3285_v46  ;;  %v3322_v46 = vld [vmem:[%s4731_s1 + $0x70] ss:$8 sps:$4 sm:$0xff]  }
  0x3a   : > { %1085 = vmatpush2.bf16.msra.mxu1 %v3286_v47  ;;  %1035 = vmatprep.subr.bf16.mxu0 %v3287_v57  ;;  %v440_v47 = vsel %vm428_vm0, %v435_v37, %v439_v38  ;;  %v506_v57 = vor.u32 %v504_v43, %v3896_v6  ;;  %v3342_v6 = vld [vmem:[%s4731_s1 + $0x44] ss:$8 sps:$4 sm:$0xff]   ;;  %v3367_v38 = vld [vmem:[%s4731_s1 + $0x5f0] ss:$8 sps:$4 sm:$0xff]   ;;  %v3373_v43 = vld [vmem:[%s4731_s1 + $0x5e0] ss:$8 sps:$4 sm:$0xff]  }
  0x3b   : > { %1086 = vmatprep.subr.bf16.mxu1 %v3289_v58  ;;  %v512_v58 = vor.u32 %v510_v44, %v475_v11  ;;  %v3345_v11 = vld [vmem:[%s4731_s1 + $0x534] ss:$8 sps:$4 sm:$0xff]   ;;  %v3376_v44 = vld [vmem:[%s4731_s1 + $0xe0] ss:$8 sps:$4 sm:$0xff]  }
  0x3d   : > { %1036 = vmatpush2.bf16.msra.mxu0 %v3291_v60  ;;  %v3328_v60 = vld [vmem:[%s4731_s1 + $0x60] ss:$8 sps:$4 sm:$0xff]  }
  0x3e   : > { %1087 = vmatpush2.bf16.msra.mxu1 %v3292_v0  ;;  %1037 = vmatprep.subr.bf16.mxu0 %v3293_v4  ;;  %v3336_v0 = vld [vmem:[%s4731_s1 + $0x54] ss:$8 sps:$4 sm:$0xff]   ;;  %v509_v4 = vor.u32 %v507_v62, %v463_v40  ;;  %v3394_v62 = vld [vmem:[%s4731_s1 + $0xb0] ss:$8 sps:$4 sm:$0xff]  }
  0x3f   : > { %1088 = vmatprep.subr.bf16.mxu1 %v3295_v9  ;;  %v3337_v9 = vld [vmem:[%s4731_s1 + $0x540] ss:$8 sps:$4 sm:$0xff]  }
  0x41   : > { %1038 = vmatpush2.bf16.msra.mxu0 %v3297_v13  ;;  %v3343_v13 = vld [vmem:[%s4731_s1 + $0x530] ss:$8 sps:$4 sm:$0xff]  }
  0x42   : > { %1089 = vmatpush2.bf16.msra.mxu1 %v3298_v14  ;;  %1039 = vmatprep.subr.bf16.mxu0 %v3299_v18  ;;  %v3346_v14 = vld [vmem:[%s4731_s1 + $0x30] ss:$8 sps:$4 sm:$0xff]   ;;  %v4028_v18 = vcombine.high %v3857_v50, %v3866_v54  ;;  %v3357_v50 = vld [vmem:[%s4731_s1 + $0x514] ss:$8 sps:$4 sm:$0xff]  }
  0x43   : > { %1090 = vmatprep.subr.bf16.mxu1 %v3301_v23  ;;  %v3360_v23 = vld [vmem:[%s4731_s1 + $0x14] ss:$8 sps:$4 sm:$0xff]  }
  0x44   : > { %v492_v54 = vshll.u32 %v4028_v18, 16 }
  0x45   : > { %1040 = vmatpush2.bf16.msra.mxu0 %v3303_v25  ;;  %v3358_v25 = vld [vmem:[%s4731_s1 + $0x10] ss:$8 sps:$4 sm:$0xff]  }
  0x46   : > { %1091 = vmatpush2.bf16.msra.mxu1 %v3304_v26  ;;  %1041 = vmatprep.subr.bf16.mxu0 %v3305_v27  ;;  %v3363_v26 = vld [vmem:[%s4731_s1 + $0x504] ss:$8 sps:$4 sm:$0xff]   ;;  %v490_v27 = vshrl.u32 %v4028_v18, 16  ;;  %v494_v28 = vrot.slane %v492_v54, 1  ;;  %v3422_v54 = vld [vmem:[%s4731_s1 + $0x174] ss:$8 sps:$4 sm:$0xff]  }
  0x47   : > { %1092 = vmatprep.subr.bf16.mxu1 %v3307_v34  ;;  %v497_v34 = vshll.u32 %v4060_v30, 16 }
  0x48   : > { %v495_v33 = vor.u32 %v494_v28, %v490_v27  ;;  %v3423_v27 = vld [vmem:[%s4731_s1 + $0x270] ss:$8 sps:$4 sm:$0xff]   ;;  %v3428_v28 = vld [vmem:[%s4731_s1 + $0x164] ss:$8 sps:$4 sm:$0xff]  }
  0x49   : > { %1042 = vmatpush2.bf16.msra.mxu0 %v3309_v35  ;;  %v3369_v35 = vld [vmem:[%s4731_s1 + $0x5f4] ss:$8 sps:$4 sm:$0xff]   ;;  %v4075_v37 = vrot.slane %v497_v34, 1  ;;  %v3429_v34 = vld [vmem:[%s4731_s1 + $0x260] ss:$8 sps:$4 sm:$0xff]  }
  0x4a   : > { %1093 = vmatpush2.bf16.msra.mxu1 %v3310_v36  ;;  %1113 = vmatprep.subr.bf16.mxu0 %v3321_v41  ;;  %v3372_v36 = vld [vmem:[%s4731_s1 + $0xf4] ss:$8 sps:$4 sm:$0xff]   ;;  %v3375_v41 = vld [vmem:[%s4731_s1 + $0x5e4] ss:$8 sps:$4 sm:$0xff]  }
  0x4b   : > { %1644 = vmatprep.subr.bf16.mxu1 %v3324_v42  ;;  %v500_v40 = vsel %vm428_vm0, %v495_v33, %v4075_v37  ;;  %v3378_v42 = vld [vmem:[%s4731_s1 + $0xe4] ss:$8 sps:$4 sm:$0xff]  }
  0x4c   : > { %1044 = vmatmul.mubr.bf16.vlgmr.msra.gmra.mxu0 %v440_v47  ;;  %v3379_v47 = vld [vmem:[%s4731_s1 + $0x5d0] ss:$8 sps:$4 sm:$0xff]  }
  0x4d   : > { %1095 = vmatmul.mubr.bf16.vlgmr.msra.gmra.mxu1 %v464_v48  ;;  %1114 = vmatpush1.bf16.msra.mxu0 %v3319_v45  ;;  %v3381_v45 = vld [vmem:[%s4731_s1 + $0x5d4] ss:$8 sps:$4 sm:$0xff]   ;;  %v3382_v48 = vld [vmem:[%s4731_s1 + $0xd0] ss:$8 sps:$4 sm:$0xff]  }
  0x4e   : > { %1645 = vmatpush1.bf16.msra.mxu1 %v3322_v46  ;;  %1115 = vmatprep.subr.bf16.mxu0 %v3327_v49  ;;  %v3384_v46 = vld [vmem:[%s4731_s1 + $0xd4] ss:$8 sps:$4 sm:$0xff]   ;;  %v3387_v49 = vld [vmem:[%s4731_s1 + $0x5c4] ss:$8 sps:$4 sm:$0xff]  }
  0x4f   : > { %1646 = vmatprep.subr.bf16.mxu1 %v3330_v51  ;;  %1053 = vmatprep.mubr.bf16.mxu0 %v506_v57  ;;  %v3390_v51 = vld [vmem:[%s4731_s1 + $0xc4] ss:$8 sps:$4 sm:$0xff]   ;;  %v3388_v57 = vld [vmem:[%s4731_s1 + $0xc0] ss:$8 sps:$4 sm:$0xff]  }
  0x50   : > { %1104 = vmatprep.mubr.bf16.mxu1 %v512_v58  ;;  %v3393_v58 = vld [vmem:[%s4731_s1 + $0x5b4] ss:$8 sps:$4 sm:$0xff]  }
  0x51   : > { %1116 = vmatpush1.bf16.msra.mxu0 %v3325_v55  ;;  %v3385_v55 = vld [vmem:[%s4731_s1 + $0x5c0] ss:$8 sps:$4 sm:$0xff]  }
  0x52   : > { %1647 = vmatpush1.bf16.msra.mxu1 %v3328_v60  ;;  %1117 = vmatprep.subr.bf16.mxu0 %v3333_v63  ;;  %v3396_v60 = vld [vmem:[%s4731_s1 + $0xb4] ss:$8 sps:$4 sm:$0xff]   ;;  %v3399_v63 = vld [vmem:[%s4731_s1 + $0x5a4] ss:$8 sps:$4 sm:$0xff]  }
  0x53   : > { %1648 = vmatprep.subr.bf16.mxu1 %v3336_v0  ;;  %v3402_v0 = vld [vmem:[%s4731_s1 + $0xa4] ss:$8 sps:$4 sm:$0xff]  }
  0x54   : > { %1054 = vmatmul.mubr.bf16.gmra.mxu0 %v503_v3  ;;  %v4146_v3 = vld [vmem:[%s3840_s30 + $0x20] ss:$8 sps:$4 sm:$0x1f]  }
  0x55   : > { %1105 = vmatmul.mubr.bf16.gmra.mxu1 %v509_v4  ;;  %1118 = vmatpush1.bf16.msra.mxu0 %v3331_v1  ;;  %v3397_v1 = vld [vmem:[%s4731_s1 + $0x5a0] ss:$8 sps:$4 sm:$0xff]   ;;  %v480_v4 = vshll.u32 %v3917_v17, 16  ;;  %v513_v33 = vshrl.u32 %v4146_v3, 16 }
  0x56   : > { %1649 = vmatpush1.bf16.msra.mxu1 %v3334_v2  ;;  %1119 = vmatprep.subr.bf16.mxu0 %v3339_v5  ;;  %v3400_v2 = vld [vmem:[%s4731_s1 + $0xa0] ss:$8 sps:$4 sm:$0xff]   ;;  %v3405_v5 = vld [vmem:[%s4731_s1 + $0x594] ss:$8 sps:$4 sm:$0xff]  }
  0x57   : > { %1650 = vmatprep.subr.bf16.mxu1 %v3342_v6  ;;  %1676 = vmatprep.mubr.bf16.mxu1 %v3860_v52  ;;  %v3408_v6 = vld [vmem:[%s4731_s1 + $0x94] ss:$8 sps:$4 sm:$0xff]  }
  0x58   : > { %1145 = vmatprep.mubr.bf16.mxu0 %v500_v40  ;;  %v3440_v40 = vld [vmem:[%s4731_s1 + $0x144] ss:$8 sps:$4 sm:$0xff]  }
  0x59   : > { %1120 = vmatpush1.bf16.msra.mxu0 %v3337_v9  ;;  %v3403_v9 = vld [vmem:[%s4731_s1 + $0x590] ss:$8 sps:$4 sm:$0xff]  }
  0x5a   : > { %1651 = vmatpush1.bf16.msra.mxu1 %v3340_v10  ;;  %1121 = vmatprep.subr.bf16.mxu0 %v3345_v11  ;;  %v478_v10 = vshrl.u32 %v3917_v17, 16  ;;  %v3406_v11 = vld [vmem:[%s4731_s1 + $0x90] ss:$8 sps:$4 sm:$0xff]  }
  0x5b   : > { %1652 = vmatprep.subr.bf16.mxu1 %v3348_v12  ;;  %v482_v12 = vrot.slane %v480_v4, 1  ;;  %v3473_v4 = vld [vmem:[%s4731_s1 + $0x2f4] ss:$8 sps:$4 sm:$0xff]  }
  0x5d   : > { %1122 = vmatpush1.bf16.msra.mxu0 %v3343_v13  ;;  %v485_v13 = vshll.u32 %v4146_v3, 16 }
  0x5e   : > { %1653 = vmatpush1.bf16.msra.mxu1 %v3346_v14  ;;  %1123 = vmatprep.subr.bf16.mxu0 %v3351_v15  ;;  %v3411_v14 = vld [vmem:[%s4731_s1 + $0x584] ss:$8 sps:$4 sm:$0xff]  }
  0x5f   : > { %1654 = vmatprep.subr.bf16.mxu1 %v3354_v19  ;;  %v3414_v15 = vld [vmem:[%s4731_s1 + $0x84] ss:$8 sps:$4 sm:$0xff]   ;;  %v3409_v19 = vld [vmem:[%s4731_s1 + $0x580] ss:$8 sps:$4 sm:$0xff]  }
  0x61   : > { %1124 = vmatpush1.bf16.msra.mxu0 %v3349_v20  ;;  %v3412_v20 = vld [vmem:[%s4731_s1 + $0x80] ss:$8 sps:$4 sm:$0xff]  }
  0x62   : > { %1655 = vmatpush1.bf16.msra.mxu1 %v3352_v22  ;;  %1125 = vmatprep.subr.bf16.mxu0 %v3357_v50  ;;  %v483_v22 = vor.u32 %v482_v12, %v478_v10  ;;  %v487_v50 = vrot.slane %v485_v13, 1  ;;  %v3479_v10 = vld [vmem:[%s4731_s1 + $0x2e4] ss:$8 sps:$4 sm:$0xff]   ;;  %v3477_v12 = vld [vmem:[%s4731_s1 + $0x2e0] ss:$8 sps:$4 sm:$0xff]  }
  0x63   : > { %1656 = vmatprep.subr.bf16.mxu1 %v3360_v23  ;;  %v3425_v23 = vld [vmem:[%s4731_s1 + $0x274] ss:$8 sps:$4 sm:$0xff]  }
  0x64   : > { %v3482_v13 = vld [vmem:[%s4731_s1 + $0x1d4] ss:$8 sps:$4 sm:$0xff]  }
  0x65   : > { %1126 = vmatpush1.bf16.msra.mxu0 %v3355_v24  ;;  %v516_v24 = vshrl.u32 %v4060_v30, 16 }
  0x66   : > { %1657 = vmatpush1.bf16.msra.mxu1 %v3358_v25  ;;  %1127 = vmatprep.subr.bf16.mxu0 %v3363_v26  ;;  %v3420_v25 = vld [vmem:[%s4731_s1 + $0x170] ss:$8 sps:$4 sm:$0xff]   ;;  %v488_v26 = vsel %vm428_vm0, %v483_v22, %v487_v50  ;;  %v3491_v22 = vld [vmem:[%s4731_s1 + $0x2c4] ss:$8 sps:$4 sm:$0xff]  }
  0x67   : > { %1658 = vmatprep.subr.bf16.mxu1 %v3366_v29  ;;  %v3431_v29 = vld [vmem:[%s4731_s1 + $0x264] ss:$8 sps:$4 sm:$0xff]  }
  0x69   : > { %1128 = vmatpush1.bf16.msra.mxu0 %v3361_v31  ;;  %v518_v31 = vor.u32 %v516_v24, %v4075_v37  ;;  %v515_v37 = vor.u32 %v513_v33, %v487_v50  ;;  %v3486_v50 = vld [vmem:[%s4731_s1 + $0x1c0] ss:$8 sps:$4 sm:$0xff]   ;;  %v3497_v24 = vld [vmem:[%s4731_s1 + $0x2b4] ss:$8 sps:$4 sm:$0xff]  }
  0x6a   : > { %1659 = vmatpush1.bf16.msra.mxu1 %v3364_v32  ;;  %1129 = vmatprep.subr.bf16.mxu0 %v3369_v35  ;;  %v3426_v32 = vld [vmem:[%s4731_s1 + $0x160] ss:$8 sps:$4 sm:$0xff]   ;;  %v3434_v35 = vld [vmem:[%s4731_s1 + $0x154] ss:$8 sps:$4 sm:$0xff]  }
  0x6b   : > { %1660 = vmatprep.subr.bf16.mxu1 %v3372_v36  ;;  %v3437_v36 = vld [vmem:[%s4731_s1 + $0x254] ss:$8 sps:$4 sm:$0xff]  }
  0x6c   : > { %v3509_v33 = vld [vmem:[%s4731_s1 + $0x294] ss:$8 sps:$4 sm:$0xff]  }
  0x6d   : > { %1130 = vmatpush2.bf16.msra.mxu0 %v3367_v38  ;;  %v3432_v38 = vld [vmem:[%s4731_s1 + $0x150] ss:$8 sps:$4 sm:$0xff]  }
  0x6e   : > { %1661 = vmatpush2.bf16.msra.mxu1 %v3370_v39  ;;  %1131 = vmatprep.subr.bf16.mxu0 %v3375_v41  ;;  %v3435_v39 = vld [vmem:[%s4731_s1 + $0x250] ss:$8 sps:$4 sm:$0xff]   ;;  %v3443_v41 = vld [vmem:[%s4731_s1 + $0x244] ss:$8 sps:$4 sm:$0xff]  }
  0x6f   : > { %1662 = vmatprep.subr.bf16.mxu1 %v3378_v42  ;;  %v3438_v42 = vld [vmem:[%s4731_s1 + $0x140] ss:$8 sps:$4 sm:$0xff]  }
  0x71   : > { %1132 = vmatpush2.bf16.msra.mxu0 %v3373_v43  ;;  %v3441_v43 = vld [vmem:[%s4731_s1 + $0x240] ss:$8 sps:$4 sm:$0xff]  }
  0x72   : > { %1663 = vmatpush2.bf16.msra.mxu1 %v3376_v44  ;;  %1133 = vmatprep.subr.bf16.mxu0 %v3381_v45  ;;  %v3446_v44 = vld [vmem:[%s4731_s1 + $0x134] ss:$8 sps:$4 sm:$0xff]  }
  0x73   : > { %1664 = vmatprep.subr.bf16.mxu1 %v3384_v46  ;;  %v3449_v45 = vld [vmem:[%s4731_s1 + $0x234] ss:$8 sps:$4 sm:$0xff]   ;;  %v3444_v46 = vld [vmem:[%s4731_s1 + $0x130] ss:$8 sps:$4 sm:$0xff]  }
  0x75   : > { %1134 = vmatpush2.bf16.msra.mxu0 %v3379_v47  ;;  %v3447_v47 = vld [vmem:[%s4731_s1 + $0x230] ss:$8 sps:$4 sm:$0xff]  }
  0x76   : > { %1665 = vmatpush2.bf16.msra.mxu1 %v3382_v48  ;;  %1135 = vmatprep.subr.bf16.mxu0 %v3387_v49  ;;  %v3452_v48 = vld [vmem:[%s4731_s1 + $0x124] ss:$8 sps:$4 sm:$0xff]  }
  0x77   : > { %1666 = vmatprep.subr.bf16.mxu1 %v3390_v51  ;;  %v3455_v49 = vld [vmem:[%s4731_s1 + $0x224] ss:$8 sps:$4 sm:$0xff]   ;;  %v3450_v51 = vld [vmem:[%s4731_s1 + $0x120] ss:$8 sps:$4 sm:$0xff]  }
  0x79   : > { %1136 = vmatpush2.bf16.msra.mxu0 %v3385_v55  ;;  %v3453_v55 = vld [vmem:[%s4731_s1 + $0x220] ss:$8 sps:$4 sm:$0xff]  }
  0x7a   : > { %1667 = vmatpush2.bf16.msra.mxu1 %v3388_v57  ;;  %1137 = vmatprep.subr.bf16.mxu0 %v3393_v58  ;;  %v3458_v57 = vld [vmem:[%s4731_s1 + $0x114] ss:$8 sps:$4 sm:$0xff]  }
  0x7b   : > { %1668 = vmatprep.subr.bf16.mxu1 %v3396_v60  ;;  %v3461_v58 = vld [vmem:[%s4731_s1 + $0x214] ss:$8 sps:$4 sm:$0xff]   ;;  %v3456_v60 = vld [vmem:[%s4731_s1 + $0x110] ss:$8 sps:$4 sm:$0xff]  }
  0x7d   : > { %1138 = vmatpush2.bf16.msra.mxu0 %v3391_v61  ;;  %v3459_v61 = vld [vmem:[%s4731_s1 + $0x210] ss:$8 sps:$4 sm:$0xff]  }
  0x7e   : > { %1669 = vmatpush2.bf16.msra.mxu1 %v3394_v62  ;;  %1139 = vmatprep.subr.bf16.mxu0 %v3399_v63  ;;  %v3464_v62 = vld [vmem:[%s4731_s1 + $0x104] ss:$8 sps:$4 sm:$0xff]  }
  0x7f   : > { %1670 = vmatprep.subr.bf16.mxu1 %v3402_v0  ;;  %v3467_v63 = vld [vmem:[%s4731_s1 + $0x204] ss:$8 sps:$4 sm:$0xff]   ;;  %v3462_v0 = vld [vmem:[%s4731_s1 + $0x100] ss:$8 sps:$4 sm:$0xff]  }
  0x81   : > { %1140 = vmatpush2.bf16.msra.mxu0 %v3397_v1  ;;  %v3465_v1 = vld [vmem:[%s4731_s1 + $0x200] ss:$8 sps:$4 sm:$0xff]  }
  0x82   : > { %1671 = vmatpush2.bf16.msra.mxu1 %v3400_v2  ;;  %1141 = vmatprep.subr.bf16.mxu0 %v3405_v5  ;;  %v3470_v2 = vld [vmem:[%s4731_s1 + $0x1f4] ss:$8 sps:$4 sm:$0xff]   ;;  %v3468_v5 = vld [vmem:[%s4731_s1 + $0x1f0] ss:$8 sps:$4 sm:$0xff]  }
  0x83   : > { %1672 = vmatprep.subr.bf16.mxu1 %v3408_v6  ;;  %v3471_v6 = vld [vmem:[%s4731_s1 + $0x2f0] ss:$8 sps:$4 sm:$0xff]  }
  0x85   : > { %1142 = vmatpush2.bf16.msra.mxu0 %v3403_v9  ;;  %v3476_v9 = vld [vmem:[%s4731_s1 + $0x1e4] ss:$8 sps:$4 sm:$0xff]  }
  0x86   : > { %1673 = vmatpush2.bf16.msra.mxu1 %v3406_v11  ;;  %1143 = vmatprep.subr.bf16.mxu0 %v3411_v14  ;;  %v3474_v11 = vld [vmem:[%s4731_s1 + $0x1e0] ss:$8 sps:$4 sm:$0xff]   ;;  %v3485_v14 = vld [vmem:[%s4731_s1 + $0x2d4] ss:$8 sps:$4 sm:$0xff]  }
  0x87   : > { %1674 = vmatprep.subr.bf16.mxu1 %v3414_v15  ;;  %v3480_v15 = vld [vmem:[%s4731_s1 + $0x1d0] ss:$8 sps:$4 sm:$0xff]  }
  0x89   : > { %1144 = vmatpush2.bf16.msra.mxu0 %v3409_v19  ;;  %v3483_v19 = vld [vmem:[%s4731_s1 + $0x2d0] ss:$8 sps:$4 sm:$0xff]  }
  0x8a   : > { %1675 = vmatpush2.bf16.msra.mxu1 %v3412_v20  ;;  %1695 = vmatprep.subr.bf16.mxu0 %v3422_v54  ;;  %v3488_v20 = vld [vmem:[%s4731_s1 + $0x1c4] ss:$8 sps:$4 sm:$0xff]   ;;  %v3489_v54 = vld [vmem:[%s4731_s1 + $0x2c0] ss:$8 sps:$4 sm:$0xff]  }
  0x8b   : > { %1746 = vmatprep.subr.bf16.mxu1 %v3425_v23  ;;  %v3494_v23 = vld [vmem:[%s4731_s1 + $0x1b4] ss:$8 sps:$4 sm:$0xff]  }
  0x8c   : > { %1146 = vmatmul.mubr.bf16.vlgmr.msra.gmra.mxu0 %v488_v26  ;;  %v3495_v26 = vld [vmem:[%s4731_s1 + $0x2b0] ss:$8 sps:$4 sm:$0xff]  }
  0x8d   : > { %1677 = vmatmul.mubr.bf16.vlgmr.msra.gmra.mxu1 %v3898_v7  ;;  %1696 = vmatpush1.bf16.msra.mxu0 %v3420_v25  ;;  %v3492_v25 = vld [vmem:[%s4731_s1 + $0x1b0] ss:$8 sps:$4 sm:$0xff]  }
  0x8e   : > { %1747 = vmatpush1.bf16.msra.mxu1 %v3423_v27  ;;  %1697 = vmatprep.subr.bf16.mxu0 %v3428_v28  ;;  %v3500_v27 = vld [vmem:[%s4731_s1 + $0x1a4] ss:$8 sps:$4 sm:$0xff]  }
  0x8f   : > { %1748 = vmatprep.subr.bf16.mxu1 %v3431_v29  ;;  %1155 = vmatprep.mubr.bf16.mxu0 %v518_v31  ;;  %v3503_v28 = vld [vmem:[%s4731_s1 + $0x2a4] ss:$8 sps:$4 sm:$0xff]   ;;  %v3498_v29 = vld [vmem:[%s4731_s1 + $0x1a0] ss:$8 sps:$4 sm:$0xff]  }
  0x90   : > { %1686 = vmatprep.mubr.bf16.mxu1 %v3863_v53  ;;  %v3501_v31 = vld [vmem:[%s4731_s1 + $0x2a0] ss:$8 sps:$4 sm:$0xff]  }
  0x91   : > { %1698 = vmatpush1.bf16.msra.mxu0 %v3426_v32  ;;  %v3506_v32 = vld [vmem:[%s4731_s1 + $0x194] ss:$8 sps:$4 sm:$0xff]  }
  0x92   : > { %1749 = vmatpush1.bf16.msra.mxu1 %v3429_v34  ;;  %1699 = vmatprep.subr.bf16.mxu0 %v3434_v35  ;;  %v3504_v34 = vld [vmem:[%s4731_s1 + $0x190] ss:$8 sps:$4 sm:$0xff]  }
  0x93   : > { %1750 = vmatprep.subr.bf16.mxu1 %v3437_v36  ;;  %v3507_v35 = vld [vmem:[%s4731_s1 + $0x290] ss:$8 sps:$4 sm:$0xff]   ;;  %v3512_v36 = vld [vmem:[%s4731_s1 + $0x184] ss:$8 sps:$4 sm:$0xff]  }
  0x94   : > { %1156 = vmatmul.mubr.bf16.gmra.mxu0 %v515_v37  ;;  %v3515_v37 = vld [vmem:[%s4731_s1 + $0x284] ss:$8 sps:$4 sm:$0xff]  }
  0x95   : > { %1687 = vmatmul.mubr.bf16.gmra.mxu1 %v3913_v16  ;;  %1700 = vmatpush1.bf16.msra.mxu0 %v3432_v38  ;;  %v3510_v38 = vld [vmem:[%s4731_s1 + $0x180] ss:$8 sps:$4 sm:$0xff]  }
  0x96   : > { %1751 = vmatpush1.bf16.msra.mxu1 %v3435_v39  ;;  %1701 = vmatprep.subr.bf16.mxu0 %v3440_v40  ;;  %v3513_v39 = vld [vmem:[%s4731_s1 + $0x280] ss:$8 sps:$4 sm:$0xff]   ;;  %v3518_v40 = vld [vmem:[%s4731_s1 + $0x674] ss:$8 sps:$4 sm:$0xff]  }
  0x97   : > { %1752 = vmatprep.subr.bf16.mxu1 %v3443_v41  ;;  %1727 = vmatprep.mubr.bf16.mxu0 %v3870_v56  ;;  %v3521_v41 = vld [vmem:[%s4731_s1 + $0x774] ss:$8 sps:$4 sm:$0xff]  }
  0x98   : > { %1778 = vmatprep.mubr.bf16.mxu1 %v4028_v18 }
  0x99   : > { %1702 = vmatpush1.bf16.msra.mxu0 %v3438_v42  ;;  %v3516_v42 = vld [vmem:[%s4731_s1 + $0x670] ss:$8 sps:$4 sm:$0xff]  }
  0x9a   : > { %1753 = vmatpush1.bf16.msra.mxu1 %v3441_v43  ;;  %1703 = vmatprep.subr.bf16.mxu0 %v3446_v44  ;;  %v3519_v43 = vld [vmem:[%s4731_s1 + $0x770] ss:$8 sps:$4 sm:$0xff]   ;;  %v3524_v44 = vld [vmem:[%s4731_s1 + $0x664] ss:$8 sps:$4 sm:$0xff]  }
  0x9b   : > { %1754 = vmatprep.subr.bf16.mxu1 %v3449_v45  ;;  %v3527_v45 = vld [vmem:[%s4731_s1 + $0x764] ss:$8 sps:$4 sm:$0xff]  }
  0x9d   : > { %1704 = vmatpush1.bf16.msra.mxu0 %v3444_v46  ;;  %v3522_v46 = vld [vmem:[%s4731_s1 + $0x660] ss:$8 sps:$4 sm:$0xff]  }
  0x9e   : > { %1755 = vmatpush1.bf16.msra.mxu1 %v3447_v47  ;;  %1705 = vmatprep.subr.bf16.mxu0 %v3452_v48  ;;  %v3525_v47 = vld [vmem:[%s4731_s1 + $0x760] ss:$8 sps:$4 sm:$0xff]   ;;  %v3530_v48 = vld [vmem:[%s4731_s1 + $0x654] ss:$8 sps:$4 sm:$0xff]  }
  0x9f   : > { %1756 = vmatprep.subr.bf16.mxu1 %v3455_v49  ;;  %v3533_v49 = vld [vmem:[%s4731_s1 + $0x754] ss:$8 sps:$4 sm:$0xff]  }
  0xa1   : > { %1706 = vmatpush1.bf16.msra.mxu0 %v3450_v51  ;;  %v1898_v51 = vrot.slane %v3860_v52, 1  ;;  %v3536_v52 = vld [vmem:[%s4731_s1 + $0x644] ss:$8 sps:$4 sm:$0xff]  }
  0xa2   : > { %1757 = vmatpush1.bf16.msra.mxu1 %v3453_v55  ;;  %1707 = vmatprep.subr.bf16.mxu0 %v3458_v57  ;;  %v1899_v55 = vrot.slane %v3863_v53, 1  ;;  %v1904_v57 = vrot.slane %v3870_v56, 1  ;;  %v3539_v56 = vld [vmem:[%s4731_s1 + $0x744] ss:$8 sps:$4 sm:$0xff]  }
  0xa3   : > { %1758 = vmatprep.subr.bf16.mxu1 %v3461_v58  ;;  %v1905_v58 = vrot.slane %v3879_v59, 1 }
  0xa5   : > { %1708 = vmatpush1.bf16.msra.mxu0 %v3456_v60  ;;  %v3528_v60 = vld [vmem:[%s4731_s1 + $0x650] ss:$8 sps:$4 sm:$0xff]  }
  0xa6   : > { %1759 = vmatpush1.bf16.msra.mxu1 %v3459_v61  ;;  %1709 = vmatprep.subr.bf16.mxu0 %v3464_v62  ;;  %v3531_v61 = vld [vmem:[%s4731_s1 + $0x750] ss:$8 sps:$4 sm:$0xff]   ;;  %v1906_v62 = vsel %vm1894_vm1, %v1904_v57, %v1905_v58  ;;  %v3611_v57 = vld [vmem:[%s4731_s1 + $0x784] ss:$8 sps:$4 sm:$0xff]  }
  0xa7   : > { %1760 = vmatprep.subr.bf16.mxu1 %v3467_v63  ;;  %v3534_v63 = vld [vmem:[%s4731_s1 + $0x640] ss:$8 sps:$4 sm:$0xff]  }
  0xa9   : > { %1710 = vmatpush1.bf16.msra.mxu0 %v3462_v0  ;;  %v3537_v0 = vld [vmem:[%s4731_s1 + $0x740] ss:$8 sps:$4 sm:$0xff]  }
  0xaa   : > { %1761 = vmatpush1.bf16.msra.mxu1 %v3465_v1  ;;  %1711 = vmatprep.subr.bf16.mxu0 %v3470_v2  ;;  %v3545_v1 = vld [vmem:[%s4731_s1 + $0x734] ss:$8 sps:$4 sm:$0xff]   ;;  %v3540_v2 = vld [vmem:[%s4731_s1 + $0x630] ss:$8 sps:$4 sm:$0xff]  }
  0xab   : > { %1762 = vmatprep.subr.bf16.mxu1 %v3473_v4  ;;  %v3543_v4 = vld [vmem:[%s4731_s1 + $0x730] ss:$8 sps:$4 sm:$0xff]  }
  0xad   : > { %1712 = vmatpush2.bf16.msra.mxu0 %v3468_v5  ;;  %v3548_v5 = vld [vmem:[%s4731_s1 + $0x624] ss:$8 sps:$4 sm:$0xff]  }
  0xae   : > { %1763 = vmatpush2.bf16.msra.mxu1 %v3471_v6  ;;  %1713 = vmatprep.subr.bf16.mxu0 %v3476_v9  ;;  %v3551_v6 = vld [vmem:[%s4731_s1 + $0x724] ss:$8 sps:$4 sm:$0xff]   ;;  %v3546_v9 = vld [vmem:[%s4731_s1 + $0x620] ss:$8 sps:$4 sm:$0xff]  }
  0xaf   : > { %1764 = vmatprep.subr.bf16.mxu1 %v3479_v10  ;;  %v3549_v10 = vld [vmem:[%s4731_s1 + $0x720] ss:$8 sps:$4 sm:$0xff]  }
  0xb1   : > { %1714 = vmatpush2.bf16.msra.mxu0 %v3474_v11  ;;  %v3554_v11 = vld [vmem:[%s4731_s1 + $0x614] ss:$8 sps:$4 sm:$0xff]  }
  0xb2   : > { %1765 = vmatpush2.bf16.msra.mxu1 %v3477_v12  ;;  %1715 = vmatprep.subr.bf16.mxu0 %v3482_v13  ;;  %v3557_v12 = vld [vmem:[%s4731_s1 + $0x714] ss:$8 sps:$4 sm:$0xff]   ;;  %v3552_v13 = vld [vmem:[%s4731_s1 + $0x610] ss:$8 sps:$4 sm:$0xff]  }
  0xb3   : > { %1766 = vmatprep.subr.bf16.mxu1 %v3485_v14  ;;  %v3555_v14 = vld [vmem:[%s4731_s1 + $0x710] ss:$8 sps:$4 sm:$0xff]  }
  0xb5   : > { %1716 = vmatpush2.bf16.msra.mxu0 %v3480_v15  ;;  %v3560_v15 = vld [vmem:[%s4731_s1 + $0x604] ss:$8 sps:$4 sm:$0xff]  }
  0xb6   : > { %1767 = vmatpush2.bf16.msra.mxu1 %v3483_v19  ;;  %1717 = vmatprep.subr.bf16.mxu0 %v3488_v20  ;;  %v3563_v19 = vld [vmem:[%s4731_s1 + $0x704] ss:$8 sps:$4 sm:$0xff]   ;;  %v3558_v20 = vld [vmem:[%s4731_s1 + $0x600] ss:$8 sps:$4 sm:$0xff]  }
  0xb7   : > { %1768 = vmatprep.subr.bf16.mxu1 %v3491_v22  ;;  %v3561_v22 = vld [vmem:[%s4731_s1 + $0x700] ss:$8 sps:$4 sm:$0xff]  }
  0xb9   : > { %1718 = vmatpush2.bf16.msra.mxu0 %v3486_v50  ;;  %v3566_v50 = vld [vmem:[%s4731_s1 + $0x6f4] ss:$8 sps:$4 sm:$0xff]  }
  0xba   : > { %1769 = vmatpush2.bf16.msra.mxu1 %v3489_v54  ;;  %1719 = vmatprep.subr.bf16.mxu0 %v3494_v23  ;;  %v3569_v54 = vld [vmem:[%s4731_s1 + $0x7f4] ss:$8 sps:$4 sm:$0xff]   ;;  %v3564_v23 = vld [vmem:[%s4731_s1 + $0x6f0] ss:$8 sps:$4 sm:$0xff]  }
  0xbb   : > { %1770 = vmatprep.subr.bf16.mxu1 %v3497_v24  ;;  %v3567_v24 = vld [vmem:[%s4731_s1 + $0x7f0] ss:$8 sps:$4 sm:$0xff]  }
  0xbd   : > { %1720 = vmatpush2.bf16.msra.mxu0 %v3492_v25  ;;  %v3572_v25 = vld [vmem:[%s4731_s1 + $0x6e4] ss:$8 sps:$4 sm:$0xff]  }
  0xbe   : > { %1771 = vmatpush2.bf16.msra.mxu1 %v3495_v26  ;;  %1721 = vmatprep.subr.bf16.mxu0 %v3500_v27  ;;  %v3575_v26 = vld [vmem:[%s4731_s1 + $0x7e4] ss:$8 sps:$4 sm:$0xff]   ;;  %v3570_v27 = vld [vmem:[%s4731_s1 + $0x6e0] ss:$8 sps:$4 sm:$0xff]  }
  0xbf   : > { %1772 = vmatprep.subr.bf16.mxu1 %v3503_v28  ;;  %v3573_v28 = vld [vmem:[%s4731_s1 + $0x7e0] ss:$8 sps:$4 sm:$0xff]  }
  0xc1   : > { %1722 = vmatpush2.bf16.msra.mxu0 %v3498_v29  ;;  %v3578_v29 = vld [vmem:[%s4731_s1 + $0x6d4] ss:$8 sps:$4 sm:$0xff]  }
  0xc2   : > { %1773 = vmatpush2.bf16.msra.mxu1 %v3501_v31  ;;  %1723 = vmatprep.subr.bf16.mxu0 %v3506_v32  ;;  %v3581_v31 = vld [vmem:[%s4731_s1 + $0x7d4] ss:$8 sps:$4 sm:$0xff]   ;;  %v3576_v32 = vld [vmem:[%s4731_s1 + $0x6d0] ss:$8 sps:$4 sm:$0xff]  }
  0xc3   : > { %1774 = vmatprep.subr.bf16.mxu1 %v3509_v33  ;;  %v3579_v33 = vld [vmem:[%s4731_s1 + $0x7d0] ss:$8 sps:$4 sm:$0xff]  }
  0xc5   : > { %1724 = vmatpush2.bf16.msra.mxu0 %v3504_v34  ;;  %v3584_v34 = vld [vmem:[%s4731_s1 + $0x6c4] ss:$8 sps:$4 sm:$0xff]  }
  0xc6   : > { %1775 = vmatpush2.bf16.msra.mxu1 %v3507_v35  ;;  %1725 = vmatprep.subr.bf16.mxu0 %v3512_v36  ;;  %v3587_v35 = vld [vmem:[%s4731_s1 + $0x7c4] ss:$8 sps:$4 sm:$0xff]   ;;  %v3582_v36 = vld [vmem:[%s4731_s1 + $0x6c0] ss:$8 sps:$4 sm:$0xff]  }
  0xc7   : > { %1776 = vmatprep.subr.bf16.mxu1 %v3515_v37  ;;  %v3585_v37 = vld [vmem:[%s4731_s1 + $0x7c0] ss:$8 sps:$4 sm:$0xff]  }
  0xc9   : > { %1726 = vmatpush2.bf16.msra.mxu0 %v3510_v38  ;;  %v3590_v38 = vld [vmem:[%s4731_s1 + $0x6b4] ss:$8 sps:$4 sm:$0xff]  }
  0xca   : > { %1777 = vmatpush2.bf16.msra.mxu1 %v3513_v39  ;;  %2405 = vmatprep.subr.bf16.mxu0 %v3518_v40  ;;  %v3593_v39 = vld [vmem:[%s4731_s1 + $0x7b4] ss:$8 sps:$4 sm:$0xff]   ;;  %v3588_v40 = vld [vmem:[%s4731_s1 + $0x6b0] ss:$8 sps:$4 sm:$0xff]  }
  0xcb   : > { %2456 = vmatprep.subr.bf16.mxu1 %v3521_v41  ;;  %v3591_v41 = vld [vmem:[%s4731_s1 + $0x7b0] ss:$8 sps:$4 sm:$0xff]  }
  0xcc   : > { %1728 = vmatmul.mubr.bf16.vlgmr.msra.gmra.mxu0 %v3901_v8 }
  0xcd   : > { %1779 = vmatmul.mubr.bf16.vlgmr.msra.gmra.mxu1 %v3917_v17  ;;  %2406 = vmatpush1.bf16.msra.mxu0 %v3516_v42  ;;  %v3596_v42 = vld [vmem:[%s4731_s1 + $0x6a4] ss:$8 sps:$4 sm:$0xff]  }
  0xce   : > { %2457 = vmatpush1.bf16.msra.mxu1 %v3519_v43  ;;  %2407 = vmatprep.subr.bf16.mxu0 %v3524_v44  ;;  %v3599_v43 = vld [vmem:[%s4731_s1 + $0x7a4] ss:$8 sps:$4 sm:$0xff]   ;;  %v3594_v44 = vld [vmem:[%s4731_s1 + $0x6a0] ss:$8 sps:$4 sm:$0xff]  }
  0xcf   : > { %2458 = vmatprep.subr.bf16.mxu1 %v3527_v45  ;;  %1737 = vmatprep.mubr.bf16.mxu0 %v3879_v59  ;;  %v3597_v45 = vld [vmem:[%s4731_s1 + $0x7a0] ss:$8 sps:$4 sm:$0xff]   ;;  %v3623_v59 = vld [vmem:[%s4731_s1 + $0x844] ss:$8 sps:$4 sm:$0xff]  }
  0xd0   : > { %1788 = vmatprep.mubr.bf16.mxu1 %v4060_v30  ;;  %v1900_v30 = vsel %vm1894_vm1, %v1898_v51, %v1899_v55  ;;  %v3608_v51 = vld [vmem:[%s4731_s1 + $0x684] ss:$8 sps:$4 sm:$0xff]  }
  0xd1   : > { %2408 = vmatpush1.bf16.msra.mxu0 %v3522_v46  ;;  %v3602_v46 = vld [vmem:[%s4731_s1 + $0x694] ss:$8 sps:$4 sm:$0xff]  }
  0xd2   : > { %2459 = vmatpush1.bf16.msra.mxu1 %v3525_v47  ;;  %2409 = vmatprep.subr.bf16.mxu0 %v3530_v48  ;;  %v3605_v47 = vld [vmem:[%s4731_s1 + $0x794] ss:$8 sps:$4 sm:$0xff]   ;;  %v3600_v48 = vld [vmem:[%s4731_s1 + $0x690] ss:$8 sps:$4 sm:$0xff]  }
  0xd3   : > { %2460 = vmatprep.subr.bf16.mxu1 %v3533_v49  ;;  %v3603_v49 = vld [vmem:[%s4731_s1 + $0x790] ss:$8 sps:$4 sm:$0xff]  }
  0xd4   : > { %1738 = vmatmul.mubr.bf16.gmra.mxu0 %v3926_v21 }
  0xd5   : > { %1789 = vmatmul.mubr.bf16.gmra.mxu1 %v4146_v3  ;;  %2410 = vmatpush1.bf16.msra.mxu0 %v3528_v60  ;;  %v3542_v3 = vld [vmem:[%s4731_s1 + $0x634] ss:$8 sps:$4 sm:$0xff]   ;;  %v1895_v60 = vrot.slane %v3898_v7, 1 }
  0xd6   : > { %2461 = vmatpush1.bf16.msra.mxu1 %v3531_v61  ;;  %2411 = vmatprep.subr.bf16.mxu0 %v3536_v52  ;;  %v1896_v61 = vrot.slane %v3913_v16, 1  ;;  %v3606_v52 = vld [vmem:[%s4731_s1 + $0x680] ss:$8 sps:$4 sm:$0xff]   ;;  %v3614_v7 = vld [vmem:[%s4731_s1 + $0x874] ss:$8 sps:$4 sm:$0xff]  }
  0xd7   : > { %2462 = vmatprep.subr.bf16.mxu1 %v3539_v56  ;;  %2437 = vmatprep.mubr.bf16.mxu0 %v1900_v30  ;;  %v3609_v56 = vld [vmem:[%s4731_s1 + $0x780] ss:$8 sps:$4 sm:$0xff]   ;;  %v1901_v30 = vrot.slane %v3901_v8, 1  ;;  %v3617_v8 = vld [vmem:[%s4731_s1 + $0x864] ss:$8 sps:$4 sm:$0xff]  }
  0xd8   : > { %2488 = vmatprep.mubr.bf16.mxu1 %v1906_v62  ;;  %v1902_v62 = vrot.slane %v3926_v21, 1  ;;  %v1897_v16 = vsel %vm1894_vm1, %v1895_v60, %v1896_v61  ;;  %v3654_v60 = vld [vmem:[%s4731_s1 + $0x890] ss:$8 sps:$4 sm:$0xff]  }
  0xd9   : > { %2412 = vmatpush1.bf16.msra.mxu0 %v3534_v63 }
  0xda   : > { %2463 = vmatpush1.bf16.msra.mxu1 %v3537_v0  ;;  %2413 = vmatprep.subr.bf16.mxu0 %v3542_v3  ;;  %v1903_v63 = vsel %vm1894_vm1, %v1901_v30, %v1902_v62  ;;  %v3612_v0 = vld [vmem:[%s4731_s1 + $0x870] ss:$8 sps:$4 sm:$0xff]   ;;  %v3661_v30 = vld [vmem:[%s3840_s30 + $0x20] ss:$8 sps:$4 sm:$0x1f]  }
  0xdb   : > { %2464 = vmatprep.subr.bf16.mxu1 %v3545_v1 }
  0xdd   : > { %2414 = vmatpush1.bf16.msra.mxu0 %v3540_v2  ;;  %v3615_v2 = vld [vmem:[%s4731_s1 + $0x860] ss:$8 sps:$4 sm:$0xff]  }
  0xde   : > { %2465 = vmatpush1.bf16.msra.mxu1 %v3543_v4  ;;  %2415 = vmatprep.subr.bf16.mxu0 %v3548_v5 }
  0xdf   : > { %2466 = vmatprep.subr.bf16.mxu1 %v3551_v6  ;;  %v3620_v6 = vld [vmem:[%s4731_s1 + $0x854] ss:$8 sps:$4 sm:$0xff]  }
  0xe1   : > { %2416 = vmatpush1.bf16.msra.mxu0 %v3546_v9 }
  0xe2   : > { %2467 = vmatpush1.bf16.msra.mxu1 %v3549_v10  ;;  %2417 = vmatprep.subr.bf16.mxu0 %v3554_v11 }
  0xe3   : > { %2468 = vmatprep.subr.bf16.mxu1 %v3557_v12  ;;  %v1910_v12 = vrot.slane %v4028_v18, 1 }
  0xe5   : > { %2418 = vmatpush1.bf16.msra.mxu0 %v3552_v13  ;;  %v3660_v13 = vld [vmem:[%s3840_s30 + $0x24] ss:$8 sps:$4 sm:$0x1f]  }
  0xe6   : > { %2469 = vmatpush1.bf16.msra.mxu1 %v3555_v14  ;;  %2419 = vmatprep.subr.bf16.mxu0 %v3560_v15  ;;  %v1911_v14 = vrot.slane %v3660_v13, 1 }
  0xe7   : > { %2470 = vmatprep.subr.bf16.mxu1 %v3563_v19  ;;  %v3618_v19 = vld [vmem:[%s4731_s1 + $0x850] ss:$8 sps:$4 sm:$0xff]  }
  0xe9   : > { %2420 = vmatpush1.bf16.msra.mxu0 %v3558_v20 }
  0xea   : > { %2471 = vmatpush1.bf16.msra.mxu1 %v3561_v22  ;;  %2421 = vmatprep.subr.bf16.mxu0 %v3566_v50  ;;  %v1912_v22 = vsel %vm1894_vm1, %v1910_v12, %v1911_v14  ;;  %v3621_v50 = vld [vmem:[%s4731_s1 + $0x840] ss:$8 sps:$4 sm:$0xff]  }
  0xeb   : > { %2472 = vmatprep.subr.bf16.mxu1 %v3569_v54 }
  0xed   : > { %2422 = vmatpush2.bf16.msra.mxu0 %v3564_v23  ;;  %v3626_v23 = vld [vmem:[%s4731_s1 + $0x834] ss:$8 sps:$4 sm:$0xff]  }
  0xee   : > { %2473 = vmatpush2.bf16.msra.mxu1 %v3567_v24  ;;  %2423 = vmatprep.subr.bf16.mxu0 %v3572_v25 }
  0xef   : > { %2474 = vmatprep.subr.bf16.mxu1 %v3575_v26 }
  0xf1   : > { %2424 = vmatpush2.bf16.msra.mxu0 %v3570_v27 }
  0xf2   : > { %2475 = vmatpush2.bf16.msra.mxu1 %v3573_v28  ;;  %2425 = vmatprep.subr.bf16.mxu0 %v3578_v29  ;;  %v3624_v29 = vld [vmem:[%s4731_s1 + $0x830] ss:$8 sps:$4 sm:$0xff]  }
  0xf3   : > { %2476 = vmatprep.subr.bf16.mxu1 %v3581_v31  ;;  %v3629_v31 = vld [vmem:[%s4731_s1 + $0x824] ss:$8 sps:$4 sm:$0xff]  }
  0xf5   : > { %2426 = vmatpush2.bf16.msra.mxu0 %v3576_v32 }
  0xf6   : > { %2477 = vmatpush2.bf16.msra.mxu1 %v3579_v33  ;;  %2427 = vmatprep.subr.bf16.mxu0 %v3584_v34  ;;  %v3627_v34 = vld [vmem:[%s4731_s1 + $0x820] ss:$8 sps:$4 sm:$0xff]  }
  0xf7   : > { %2478 = vmatprep.subr.bf16.mxu1 %v3587_v35  ;;  %v3632_v35 = vld [vmem:[%s4731_s1 + $0x814] ss:$8 sps:$4 sm:$0xff]  }
  0xf9   : > { %2428 = vmatpush2.bf16.msra.mxu0 %v3582_v36  ;;  %v3630_v36 = vld [vmem:[%s4731_s1 + $0x810] ss:$8 sps:$4 sm:$0xff]  }
  0xfa   : > { %2479 = vmatpush2.bf16.msra.mxu1 %v3585_v37  ;;  %2429 = vmatprep.subr.bf16.mxu0 %v3590_v38  ;;  %v3635_v37 = vld [vmem:[%s4731_s1 + $0x804] ss:$8 sps:$4 sm:$0xff]   ;;  %v3633_v38 = vld [vmem:[%s4731_s1 + $0x800] ss:$8 sps:$4 sm:$0xff]  }
  0xfb   : > { %2480 = vmatprep.subr.bf16.mxu1 %v3593_v39  ;;  %v3638_v39 = vld [vmem:[%s4731_s1 + $0x8f4] ss:$8 sps:$4 sm:$0xff]  }
  0xfd   : > { %2430 = vmatpush2.bf16.msra.mxu0 %v3588_v40  ;;  %v3636_v40 = vld [vmem:[%s4731_s1 + $0x8f0] ss:$8 sps:$4 sm:$0xff]  }
  0xfe   : > { %2481 = vmatpush2.bf16.msra.mxu1 %v3591_v41  ;;  %2431 = vmatprep.subr.bf16.mxu0 %v3596_v42  ;;  %v3641_v41 = vld [vmem:[%s4731_s1 + $0x8e4] ss:$8 sps:$4 sm:$0xff]   ;;  %v3639_v42 = vld [vmem:[%s4731_s1 + $0x8e0] ss:$8 sps:$4 sm:$0xff]  }
  0xff   : > { %2482 = vmatprep.subr.bf16.mxu1 %v3599_v43  ;;  %v3644_v43 = vld [vmem:[%s4731_s1 + $0x8d4] ss:$8 sps:$4 sm:$0xff]  }
 0x101   : > { %2432 = vmatpush2.bf16.msra.mxu0 %v3594_v44  ;;  %v3642_v44 = vld [vmem:[%s4731_s1 + $0x8d0] ss:$8 sps:$4 sm:$0xff]  }
 0x102   : > { %2483 = vmatpush2.bf16.msra.mxu1 %v3597_v45  ;;  %2433 = vmatprep.subr.bf16.mxu0 %v3602_v46  ;;  %v3647_v45 = vld [vmem:[%s4731_s1 + $0x8c4] ss:$8 sps:$4 sm:$0xff]   ;;  %v3645_v46 = vld [vmem:[%s4731_s1 + $0x8c0] ss:$8 sps:$4 sm:$0xff]  }
 0x103   : > { %2484 = vmatprep.subr.bf16.mxu1 %v3605_v47  ;;  %v3650_v47 = vld [vmem:[%s4731_s1 + $0x8b4] ss:$8 sps:$4 sm:$0xff]  }
 0x105   : > { %2434 = vmatpush2.bf16.msra.mxu0 %v3600_v48  ;;  %v3648_v48 = vld [vmem:[%s4731_s1 + $0x8b0] ss:$8 sps:$4 sm:$0xff]  }
 0x106   : > { %2485 = vmatpush2.bf16.msra.mxu1 %v3603_v49  ;;  %2435 = vmatprep.subr.bf16.mxu0 %v3608_v51  ;;  %v3653_v49 = vld [vmem:[%s4731_s1 + $0x8a4] ss:$8 sps:$4 sm:$0xff]   ;;  %v3651_v51 = vld [vmem:[%s4731_s1 + $0x8a0] ss:$8 sps:$4 sm:$0xff]  }
 0x107   : > { %2486 = vmatprep.subr.bf16.mxu1 %v3611_v57  ;;  %v3656_v57 = vld [vmem:[%s4731_s1 + $0x894] ss:$8 sps:$4 sm:$0xff]  }
 0x109   : > { %2436 = vmatpush2.bf16.msra.mxu0 %v3606_v52  ;;  %v3657_v52 = vld [vmem:[%s4731_s1 + $0x880] ss:$8 sps:$4 sm:$0xff]  }
 0x10a   : > { %2487 = vmatpush2.bf16.msra.mxu1 %v3609_v56  ;;  %2507 = vmatprep.subr.bf16.mxu0 %v3614_v7  ;;  %v1907_v56 = vrot.slane %v3917_v17, 1 }
 0x10b   : > { %3173 = vmatprep.subr.bf16.mxu1 %v3614_v7 }
 0x10c   : > { %v1045_v21 = vpop.f32.mrf.mxu0  ;;  %2438 = vmatmul.mubr.bf16.vlgmr.msra.gmra.mxu0 %v1897_v16 }
 0x10d   : > { %v1096_v3 = vpop.f32.mrf.mxu1  ;;  %2489 = vmatmul.mubr.bf16.vlgmr.msra.gmra.mxu1 %v1903_v63  ;;  %2508 = vmatpush1.bf16.msra.mxu0 %v3612_v0 }
 0x10e   : > { %v4599_v1 = vadd.f32 %v1096_v3, %v1045_v21  ;;  %3189 = vmatpush1.bf16.msra.mxu1 %v3612_v0  ;;  %v1047_v4 = vpop.f32.mrf.mxu0  ;;  %2509 = vmatprep.subr.bf16.mxu0 %v3617_v8 }
 0x10f   : > { %v1098_v5 = vpop.f32.mrf.mxu1  ;;  %3174 = vmatprep.subr.bf16.mxu1 %v3617_v8  ;;  %2447 = vmatprep.mubr.bf16.mxu0 %v1899_v55 }
 0x110   : > { %v4607_v9 = vadd.f32 %v1098_v5, %v1047_v4  ;;  %2498 = vmatprep.mubr.bf16.mxu1 %v1905_v58  ;;  %v1049_v10 = vpop.f32.mrf.mxu0 }
 0x111   : > { %v1100_v11 = vpop.f32.mrf.mxu1  ;;  %2510 = vmatpush1.bf16.msra.mxu0 %v3615_v2 }
 0x112   : > { %v4615_v15 = vadd.f32 %v1100_v11, %v1049_v10  ;;  %3190 = vmatpush1.bf16.msra.mxu1 %v3615_v2  ;;  %v1051_v20 = vpop.f32.mrf.mxu0  ;;  %2511 = vmatprep.subr.bf16.mxu0 %v3620_v6 }
 0x113   : > { %v1102_v53 = vpop.f32.mrf.mxu1  ;;  %3175 = vmatprep.subr.bf16.mxu1 %v3620_v6 }
 0x114   : > { %v4623_v55 = vadd.f32 %v1102_v53, %v1051_v20  ;;  %2448 = vmatmul.mubr.bf16.gmra.mxu0 %v1896_v61  ;;  %v1055_v18 = vpop.f32.mrf.mxu0  ;;  %v3659_v61 = vld [vmem:[%s4731_s1 + $0x884] ss:$8 sps:$4 sm:$0xff]  }
 0x115   : > { %2499 = vmatmul.mubr.bf16.gmra.mxu1 %v1902_v62  ;;  %v1106_v58 = vpop.f32.mrf.mxu1  ;;  %2512 = vmatpush1.bf16.msra.mxu0 %v3618_v19  ;;  %v1908_v62 = vrot.slane %v3661_v30, 1 }
 0x116   : > { %3191 = vmatpush1.bf16.msra.mxu1 %v3618_v19  ;;  %v4629_v54 = vadd.f32 %v1106_v58, %v1055_v18  ;;  %2513 = vmatprep.subr.bf16.mxu0 %v3623_v59  ;;  %v1057_v24 = vpop.f32.mrf.mxu0 }
 0x117   : > { %3176 = vmatprep.subr.bf16.mxu1 %v3623_v59  ;;  %v1108_v25 = vpop.f32.mrf.mxu1  ;;  %2539 = vmatprep.mubr.bf16.mxu0 %v1912_v22  ;;  %v1909_v7 = vsel %vm1894_vm1, %v1907_v56, %v1908_v62 }
 0x118   : > { %v4634_v26 = vadd.f32 %v1108_v25, %v1057_v24  ;;  %2549 = vmatprep.mubr.bf16.mxu1 %v1911_v14  ;;  %v1059_v27 = vpop.f32.mrf.mxu0 }
 0x119   : > { %v1110_v28 = vpop.f32.mrf.mxu1  ;;  %2514 = vmatpush1.bf16.msra.mxu0 %v3621_v50 }
 0x11a   : > { %3192 = vmatpush1.bf16.msra.mxu1 %v3621_v50  ;;  %2515 = vmatprep.subr.bf16.mxu0 %v3626_v23  ;;  %v1060_v32 = vpop.f32.mrf.mxu0 }
 0x11b   : > { %3177 = vmatprep.subr.bf16.mxu1 %v3626_v23  ;;  %v1111_v33 = vpop.f32.mrf.mxu1 }
 0x11d   : > { %2516 = vmatpush1.bf16.msra.mxu0 %v3624_v29 }
 0x11e   : > { %3193 = vmatpush1.bf16.msra.mxu1 %v3624_v29  ;;  %2517 = vmatprep.subr.bf16.mxu0 %v3629_v31 }
 0x11f   : > { %3178 = vmatprep.subr.bf16.mxu1 %v3629_v31 }
 0x121   : > { %2518 = vmatpush1.bf16.msra.mxu0 %v3627_v34 }
 0x122   : > { %3194 = vmatpush1.bf16.msra.mxu1 %v3627_v34  ;;  %2519 = vmatprep.subr.bf16.mxu0 %v3632_v35 }
 0x123   : > { %3179 = vmatprep.subr.bf16.mxu1 %v3632_v35 }
 0x125   : > { %2520 = vmatpush1.bf16.msra.mxu0 %v3630_v36 }
 0x126   : > { %3195 = vmatpush1.bf16.msra.mxu1 %v3630_v36  ;;  %2521 = vmatprep.subr.bf16.mxu0 %v3635_v37 }
 0x127   : > { %3180 = vmatprep.subr.bf16.mxu1 %v3635_v37 }
 0x129   : > { %2522 = vmatpush1.bf16.msra.mxu0 %v3633_v38 }
 0x12a   : > { %3196 = vmatpush1.bf16.msra.mxu1 %v3633_v38  ;;  %2523 = vmatprep.subr.bf16.mxu0 %v3638_v39 }
 0x12b   : > { %3181 = vmatprep.subr.bf16.mxu1 %v3638_v39 }
 0x12d   : > { %2524 = vmatpush2.bf16.msra.mxu0 %v3636_v40 }
 0x12e   : > { %3197 = vmatpush2.bf16.msra.mxu1 %v3636_v40  ;;  %2525 = vmatprep.subr.bf16.mxu0 %v3641_v41 }
 0x12f   : > { %3182 = vmatprep.subr.bf16.mxu1 %v3641_v41 }
 0x131   : > { %2526 = vmatpush2.bf16.msra.mxu0 %v3639_v42 }
 0x132   : > { %3198 = vmatpush2.bf16.msra.mxu1 %v3639_v42  ;;  %2527 = vmatprep.subr.bf16.mxu0 %v3644_v43 }
 0x133   : > { %3183 = vmatprep.subr.bf16.mxu1 %v3644_v43 }
 0x135   : > { %2528 = vmatpush2.bf16.msra.mxu0 %v3642_v44 }
 0x136   : > { %3199 = vmatpush2.bf16.msra.mxu1 %v3642_v44  ;;  %2529 = vmatprep.subr.bf16.mxu0 %v3647_v45 }
 0x137   : > { %3184 = vmatprep.subr.bf16.mxu1 %v3647_v45 }
 0x139   : > { %2530 = vmatpush2.bf16.msra.mxu0 %v3645_v46 }
 0x13a   : > { %3200 = vmatpush2.bf16.msra.mxu1 %v3645_v46  ;;  %2531 = vmatprep.subr.bf16.mxu0 %v3650_v47 }
 0x13b   : > { %3185 = vmatprep.subr.bf16.mxu1 %v3650_v47 }
 0x13d   : > { %2532 = vmatpush2.bf16.msra.mxu0 %v3648_v48 }
 0x13e   : > { %3201 = vmatpush2.bf16.msra.mxu1 %v3648_v48  ;;  %2533 = vmatprep.subr.bf16.mxu0 %v3653_v49 }
 0x13f   : > { %3186 = vmatprep.subr.bf16.mxu1 %v3653_v49 }
 0x141   : > { %2534 = vmatpush2.bf16.msra.mxu0 %v3651_v51 }
 0x142   : > { %3202 = vmatpush2.bf16.msra.mxu1 %v3651_v51  ;;  %2535 = vmatprep.subr.bf16.mxu0 %v3656_v57 }
 0x143   : > { %3187 = vmatprep.subr.bf16.mxu1 %v3656_v57 }
 0x145   : > { %2536 = vmatpush2.bf16.msra.mxu0 %v3654_v60 }
 0x146   : > { %3203 = vmatpush2.bf16.msra.mxu1 %v3654_v60  ;;  %2537 = vmatprep.subr.bf16.mxu0 %v3659_v61 }
 0x147   : > { %3188 = vmatprep.subr.bf16.mxu1 %v3659_v61 }
 0x149   : > { %2538 = vmatpush2.bf16.msra.mxu0 %v3657_v52 }
 0x14a   : > { %3204 = vmatpush2.bf16.msra.mxu1 %v3657_v52 }
 0x14c   : > { %v1147_v16 = vpop.f32.mrf.mxu0  ;;  %2540 = vmatmul.mubr.bf16.vlgmr.msra.gmra.mxu0 %v1909_v7 }
 0x14d   : > { %v1678_v63 = vpop.f32.mrf.mxu1  ;;  %2550 = vmatmul.mubr.bf16.vlgmr.msra.gmra.mxu1 %v1908_v62  ;;  %v1148_v0 = vadd.f32 %v1147_v16, %v4599_v1 }
 0x14e   : > { %v1149_v8 = vpop.f32.mrf.mxu0 }
 0x14f   : > { %v1680_v21 = vpop.f32.mrf.mxu1  ;;  %v1679_v3 = vadd.f32 %v1678_v63, %v1148_v0  ;;  %v1150_v2 = vadd.f32 %v1149_v8, %v4607_v9 }
 0x150   : > { %v1151_v17 = vpop.f32.mrf.mxu0 }
 0x151   : > { %v1682_v4 = vpop.f32.mrf.mxu1  ;;  %v1681_v5 = vadd.f32 %v1680_v21, %v1150_v2  ;;  %v1152_v6 = vadd.f32 %v1151_v17, %v4615_v15 }
 0x152   : > { %v1153_v10 = vpop.f32.mrf.mxu0 }
 0x153   : > { %v1684_v11 = vpop.f32.mrf.mxu1  ;;  %v1683_v12 = vadd.f32 %v1682_v4, %v1152_v6  ;;  %v1154_v13 = vadd.f32 %v1153_v10, %v4623_v55  ;;  %v2566_v6 = vlaneseq }
 0x154   : > { %v1157_v14 = vpop.f32.mrf.mxu0 }
 0x155   : > { %v1688_v19 = vpop.f32.mrf.mxu1  ;;  %v1685_v20 = vadd.f32 %v1684_v11, %v1154_v13  ;;  %v1158_v1 = vadd.f32 %v1157_v14, %v4629_v54  ;;  %v2567_v10 = vshrl.u32 %v2566_v6, 7 }
 0x156   : > { %v1159_v53 = vpop.f32.mrf.mxu0 }
 0x157   : > { %v1690_v59 = vpop.f32.mrf.mxu1  ;;  %v1160_v18 = vadd.f32 %v1159_v53, %v4634_v26  ;;  %v1689_v9 = vadd.f32 %v1688_v19, %v1158_v1  ;;  %v2568_v11 = vsub.s32 0, %v2567_v10  ;;  %v2572_v13 = vsub.s32 1, %v2567_v10 }
 0x158   : > { %v1161_v58 = vpop.f32.mrf.mxu0 }
 0x159   : > { %v1692_v22 = vpop.f32.mrf.mxu1  ;;  %v1691_v50 = vadd.f32 %v1690_v59, %v1160_v18 }
 0x15a   : > { %v1162_v23 = vpop.f32.mrf.mxu0 }
 0x15b   : > { %v1693_v15 = vpop.f32.mrf.mxu1 }
 0x18c   : > { %v1729_v24 = vpop.f32.mrf.mxu0 }
 0x18d   : > { %v1780_v25 = vpop.f32.mrf.mxu1  ;;  %v1730_v27 = vadd.f32 %v1729_v24, %v1679_v3 }
 0x18e   : > { %v1731_v28 = vpop.f32.mrf.mxu0 }
 0x18f   : > { %v1782_v55 = vpop.f32.mrf.mxu1  ;;  %v1781_v29 = vadd.f32 %v1780_v25, %v1730_v27  ;;  %v1732_v31 = vadd.f32 %v1731_v28, %v1681_v5 }
 0x190   : > { %v1733_v32 = vpop.f32.mrf.mxu0 }
 0x191   : > { %v1784_v33 = vpop.f32.mrf.mxu1  ;;  %v1783_v54 = vadd.f32 %v1782_v55, %v1732_v31  ;;  %v1734_v34 = vadd.f32 %v1733_v32, %v1683_v12  ;;  %v2564_v12 = vld [vmem:[%s4732_s2] sm:$0x3] }
 0x192   : > { %v1735_v35 = vpop.f32.mrf.mxu0  ;;  %v2573_v22 = vrot.slane %v2564_v12, %v2572_v13 }
 0x193   : > { %v1786_v36 = vpop.f32.mrf.mxu1  ;;  %v4714_v26 = vadd.f32 %v1784_v33, %v1734_v34  ;;  %v1736_v37 = vadd.f32 %v1735_v35, %v1685_v20  ;;  %v2569_v20 = vrot.slane %v2564_v12, %v2568_v11 }
 0x194   : > { %v1739_v38 = vpop.f32.mrf.mxu0 }
 0x195   : > { %v1790_v39 = vpop.f32.mrf.mxu1  ;;  %v4716_v40 = vadd.f32 %v1786_v36, %v1736_v37  ;;  %v1740_v41 = vadd.f32 %v1739_v38, %v1689_v9 }
 0x196   : > { %v1741_v42 = vpop.f32.mrf.mxu0 }
 0x197   : > { %v1792_v43 = vpop.f32.mrf.mxu1  ;;  %v1742_v44 = vadd.f32 %v1741_v42, %v1691_v50  ;;  %v1791_v45 = vadd.f32 %v1790_v39, %v1740_v41 }
 0x198   : > { %v1743_v46 = vpop.f32.mrf.mxu0 }
 0x199   : > { %v1794_v47 = vpop.f32.mrf.mxu1  ;;  %v1793_v48 = vadd.f32 %v1792_v43, %v1742_v44 }
 0x19a   : > { %v1744_v49 = vpop.f32.mrf.mxu0 }
 0x19b   : > { %v1795_v51 = vpop.f32.mrf.mxu1 }
 0x1cc   : > { %v2439_v57 = vpop.f32.mrf.mxu0 }
 0x1cd   : > { %v2490_v60 = vpop.f32.mrf.mxu1 }
 0x1ce   : > { %v2491_v61 = vadd.f32 %v2490_v60, %v2439_v57  ;;  %v2441_v52 = vpop.f32.mrf.mxu0 }
 0x1cf   : > { %v2492_v56 = vpop.f32.mrf.mxu1 }
 0x1d0   : > { %v2443_v30 = vpop.f32.mrf.mxu0  ;;  %v2493_v53 = vadd.f32 %v2492_v56, %v2441_v52 }
 0x1d1   : > { %v2494_v62 = vpop.f32.mrf.mxu1 }
 0x1d2   : > { %v2495_v7 = vadd.f32 %v2494_v62, %v2443_v30  ;;  %v2445_v16 = vpop.f32.mrf.mxu0 }
 0x1d3   : > { %v2496_v63 = vpop.f32.mrf.mxu1 }
 0x1d4   : > { %v2449_v0 = vpop.f32.mrf.mxu0  ;;  %v2497_v34 = vadd.f32 %v2496_v63, %v2445_v16 }
 0x1d5   : > { %v2500_v8 = vpop.f32.mrf.mxu1 }
 0x1d6   : > { %v2451_v21 = vpop.f32.mrf.mxu0  ;;  %v2501_v14 = vadd.f32 %v2500_v8, %v2449_v0 }
 0x1d7   : > { %v2502_v3 = vpop.f32.mrf.mxu1 }
 0x1d8   : > { %v2453_v2 = vpop.f32.mrf.mxu0  ;;  %v2503_v59 = vadd.f32 %v2502_v3, %v2451_v21 }
 0x1d9   : > { %v2504_v17 = vpop.f32.mrf.mxu1 }
 0x1da   : > { %v2454_v4 = vpop.f32.mrf.mxu0 }
 0x1db   : > { %v2505_v5 = vpop.f32.mrf.mxu1 }
 0x20c   : > { %v2541_v19 = vpop.f32.mrf.mxu0 }
 0x20d   : > { %v2551_v1 = vpop.f32.mrf.mxu1  ;;  %v2542_v18 = vadd.f32 %v2541_v19, %v2491_v61 }
 0x20e   : > { %v2552_v9 = vadd.f32 %v2551_v1, %v2501_v14  ;;  %v2543_v58 = vpop.f32.mrf.mxu0 }
 0x20f   : > { %v2553_v50 = vpop.f32.mrf.mxu1  ;;  %v2558_v23 = vadd.f32 %v2542_v18, %v1781_v29  ;;  %v2544_v24 = vadd.f32 %v2543_v58, %v2493_v53 }
 0x210   : > { %v2562_v15 = vadd.f32 %v2552_v9, %v1791_v45  ;;  %v2554_v25 = vadd.f32 %v2553_v50, %v2503_v59  ;;  %v2545_v27 = vpop.f32.mrf.mxu0 }
 0x211   : > { %v2555_v28 = vpop.f32.mrf.mxu1  ;;  %v2576_v55 = vadd.f32 %v2569_v20, %v2558_v23  ;;  %v2559_v32 = vadd.f32 %v2544_v24, %v1783_v54  ;;  %v2546_v35 = vadd.f32 %v2545_v27, %v2495_v7 }
 0x212   : > { %v2580_v31 = vadd.f32 %v2569_v20, %v2562_v15  ;;  %v2563_v33 = vadd.f32 %v2554_v25, %v1793_v48  ;;  %v2547_v36 = vpop.f32.mrf.mxu0 }
 0x213   : > { %v2556_v37 = vpop.f32.mrf.mxu1  ;;  %v2577_v38 = vadd.f32 %v2573_v22, %v2559_v32  ;;  %v2560_v41 = vadd.f32 %v2546_v35, %v4714_v26  ;;  %v2548_v42 = vadd.f32 %v2547_v36, %v2497_v34  ;;  %v2582_v29 = vmax.f32 %v2576_v55, 0.0 }
 0x214   : > { %v2581_v39 = vadd.f32 %v2573_v22, %v2563_v33  ;;  %v2586_v43 = vmax.f32 %v2580_v31, 0.0 }
 0x215   : > { %v2583_v44 = vmax.f32 %v2577_v38, 0.0  ;;  %v2578_v54 = vadd.f32 %v2569_v20, %v2560_v41  ;;  %v2561_v46 = vadd.f32 %v2548_v42, %v4716_v40 }
 0x216   : > { %v2587_v45 = vmax.f32 %v2581_v39, 0.0 }
 0x217   : > { %v3170_v47 = vpack.c.bf16 %v2583_v44, %v2582_v29  ;;  %v2579_v49 = vadd.f32 %v2573_v22, %v2561_v46  ;;  %v2584_v51 = vmax.f32 %v2578_v54, 0.0 }
 0x218   : > { %v3172_v48 = vpack.c.bf16 %v2587_v45, %v2586_v43 }
 0x219   : > { %2608 = vst [vmem:[%s170_s18] sm:$0xff] %v3170_v47  ;;  %v2585_v57 = vmax.f32 %v2579_v49, 0.0 }
 0x21a   : > { %2610 = vst [vmem:[%s170_s18 + $0x10] sm:$0xff] %v3172_v48 }
 0x21b   : > { %v3171_v26 = vpack.c.bf16 %v2585_v57, %v2584_v51 }
 0x21d   : > { %2609 = vst [vmem:[%s170_s18 + $0x8] sm:$0xff] %v3171_v26 }
 0x21e PF: > { %s13_s12 = sadd.s32 1, %s3668_s12  }
 0x21f   : > { %p10_p4 = scmp.ge.s32.totalorder %s13_s12, 4  }
 0x221   :  { %12 = sbr.rel (!%p10_p4) target bundleno = 1 (0x1), region = 64 }

</bundles_post_ra>
